<compile_context>
chip_gen: v5e
topology: v5e:2x2
jax: 0.10.0
libtpu: 0.0.40
codegen_flags: <defaults>
</compile_context>

<pallas_src>
import functools
import inspect

import jax
import jax.numpy as jnp
from jax.experimental import pallas as pl
from jax.experimental.pallas import tpu as pltpu

# Layer sizes of the nn.Sequential in DenseModel.
LAYER_DIMS = [2, 1024, 512, 256, 128, 64, 64, 64, 3]
NUM_LAYERS = len(LAYER_DIMS) - 1          # 8 Linear layers
IN_DIM = LAYER_DIMS[0]
OUT_DIM = LAYER_DIMS[-1]
# Lane-dense (>=128) padded widths for every activation except the (N, 2) input.
PADDED_DIMS = [2, 1024, 512, 256, 128, 128, 128, 128, 128]
PADDED_OUT = PADDED_DIMS[-1]


def _supports_single_buffered():
    """One-time capability check for pl.Buffered(1) via pipeline_mode."""
    if not hasattr(pl, "Buffered"):
        return False
    try:
        sig = inspect.signature(pl.BlockSpec)
        return "pipeline_mode" in sig.parameters
    except (TypeError, ValueError):
        return False


_SINGLE_BUFFER_WEIGHTS = _supports_single_buffered()


def _const_spec(shape):
    """BlockSpec for a grid-invariant (fully VMEM-resident) parameter."""
    ndim = len(shape)
    index_map = lambda i: (0,) * ndim
    if _SINGLE_BUFFER_WEIGHTS:
        # Constant index_map -> no re-fetch across grid steps; single buffer
        # halves the (already small) weight VMEM footprint.
        return pl.BlockSpec(shape, index_map, pipeline_mode=pl.Buffered(1))
    return pl.BlockSpec(shape, index_map)


def _mlp_kernel(x_ref, *refs, use_bf16, bf16_elementwise):
    """Fused 8-layer MLP forward for one tile of batch rows.

    refs = (w1, b1, ..., w8, b8, o_ref). Weights are (in, out); hidden /
    output widths are zero-padded to lane-dense sizes. ReLU after every layer
    except the last.
    """
    param_refs = refs[:-1]
    o_ref = refs[-1]

    x = x_ref[...].astype(jnp.float32)        # (B, 2)
    w1 = param_refs[0][...]                   # (2, 1024) f32
    b1 = param_refs[1][...]                   # (1, 1024) f32

    # Layer 0: K=2 contraction as two broadcast FMAs on the VPU (an MXU push
    # for K=2 would waste a full systolic pass).
    h = x[:, 0:1] * w1[0:1, :] + x[:, 1:2] * w1[1:2, :] + b1
    h = jnp.maximum(h, 0.0)

    for layer in range(1, NUM_LAYERS):
        w = param_refs[2 * layer][...]        # bf16 if use_bf16 else f32
        b = param_refs[2 * layer + 1][...]    # (1, out), dtype set in prep
        lhs = h.astype(w.dtype)
        acc = jnp.dot(lhs, w, preferred_element_type=jnp.float32)
        if layer == NUM_LAYERS - 1:
            o_ref[...] = (acc + b.astype(jnp.float32)).astype(o_ref.dtype)
        elif use_bf16 and bf16_elementwise:
            # bf16 bias-add + ReLU: halves VPU work / vreg pressure and feeds
            # the next matmul's LHS directly. (On v5e this still lowers; the
            # win is on v6e/v7x which have bf16 VALUs.)
            h = jnp.maximum(acc.astype(jnp.bfloat16) + b, 0)
        else:
            h = jnp.maximum(acc + b.astype(jnp.float32), 0.0)


def prep_params(params, *, use_bf16=True, bf16_elementwise=True):
    """One-time parameter prep: zero-pad to lane-dense widths, cast, reshape.

    params: list of (W, b) with W: (in, out), b: (out,), PyTorch layout
            transposed to (in, out).
    Returns a flat tuple (w1, b1, ..., w8, b8) of device-ready arrays.
    """
    flat = []
    for i, (w, b) in enumerate(params):
        w = jnp.asarray(w, jnp.float32)
        b = jnp.asarray(b, jnp.float32)
        in_d, out_d = LAYER_DIMS[i], LAYER_DIMS[i + 1]
        pin, pout = PADDED_DIMS[i], PADDED_DIMS[i + 1]
        assert w.shape == (in_d, out_d) and b.shape == (out_d,)
        if (pin, pout) != (in_d, out_d):
            w = jnp.pad(w, ((0, pin - in_d), (0, pout - out_d)))
        if pout != out_d:
            b = jnp.pad(b, (0, pout - out_d))
        if i == 0:
            pass                                  # f32 VPU path
        elif i == NUM_LAYERS - 1:
            if use_bf16:
                w = w.astype(jnp.bfloat16)        # bias stays f32
        else:
            if use_bf16:
                w = w.astype(jnp.bfloat16)
                if bf16_elementwise:
                    b = b.astype(jnp.bfloat16)
        flat.append(w)
        flat.append(b.reshape(1, -1))
    return tuple(flat)


def _choose_block_rows(n, max_block_rows):
    """Largest multiple-of-8 tile <= max_block_rows with >= 2 grid steps."""
    half = -(-n // 2)                 # ceil(n / 2)
    half = -(-half // 8) * 8          # round up to multiple of 8 (sublane)
    return max(8, min(max_block_rows, half))


def make_dense_model(params, *, use_bf16=True, bf16_elementwise=True,
                     max_block_rows=1024):
    """Build a jitted forward(x) for DenseModel backed by one fused kernel.

    Parameter prep happens exactly once here; the returned callable only
    dispatches the (cached-per-shape) pallas_call.
    """
    flat_params = prep_params(params, use_bf16=use_bf16,
                              bf16_elementwise=bf16_elementwise)

    kernel = functools.partial(_mlp_kernel, use_bf16=use_bf16,
                               bf16_elementwise=bf16_elementwise)

    bytes_params = sum(int(p.size) * p.dtype.itemsize for p in flat_params)
    flops_per_row = 2 * sum(PADDED_DIMS[i] * PADDED_DIMS[i + 1]
                            for i in range(NUM_LAYERS))

    def _forward_impl(x, flat):
        n = x.shape[0]
        block_rows = _choose_block_rows(n, max_block_rows)
        n_pad = pl.cdiv(n, block_rows) * block_rows
        if n_pad != n:                      # ragged batch -> zero-pad rows
            x = jnp.pad(x, ((0, n_pad - n), (0, 0)))
        grid = (n_pad // block_rows,)

        in_specs = [pl.BlockSpec((block_rows, IN_DIM), lambda i: (i, 0))]
        for p in flat:
            in_specs.append(_const_spec(p.shape))
        out_spec = pl.BlockSpec((block_rows, PADDED_OUT), lambda i: (i, 0))

        cost = pl.CostEstimate(
            flops=flops_per_row * n_pad,
            transcendentals=0,
            bytes_accessed=bytes_params + n_pad * IN_DIM * 4
                           + n_pad * PADDED_OUT * 4)

        out_padded = pl.pallas_call(
            kernel,
            out_shape=jax.ShapeDtypeStruct((n_pad, PADDED_OUT), jnp.float32),
            grid_spec=pltpu.PrefetchScalarGridSpec(
                num_scalar_prefetch=0,
                grid=grid,
                in_specs=in_specs,
                out_specs=out_spec,
            ),
            compiler_params=pltpu.CompilerParams(
                dimension_semantics=("parallel",),
                vmem_limit_bytes=40 << 20,
            ),
            cost_estimate=cost,
        )(x, *flat)
        return out_padded[:n, :OUT_DIM]

    jitted = jax.jit(_forward_impl)

    def forward(x):
        return jitted(x, flat_params)

    return forward


def init_params(key):
    """PyTorch nn.Linear default init: U(-1/sqrt(fan_in), +1/sqrt(fan_in))."""
    params = []
    for i in range(NUM_LAYERS):
        fan_in, fan_out = LAYER_DIMS[i], LAYER_DIMS[i + 1]
        key, kw, kb = jax.random.split(key, 3)
        bound = 1.0 / jnp.sqrt(jnp.float32(fan_in))
        w = jax.random.uniform(kw, (fan_in, fan_out), jnp.float32, -bound, bound)
        b = jax.random.uniform(kb, (fan_out,), jnp.float32, -bound, bound)
        params.append((w, b))
    return params


def reference_forward(x, params, *, use_bf16=True, bf16_elementwise=True):
    """Pure-JAX reference matching the kernel's casting behaviour."""
    h = jnp.asarray(x, jnp.float32)
    for i, (w, b) in enumerate(params):
        w = jnp.asarray(w, jnp.float32)
        b = jnp.asarray(b, jnp.float32)
        if i == 0:
            h = jnp.dot(h, w, preferred_element_type=jnp.float32) + b
            h = jnp.maximum(h, 0.0)
            continue
        lhs = h.astype(jnp.bfloat16) if use_bf16 else h
        rhs = w.astype(jnp.bfloat16) if use_bf16 else w
        acc = jnp.dot(lhs, rhs, preferred_element_type=jnp.float32)
        if i == NUM_LAYERS - 1:
            h = acc + b
        elif use_bf16 and bf16_elementwise:
            h = jnp.maximum(acc.astype(jnp.bfloat16) + b.astype(jnp.bfloat16),
                            0).astype(jnp.float32)
        else:
            h = jnp.maximum(acc + b, 0.0)
    return h


if __name__ == "__main__":
    key = jax.random.PRNGKey(0)
    key, kx = jax.random.split(key)

    # Ragged batch (not a multiple of 8) -> exercises row padding + a 2-step grid.
    N = 300
    x = jax.random.normal(kx, (N, IN_DIM), jnp.float32)
    params = init_params(key)

    forward = make_dense_model(params, use_bf16=True, bf16_elementwise=True)
    out = jax.block_until_ready(forward(x))
    assert out.shape == (N, OUT_DIM), out.shape

    # Check against a reference with identical bf16 casting (tolerance-close:
    # layer-0 summation order differs between the VPU FMA and jnp.dot).
    ref_matched = reference_forward(x, params, use_bf16=True,
                                    bf16_elementwise=True)
    err = float(jnp.max(jnp.abs(out - ref_matched)))
    assert jnp.allclose(out, ref_matched, atol=2e-2, rtol=2e-2), (
        f"mismatch vs bf16-matched reference: max abs err = {err}")

    # Loose sanity check against the pure-f32 reference (bf16-chain tolerance).
    ref_f32 = reference_forward(x, params, use_bf16=False)
    assert jnp.allclose(out, ref_f32, atol=1e-1, rtol=1e-1), (
        f"mismatch vs f32 reference: max abs err = "
        f"{float(jnp.max(jnp.abs(out - ref_f32)))}")

    print("KERNEL_OK")
</pallas_src>

<mosaic_0001>
module attributes {stable_mosaic.version = 11 : i64} {
  func.func @_mlp_kernel(%arg0: i32, %arg1: memref<152x2xf32, #tpu.memory_space<vmem>>, %arg2: memref<2x1024xf32, #tpu.memory_space<vmem>>, %arg3: memref<1x1024xf32, #tpu.memory_space<vmem>>, %arg4: memref<1024x512xbf16, #tpu.memory_space<vmem>>, %arg5: memref<1x512xbf16, #tpu.memory_space<vmem>>, %arg6: memref<512x256xbf16, #tpu.memory_space<vmem>>, %arg7: memref<1x256xbf16, #tpu.memory_space<vmem>>, %arg8: memref<256x128xbf16, #tpu.memory_space<vmem>>, %arg9: memref<1x128xbf16, #tpu.memory_space<vmem>>, %arg10: memref<128x128xbf16, #tpu.memory_space<vmem>>, %arg11: memref<1x128xbf16, #tpu.memory_space<vmem>>, %arg12: memref<128x128xbf16, #tpu.memory_space<vmem>>, %arg13: memref<1x128xbf16, #tpu.memory_space<vmem>>, %arg14: memref<128x128xbf16, #tpu.memory_space<vmem>>, %arg15: memref<1x128xbf16, #tpu.memory_space<vmem>>, %arg16: memref<128x128xbf16, #tpu.memory_space<vmem>>, %arg17: memref<1x128xf32, #tpu.memory_space<vmem>>, %arg18: memref<152x128xf32, #tpu.memory_space<vmem>>) attributes {dimension_semantics = [#tpu.dimension_semantics<parallel>], iteration_bounds = array<i64: 2>, scalar_prefetch = 0 : i64, scratch_operands = 0 : i64, tpu.core_type = #tpu.core_type<tc>, window_params = [{transform_indices = @transform_0, window_bounds = array<i64: 152, 2>}, {pipeline_mode = #tpu.pipeline_mode<synchronous>, transform_indices = @transform_1, window_bounds = array<i64: 2, 1024>}, {pipeline_mode = #tpu.pipeline_mode<synchronous>, transform_indices = @transform_2, window_bounds = array<i64: 1, 1024>}, {pipeline_mode = #tpu.pipeline_mode<synchronous>, transform_indices = @transform_3, window_bounds = array<i64: 1024, 512>}, {pipeline_mode = #tpu.pipeline_mode<synchronous>, transform_indices = @transform_4, window_bounds = array<i64: 1, 512>}, {pipeline_mode = #tpu.pipeline_mode<synchronous>, transform_indices = @transform_5, window_bounds = array<i64: 512, 256>}, {pipeline_mode = #tpu.pipeline_mode<synchronous>, transform_indices = @transform_6, window_bounds = array<i64: 1, 256>}, {pipeline_mode = #tpu.pipeline_mode<synchronous>, transform_indices = @transform_7, window_bounds = array<i64: 256, 128>}, {pipeline_mode = #tpu.pipeline_mode<synchronous>, transform_indices = @transform_8, window_bounds = array<i64: 1, 128>}, {pipeline_mode = #tpu.pipeline_mode<synchronous>, transform_indices = @transform_9, window_bounds = array<i64: 128, 128>}, {pipeline_mode = #tpu.pipeline_mode<synchronous>, transform_indices = @transform_10, window_bounds = array<i64: 1, 128>}, {pipeline_mode = #tpu.pipeline_mode<synchronous>, transform_indices = @transform_11, window_bounds = array<i64: 128, 128>}, {pipeline_mode = #tpu.pipeline_mode<synchronous>, transform_indices = @transform_12, window_bounds = array<i64: 1, 128>}, {pipeline_mode = #tpu.pipeline_mode<synchronous>, transform_indices = @transform_13, window_bounds = array<i64: 128, 128>}, {pipeline_mode = #tpu.pipeline_mode<synchronous>, transform_indices = @transform_14, window_bounds = array<i64: 1, 128>}, {pipeline_mode = #tpu.pipeline_mode<synchronous>, transform_indices = @transform_15, window_bounds = array<i64: 128, 128>}, {pipeline_mode = #tpu.pipeline_mode<synchronous>, transform_indices = @transform_16, window_bounds = array<i64: 1, 128>}, {transform_indices = @transform_17, window_bounds = array<i64: 152, 128>}]} {
    %c0 = arith.constant 0 : index
    %c0_0 = arith.constant 0 : index
    %0 = vector.load %arg1[%c0, %c0_0] : memref<152x2xf32, #tpu.memory_space<vmem>>, vector<152x2xf32>
    %c0_1 = arith.constant 0 : index
    %c0_2 = arith.constant 0 : index
    %1 = vector.load %arg2[%c0_1, %c0_2] : memref<2x1024xf32, #tpu.memory_space<vmem>>, vector<2x1024xf32>
    %c0_3 = arith.constant 0 : index
    %c0_4 = arith.constant 0 : index
    %2 = vector.load %arg3[%c0_3, %c0_4] : memref<1x1024xf32, #tpu.memory_space<vmem>>, vector<1x1024xf32>
    %3 = vector.extract_strided_slice %0 {offsets = [0, 0], sizes = [152, 1], strides = [1, 1]} : vector<152x2xf32> to vector<152x1xf32>
    %4 = vector.extract_strided_slice %1 {offsets = [0, 0], sizes = [1, 1024], strides = [1, 1]} : vector<2x1024xf32> to vector<1x1024xf32>
    %5 = vector.broadcast %3 : vector<152x1xf32> to vector<152x1024xf32>
    %6 = vector.broadcast %4 : vector<1x1024xf32> to vector<152x1024xf32>
    %7 = arith.mulf %5, %6 : vector<152x1024xf32>
    %8 = vector.extract_strided_slice %0 {offsets = [0, 1], sizes = [152, 1], strides = [1, 1]} : vector<152x2xf32> to vector<152x1xf32>
    %9 = vector.extract_strided_slice %1 {offsets = [1, 0], sizes = [1, 1024], strides = [1, 1]} : vector<2x1024xf32> to vector<1x1024xf32>
    %10 = vector.broadcast %8 : vector<152x1xf32> to vector<152x1024xf32>
    %11 = vector.broadcast %9 : vector<1x1024xf32> to vector<152x1024xf32>
    %12 = arith.mulf %10, %11 : vector<152x1024xf32>
    %13 = arith.addf %7, %12 : vector<152x1024xf32>
    %14 = vector.broadcast %2 : vector<1x1024xf32> to vector<152x1024xf32>
    %15 = arith.addf %13, %14 : vector<152x1024xf32>
    %cst = arith.constant 0.000000e+00 : f32
    %16 = vector.broadcast %cst : f32 to vector<152x1024xf32>
    %17 = arith.maximumf %15, %16 : vector<152x1024xf32>
    %c0_5 = arith.constant 0 : index
    %c0_6 = arith.constant 0 : index
    %18 = vector.load %arg4[%c0_5, %c0_6] : memref<1024x512xbf16, #tpu.memory_space<vmem>>, vector<1024x512xbf16>
    %c0_7 = arith.constant 0 : index
    %c0_8 = arith.constant 0 : index
    %19 = vector.load %arg5[%c0_7, %c0_8] : memref<1x512xbf16, #tpu.memory_space<vmem>>, vector<1x512xbf16>
    %20 = arith.truncf %17 : vector<152x1024xf32> to vector<152x1024xbf16>
    %cst_9 = arith.constant dense<0.000000e+00> : vector<152x512xf32>
    %21 = tpu.matmul %20, %18, %cst_9 {dimension_numbers = #tpu.dot_dimension_numbers<[1], [0], [0], [1], [0, 0, 1, 1], [], []>} : vector<152x1024xbf16>, vector<1024x512xbf16>, vector<152x512xf32> -> vector<152x512xf32>
    %22 = arith.truncf %21 : vector<152x512xf32> to vector<152x512xbf16>
    %23 = vector.broadcast %19 : vector<1x512xbf16> to vector<152x512xbf16>
    %24 = arith.addf %22, %23 : vector<152x512xbf16>
    %cst_10 = arith.constant 0.000000e+00 : bf16
    %25 = vector.broadcast %cst_10 : bf16 to vector<152x512xbf16>
    %26 = arith.maximumf %24, %25 : vector<152x512xbf16>
    %c0_11 = arith.constant 0 : index
    %c0_12 = arith.constant 0 : index
    %27 = vector.load %arg6[%c0_11, %c0_12] : memref<512x256xbf16, #tpu.memory_space<vmem>>, vector<512x256xbf16>
    %c0_13 = arith.constant 0 : index
    %c0_14 = arith.constant 0 : index
    %28 = vector.load %arg7[%c0_13, %c0_14] : memref<1x256xbf16, #tpu.memory_space<vmem>>, vector<1x256xbf16>
    %cst_15 = arith.constant dense<0.000000e+00> : vector<152x256xf32>
    %29 = tpu.matmul %26, %27, %cst_15 {dimension_numbers = #tpu.dot_dimension_numbers<[1], [0], [0], [1], [0, 0, 1, 1], [], []>} : vector<152x512xbf16>, vector<512x256xbf16>, vector<152x256xf32> -> vector<152x256xf32>
    %30 = arith.truncf %29 : vector<152x256xf32> to vector<152x256xbf16>
    %31 = vector.broadcast %28 : vector<1x256xbf16> to vector<152x256xbf16>
    %32 = arith.addf %30, %31 : vector<152x256xbf16>
    %cst_16 = arith.constant 0.000000e+00 : bf16
    %33 = vector.broadcast %cst_16 : bf16 to vector<152x256xbf16>
    %34 = arith.maximumf %32, %33 : vector<152x256xbf16>
    %c0_17 = arith.constant 0 : index
    %c0_18 = arith.constant 0 : index
    %35 = vector.load %arg8[%c0_17, %c0_18] : memref<256x128xbf16, #tpu.memory_space<vmem>>, vector<256x128xbf16>
    %c0_19 = arith.constant 0 : index
    %c0_20 = arith.constant 0 : index
    %36 = vector.load %arg9[%c0_19, %c0_20] : memref<1x128xbf16, #tpu.memory_space<vmem>>, vector<1x128xbf16>
    %cst_21 = arith.constant dense<0.000000e+00> : vector<152x128xf32>
    %37 = tpu.matmul %34, %35, %cst_21 {dimension_numbers = #tpu.dot_dimension_numbers<[1], [0], [0], [1], [0, 0, 1, 1], [], []>} : vector<152x256xbf16>, vector<256x128xbf16>, vector<152x128xf32> -> vector<152x128xf32>
    %38 = arith.truncf %37 : vector<152x128xf32> to vector<152x128xbf16>
    %39 = vector.broadcast %36 : vector<1x128xbf16> to vector<152x128xbf16>
    %40 = arith.addf %38, %39 : vector<152x128xbf16>
    %cst_22 = arith.constant 0.000000e+00 : bf16
    %41 = vector.broadcast %cst_22 : bf16 to vector<152x128xbf16>
    %42 = arith.maximumf %40, %41 : vector<152x128xbf16>
    %c0_23 = arith.constant 0 : index
    %c0_24 = arith.constant 0 : index
    %43 = vector.load %arg10[%c0_23, %c0_24] : memref<128x128xbf16, #tpu.memory_space<vmem>>, vector<128x128xbf16>
    %c0_25 = arith.constant 0 : index
    %c0_26 = arith.constant 0 : index
    %44 = vector.load %arg11[%c0_25, %c0_26] : memref<1x128xbf16, #tpu.memory_space<vmem>>, vector<1x128xbf16>
    %cst_27 = arith.constant dense<0.000000e+00> : vector<152x128xf32>
    %45 = tpu.matmul %42, %43, %cst_27 {dimension_numbers = #tpu.dot_dimension_numbers<[1], [0], [0], [1], [0, 0, 1, 1], [], []>} : vector<152x128xbf16>, vector<128x128xbf16>, vector<152x128xf32> -> vector<152x128xf32>
    %46 = arith.truncf %45 : vector<152x128xf32> to vector<152x128xbf16>
    %47 = vector.broadcast %44 : vector<1x128xbf16> to vector<152x128xbf16>
    %48 = arith.addf %46, %47 : vector<152x128xbf16>
    %cst_28 = arith.constant 0.000000e+00 : bf16
    %49 = vector.broadcast %cst_28 : bf16 to vector<152x128xbf16>
    %50 = arith.maximumf %48, %49 : vector<152x128xbf16>
    %c0_29 = arith.constant 0 : index
    %c0_30 = arith.constant 0 : index
    %51 = vector.load %arg12[%c0_29, %c0_30] : memref<128x128xbf16, #tpu.memory_space<vmem>>, vector<128x128xbf16>
    %c0_31 = arith.constant 0 : index
    %c0_32 = arith.constant 0 : index
    %52 = vector.load %arg13[%c0_31, %c0_32] : memref<1x128xbf16, #tpu.memory_space<vmem>>, vector<1x128xbf16>
    %cst_33 = arith.constant dense<0.000000e+00> : vector<152x128xf32>
    %53 = tpu.matmul %50, %51, %cst_33 {dimension_numbers = #tpu.dot_dimension_numbers<[1], [0], [0], [1], [0, 0, 1, 1], [], []>} : vector<152x128xbf16>, vector<128x128xbf16>, vector<152x128xf32> -> vector<152x128xf32>
    %54 = arith.truncf %53 : vector<152x128xf32> to vector<152x128xbf16>
    %55 = vector.broadcast %52 : vector<1x128xbf16> to vector<152x128xbf16>
    %56 = arith.addf %54, %55 : vector<152x128xbf16>
    %cst_34 = arith.constant 0.000000e+00 : bf16
    %57 = vector.broadcast %cst_34 : bf16 to vector<152x128xbf16>
    %58 = arith.maximumf %56, %57 : vector<152x128xbf16>
    %c0_35 = arith.constant 0 : index
    %c0_36 = arith.constant 0 : index
    %59 = vector.load %arg14[%c0_35, %c0_36] : memref<128x128xbf16, #tpu.memory_space<vmem>>, vector<128x128xbf16>
    %c0_37 = arith.constant 0 : index
    %c0_38 = arith.constant 0 : index
    %60 = vector.load %arg15[%c0_37, %c0_38] : memref<1x128xbf16, #tpu.memory_space<vmem>>, vector<1x128xbf16>
    %cst_39 = arith.constant dense<0.000000e+00> : vector<152x128xf32>
    %61 = tpu.matmul %58, %59, %cst_39 {dimension_numbers = #tpu.dot_dimension_numbers<[1], [0], [0], [1], [0, 0, 1, 1], [], []>} : vector<152x128xbf16>, vector<128x128xbf16>, vector<152x128xf32> -> vector<152x128xf32>
    %62 = arith.truncf %61 : vector<152x128xf32> to vector<152x128xbf16>
    %63 = vector.broadcast %60 : vector<1x128xbf16> to vector<152x128xbf16>
    %64 = arith.addf %62, %63 : vector<152x128xbf16>
    %cst_40 = arith.constant 0.000000e+00 : bf16
    %65 = vector.broadcast %cst_40 : bf16 to vector<152x128xbf16>
    %66 = arith.maximumf %64, %65 : vector<152x128xbf16>
    %c0_41 = arith.constant 0 : index
    %c0_42 = arith.constant 0 : index
    %67 = vector.load %arg16[%c0_41, %c0_42] : memref<128x128xbf16, #tpu.memory_space<vmem>>, vector<128x128xbf16>
    %c0_43 = arith.constant 0 : index
    %c0_44 = arith.constant 0 : index
    %68 = vector.load %arg17[%c0_43, %c0_44] : memref<1x128xf32, #tpu.memory_space<vmem>>, vector<1x128xf32>
    %cst_45 = arith.constant dense<0.000000e+00> : vector<152x128xf32>
    %69 = tpu.matmul %66, %67, %cst_45 {dimension_numbers = #tpu.dot_dimension_numbers<[1], [0], [0], [1], [0, 0, 1, 1], [], []>} : vector<152x128xbf16>, vector<128x128xbf16>, vector<152x128xf32> -> vector<152x128xf32>
    %70 = vector.broadcast %68 : vector<1x128xf32> to vector<152x128xf32>
    %71 = arith.addf %69, %70 : vector<152x128xf32>
    %c0_46 = arith.constant 0 : index
    %c0_47 = arith.constant 0 : index
    %72 = vector.load %arg18[%c0_46, %c0_47] : memref<152x128xf32, #tpu.memory_space<vmem>>, vector<152x128xf32>
    tpu.vector_store %arg18[%c0_46, %c0_47], %71 {strides = array<i32>} : memref<152x128xf32, #tpu.memory_space<vmem>>, vector<152x128xf32>,
    return
  }
  func.func @transform_0(%arg0: i32) -> (i32, i32) {
    %c0_i32 = arith.constant 0 : i32
    %c0_i32_0 = arith.constant 0 : i32
    return %arg0, %c0_i32 : i32, i32
  }
  func.func @transform_1(%arg0: i32) -> (i32, i32) {
    %c0_i32 = arith.constant 0 : i32
    %c0_i32_0 = arith.constant 0 : i32
    %c0_i32_1 = arith.constant 0 : i32
    return %c0_i32, %c0_i32_0 : i32, i32
  }
  func.func @transform_2(%arg0: i32) -> (i32, i32) {
    %c0_i32 = arith.constant 0 : i32
    %c0_i32_0 = arith.constant 0 : i32
    %c0_i32_1 = arith.constant 0 : i32
    return %c0_i32, %c0_i32_0 : i32, i32
  }
  func.func @transform_3(%arg0: i32) -> (i32, i32) {
    %c0_i32 = arith.constant 0 : i32
    %c0_i32_0 = arith.constant 0 : i32
    %c0_i32_1 = arith.constant 0 : i32
    return %c0_i32, %c0_i32_0 : i32, i32
  }
  func.func @transform_4(%arg0: i32) -> (i32, i32) {
    %c0_i32 = arith.constant 0 : i32
    %c0_i32_0 = arith.constant 0 : i32
    %c0_i32_1 = arith.constant 0 : i32
    return %c0_i32, %c0_i32_0 : i32, i32
  }
  func.func @transform_5(%arg0: i32) -> (i32, i32) {
    %c0_i32 = arith.constant 0 : i32
    %c0_i32_0 = arith.constant 0 : i32
    %c0_i32_1 = arith.constant 0 : i32
    return %c0_i32, %c0_i32_0 : i32, i32
  }
  func.func @transform_6(%arg0: i32) -> (i32, i32) {
    %c0_i32 = arith.constant 0 : i32
    %c0_i32_0 = arith.constant 0 : i32
    %c0_i32_1 = arith.constant 0 : i32
    return %c0_i32, %c0_i32_0 : i32, i32
  }
  func.func @transform_7(%arg0: i32) -> (i32, i32) {
    %c0_i32 = arith.constant 0 : i32
    %c0_i32_0 = arith.constant 0 : i32
    %c0_i32_1 = arith.constant 0 : i32
    return %c0_i32, %c0_i32_0 : i32, i32
  }
  func.func @transform_8(%arg0: i32) -> (i32, i32) {
    %c0_i32 = arith.constant 0 : i32
    %c0_i32_0 = arith.constant 0 : i32
    %c0_i32_1 = arith.constant 0 : i32
    return %c0_i32, %c0_i32_0 : i32, i32
  }
  func.func @transform_9(%arg0: i32) -> (i32, i32) {
    %c0_i32 = arith.constant 0 : i32
    %c0_i32_0 = arith.constant 0 : i32
    %c0_i32_1 = arith.constant 0 : i32
    return %c0_i32, %c0_i32_0 : i32, i32
  }
  func.func @transform_10(%arg0: i32) -> (i32, i32) {
    %c0_i32 = arith.constant 0 : i32
    %c0_i32_0 = arith.constant 0 : i32
    %c0_i32_1 = arith.constant 0 : i32
    return %c0_i32, %c0_i32_0 : i32, i32
  }
  func.func @transform_11(%arg0: i32) -> (i32, i32) {
    %c0_i32 = arith.constant 0 : i32
    %c0_i32_0 = arith.constant 0 : i32
    %c0_i32_1 = arith.constant 0 : i32
    return %c0_i32, %c0_i32_0 : i32, i32
  }
  func.func @transform_12(%arg0: i32) -> (i32, i32) {
    %c0_i32 = arith.constant 0 : i32
    %c0_i32_0 = arith.constant 0 : i32
    %c0_i32_1 = arith.constant 0 : i32
    return %c0_i32, %c0_i32_0 : i32, i32
  }
  func.func @transform_13(%arg0: i32) -> (i32, i32) {
    %c0_i32 = arith.constant 0 : i32
    %c0_i32_0 = arith.constant 0 : i32
    %c0_i32_1 = arith.constant 0 : i32
    return %c0_i32, %c0_i32_0 : i32, i32
  }
  func.func @transform_14(%arg0: i32) -> (i32, i32) {
    %c0_i32 = arith.constant 0 : i32
    %c0_i32_0 = arith.constant 0 : i32
    %c0_i32_1 = arith.constant 0 : i32
    return %c0_i32, %c0_i32_0 : i32, i32
  }
  func.func @transform_15(%arg0: i32) -> (i32, i32) {
    %c0_i32 = arith.constant 0 : i32
    %c0_i32_0 = arith.constant 0 : i32
    %c0_i32_1 = arith.constant 0 : i32
    return %c0_i32, %c0_i32_0 : i32, i32
  }
  func.func @transform_16(%arg0: i32) -> (i32, i32) {
    %c0_i32 = arith.constant 0 : i32
    %c0_i32_0 = arith.constant 0 : i32
    %c0_i32_1 = arith.constant 0 : i32
    return %c0_i32, %c0_i32_0 : i32, i32
  }
  func.func @transform_17(%arg0: i32) -> (i32, i32) {
    %c0_i32 = arith.constant 0 : i32
    %c0_i32_0 = arith.constant 0 : i32
    return %arg0, %c0_i32 : i32, i32
  }
}

</mosaic_0001>

<bundles_post_ra>
// kernel: _forward_impl.1
= control target key start
LH: loop header
LB: loop body
LE: loop exit
PB: predicated region body
PF: predicated region fallthrough
CT: control target
= control target key end

     0   :  { %s13593_s0 = inlined_call_operand.vmem [shape: f32[304,2], index: 0, kind: input, shape index: {}]   ;;  %s13594_s1 = inlined_call_operand.vmem [shape: f32[2,1024], index: 1, kind: input, shape index: {}]   ;;  %s13595_s2 = inlined_call_operand.vmem [shape: f32[1,1024], index: 2, kind: input, shape index: {}]   ;;  %s13596_s3 = inlined_call_operand.hbm [shape: bf16[1024,512], index: 3, kind: input, shape index: {}]   ;;  %s13597_s4 = inlined_call_operand.hbm [shape: bf16[1,512], index: 4, kind: input, shape index: {}]   ;;  %s13598_s5 = inlined_call_operand.vmem [shape: bf16[512,256], index: 5, kind: input, shape index: {}]   ;;  %s13599_s6 = inlined_call_operand.vmem [shape: bf16[1,256], index: 6, kind: input, shape index: {}]   ;;  %s13600_s7 = inlined_call_operand.vmem [shape: bf16[256,128], index: 7, kind: input, shape index: {}]   ;;  %s13601_s8 = inlined_call_operand.vmem [shape: bf16[1,128], index: 8, kind: input, shape index: {}]   ;;  %s13602_s9 = inlined_call_operand.vmem [shape: bf16[128,128], index: 9, kind: input, shape index: {}]   ;;  %s13603_s10 = inlined_call_operand.vmem [shape: bf16[1,128], index: 10, kind: input, shape index: {}]   ;;  %s13604_s11 = inlined_call_operand.vmem [shape: bf16[128,128], index: 11, kind: input, shape index: {}]   ;;  %s13605_s12 = inlined_call_operand.vmem [shape: bf16[1,128], index: 12, kind: input, shape index: {}]   ;;  %s13606_s13 = inlined_call_operand.vmem [shape: bf16[128,128], index: 13, kind: input, shape index: {}]   ;;  %s13607_s14 = inlined_call_operand.vmem [shape: bf16[1,128], index: 14, kind: input, shape index: {}]   ;;  %s13608_s15 = inlined_call_operand.vmem [shape: bf16[128,128], index: 15, kind: input, shape index: {}]   ;;  %s13609_s16 = inlined_call_operand.vmem [shape: f32[1,128], index: 16, kind: input, shape index: {}]   ;;  %s13610_s17 = inlined_call_operand.vmem [shape: f32[304,128], index: 17, kind: output, shape index: {}]  }
   0x1   :  { %13859 = sst [smem:[#allocation99_spill]] %s13593_s0 }
   0x2   :  { %13860 = sst [smem:[#allocation100_spill]] %s13594_s1 }
   0x3   :  { %22 = vsyncpa [#allocation3], 0 }
   0x4   :  { %23 = vsyncpa [#allocation5], 0  ;;  %s10039_s24 = smov 0  }
   0x5 LB: > { %s439_s27 = sshll.u32 %s13596_s3, 4  ;;  %s7943_s28 = sadd.s32 4294967295, %s9941_s24   ;;  %s9941_s24 = sphi %s10039_s24, %s29_s24   ;;  %s440_s27 = int_to_ptr.hbm [resolvable:$true] %s439_s27 }
   0x6   : > { %p7945_p0 = scmp.ge.s32.totalorder %s9941_s24, 1  ;;  %p422_p1 = scmp.lt.s32.totalorder %s9941_s24, 3 }
   0x7   : > { %p10050_p2 = scmp.eq.s32.totalorder %s7943_s28, 0  ;;  %s9943_s30 = smov [#allocation2]  }
   0x8   : > { %p10054_p3 = pnand %p7945_p0, %p422_p1  ;;  %s441_s18 = sshll.u32 %s9943_s30, 4  ;;  %s442_s18 = int_to_ptr.vmem [resolvable:$true] %s441_s18 }
   0x9   : > { %s454_s20 = sshll.u32 %s13597_s4, 4  ;;  %s9944_s21 = smov [#allocation4]   ;;  %s455_s20 = int_to_ptr.hbm [resolvable:$true] %s454_s20 }
   0xa   : > { %p9820_p4 = pneg %p10054_p3  ;;  %s456_s22 = sshll.u32 %s9944_s21, 4  ;;  %s457_s22 = int_to_ptr.vmem [resolvable:$true] %s456_s22 }
   0xb   : > { %s9945_s23 = smov 256   ;;  %s9946_s25 = smov 16  }
   0xc   : > { %p9821_p5 = pnand %p10050_p2, %p9820_p4  ;;  %514 = sbr.rel (%p10054_p3) target bundleno = 2704 (0xa90), region = 88 }
   0xe   : > { %9823 = dma.hbm_to_vmem [thread:$0]  (!%p9821_p5), %s440_s27, 32768, %s442_s18, [#allocation3], %s9945_s23, %s9945_s23, %s9946_s25  }
   0xf   : > { %9826 = dma.hbm_to_vmem [thread:$0]  (!%p9821_p5), %s455_s20, 64, %s457_s22, [#allocation5]  }
  0x11   : > { %9932 = dma.done.wait (%p10050_p2), [#allocation3], 32768  }
  0x12   : > { %9934 = vsyncadd (%p10050_p2), [#allocation3], 4294934528 }
  0x13   : > { %9936 = dma.done.wait (%p10050_p2), [#allocation5], 64  }
  0x14   : > { %9938 = vsyncadd (%p10050_p2), [#allocation5], 4294967232  ;;  %s572_s26 = smul.u32 19, %s7943_s28  ;;  %v9947_v0 = vmov 1   ;;  %v9948_v1 = vmov 0   ;;  %s13863_s29 = sld [smem:[#allocation99_spill]] }
  0x15   : > { %9846 = vset.pattern.permute.xlu1 %v9947_v0  ;;  %9845 = vset.pattern.permute.xlu0 %v9948_v1  ;;  %v8068_v13 = vld [vmem:[#allocation2 + $0xe0] sm:$0xf]  ;;  %v9458_v14 = vld [vmem:[#allocation2 + $0xec] sm:$0xf0]  ;;  %s13865_s1 = sld [smem:[#allocation100_spill]] }
  0x16   : > { %p573_p6 = scmp.lt.s32.totalorder %s572_s26, 37  ;;  %9847 = vset.pattern.permute.xlu2 %v9948_v1  ;;  %v8196_v15 = vld [vmem:[#allocation2 + $0x1e0] sm:$0xf]  ;;  %v8069_v17 = vor.u32 %v9458_v14, %v8068_v13  ;;  %v9490_v18 = vld [vmem:[#allocation2 + $0x1ec] sm:$0xf0] }
  0x17   : > { %v8197_v19 = vor.u32 %v9490_v18, %v8196_v15  ;;  %v8052_v21 = vld [vmem:[#allocation2 + $0xc0] sm:$0xf]  ;;  %v9454_v22 = vld [vmem:[#allocation2 + $0xcc] sm:$0xf0] }
  0x18   : > { %s14338_s26 = smov (!%p573_p6, %s572_s26), 37  ;;  %9796 = vmatpush.bf16.msra.mxu2 %v8069_v17  ;;  %3221 = vmatpush.bf16.msra.mxu0 %v8069_v17  ;;  %v8180_v23 = vld [vmem:[#allocation2 + $0x1c0] sm:$0xf]  ;;  %v8053_v24 = vor.u32 %v9454_v22, %v8052_v21  ;;  %v9486_v25 = vld [vmem:[#allocation2 + $0x1cc] sm:$0xf0] }
  0x19   : > { %s7952_s27 = sshll.u32 %s14338_s26, 3  ;;  %9804 = vmatpush.bf16.msra.mxu3 %v8197_v19  ;;  %3279 = vmatpush.bf16.msra.mxu1 %v8197_v19  ;;  %v8036_v26 = vld [vmem:[#allocation2 + $0xa0] sm:$0xf]  ;;  %v9450_v27 = vld [vmem:[#allocation2 + $0xac] sm:$0xf0]  ;;  %v8181_v28 = vor.u32 %v9486_v25, %v8180_v23 }
  0x1a   : > { %s10086_s18 = scalar_lea.vmem %s13863_s29, %s7952_s27  ;;  %v8164_v29 = vld [vmem:[#allocation2 + $0x1a0] sm:$0xf]  ;;  %v9482_v30 = vld [vmem:[#allocation2 + $0x1ac] sm:$0xf0]  ;;  %v8037_v32 = vor.u32 %v9450_v27, %v8036_v26  ;;  %s13549_s28 = scalar_lea.vmem %s13610_s17, %s7952_s27 }
  0x1b   : > { %v594_v2 = vld [vmem:[%s10086_s18 + $0x50] sm:$0xff]  ;;  %v596_v3 = vld [vmem:[%s10086_s18 + $0x60] sm:$0xff]  ;;  %v595_v4 = vld [vmem:[%s10086_s18 + $0x58] sm:$0xff]  ;;  %v8165_v33 = vor.u32 %v9482_v30, %v8164_v29 }
  0x1c   : > { %920 = vperm.xlu1 %9846, %v594_v2   ;;  %658 = vperm.xlu0 %9845, %v594_v2   ;;  %v597_v5 = vld [vmem:[%s10086_s18 + $0x68] sm:$0xff]  ;;  %v598_v6 = vld [vmem:[%s10086_s18 + $0x70] sm:$0xff]  ;;  %v599_v7 = vld [vmem:[%s10086_s18 + $0x78] sm:$0xff] }
  0x1d   : > { %668 = vperm.xlu2 %9847, %v596_v3   ;;  %v600_v8 = vld [vmem:[%s10086_s18 + $0x80] sm:$0xff]  ;;  %v601_v9 = vld [vmem:[%s10086_s18 + $0x88] sm:$0xff]  ;;  %v602_v10 = vld [vmem:[%s10086_s18 + $0x90] sm:$0xff]  ;;  %9797 = vmatpush.bf16.msra.mxu2 %v8053_v24 }
  0x1e   : > { %v584_v11 = vld [vmem:[%s10086_s18] sm:$0xff]  ;;  %v585_v12 = vld [vmem:[%s10086_s18 + $0x8] sm:$0xff]  ;;  %v587_v16 = vld [vmem:[%s10086_s18 + $0x18] sm:$0xff]  ;;  %9805 = vmatpush.bf16.msra.mxu3 %v8181_v28  ;;  %3222 = vmatpush.bf16.msra.mxu0 %v8053_v24 }
  0x1f   : > { %v586_v20 = vld [vmem:[%s10086_s18 + $0x10] sm:$0xff]  ;;  %v588_v31 = vld [vmem:[%s10086_s18 + $0x20] sm:$0xff]  ;;  %3280 = vmatpush.bf16.msra.mxu1 %v8181_v28  ;;  %v8020_v34 = vld [vmem:[#allocation2 + $0x80] sm:$0xf] }
  0x20   : > { %v9446_v35 = vld [vmem:[#allocation2 + $0x8c] sm:$0xf0]  ;;  %v8148_v36 = vld [vmem:[#allocation2 + $0x180] sm:$0xf]  ;;  %v592_v42 = vld [vmem:[%s10086_s18 + $0x40] sm:$0xff] }
  0x21   : > { %9798 = vmatpush.bf16.msra.mxu2 %v8037_v32  ;;  %v8021_v37 = vor.u32 %v9446_v35, %v8020_v34  ;;  %v9478_v38 = vld [vmem:[#allocation2 + $0x18c] sm:$0xf0]  ;;  %v589_v41 = vld [vmem:[%s10086_s18 + $0x28] sm:$0xff]  ;;  %v590_v55 = vld [vmem:[%s10086_s18 + $0x30] sm:$0xff] }
  0x22   : > { %9806 = vmatpush.bf16.msra.mxu3 %v8165_v33  ;;  %v8149_v39 = vor.u32 %v9478_v38, %v8148_v36  ;;  %3223 = vmatpush.bf16.msra.mxu0 %v8037_v32  ;;  %v591_v40 = vld [vmem:[%s10086_s18 + $0x38] sm:$0xff]  ;;  %v8004_v43 = vld [vmem:[#allocation2 + $0x60] sm:$0xf]  ;;  %v10126_v13 = vld [vmem:[%s13865_s1] sm:$0xff] }
  0x23   : > { %3281 = vmatpush.bf16.msra.mxu1 %v8165_v33  ;;  %v9442_v44 = vld [vmem:[#allocation2 + $0x6c] sm:$0xf0]  ;;  %v8132_v45 = vld [vmem:[#allocation2 + $0x160] sm:$0xf]  ;;  %v703_v18 = vperm.slane %v10126_v13, 0  ;;  %v955_v19 = vperm.slane %v10126_v13, 1 }
  0x24   : > { %924 = vperm.xlu1 %9846, %v595_v4   ;;  %663 = vperm.xlu0 %9845, %v595_v4   ;;  %v8005_v46 = vor.u32 %v9442_v44, %v8004_v43  ;;  %v9474_v47 = vld [vmem:[#allocation2 + $0x16c] sm:$0xf0]  ;;  %v7988_v48 = vld [vmem:[#allocation2 + $0x40] sm:$0xf]  ;;  %v704_v22 = vperm.slane %v10126_v13, 2  ;;  %v956_v23 = vperm.slane %v10126_v13, 3 }
  0x25   : > { %673 = vperm.xlu2 %9847, %v597_v5   ;;  %9799 = vmatpush.bf16.msra.mxu2 %v8021_v37  ;;  %v8133_v49 = vor.u32 %v9474_v47, %v8132_v45  ;;  %v9438_v50 = vld [vmem:[#allocation2 + $0x4c] sm:$0xf0]  ;;  %v8116_v51 = vld [vmem:[#allocation2 + $0x140] sm:$0xf]  ;;  %v10137_v26 = vperm.slane %v703_v18, 0  ;;  %v10139_v27 = vperm.slane %v955_v19, 1 }
  0x26   : > { %9807 = vmatpush.bf16.msra.mxu3 %v8149_v39  ;;  %3224 = vmatpush.bf16.msra.mxu0 %v8021_v37  ;;  %v9470_v52 = vld [vmem:[#allocation2 + $0x14c] sm:$0xf0]  ;;  %v7989_v53 = vor.u32 %v9438_v50, %v7988_v48  ;;  %v7972_v56 = vld [vmem:[#allocation2 + $0x20] sm:$0xf]  ;;  %v10141_v28 = vperm.slane %v704_v22, 0 }
  0x27   : > { %3282 = vmatpush.bf16.msra.mxu1 %v8149_v39  ;;  %v8117_v54 = vor.u32 %v9470_v52, %v8116_v51  ;;  %v9434_v57 = vld [vmem:[#allocation2 + $0x2c] sm:$0xf0]  ;;  %v8100_v59 = vld [vmem:[#allocation2 + $0x120] sm:$0xf] }
  0x28   : > { %v7973_v58 = vor.u32 %v9434_v57, %v7972_v56  ;;  %v9466_v60 = vld [vmem:[#allocation2 + $0x12c] sm:$0xf0]  ;;  %v7956_v61 = vld [vmem:[#allocation2] sm:$0xf] }
  0x29   : > { %9800 = vmatpush.bf16.msra.mxu2 %v8005_v46  ;;  %v8101_v62 = vor.u32 %v9466_v60, %v8100_v59  ;;  %v9430_v63 = vld [vmem:[#allocation2 + $0xc] sm:$0xf0]  ;;  %v8084_v2 = vld [vmem:[#allocation2 + $0x100] sm:$0xf] }
  0x2a   : > { %9808 = vmatpush.bf16.msra.mxu3 %v8133_v49  ;;  %3225 = vmatpush.bf16.msra.mxu0 %v8005_v46  ;;  %v7957_v4 = vor.u32 %v9430_v63, %v7956_v61  ;;  %v8308_v14 = vld [vmem:[#allocation2 + $0x2c0] sm:$0xf]  ;;  %v9518_v15 = vld [vmem:[#allocation2 + $0x2cc] sm:$0xf0] }
  0x2b   : > { %3283 = vmatpush.bf16.msra.mxu1 %v8133_v49  ;;  %v593_v17 = vld [vmem:[%s10086_s18 + $0x48] sm:$0xff]  ;;  %v9550_v21 = vld [vmem:[#allocation2 + $0x3cc] sm:$0xf0] }
  0x2c   : > { %932 = vperm.xlu1 %9846, %v597_v5   ;;  %9848 = vset.pattern.permute.xlu0 %v9947_v0  ;;  %v8292_v35 = vld [vmem:[#allocation2 + $0x2a0] sm:$0xf]  ;;  %v9514_v36 = vld [vmem:[#allocation2 + $0x2ac] sm:$0xf0] }
  0x2d   : > { %928 = vperm.xlu0 %9848, %v596_v3   ;;  %678 = vperm.xlu2 %9847, %v598_v6   ;;  %v9462_v3 = vld [vmem:[#allocation2 + $0x10c] sm:$0xf0]  ;;  %v8420_v37 = vld [vmem:[#allocation2 + $0x3a0] sm:$0xf]  ;;  %v8293_v38 = vor.u32 %v9514_v36, %v8292_v35 }
  0x2e   : > { %9801 = vmatpush.bf16.msra.mxu2 %v7989_v53  ;;  %9809 = vmatpush.bf16.msra.mxu3 %v8117_v54  ;;  %v8085_v5 = vor.u32 %v9462_v3, %v8084_v2  ;;  %v9546_v39 = vld [vmem:[#allocation2 + $0x3ac] sm:$0xf0]  ;;  %v8260_v22 = vld [vmem:[#allocation2 + $0x260] sm:$0xf] }
  0x2f   : > { %3226 = vmatpush.bf16.msra.mxu0 %v7989_v53  ;;  %3284 = vmatpush.bf16.msra.mxu1 %v8117_v54  ;;  %v8276_v53 = vld [vmem:[#allocation2 + $0x280] sm:$0xf]  ;;  %v9510_v54 = vld [vmem:[#allocation2 + $0x28c] sm:$0xf0] }
  0x32   : > { %9802 = vmatpush.bf16.msra.mxu2 %v7973_v58  ;;  %9810 = vmatpush.bf16.msra.mxu3 %v8101_v62 }
  0x33   : > { %3227 = vmatpush.bf16.msra.mxu0 %v7973_v58  ;;  %3285 = vmatpush.bf16.msra.mxu1 %v8101_v62  ;;  %v8277_v58 = vor.u32 %v9510_v54, %v8276_v53 }
  0x34   : > { %9849 = vset.pattern.permute.xlu1 %v9948_v1 }
  0x35   : > { %683 = vperm.xlu1 %9849, %v599_v7   ;;  %940 = vperm.xlu0 %9848, %v599_v7   ;;  %v8324_v7 = vld [vmem:[#allocation2 + $0x2e0] sm:$0xf] }
  0x36   : > { %9850 = vset.pattern.permute.xlu2 %v9947_v0  ;;  %9803 = vmatpush.bf16.msra.mxu2 %v7957_v4 }
  0x37   : > { %936 = vperm.xlu2 %9850, %v598_v6   ;;  %9811 = vmatpush.bf16.msra.mxu3 %v8085_v5 }
  0x38   : > { %3228 = vmatpush.bf16.msra.mxu0 %v7957_v4  ;;  %3286 = vmatpush.bf16.msra.mxu1 %v8085_v5 }
  0x3d   : > { %688 = vperm.xlu1 %9849, %v600_v8   ;;  %944 = vperm.xlu0 %9848, %v600_v8   ;;  %v9522_v8 = vld [vmem:[#allocation2 + $0x2ec] sm:$0xf0] }
  0x3f   : > { %9851 = vset.pattern.permute.xlu2 %v9948_v1 }
  0x40   : > { %693 = vperm.xlu2 %9851, %v601_v9  }
  0x45   : > { %9852 = vset.pattern.permute.xlu1 %v9947_v0  ;;  %952 = vperm.xlu0 %9848, %v602_v10  }
  0x46   : > { %948 = vperm.xlu1 %9852, %v601_v9   ;;  %v8452_v9 = vld [vmem:[#allocation2 + $0x3e0] sm:$0xf] }
  0x48   : > { %698 = vperm.xlu2 %9851, %v602_v10   ;;  %v8325_v10 = vor.u32 %v9522_v8, %v8324_v7 }
  0x4a   : > { %3337 = vmatpush.bf16.msrb.mxu2 %v8325_v10 }
  0x4d   : > { %880 = vperm.xlu0 %9848, %v584_v11  }
  0x4e   : > { %9853 = vset.pattern.permute.xlu1 %v9948_v1 }
  0x4f   : > { %608 = vperm.xlu1 %9853, %v584_v11   ;;  %v9554_v11 = vld [vmem:[#allocation2 + $0x3ec] sm:$0xf0] }
  0x50   : > { %613 = vperm.xlu2 %9851, %v585_v12  }
  0x55   : > { %9855 = vset.pattern.permute.xlu0 %v9948_v1 }
  0x56   : > { %623 = vperm.xlu0 %9855, %v587_v16  }
  0x57   : > { %9854 = vset.pattern.permute.xlu1 %v9947_v0 }
  0x58   : > { %884 = vperm.xlu1 %9854, %v585_v12   ;;  %618 = vperm.xlu2 %9851, %v586_v20   ;;  %v8453_v12 = vor.u32 %v9554_v11, %v8452_v9 }
  0x5a   : > { %3395 = vmatpush.bf16.msrb.mxu3 %v8453_v12 }
  0x5e   : > { %9859 = vset.pattern.permute.xlu0 %v9947_v0 }
  0x5f   : > { %896 = vperm.xlu0 %9859, %v588_v31  }
  0x60   : > { %888 = vperm.xlu1 %9854, %v586_v20   ;;  %9856 = vset.pattern.permute.xlu2 %v9947_v0  ;;  %v8309_v20 = vor.u32 %v9518_v15, %v8308_v14 }
  0x61   : > { %892 = vperm.xlu2 %9856, %v587_v16   ;;  %v8436_v16 = vld [vmem:[#allocation2 + $0x3c0] sm:$0xf] }
  0x62   : > { %v8437_v24 = vor.u32 %v9550_v21, %v8436_v16  ;;  %3338 = vmatpush.bf16.msrb.mxu2 %v8309_v20  ;;  %v8404_v20 = vld [vmem:[#allocation2 + $0x380] sm:$0xf]  ;;  %v9542_v21 = vld [vmem:[#allocation2 + $0x38c] sm:$0xf0] }
  0x64   : > { %3396 = vmatpush.bf16.msrb.mxu3 %v8437_v24 }
  0x66   : > { %3339 = vmatpush.bf16.msrb.mxu2 %v8293_v38 }
  0x67   : > { %908 = vperm.xlu0 %9859, %v591_v40  }
  0x68   : > { %9857 = vset.pattern.permute.xlu1 %v9948_v1 }
  0x69   : > { %628 = vperm.xlu1 %9857, %v588_v31   ;;  %9858 = vset.pattern.permute.xlu2 %v9948_v1  ;;  %v10152_v31 = vld [vmem:[%s13595_s2] sm:$0xff] }
  0x6a   : > { %633 = vperm.xlu2 %9858, %v589_v41   ;;  %v10168_v45 = vperm.slane %v10152_v31, 1  ;;  %3340 = vmatpush.bf16.msrb.mxu2 %v8277_v58 }
  0x6f   : > { %912 = vperm.xlu0 %9859, %v592_v42  }
  0x71   : > { %9860 = vset.pattern.permute.xlu1 %v9947_v0 }
  0x72   : > { %900 = vperm.xlu1 %9860, %v589_v41   ;;  %638 = vperm.xlu2 %9858, %v590_v55  }
  0x77   : > { %v10121_v6 = vpop.permute.xlu2 %668 }
  0x78   : > { %13864 = vst [vmem:[#allocation8_spill] sm:$0xff] %v10121_v6  ;;  %v823_v14 = vmul.f32 %v10137_v26, %v10121_v6  ;;  %v824_v16 = vmul.f32 %v10141_v28, %v10121_v6  ;;  %v9678_v6 = vld [vmem:[#allocation2 + $0x7cc] sm:$0xf0] }
  0x7a   : > { %9861 = vset.pattern.permute.xlu1 %v9948_v1  ;;  %9862 = vset.pattern.permute.xlu2 %v9947_v0 }
  0x7b   : > { %643 = vperm.xlu1 %9861, %v591_v40   ;;  %904 = vperm.xlu2 %9862, %v590_v55   ;;  %v8421_v40 = vor.u32 %v9546_v39, %v8420_v37 }
  0x7d   : > { %3397 = vmatpush.bf16.msrb.mxu3 %v8421_v40 }
  0x7f   : > { %v10134_v25 = vpop.permute.xlu2 %673 }
  0x80   : > { %13866 = vst [vmem:[#allocation9_spill] sm:$0xff] %v10134_v25  ;;  %v831_v61 = vmul.f32 %v10137_v26, %v10134_v25  ;;  %v832_v62 = vmul.f32 %v10141_v28, %v10134_v25 }
  0x83   : > { %648 = vperm.xlu1 %9861, %v592_v42   ;;  %9863 = vset.pattern.permute.xlu2 %v9948_v1  ;;  %v10143_v1 = vperm.slane %v956_v23, 1  ;;  %v10163_v42 = vperm.slane %v10152_v31, 0 }
  0x84   : > { %653 = vperm.xlu2 %9863, %v593_v17  }
  0x87   : > { %v10165_v43 = vpop.permute.xlu2 %678 }
  0x88   : > { %13867 = vst [vmem:[#allocation10_spill] sm:$0xff] %v10165_v43 }
  0x8b   : > { %9864 = vset.pattern.permute.xlu1 %v9947_v0 }
  0x8c   : > { %916 = vperm.xlu1 %9864, %v593_v17  }
  0x8e   : > { %v10145_v29 = vpop.permute.xlu1 %920  ;;  %v10147_v30 = vpop.permute.xlu0 %658 }
  0x8f   : > { %v807_v0 = vmul.f32 %v10137_v26, %v10147_v30  ;;  %v1059_v32 = vmul.f32 %v10139_v27, %v10145_v29  ;;  %v808_v33 = vmul.f32 %v10141_v28, %v10147_v30  ;;  %v1060_v34 = vmul.f32 %v10143_v1, %v10145_v29 }
  0x91   : > { %v1211_v41 = vadd.f32 %v1059_v32, %v807_v0  ;;  %v1212_v44 = vadd.f32 %v1060_v34, %v808_v33  ;;  %v10202_v12 = vpop.permute.xlu2 %936  ;;  %v8405_v0 = vor.u32 %v9542_v21, %v8404_v20  ;;  %v9506_v32 = vld [vmem:[#allocation2 + $0x26c] sm:$0xf0]  ;;  %v8228_v20 = vld [vmem:[#allocation2 + $0x220] sm:$0xf] }
  0x92   : > { %13873 = vst [vmem:[#allocation16_spill] sm:$0xff] %v10202_v12  ;;  %v8261_v33 = vor.u32 %v9506_v32, %v8260_v22  ;;  %v9498_v22 = vld [vmem:[#allocation2 + $0x22c] sm:$0xf0] }
  0x93   : > { %v1380_v52 = vadd.f32 %v10163_v42, %v1211_v41  ;;  %v1381_v57 = vadd.f32 %v10168_v45, %v1212_v44  ;;  %3398 = vmatpush.bf16.msrb.mxu3 %v8405_v0  ;;  %v8229_v32 = vor.u32 %v9498_v22, %v8228_v20  ;;  %v8212_v20 = vld [vmem:[#allocation2 + $0x200] sm:$0xf] }
  0x94   : > { %3341 = vmatpush.bf16.msrb.mxu2 %v8261_v33  ;;  %v9530_v33 = vld [vmem:[#allocation2 + $0x32c] sm:$0xf0]  ;;  %v8340_v22 = vld [vmem:[#allocation2 + $0x300] sm:$0xf] }
  0x95   : > { %v1532_v63 = vmax.f32 %v1380_v52, 0.0  ;;  %v1533_v3 = vmax.f32 %v1381_v57, 0.0 }
  0x96   : > { %v10170_v46 = vpop.permute.xlu1 %924  ;;  %v10172_v47 = vpop.permute.xlu0 %663 }
  0x97   : > { %13868 = vst [vmem:[#allocation11_spill] sm:$0xff] %v10170_v46  ;;  %v815_v48 = vmul.f32 %v10137_v26, %v10172_v47  ;;  %v1067_v49 = vmul.f32 %v10139_v27, %v10170_v46  ;;  %v816_v50 = vmul.f32 %v10141_v28, %v10172_v47  ;;  %v1068_v51 = vmul.f32 %v10143_v1, %v10170_v46  ;;  %v8516_v46 = vld [vmem:[#allocation2 + $0x460] sm:$0xf] }
  0x99   : > { %v1219_v55 = vadd.f32 %v1067_v49, %v815_v48  ;;  %v1220_v56 = vadd.f32 %v1068_v51, %v816_v50  ;;  %v8388_v50 = vld [vmem:[#allocation2 + $0x360] sm:$0xf]  ;;  %v9538_v51 = vld [vmem:[#allocation2 + $0x36c] sm:$0xf0] }
  0x9a   : > { %v10222_v40 = vpop.permute.xlu2 %693  ;;  %v8389_v52 = vor.u32 %v9538_v51, %v8388_v50 }
  0x9b   : > { %v1388_v59 = vadd.f32 %v10163_v42, %v1219_v55  ;;  %v1389_v60 = vadd.f32 %v10168_v45, %v1220_v56  ;;  %13876 = vst [vmem:[#allocation19_spill] sm:$0xff] %v10222_v40 }
  0x9c   : > { %3399 = vmatpush.bf16.msrb.mxu3 %v8389_v52  ;;  %v863_v52 = vmul.f32 %v10137_v26, %v10222_v40 }
  0x9d   : > { %v1540_v2 = vmax.f32 %v1388_v59, 0.0  ;;  %v1541_v4 = vmax.f32 %v1389_v60, 0.0 }
  0x9e   : > { %v10190_v5 = vpop.permute.xlu1 %932 }
  0x9f   : > { %13869 = vst [vmem:[#allocation12_spill] sm:$0xff] %v10190_v5  ;;  %v10192_v7 = vpop.permute.xlu0 %928  ;;  %v10194_v8 = vpack.c.bf16 %v1540_v2, %v1532_v63  ;;  %v10196_v9 = vpack.c.bf16 %v1541_v4, %v1533_v3  ;;  %v1083_v10 = vmul.f32 %v10139_v27, %v10190_v5  ;;  %v1084_v11 = vmul.f32 %v10143_v1, %v10190_v5  ;;  %v8244_v4 = vld [vmem:[#allocation2 + $0x240] sm:$0xf] }
  0xa0   : > { %13870 = vst [vmem:[#allocation13_spill] sm:$0xff] %v10192_v7  ;;  %v1075_v15 = vmul.f32 %v10139_v27, %v10192_v7  ;;  %v1076_v17 = vmul.f32 %v10143_v1, %v10192_v7  ;;  %v840_v63 = vmul.f32 %v10141_v28, %v10165_v43  ;;  %v1092_v2 = vmul.f32 %v10143_v1, %v10202_v12  ;;  %v9582_v7 = vld [vmem:[#allocation2 + $0x4cc] sm:$0xf0] }
  0xa1   : > { %13871 = vst [vmem:[#allocation14_spill] sm:$0xff] %v10194_v8  ;;  %3254 = vmatmul.bf16.vlgmr.msra.gmra.mxu2 %v10194_v8  ;;  %3312 = vmatmul.bf16.vlgmr.msra.gmra.mxu3 %v10196_v9  ;;  %v1235_v18 = vadd.f32 %v1083_v10, %v831_v61  ;;  %v1236_v19 = vadd.f32 %v1084_v11, %v832_v62  ;;  %v9502_v10 = vld [vmem:[#allocation2 + $0x24c] sm:$0xf0] }
  0xa2   : > { %13872 = vst [vmem:[#allocation15_spill] sm:$0xff] %v10196_v9  ;;  %v1227_v23 = vadd.f32 %v1075_v15, %v823_v14  ;;  %v1228_v24 = vadd.f32 %v1076_v17, %v824_v16  ;;  %v839_v61 = vmul.f32 %v10137_v26, %v10165_v43  ;;  %v1091_v62 = vmul.f32 %v10139_v27, %v10202_v12  ;;  %v10250_v3 = vpop.permute.xlu2 %698  ;;  %v9618_v12 = vld [vmem:[#allocation2 + $0x5ec] sm:$0xf0]  ;;  %v8948_v43 = vld [vmem:[#allocation2 + $0x7c0] sm:$0xf] }
  0xa3   : > { %v1404_v34 = vadd.f32 %v10163_v42, %v1235_v18  ;;  %v1405_v35 = vadd.f32 %v10168_v45, %v1236_v19  ;;  %13881 = vst [vmem:[#allocation24_spill] sm:$0xff] %v10250_v3  ;;  %v8245_v15 = vor.u32 %v9502_v10, %v8244_v4  ;;  %v1244_v17 = vadd.f32 %v1092_v2, %v840_v63  ;;  %v8372_v18 = vld [vmem:[#allocation2 + $0x340] sm:$0xf]  ;;  %v9534_v19 = vld [vmem:[#allocation2 + $0x34c] sm:$0xf0] }
  0xa4   : > { %v1396_v36 = vadd.f32 %v10163_v42, %v1227_v23  ;;  %v1397_v37 = vadd.f32 %v10168_v45, %v1228_v24  ;;  %v1243_v16 = vadd.f32 %v1091_v62, %v839_v61  ;;  %v8373_v21 = vor.u32 %v9534_v19, %v8372_v18  ;;  %v8356_v23 = vld [vmem:[#allocation2 + $0x320] sm:$0xf] }
  0xa5   : > { %v1556_v41 = vmax.f32 %v1404_v34, 0.0  ;;  %v1557_v44 = vmax.f32 %v1405_v35, 0.0  ;;  %3342 = vmatpush.bf16.msrb.mxu2 %v8245_v15  ;;  %v8357_v35 = vor.u32 %v9530_v33, %v8356_v23  ;;  %v9526_v33 = vld [vmem:[#allocation2 + $0x30c] sm:$0xf0]  ;;  %v8949_v5 = vor.u32 %v9678_v6, %v8948_v43 }
  0xa6   : > { %v1548_v48 = vmax.f32 %v1396_v36, 0.0  ;;  %v1549_v49 = vmax.f32 %v1397_v37, 0.0  ;;  %3400 = vmatpush.bf16.msrb.mxu3 %v8373_v21  ;;  %v1412_v37 = vadd.f32 %v10163_v42, %v1243_v16  ;;  %v9494_v21 = vld [vmem:[#allocation2 + $0x20c] sm:$0xf0] }
  0xa7   : > { %v10218_v38 = vpop.permute.xlu1 %683  ;;  %v10220_v39 = vpop.permute.xlu0 %940 }
  0xa8   : > { %13874 = vst [vmem:[#allocation17_spill] sm:$0xff] %v10218_v38  ;;  %v10224_v53 = vpack.c.bf16 %v1556_v41, %v1548_v48  ;;  %v10226_v54 = vpack.c.bf16 %v1557_v44, %v1549_v49  ;;  %v847_v57 = vmul.f32 %v10137_v26, %v10218_v38  ;;  %v1099_v58 = vmul.f32 %v10139_v27, %v10220_v39 }
  0xa9   : > { %13875 = vst [vmem:[#allocation18_spill] sm:$0xff] %v10220_v39  ;;  %v848_v59 = vmul.f32 %v10141_v28, %v10218_v38  ;;  %v1100_v60 = vmul.f32 %v10143_v1, %v10220_v39  ;;  %v1413_v41 = vadd.f32 %v10168_v45, %v1244_v17  ;;  %3343 = vmatpush.bf16.msrb.mxu2 %v8229_v32  ;;  %v1564_v50 = vmax.f32 %v1412_v37, 0.0 }
  0xaa   : > { %13877 = vst [vmem:[#allocation20_spill] sm:$0xff] %v10224_v53  ;;  %v1251_v11 = vadd.f32 %v1099_v58, %v847_v57  ;;  %v10260_v49 = vpop.permute.xlu2 %613  ;;  %3401 = vmatpush.bf16.msrb.mxu3 %v8357_v35  ;;  %v864_v57 = vmul.f32 %v10141_v28, %v10222_v40  ;;  %v8213_v32 = vor.u32 %v9494_v21, %v8212_v20  ;;  %v8580_v40 = vld [vmem:[#allocation2 + $0x4e0] sm:$0xf] }
  0xab   : > { %13878 = vst [vmem:[#allocation21_spill] sm:$0xff] %v10226_v54  ;;  %v1252_v14 = vadd.f32 %v1100_v60, %v848_v59  ;;  %v1565_v51 = vmax.f32 %v1413_v41, 0.0  ;;  %v8341_v41 = vor.u32 %v9526_v33, %v8340_v22 }
  0xac   : > { %v1420_v24 = vadd.f32 %v10163_v42, %v1251_v11 }
  0xad   : > { %v1421_v0 = vadd.f32 %v10168_v45, %v1252_v14  ;;  %3344 = vmatpush.bf16.msrb.mxu2 %v8213_v32 }
  0xae   : > { %v1572_v44 = vmax.f32 %v1420_v24, 0.0  ;;  %3402 = vmatpush.bf16.msrb.mxu3 %v8341_v41 }
  0xaf   : > { %v10228_v55 = vpop.permute.xlu1 %688  ;;  %v10230_v56 = vpop.permute.xlu0 %944  ;;  %v1573_v48 = vmax.f32 %v1421_v0, 0.0 }
  0xb0   : > { %13879 = vst [vmem:[#allocation22_spill] sm:$0xff] %v10228_v55  ;;  %v10266_v58 = vpack.c.bf16 %v1572_v44, %v1564_v50  ;;  %v855_v62 = vmul.f32 %v10137_v26, %v10228_v55  ;;  %v1107_v63 = vmul.f32 %v10139_v27, %v10230_v56  ;;  %v856_v4 = vmul.f32 %v10141_v28, %v10228_v55 }
  0xb1   : > { %13880 = vst [vmem:[#allocation23_spill] sm:$0xff] %v10230_v56  ;;  %3259 = vmatmul.bf16.gmra.mxu2 %v10224_v53  ;;  %3317 = vmatmul.bf16.gmra.mxu3 %v10226_v54  ;;  %v10268_v59 = vpack.c.bf16 %v1573_v48, %v1565_v51  ;;  %v1108_v10 = vmul.f32 %v10143_v1, %v10230_v56  ;;  %v8708_v56 = vld [vmem:[#allocation2 + $0x5e0] sm:$0xf] }
  0xb2   : > { %13884 = vst [vmem:[#allocation27_spill] sm:$0xff] %v10266_v58  ;;  %v1259_v16 = vadd.f32 %v1107_v63, %v855_v62  ;;  %v10292_v23 = vpop.permute.xlu2 %618  ;;  %v872_v62 = vmul.f32 %v10141_v28, %v10250_v3 }
  0xb3   : > { %13885 = vst [vmem:[#allocation28_spill] sm:$0xff] %v10268_v59  ;;  %v1260_v19 = vadd.f32 %v1108_v10, %v856_v4 }
  0xb4   : > { %13886 = vst [vmem:[#allocation29_spill] sm:$0xff] %v10292_v23  ;;  %v1428_v44 = vadd.f32 %v10163_v42, %v1259_v16 }
  0xb5   : > { %v1429_v51 = vadd.f32 %v10168_v45, %v1260_v19 }
  0xb7   : > { %v10256_v36 = vpop.permute.xlu0 %952  ;;  %v1581_v19 = vmax.f32 %v1429_v51, 0.0 }
  0xb8   : > { %v10254_v34 = vpop.permute.xlu1 %948  ;;  %13883 = vst [vmem:[#allocation26_spill] sm:$0xff] %v10256_v36  ;;  %v1124_v22 = vmul.f32 %v10143_v1, %v10256_v36 }
  0xb9   : > { %13882 = vst [vmem:[#allocation25_spill] sm:$0xff] %v10254_v34  ;;  %v1115_v60 = vmul.f32 %v10139_v27, %v10254_v34  ;;  %v1116_v61 = vmul.f32 %v10143_v1, %v10254_v34 }
  0xbb   : > { %v1267_v14 = vadd.f32 %v1115_v60, %v863_v52  ;;  %v1268_v15 = vadd.f32 %v1116_v61, %v864_v57  ;;  %v735_v57 = vmul.f32 %v10137_v26, %v10260_v49  ;;  %v736_v60 = vmul.f32 %v10141_v28, %v10260_v49 }
  0xbc   : > { %v871_v61 = vmul.f32 %v10137_v26, %v10250_v3 }
  0xbd   : > { %v1436_v35 = vadd.f32 %v10163_v42, %v1267_v14  ;;  %v1437_v37 = vadd.f32 %v10168_v45, %v1268_v15  ;;  %v1580_v15 = vmax.f32 %v1428_v44, 0.0 }
  0xbf   : > { %v10286_v11 = vpop.permute.xlu0 %880  ;;  %v1588_v63 = vmax.f32 %v1436_v35, 0.0  ;;  %v1589_v4 = vmax.f32 %v1437_v37, 0.0 }
  0xc0   : > { %v979_v24 = vmul.f32 %v10139_v27, %v10286_v11  ;;  %v980_v0 = vmul.f32 %v10143_v1, %v10286_v11 }
  0xc1   : > { %3264 = vmatmul.bf16.gmra.mxu2 %v10266_v58  ;;  %3322 = vmatmul.bf16.gmra.mxu3 %v10268_v59  ;;  %v10280_v2 = vpop.permute.xlu1 %608  ;;  %v10326_v32 = vpack.c.bf16 %v1589_v4, %v1581_v19  ;;  %v8836_v4 = vld [vmem:[#allocation2 + $0x6e0] sm:$0xf]  ;;  %v9682_v19 = vld [vmem:[#allocation2 + $0x7ec] sm:$0xf0]  ;;  %v958_v59 = vperm.slane %v10126_v13, 7 }
  0xc2   : > { %v727_v17 = vmul.f32 %v10137_v26, %v10280_v2  ;;  %v728_v18 = vmul.f32 %v10141_v28, %v10280_v2 }
  0xc3   : > { %13889 = vst [vmem:[#allocation32_spill] sm:$0xff] %v10326_v32 }
  0xc4   : > { %v1131_v48 = vadd.f32 %v979_v24, %v727_v17  ;;  %v1132_v50 = vadd.f32 %v980_v0, %v728_v18  ;;  %v1123_v18 = vmul.f32 %v10139_v27, %v10256_v36  ;;  %v10322_v24 = vpop.permute.xlu2 %892  ;;  %v10324_v0 = vpack.c.bf16 %v1588_v63, %v1580_v15 }
  0xc5   : > { %13887 = vst [vmem:[#allocation30_spill] sm:$0xff] %v10322_v24  ;;  %v1003_v63 = vmul.f32 %v10139_v27, %v10322_v24 }
  0xc6   : > { %v1300_v16 = vadd.f32 %v10163_v42, %v1131_v48  ;;  %v1301_v17 = vadd.f32 %v10168_v45, %v1132_v50  ;;  %13888 = vst [vmem:[#allocation31_spill] sm:$0xff] %v10324_v0  ;;  %v1275_v48 = vadd.f32 %v1123_v18, %v871_v61  ;;  %v957_v50 = vperm.slane %v10126_v13, 5  ;;  %v8964_v18 = vld [vmem:[#allocation2 + $0x7e0] sm:$0xf] }
  0xc8   : > { %v10328_v33 = vpop.permute.xlu0 %623  ;;  %v1452_v41 = vmax.f32 %v1300_v16, 0.0  ;;  %v1453_v44 = vmax.f32 %v1301_v17, 0.0  ;;  %v1004_v16 = vmul.f32 %v10143_v1, %v10322_v24 }
  0xc9   : > { %13890 = vst [vmem:[#allocation33_spill] sm:$0xff] %v10328_v33  ;;  %v751_v15 = vmul.f32 %v10137_v26, %v10328_v33  ;;  %v752_v61 = vmul.f32 %v10141_v28, %v10328_v33 }
  0xca   : > { %v10302_v52 = vpop.permute.xlu1 %884 }
  0xcb   : > { %v987_v10 = vmul.f32 %v10139_v27, %v10302_v52  ;;  %v988_v14 = vmul.f32 %v10143_v1, %v10302_v52 }
  0xcd   : > { %v1139_v20 = vadd.f32 %v987_v10, %v735_v57  ;;  %v1140_v21 = vadd.f32 %v988_v14, %v736_v60  ;;  %v1276_v60 = vadd.f32 %v1124_v22, %v872_v62  ;;  %v9650_v10 = vld [vmem:[#allocation2 + $0x6ec] sm:$0xf0] }
  0xce   : > { %v8837_v17 = vor.u32 %v9650_v10, %v8836_v4  ;;  %v1444_v4 = vadd.f32 %v10163_v42, %v1275_v48  ;;  %v706_v10 = vperm.slane %v10126_v13, 6 }
  0xcf   : > { %v1308_v35 = vadd.f32 %v10163_v42, %v1139_v20  ;;  %v1309_v37 = vadd.f32 %v10168_v45, %v1140_v21 }
  0xd0   : > { %3569 = vmatpush.bf16.msra.mxu2 %v8837_v17  ;;  %v1596_v58 = vmax.f32 %v1444_v4, 0.0  ;;  %v10374_v53 = vperm.slane %v706_v10, 0 }
  0xd1   : > { %3269 = vmatmul.bf16.gmra.mxu2 %v10324_v0  ;;  %3327 = vmatmul.bf16.gmra.mxu3 %v10326_v32  ;;  %v1460_v51 = vmax.f32 %v1308_v35, 0.0  ;;  %v1461_v57 = vmax.f32 %v1309_v37, 0.0  ;;  %v705_v35 = vperm.slane %v10126_v13, 4  ;;  %v8965_v37 = vor.u32 %v9682_v19, %v8964_v18  ;;  %v10365_v0 = vpop.permute.xlu2 %633 }
  0xd2   : > { %v10337_v14 = vpop.permute.xlu1 %888  ;;  %v1155_v18 = vadd.f32 %v1003_v63, %v751_v15  ;;  %v1156_v32 = vadd.f32 %v1004_v16, %v752_v61  ;;  %13894 = vst [vmem:[#allocation37_spill] sm:$0xff] %v10365_v0  ;;  %v10383_v16 = vperm.slane %v10152_v31, 2  ;;  %v768_v3 = vmul.f32 %v10141_v28, %v10365_v0 }
  0xd3   : > { %13891 = vst [vmem:[#allocation34_spill] sm:$0xff] %v10337_v14  ;;  %v10345_v62 = vpack.c.bf16 %v1460_v51, %v1452_v41  ;;  %v10347_v20 = vpack.c.bf16 %v1461_v57, %v1453_v44  ;;  %v995_v21 = vmul.f32 %v10139_v27, %v10337_v14  ;;  %v996_v22 = vmul.f32 %v10143_v1, %v10337_v14 }
  0xd4   : > { %v743_v41 = vmul.f32 %v10137_v26, %v10292_v23  ;;  %v744_v44 = vmul.f32 %v10141_v28, %v10292_v23  ;;  %v1445_v51 = vadd.f32 %v10168_v45, %v1276_v60  ;;  %v10362_v57 = vperm.slane %v957_v50, 1  ;;  %3627 = vmatpush.bf16.msra.mxu3 %v8965_v37  ;;  %v10389_v37 = vpop.permute.xlu0 %896 }
  0xd5   : > { %13892 = vst [vmem:[#allocation35_spill] sm:$0xff] %v10345_v62  ;;  %3229 = vmatmul.bf16.vlgmr.msra.gmra.mxu0 %v10345_v62  ;;  %3287 = vmatmul.bf16.vlgmr.msra.gmra.mxu1 %v10347_v20  ;;  %v10367_v48 = vperm.slane %v705_v35, 0  ;;  %v1324_v15 = vadd.f32 %v10163_v42, %v1155_v18  ;;  %v1325_v13 = vadd.f32 %v10168_v45, %v1156_v32 }
  0xd6   : > { %13893 = vst [vmem:[#allocation36_spill] sm:$0xff] %v10347_v20  ;;  %v1147_v17 = vadd.f32 %v995_v21, %v743_v41  ;;  %v1148_v19 = vadd.f32 %v996_v22, %v744_v44  ;;  %v989_v54 = vmul.f32 %v10362_v57, %v10302_v52  ;;  %v1597_v60 = vmax.f32 %v1445_v51, 0.0 }
  0xd7   : > { %v737_v50 = vmul.f32 %v10367_v48, %v10260_v49  ;;  %v10385_v22 = vperm.slane %v958_v59, 1  ;;  %v10387_v35 = vpack.c.bf16 %v1596_v58, %v1596_v58  ;;  %13897 = vst [vmem:[#allocation40_spill] sm:$0xff] %v10389_v37  ;;  %v738_v41 = vmul.f32 %v10374_v53, %v10260_v49 }
  0xd8   : > { %v1316_v63 = vadd.f32 %v10163_v42, %v1147_v17  ;;  %v1317_v61 = vadd.f32 %v10168_v45, %v1148_v19  ;;  %v1005_v44 = vmul.f32 %v10362_v57, %v10322_v24  ;;  %v10395_v51 = vpack.c.bf16 %v1597_v60, %v1597_v60  ;;  %3628 = vmatpush.bf16.msra.mxu3 %v8949_v5 }
  0xd9   : > { %13896 = vst [vmem:[#allocation39_spill] sm:$0xff] %v10387_v35  ;;  %v1141_v4 = vadd.f32 %v989_v54, %v737_v50  ;;  %v729_v32 = vmul.f32 %v10367_v48, %v10280_v2  ;;  %v730_v59 = vmul.f32 %v10374_v53, %v10280_v2  ;;  %v990_v58 = vmul.f32 %v10385_v22, %v10302_v52  ;;  %v10420_v62 = vpop.permute.xlu2 %638 }
  0xda   : > { %13898 = vst [vmem:[#allocation41_spill] sm:$0xff] %v10395_v51  ;;  %v1468_v10 = vmax.f32 %v1316_v63, 0.0  ;;  %v1476_v17 = vmax.f32 %v1324_v15, 0.0  ;;  %v1469_v54 = vmax.f32 %v1317_v61, 0.0  ;;  %v1477_v18 = vmax.f32 %v1325_v13, 0.0 }
  0xdb   : > { %v10376_v21 = vpop.permute.xlu1 %628  ;;  %v981_v19 = vmul.f32 %v10362_v57, %v10286_v11  ;;  %v982_v60 = vmul.f32 %v10385_v22, %v10286_v11  ;;  %v1011_v9 = vmul.f32 %v10139_v27, %v10389_v37  ;;  %v10414_v63 = vadd.f32 %v10383_v16, %v1141_v4  ;;  %13899 = vst [vmem:[#allocation42_spill] sm:$0xff] %v10420_v62 }
  0xdc   : > { %13895 = vst [vmem:[#allocation38_spill] sm:$0xff] %v10376_v21  ;;  %v759_v50 = vmul.f32 %v10137_v26, %v10376_v21  ;;  %v760_v15 = vmul.f32 %v10141_v28, %v10376_v21  ;;  %v1012_v61 = vmul.f32 %v10143_v1, %v10389_v37  ;;  %v1142_v20 = vadd.f32 %v990_v58, %v738_v41 }
  0xdd   : > { %v1133_v13 = vadd.f32 %v981_v19, %v729_v32  ;;  %v1134_v8 = vadd.f32 %v982_v60, %v730_v59  ;;  %v753_v36 = vmul.f32 %v10367_v48, %v10328_v33  ;;  %v767_v4 = vmul.f32 %v10137_v26, %v10365_v0 }
  0xde   : > { %v10435_v32 = vperm.slane %v10152_v31, 3  ;;  %v1163_v41 = vadd.f32 %v1011_v9, %v759_v50  ;;  %v754_v59 = vmul.f32 %v10374_v53, %v10328_v33  ;;  %v1006_v58 = vmul.f32 %v10385_v22, %v10322_v24  ;;  %v8820_v9 = vld [vmem:[#allocation2 + $0x6c0] sm:$0xf] }
  0xdf   : > { %v1302_v19 = vadd.f32 %v10383_v16, %v1133_v13  ;;  %v1157_v39 = vadd.f32 %v1005_v44, %v753_v36  ;;  %v8709_v13 = vor.u32 %v9618_v12, %v8708_v56  ;;  %v9614_v36 = vld [vmem:[#allocation2 + $0x5cc] sm:$0xf0]  ;;  %v745_v6 = vmul.f32 %v10367_v48, %v10292_v23  ;;  %v8676_v56 = vld [vmem:[#allocation2 + $0x5a0] sm:$0xf] }
  0xe0   : > { %v1303_v60 = vadd.f32 %v10435_v32, %v1134_v8  ;;  %v1311_v50 = vadd.f32 %v10435_v32, %v1142_v20  ;;  %v8564_v8 = vld [vmem:[#allocation2 + $0x4c0] sm:$0xf]  ;;  %v746_v43 = vmul.f32 %v10374_v53, %v10292_v23  ;;  %v9578_v12 = vld [vmem:[#allocation2 + $0x4ac] sm:$0xf0] }
  0xe1   : > { %3274 = vmatmul.bf16.gmra.mxu2 %v10387_v35  ;;  %3332 = vmatmul.bf16.gmra.mxu3 %v10395_v51  ;;  %v10424_v35 = vpack.c.bf16 %v1476_v17, %v1468_v10  ;;  %v10426_v51 = vpack.c.bf16 %v1477_v18, %v1469_v54  ;;  %v1462_v10 = vmax.f32 %v10414_v63, 0.0  ;;  %v1164_v54 = vadd.f32 %v1012_v61, %v760_v15  ;;  %v9646_v18 = vld [vmem:[#allocation2 + $0x6cc] sm:$0xf0]  ;;  %v8692_v20 = vld [vmem:[#allocation2 + $0x5c0] sm:$0xf] }
  0xe2   : > { %v1332_v15 = vadd.f32 %v10163_v42, %v1163_v41  ;;  %v1158_v61 = vadd.f32 %v1006_v58, %v754_v59  ;;  %v1454_v44 = vmax.f32 %v1302_v19, 0.0  ;;  %3511 = vmatpush.bf16.msrb.mxu1 %v8709_v13  ;;  %v9610_v41 = vld [vmem:[#allocation2 + $0x5ac] sm:$0xf0]  ;;  %v1455_v59 = vmax.f32 %v1303_v60, 0.0  ;;  %v10461_v58 = vpop.permute.xlu0 %908 }
  0xe3   : > { %13900 = vst [vmem:[#allocation43_spill] sm:$0xff] %v10424_v35  ;;  %v10464_v5 = vadd.f32 %v10383_v16, %v1157_v39  ;;  %v997_v60 = vmul.f32 %v10362_v57, %v10337_v14  ;;  %v8677_v39 = vor.u32 %v9610_v41, %v8676_v56 }
  0xe4   : > { %13901 = vst [vmem:[#allocation44_spill] sm:$0xff] %v10426_v51  ;;  %v10432_v34 = vpop.permute.xlu1 %900 }
  0xe5   : > { %13902 = vst [vmem:[#allocation45_spill] sm:$0xff] %v10432_v34  ;;  %3234 = vmatmul.bf16.gmra.mxu0 %v10424_v35  ;;  %3292 = vmatmul.bf16.gmra.mxu1 %v10426_v51  ;;  %v1019_v17 = vmul.f32 %v10139_v27, %v10432_v34  ;;  %v1020_v31 = vmul.f32 %v10143_v1, %v10432_v34  ;;  %v9586_v51 = vld [vmem:[#allocation2 + $0x4ec] sm:$0xf0] }
  0xe6   : > { %v8821_v35 = vor.u32 %v9646_v18, %v8820_v9  ;;  %v8581_v38 = vor.u32 %v9586_v51, %v8580_v40  ;;  %v1333_v18 = vadd.f32 %v10168_v45, %v1164_v54  ;;  %v8565_v40 = vor.u32 %v9582_v7, %v8564_v8  ;;  %v10459_v7 = vpop.permute.xlu2 %904  ;;  %13904 = vst [vmem:[#allocation47_spill] sm:$0xff] %v10461_v58 }
  0xe7   : > { %v1171_v63 = vadd.f32 %v1019_v17, %v767_v4  ;;  %v1172_v55 = vadd.f32 %v1020_v31, %v768_v3  ;;  %v1463_v51 = vmax.f32 %v1311_v50, 0.0  ;;  %v8693_v4 = vor.u32 %v9614_v36, %v8692_v20  ;;  %13903 = vst [vmem:[#allocation46_spill] sm:$0xff] %v10459_v7 }
  0xe8   : > { %3570 = vmatpush.bf16.msra.mxu2 %v8821_v35  ;;  %3453 = vmatpush.bf16.msrb.mxu0 %v8581_v38  ;;  %v8548_v35 = vld [vmem:[#allocation2 + $0x4a0] sm:$0xf]  ;;  %v10466_v17 = vpack.c.bf16 %v1462_v10, %v1454_v44  ;;  %v1485_v31 = vmax.f32 %v1333_v18, 0.0  ;;  %v10471_v50 = vadd.f32 %v10435_v32, %v1158_v61  ;;  %v775_v10 = vmul.f32 %v10137_v26, %v10420_v62 }
  0xe9   : > { %v1340_v9 = vadd.f32 %v10163_v42, %v1171_v63  ;;  %v1341_v3 = vadd.f32 %v10168_v45, %v1172_v55  ;;  %v1484_v55 = vmax.f32 %v1332_v15, 0.0  ;;  %v998_v63 = vmul.f32 %v10385_v22, %v10337_v14  ;;  %3512 = vmatpush.bf16.msrb.mxu1 %v8693_v4  ;;  %v9574_v4 = vld [vmem:[#allocation2 + $0x48c] sm:$0xf0] }
  0xea   : > { %13905 = vst [vmem:[#allocation48_spill] sm:$0xff] %v10466_v17  ;;  %v8549_v15 = vor.u32 %v9578_v12, %v8548_v35  ;;  %v10477_v13 = vpack.c.bf16 %v1463_v51, %v1455_v59  ;;  %v1027_v8 = vmul.f32 %v10139_v27, %v10459_v7  ;;  %v1035_v61 = vmul.f32 %v10139_v27, %v10461_v58  ;;  %v8532_v51 = vld [vmem:[#allocation2 + $0x480] sm:$0xf]  ;;  %v9606_v59 = vld [vmem:[#allocation2 + $0x58c] sm:$0xf0] }
  0xeb   : > { %v1492_v38 = vmax.f32 %v1340_v9, 0.0  ;;  %v1493_v54 = vmax.f32 %v1341_v3, 0.0  ;;  %v776_v9 = vmul.f32 %v10141_v28, %v10420_v62  ;;  %v1028_v18 = vmul.f32 %v10143_v1, %v10459_v7  ;;  %v8660_v35 = vld [vmem:[#allocation2 + $0x580] sm:$0xf] }
  0xec   : > { %3454 = vmatpush.bf16.msrb.mxu0 %v8565_v40  ;;  %13907 = vst [vmem:[#allocation50_spill] sm:$0xff] %v10477_v13  ;;  %v1036_v3 = vmul.f32 %v10143_v1, %v10461_v58  ;;  %v1149_v12 = vadd.f32 %v997_v60, %v745_v6  ;;  %v1150_v56 = vadd.f32 %v998_v63, %v746_v43  ;;  %v9570_v6 = vld [vmem:[#allocation2 + $0x46c] sm:$0xf0]  ;;  %v8644_v43 = vld [vmem:[#allocation2 + $0x560] sm:$0xf] }
  0xed   : > { %v10468_v19 = vpop.permute.xlu1 %643  ;;  %v10485_v20 = vpack.c.bf16 %v1492_v38, %v1484_v55  ;;  %v10495_v40 = vpack.c.bf16 %v1493_v54, %v1485_v31  ;;  %3513 = vmatpush.bf16.msrb.mxu1 %v8677_v39  ;;  %v8533_v41 = vor.u32 %v9574_v4, %v8532_v51  ;;  %v8661_v55 = vor.u32 %v9606_v59, %v8660_v35  ;;  %v9602_v39 = vld [vmem:[#allocation2 + $0x56c] sm:$0xf0] }
  0xee   : > { %13906 = vst [vmem:[#allocation49_spill] sm:$0xff] %v10468_v19  ;;  %v783_v36 = vmul.f32 %v10137_v26, %v10468_v19  ;;  %v784_v44 = vmul.f32 %v10141_v28, %v10468_v19  ;;  %v1179_v54 = vadd.f32 %v1027_v8, %v775_v10  ;;  %v1318_v63 = vadd.f32 %v10383_v16, %v1149_v12  ;;  %v8804_v10 = vld [vmem:[#allocation2 + $0x6a0] sm:$0xf]  ;;  %v9642_v8 = vld [vmem:[#allocation2 + $0x6ac] sm:$0xf0] }
  0xef   : > { %13908 = vst [vmem:[#allocation51_spill] sm:$0xff] %v10485_v20  ;;  %v8517_v51 = vor.u32 %v9570_v6, %v8516_v46  ;;  %v8645_v4 = vor.u32 %v9602_v39, %v8644_v43  ;;  %v8805_v35 = vor.u32 %v9642_v8, %v8804_v10  ;;  %v9674_v59 = vld [vmem:[#allocation2 + $0x7ac] sm:$0xf0]  ;;  %v8484_v39 = vld [vmem:[#allocation2 + $0x420] sm:$0xf]  ;;  %v1013_v10 = vmul.f32 %v10362_v57, %v10389_v37 }
  0xf0   : > { %13909 = vst [vmem:[#allocation52_spill] sm:$0xff] %v10495_v40  ;;  %3455 = vmatpush.bf16.msrb.mxu0 %v8549_v15  ;;  %v1188_v25 = vadd.f32 %v1036_v3, %v784_v44  ;;  %v1319_v15 = vadd.f32 %v10435_v32, %v1150_v56  ;;  %v1348_v3 = vadd.f32 %v10163_v42, %v1179_v54  ;;  %v8932_v44 = vld [vmem:[#allocation2 + $0x7a0] sm:$0xf]  ;;  %v1470_v31 = vmax.f32 %v1318_v63, 0.0 }
  0xf1   : > { %3345 = vmatmul.bf16.vlgmr.msrb.gmra.mxu2 %v10466_v17  ;;  %3403 = vmatmul.bf16.vlgmr.msrb.gmra.mxu3 %v10477_v13  ;;  %v1187_v13 = vadd.f32 %v1035_v61, %v783_v36  ;;  %v1180_v17 = vadd.f32 %v1028_v18, %v776_v9  ;;  %v8500_v61 = vld [vmem:[#allocation2 + $0x440] sm:$0xf]  ;;  %v9566_v9 = vld [vmem:[#allocation2 + $0x44c] sm:$0xf0]  ;;  %v761_v54 = vmul.f32 %v10367_v48, %v10376_v21 }
  0xf2   : > { %3514 = vmatpush.bf16.msrb.mxu1 %v8661_v55  ;;  %v8628_v18 = vld [vmem:[#allocation2 + $0x540] sm:$0xf]  ;;  %v9598_v36 = vld [vmem:[#allocation2 + $0x54c] sm:$0xf0]  ;;  %3571 = vmatpush.bf16.msra.mxu2 %v8805_v35  ;;  %v8933_v55 = vor.u32 %v9674_v59, %v8932_v44  ;;  %v1471_v46 = vmax.f32 %v1319_v15, 0.0  ;;  %v8501_v6 = vor.u32 %v9566_v9, %v8500_v61  ;;  %v769_v8 = vmul.f32 %v10367_v48, %v10365_v0  ;;  %v10529_v44 = vpop.permute.xlu2 %653  ;;  %v10531_v59 = vpop.permute.xlu0 %912 }
  0xf3   : > { %v1356_v12 = vadd.f32 %v10163_v42, %v1187_v13  ;;  %v1349_v56 = vadd.f32 %v10168_v45, %v1180_v17  ;;  %v8629_v43 = vor.u32 %v9598_v36, %v8628_v18  ;;  %v762_v17 = vmul.f32 %v10374_v53, %v10376_v21  ;;  %v9562_v13 = vld [vmem:[#allocation2 + $0x42c] sm:$0xf0]  ;;  %v8612_v63 = vld [vmem:[#allocation2 + $0x520] sm:$0xf]  ;;  %13911 = vst [vmem:[#allocation54_spill] sm:$0xff] %v10529_v44 }
  0xf4   : > { %3456 = vmatpush.bf16.msrb.mxu0 %v8533_v41  ;;  %v1357_v41 = vadd.f32 %v10168_v45, %v1188_v25  ;;  %v1014_v25 = vmul.f32 %v10385_v22, %v10389_v37  ;;  %3629 = vmatpush.bf16.msra.mxu3 %v8933_v55  ;;  %v9594_v15 = vld [vmem:[#allocation2 + $0x52c] sm:$0xf0]  ;;  %v1022_v35 = vmul.f32 %v10385_v22, %v10432_v34  ;;  %v1500_v61 = vmax.f32 %v1348_v3, 0.0 }
  0xf5   : > { %3239 = vmatmul.bf16.gmra.mxu0 %v10485_v20  ;;  %3297 = vmatmul.bf16.gmra.mxu1 %v10495_v40  ;;  %v10505_v60 = vpop.permute.xlu1 %648  ;;  %v1508_v9 = vmax.f32 %v1356_v12, 0.0  ;;  %v1501_v18 = vmax.f32 %v1349_v56, 0.0  ;;  %13912 = vst [vmem:[#allocation55_spill] sm:$0xff] %v10531_v59  ;;  %v8485_v55 = vor.u32 %v9562_v13, %v8484_v39  ;;  %v8613_v38 = vor.u32 %v9594_v15, %v8612_v63 }
  0xf6   : > { %13910 = vst [vmem:[#allocation53_spill] sm:$0xff] %v10505_v60  ;;  %3515 = vmatpush.bf16.msrb.mxu1 %v8645_v4  ;;  %v770_v4 = vmul.f32 %v10374_v53, %v10365_v0  ;;  %v1509_v36 = vmax.f32 %v1357_v41, 0.0  ;;  %v13913_v40 = vmax.f32 %v10464_v5, 0.0  ;;  %v13915_v37 = vmax.f32 %v10471_v50, 0.0 }
  0xf7   : > { %v1165_v3 = vadd.f32 %v1013_v10, %v761_v54  ;;  %v1166_v12 = vadd.f32 %v1014_v25, %v762_v17  ;;  %v10549_v5 = vpack.c.bf16 %v1508_v9, %v1500_v61  ;;  %v800_v50 = vmul.f32 %v10141_v28, %v10529_v44  ;;  %v9590_v17 = vld [vmem:[#allocation2 + $0x50c] sm:$0xf0] }
  0xf8   : > { %3457 = vmatpush.bf16.msrb.mxu0 %v8517_v51  ;;  %v1021_v51 = vmul.f32 %v10362_v57, %v10432_v34  ;;  %v10535_v20 = vpack.c.bf16 %v13913_v40, %v1470_v31  ;;  %v10539_v0 = vpack.c.bf16 %v13915_v37, %v1471_v46  ;;  %v1174_v34 = vadd.f32 %v1022_v35, %v770_v4  ;;  %v8468_v40 = vld [vmem:[#allocation2 + $0x400] sm:$0xf]  ;;  %v9558_v31 = vld [vmem:[#allocation2 + $0x40c] sm:$0xf0] }
  0xf9   : > { %13918 = vst [vmem:[#allocation59_spill] sm:$0xff] %v10549_v5  ;;  %v10551_v37 = vpack.c.bf16 %v1509_v36, %v1501_v18  ;;  %v8596_v46 = vld [vmem:[#allocation2 + $0x500] sm:$0xf]  ;;  %v791_v39 = vmul.f32 %v10137_v26, %v10505_v60  ;;  %v1044_v54 = vmul.f32 %v10143_v1, %v10531_v59  ;;  %v8469_v10 = vor.u32 %v9558_v31, %v8468_v40 }
  0xfa   : > { %3516 = vmatpush.bf16.msrb.mxu1 %v8629_v43  ;;  %13914 = vst [vmem:[#allocation56_spill] sm:$0xff] %v10535_v20  ;;  %v1173_v41 = vadd.f32 %v1021_v51, %v769_v8  ;;  %v1043_v43 = vmul.f32 %v10139_v27, %v10531_v59  ;;  %v792_v13 = vmul.f32 %v10141_v28, %v10505_v60 }
  0xfb   : > { %13916 = vst [vmem:[#allocation57_spill] sm:$0xff] %v10539_v0  ;;  %v8597_v15 = vor.u32 %v9590_v17, %v8596_v46  ;;  %v1334_v8 = vadd.f32 %v10383_v16, %v1165_v3  ;;  %v1335_v51 = vadd.f32 %v10435_v32, %v1166_v12  ;;  %v777_v17 = vmul.f32 %v10367_v48, %v10420_v62 }
  0xfc   : > { %3458 = vmatpush.bf16.msrb.mxu0 %v8501_v6  ;;  %v799_v6 = vmul.f32 %v10137_v26, %v10529_v44  ;;  %13919 = vst [vmem:[#allocation60_spill] sm:$0xff] %v10551_v37  ;;  %v10568_v26 = vld [vmem:[%s13865_s1 + $0x8] sm:$0xff]  ;;  %v1195_v28 = vadd.f32 %v1043_v43, %v791_v39  ;;  %v1196_v9 = vadd.f32 %v1044_v54, %v792_v13 }
  0xfd   : > { %v959_v4 = vperm.slane %v10568_v26, 1  ;;  %v708_v35 = vperm.slane %v10568_v26, 2  ;;  %v960_v36 = vperm.slane %v10568_v26, 3  ;;  %v1487_v3 = vmax.f32 %v1335_v51, 0.0 }
  0xfe   : > { %v10541_v56 = vpop.permute.xlu1 %916  ;;  %3517 = vmatpush.bf16.msrb.mxu1 %v8613_v38  ;;  %v1342_v38 = vadd.f32 %v10383_v16, %v1173_v41  ;;  %v1364_v41 = vadd.f32 %v10163_v42, %v1195_v28  ;;  %v1029_v13 = vmul.f32 %v10362_v57, %v10459_v7  ;;  %v1038_v28 = vmul.f32 %v10385_v22, %v10461_v58 }
  0xff   : > { %13917 = vst [vmem:[#allocation58_spill] sm:$0xff] %v10541_v56  ;;  %v1051_v25 = vmul.f32 %v10139_v27, %v10541_v56  ;;  %v1052_v63 = vmul.f32 %v10143_v1, %v10541_v56  ;;  %v1343_v27 = vadd.f32 %v10435_v32, %v1174_v34  ;;  %v707_v1 = vperm.slane %v10568_v26, 0 }
 0x100   : > { %3459 = vmatpush.bf16.msrb.mxu0 %v8485_v55  ;;  %v1486_v55 = vmax.f32 %v1334_v8, 0.0  ;;  %v1494_v34 = vmax.f32 %v1342_v38, 0.0  ;;  %v10583_v40 = vperm.slane %v959_v4, 1  ;;  %v10585_v31 = vperm.slane %v708_v35, 0  ;;  %v9638_v8 = vld [vmem:[#allocation2 + $0x68c] sm:$0xf0] }
 0x101   : > { %3350 = vmatmul.bf16.gmra.mxu2 %v10535_v20  ;;  %3408 = vmatmul.bf16.gmra.mxu3 %v10539_v0  ;;  %v1203_v61 = vadd.f32 %v1051_v25, %v799_v6  ;;  %v1204_v18 = vadd.f32 %v1052_v63, %v800_v50  ;;  %v1495_v12 = vmax.f32 %v1343_v27, 0.0  ;;  %v10581_v43 = vperm.slane %v707_v1, 0  ;;  %v8916_v38 = vld [vmem:[#allocation2 + $0x780] sm:$0xf]  ;;  %v9670_v4 = vld [vmem:[#allocation2 + $0x78c] sm:$0xf0] }
 0x102   : > { %3518 = vmatpush.bf16.msrb.mxu1 %v8597_v15  ;;  %v1365_v6 = vadd.f32 %v10168_v45, %v1196_v9  ;;  %v10590_v39 = vperm.slane %v960_v36, 1  ;;  %v10592_v54 = vpack.c.bf16 %v1494_v34, %v1486_v55  ;;  %v785_v25 = vmul.f32 %v10367_v48, %v10468_v19  ;;  %v8788_v15 = vld [vmem:[#allocation2 + $0x680] sm:$0xf] }
 0x103   : > { %v1372_v46 = vadd.f32 %v10163_v42, %v1203_v61  ;;  %v1373_v50 = vadd.f32 %v10168_v45, %v1204_v18  ;;  %v1037_v42 = vmul.f32 %v10362_v57, %v10461_v58  ;;  %v778_v45 = vmul.f32 %v10374_v53, %v10420_v62 }
 0x104   : > { %3460 = vmatpush.bf16.msrb.mxu0 %v8469_v10  ;;  %13920 = vst [vmem:[#allocation61_spill] sm:$0xff] %v10592_v54  ;;  %v10594_v10 = vpack.c.bf16 %v1495_v12, %v1487_v3  ;;  %v786_v63 = vmul.f32 %v10374_v53, %v10468_v19  ;;  %v1516_v51 = vmax.f32 %v1364_v41, 0.0  ;;  %v1030_v27 = vmul.f32 %v10385_v22, %v10459_v7 }
 0x105   : > { %3244 = vmatmul.bf16.gmra.mxu0 %v10549_v5  ;;  %3302 = vmatmul.bf16.gmra.mxu1 %v10551_v37  ;;  %v8789_v1 = vor.u32 %v9638_v8, %v8788_v15  ;;  %v1524_v35 = vmax.f32 %v1372_v46, 0.0  ;;  %v1517_v61 = vmax.f32 %v1365_v6, 0.0  ;;  %v1525_v9 = vmax.f32 %v1373_v50, 0.0 }
 0x106   : > { %13921 = vst [vmem:[#allocation62_spill] sm:$0xff] %v10594_v10  ;;  %v8917_v18 = vor.u32 %v9670_v4, %v8916_v38  ;;  %v731_v36 = vmul.f32 %v10581_v43, %v10280_v2  ;;  %v739_v55 = vmul.f32 %v10581_v43, %v10260_v49  ;;  %v991_v34 = vmul.f32 %v10583_v40, %v10302_v52  ;;  %v10643_v4 = vld [vmem:[%s13595_s2] sm:$0xff] }
 0x107   : > { %v732_v3 = vmul.f32 %v10585_v31, %v10280_v2  ;;  %3572 = vmatpush.bf16.msra.mxu2 %v8789_v1  ;;  %v1181_v12 = vadd.f32 %v1029_v13, %v777_v17  ;;  %v1189_v41 = vadd.f32 %v1037_v42, %v785_v25  ;;  %v992_v46 = vmul.f32 %v10590_v39, %v10302_v52 }
 0x108   : > { %v1182_v6 = vadd.f32 %v1030_v27, %v778_v45  ;;  %v1190_v50 = vadd.f32 %v1038_v28, %v786_v63  ;;  %v983_v15 = vmul.f32 %v10583_v40, %v10286_v11  ;;  %v984_v8 = vmul.f32 %v10590_v39, %v10286_v11  ;;  %3630 = vmatpush.bf16.msra.mxu3 %v8917_v18 }
 0x109   : > { %v10628_v38 = vpack.c.bf16 %v1524_v35, %v1516_v51  ;;  %v10630_v1 = vpack.c.bf16 %v1525_v9, %v1517_v61  ;;  %v740_v17 = vmul.f32 %v10585_v31, %v10260_v49  ;;  %v1143_v13 = vadd.f32 %v991_v34, %v739_v55  ;;  %13924 = vst [vmem:[#allocation65_spill] sm:$0xff] %v10643_v4 }
 0x10a   : > { %v1135_v25 = vadd.f32 %v983_v15, %v731_v36  ;;  %v1136_v42 = vadd.f32 %v984_v8, %v732_v3  ;;  %v1350_v45 = vadd.f32 %v10383_v16, %v1181_v12  ;;  %v1358_v63 = vadd.f32 %v10383_v16, %v1189_v41 }
 0x10b   : > { %13922 = vst [vmem:[#allocation63_spill] sm:$0xff] %v10628_v38  ;;  %v1144_v27 = vadd.f32 %v992_v46, %v740_v17  ;;  %v1351_v51 = vadd.f32 %v10435_v32, %v1182_v6  ;;  %v1359_v28 = vadd.f32 %v10435_v32, %v1190_v50  ;;  %v10646_v35 = vperm.slane %v10643_v4, 4 }
 0x10c   : > { %13923 = vst [vmem:[#allocation64_spill] sm:$0xff] %v10630_v1  ;;  %v10649_v61 = vperm.slane %v10643_v4, 5  ;;  %v1502_v36 = vmax.f32 %v1350_v45, 0.0  ;;  %v1510_v55 = vmax.f32 %v1358_v63, 0.0  ;;  %v793_v17 = vmul.f32 %v10367_v48, %v10505_v60 }
 0x10d   : > { %v1304_v9 = vadd.f32 %v10646_v35, %v1135_v25  ;;  %v1312_v34 = vadd.f32 %v10646_v35, %v1143_v13  ;;  %v1503_v12 = vmax.f32 %v1351_v51, 0.0  ;;  %v1511_v41 = vmax.f32 %v1359_v28, 0.0 }
 0x10e   : > { %v1305_v18 = vadd.f32 %v10649_v61, %v1136_v42  ;;  %v1313_v3 = vadd.f32 %v10649_v61, %v1144_v27  ;;  %v10655_v50 = vpack.c.bf16 %v1510_v55, %v1502_v36  ;;  %v801_v42 = vmul.f32 %v10367_v48, %v10529_v44 }
 0x10f   : > { %v1456_v46 = vmax.f32 %v1304_v9, 0.0  ;;  %v1464_v15 = vmax.f32 %v1312_v34, 0.0  ;;  %v10659_v25 = vpack.c.bf16 %v1511_v41, %v1503_v12  ;;  %v1045_v13 = vmul.f32 %v10362_v57, %v10531_v59  ;;  %v8772_v12 = vld [vmem:[#allocation2 + $0x660] sm:$0xf]  ;;  %v9634_v41 = vld [vmem:[#allocation2 + $0x66c] sm:$0xf0] }
 0x110   : > { %v1457_v6 = vmax.f32 %v1305_v18, 0.0  ;;  %13925 = vst [vmem:[#allocation66_spill] sm:$0xff] %v10655_v50  ;;  %v1465_v8 = vmax.f32 %v1313_v3, 0.0  ;;  %v794_v45 = vmul.f32 %v10374_v53, %v10505_v60  ;;  %v1053_v63 = vmul.f32 %v10362_v57, %v10541_v56 }
 0x111   : > { %3355 = vmatmul.bf16.gmra.mxu2 %v10592_v54  ;;  %3413 = vmatmul.bf16.gmra.mxu3 %v10594_v10  ;;  %13926 = vst [vmem:[#allocation67_spill] sm:$0xff] %v10659_v25  ;;  %v802_v27 = vmul.f32 %v10374_v53, %v10529_v44  ;;  %v1046_v51 = vmul.f32 %v10385_v22, %v10531_v59  ;;  %v8900_v10 = vld [vmem:[#allocation2 + $0x760] sm:$0xf] }
 0x112   : > { %v1054_v28 = vmul.f32 %v10385_v22, %v10541_v56  ;;  %v755_v9 = vmul.f32 %v10581_v43, %v10328_v33  ;;  %v999_v18 = vmul.f32 %v10583_v40, %v10337_v14  ;;  %v1007_v36 = vmul.f32 %v10583_v40, %v10322_v24 }
 0x113   : > { %v10683_v55 = vpack.c.bf16 %v1464_v15, %v1456_v46  ;;  %v10685_v34 = vpack.c.bf16 %v1465_v8, %v1457_v6  ;;  %v756_v3 = vmul.f32 %v10585_v31, %v10328_v33  ;;  %v1197_v54 = vadd.f32 %v1045_v13, %v793_v17  ;;  %v8724_v33 = vld [vmem:[#allocation2 + $0x600] sm:$0xf] }
 0x114   : > { %v1000_v0 = vmul.f32 %v10590_v39, %v10337_v14  ;;  %v1008_v20 = vmul.f32 %v10590_v39, %v10322_v24  ;;  %v1198_v46 = vadd.f32 %v1046_v51, %v794_v45  ;;  %v1206_v15 = vadd.f32 %v1054_v28, %v802_v27 }
 0x115   : > { %3249 = vmatmul.bf16.gmra.mxu0 %v10628_v38  ;;  %3307 = vmatmul.bf16.gmra.mxu1 %v10630_v1  ;;  %13927 = vst [vmem:[#allocation68_spill] sm:$0xff] %v10683_v55  ;;  %v9666_v1 = vld [vmem:[#allocation2 + $0x76c] sm:$0xf0]  ;;  %v747_v37 = vmul.f32 %v10581_v43, %v10292_v23  ;;  %v748_v17 = vmul.f32 %v10585_v31, %v10292_v23  ;;  %v8884_v23 = vld [vmem:[#allocation2 + $0x740] sm:$0xf] }
 0x116   : > { %13928 = vst [vmem:[#allocation69_spill] sm:$0xff] %v10685_v34  ;;  %v8901_v6 = vor.u32 %v9666_v1, %v8900_v10  ;;  %v1367_v27 = vadd.f32 %v10435_v32, %v1198_v46  ;;  %v1375_v51 = vadd.f32 %v10435_v32, %v1206_v15  ;;  %v1160_v28 = vadd.f32 %v1008_v20, %v756_v3 }
 0x117   : > { %v1151_v45 = vadd.f32 %v999_v18, %v747_v37  ;;  %v1152_v10 = vadd.f32 %v1000_v0, %v748_v17  ;;  %v1061_v20 = vmul.f32 %v10362_v57, %v10145_v29  ;;  %v1062_v3 = vmul.f32 %v10385_v22, %v10145_v29 }
 0x118   : > { %3631 = vmatpush.bf16.msra.mxu3 %v8901_v6  ;;  %v1527_v37 = vmax.f32 %v1375_v51, 0.0  ;;  %v1329_v0 = vadd.f32 %v10649_v61, %v1160_v28  ;;  %v817_v15 = vmul.f32 %v10367_v48, %v10172_v47  ;;  %v13931_v6 = vld [vmem:[#allocation11_spill] sm:$0xff] }
 0x119   : > { %v1069_v17 = vmul.f32 %v10362_v57, %v13931_v6 }
 0x11a   : > { %v1481_v28 = vmax.f32 %v1329_v0, 0.0 }
 0x121   : > { %3360 = vmatmul.bf16.gmra.mxu2 %v10655_v50  ;;  %3418 = vmatmul.bf16.gmra.mxu3 %v10659_v25  ;;  %v8773_v50 = vor.u32 %v9634_v41, %v8772_v12  ;;  %v1205_v25 = vadd.f32 %v1053_v63, %v801_v42  ;;  %v1366_v42 = vadd.f32 %v10383_v16, %v1197_v54  ;;  %v1519_v54 = vmax.f32 %v1367_v27, 0.0 }
 0x122   : > { %v1159_v63 = vadd.f32 %v1007_v36, %v755_v9  ;;  %v1321_v41 = vadd.f32 %v10649_v61, %v1152_v10  ;;  %v810_v36 = vmul.f32 %v10374_v53, %v10147_v30  ;;  %v1070_v10 = vmul.f32 %v10385_v22, %v13931_v6 }
 0x123   : > { %3573 = vmatpush.bf16.msra.mxu2 %v8773_v50  ;;  %v1374_v1 = vadd.f32 %v10383_v16, %v1205_v25  ;;  %v1518_v50 = vmax.f32 %v1366_v42, 0.0  ;;  %v809_v25 = vmul.f32 %v10367_v48, %v10147_v30  ;;  %v10729_v27 = vpack.c.bf16 %v1527_v37, %v1519_v54 }
 0x124   : > { %v3255_v8 = vpop.f32.mrf.mxu2  ;;  %v3313_v38 = vpop.f32.mrf.mxu3  ;;  %v1328_v12 = vadd.f32 %v10646_v35, %v1159_v63  ;;  %v818_v63 = vmul.f32 %v10374_v53, %v10172_v47  ;;  %v1473_v51 = vmax.f32 %v1321_v41, 0.0  ;;  %v764_v41 = vmul.f32 %v10585_v31, %v10376_v21 }
 0x125   : > { %v10697_v13 = vadd.f32 %v3313_v38, %v3255_v8  ;;  %3461 = vmatmul.bf16.vlgmr.msrb.gmra.mxu0 %v10683_v55  ;;  %3519 = vmatmul.bf16.vlgmr.msrb.gmra.mxu1 %v10685_v34  ;;  %v1320_v38 = vadd.f32 %v10646_v35, %v1151_v45  ;;  %v1526_v8 = vmax.f32 %v1374_v1, 0.0  ;;  %13933 = vst [vmem:[#allocation72_spill] sm:$0xff] %v10729_v27  ;;  %v13935_v55 = vld [vmem:[#allocation40_spill] sm:$0xff] }
 0x126   : > { %v1480_v45 = vmax.f32 %v1328_v12, 0.0  ;;  %v763_v34 = vmul.f32 %v10581_v43, %v10376_v21  ;;  %v1016_v0 = vmul.f32 %v10590_v39, %v13935_v55  ;;  %v9630_v21 = vld [vmem:[#allocation2 + $0x64c] sm:$0xf0] }
 0x127   : > { %13929 = vst [vmem:[#allocation70_spill] sm:$0xff] %v10697_v13  ;;  %v1472_v42 = vmax.f32 %v1320_v38, 0.0  ;;  %v10727_v1 = vpack.c.bf16 %v1526_v8, %v1518_v50  ;;  %v13934_v38 = vld [vmem:[#allocation37_spill] sm:$0xff]  ;;  %v1015_v50 = vmul.f32 %v10583_v40, %v13935_v55  ;;  %v8756_v55 = vld [vmem:[#allocation2 + $0x640] sm:$0xf] }
 0x128   : > { %v771_v12 = vmul.f32 %v10581_v43, %v13934_v38  ;;  %v13936_v8 = vld [vmem:[#allocation45_spill] sm:$0xff]  ;;  %v772_v37 = vmul.f32 %v10585_v31, %v13934_v38 }
 0x129   : > { %13932 = vst [vmem:[#allocation11_spill] sm:$0xff] %v10727_v1  ;;  %v1023_v54 = vmul.f32 %v10583_v40, %v13936_v8  ;;  %v1167_v13 = vadd.f32 %v1015_v50, %v763_v34 }
 0x12b   : > { %v1175_v38 = vadd.f32 %v1023_v54, %v771_v12  ;;  %v1336_v34 = vadd.f32 %v10646_v35, %v1167_v13  ;;  %v13942_v13 = vld [vmem:[#allocation12_spill] sm:$0xff] }
 0x12c   : > { %v3257_v9 = vpop.f32.mrf.mxu2  ;;  %v3315_v18 = vpop.f32.mrf.mxu3 }
 0x12d   : > { %v10717_v46 = vadd.f32 %v3315_v18, %v3257_v9  ;;  %v1213_v9 = vadd.f32 %v1061_v20, %v809_v25  ;;  %v1214_v18 = vadd.f32 %v1062_v3, %v810_v36  ;;  %v1024_v25 = vmul.f32 %v10590_v39, %v13936_v8 }
 0x12e   : > { %v10749_v20 = vpack.c.bf16 %v1480_v45, %v1472_v42  ;;  %v10751_v36 = vpack.c.bf16 %v1481_v28, %v1473_v51  ;;  %v1221_v3 = vadd.f32 %v1069_v17, %v817_v15  ;;  %v1168_v45 = vadd.f32 %v1016_v0, %v764_v41  ;;  %v9662_v15 = vld [vmem:[#allocation2 + $0x74c] sm:$0xf0] }
 0x12f   : > { %13930 = vst [vmem:[#allocation71_spill] sm:$0xff] %v10717_v46  ;;  %v1382_v42 = vadd.f32 %v10383_v16, %v1213_v9  ;;  %v1176_v51 = vadd.f32 %v1024_v25, %v772_v37  ;;  %v8757_v28 = vor.u32 %v9630_v21, %v8756_v55  ;;  %v13940_v41 = vld [vmem:[#allocation9_spill] sm:$0xff] }
 0x130   : > { %13937 = vst [vmem:[#allocation73_spill] sm:$0xff] %v10749_v20  ;;  %v1390_v17 = vadd.f32 %v10383_v16, %v1221_v3  ;;  %v1337_v9 = vadd.f32 %v10649_v61, %v1168_v45  ;;  %v834_v25 = vmul.f32 %v10374_v53, %v13940_v41  ;;  %v1488_v45 = vmax.f32 %v1336_v34, 0.0 }
 0x131   : > { %3365 = vmatmul.bf16.gmra.mxu2 %v10727_v1  ;;  %3423 = vmatmul.bf16.gmra.mxu3 %v10729_v27  ;;  %13938 = vst [vmem:[#allocation74_spill] sm:$0xff] %v10751_v36  ;;  %v1222_v27 = vadd.f32 %v1070_v10, %v818_v63  ;;  %v8885_v10 = vor.u32 %v9662_v15, %v8884_v23  ;;  %v1534_v12 = vmax.f32 %v1382_v42, 0.0  ;;  %v13941_v23 = vld [vmem:[#allocation13_spill] sm:$0xff] }
 0x132   : > { %3574 = vmatpush.bf16.msra.mxu2 %v8757_v28  ;;  %v1345_v50 = vadd.f32 %v10649_v61, %v1176_v51  ;;  %v1542_v21 = vmax.f32 %v1390_v17, 0.0  ;;  %v1077_v0 = vmul.f32 %v10362_v57, %v13941_v23  ;;  %v1078_v3 = vmul.f32 %v10385_v22, %v13941_v23 }
 0x133   : > { %v1391_v63 = vadd.f32 %v10435_v32, %v1222_v27  ;;  %3632 = vmatpush.bf16.msra.mxu3 %v8885_v10  ;;  %v1086_v28 = vmul.f32 %v10385_v22, %v13942_v13  ;;  %v1489_v15 = vmax.f32 %v1337_v9, 0.0  ;;  %v779_v9 = vmul.f32 %v10581_v43, %v10420_v62 }
 0x134   : > { %v3260_v1 = vpop.f32.mrf.mxu2  ;;  %v3318_v5 = vpop.f32.mrf.mxu3  ;;  %v1497_v17 = vmax.f32 %v1345_v50, 0.0 }
 0x135   : > { %v10753_v46 = vadd.f32 %v3318_v5, %v3260_v1  ;;  %3466 = vmatmul.bf16.gmra.mxu0 %v10749_v20  ;;  %3524 = vmatmul.bf16.gmra.mxu1 %v10751_v36  ;;  %v1383_v5 = vadd.f32 %v10435_v32, %v1214_v18  ;;  %v1344_v1 = vadd.f32 %v10646_v35, %v1175_v38  ;;  %v1543_v54 = vmax.f32 %v1391_v63, 0.0 }
 0x136   : > { %v833_v18 = vmul.f32 %v10367_v48, %v13940_v41  ;;  %v1085_v38 = vmul.f32 %v10362_v57, %v13942_v13  ;;  %v10783_v36 = vpack.c.bf16 %v1542_v21, %v1534_v12  ;;  %v10793_v50 = vpack.c.bf16 %v1497_v17, %v1489_v15  ;;  %v8740_v15 = vld [vmem:[#allocation2 + $0x620] sm:$0xf]  ;;  %v9626_v17 = vld [vmem:[#allocation2 + $0x62c] sm:$0xf0] }
 0x137   : > { %13939 = vst [vmem:[#allocation75_spill] sm:$0xff] %v10753_v46  ;;  %v1535_v55 = vmax.f32 %v1383_v5, 0.0  ;;  %v1496_v51 = vmax.f32 %v1344_v1, 0.0  ;;  %v13944_v5 = vld [vmem:[#allocation8_spill] sm:$0xff]  ;;  %v1238_v1 = vadd.f32 %v1086_v28, %v834_v25  ;;  %v787_v12 = vmul.f32 %v10581_v43, %v10468_v19 }
 0x138   : > { %v825_v63 = vmul.f32 %v10367_v48, %v13944_v5  ;;  %v826_v10 = vmul.f32 %v10374_v53, %v13944_v5  ;;  %13945 = vst [vmem:[#allocation77_spill] sm:$0xff] %v10783_v36  ;;  %v1031_v21 = vmul.f32 %v10583_v40, %v10459_v7 }
 0x139   : > { %v10785_v20 = vpack.c.bf16 %v1543_v54, %v1535_v55  ;;  %v10789_v34 = vpack.c.bf16 %v1496_v51, %v1488_v45  ;;  %13948 = vst [vmem:[#allocation80_spill] sm:$0xff] %v10793_v50  ;;  %v1039_v55 = vmul.f32 %v10583_v40, %v10461_v58  ;;  %v780_v54 = vmul.f32 %v10585_v31, %v10420_v62 }
 0x13a   : > { %v1229_v46 = vadd.f32 %v1077_v0, %v825_v63  ;;  %v1032_v0 = vmul.f32 %v10590_v39, %v10459_v7  ;;  %v13950_v7 = vld [vmem:[#allocation10_spill] sm:$0xff] }
 0x13b   : > { %13946 = vst [vmem:[#allocation78_spill] sm:$0xff] %v10785_v20 }
 0x13c   : > { %v3262_v37 = vpop.f32.mrf.mxu2  ;;  %v3320_v27 = vpop.f32.mrf.mxu3  ;;  %13947 = vst [vmem:[#allocation79_spill] sm:$0xff] %v10789_v34  ;;  %v1398_v51 = vadd.f32 %v10383_v16, %v1229_v46  ;;  %v841_v46 = vmul.f32 %v10367_v48, %v13950_v7 }
 0x13d   : > { %v10775_v42 = vadd.f32 %v3320_v27, %v3262_v37  ;;  %v1237_v37 = vadd.f32 %v1085_v38, %v833_v18  ;;  %v1230_v27 = vadd.f32 %v1078_v3, %v826_v10  ;;  %v788_v18 = vmul.f32 %v10585_v31, %v10468_v19 }
 0x13e   : > { %v1040_v38 = vmul.f32 %v10590_v39, %v10461_v58  ;;  %v1407_v10 = vadd.f32 %v10435_v32, %v1238_v1 }
 0x13f   : > { %13943 = vst [vmem:[#allocation76_spill] sm:$0xff] %v10775_v42  ;;  %v1406_v28 = vadd.f32 %v10383_v16, %v1237_v37  ;;  %v1399_v63 = vadd.f32 %v10435_v32, %v1230_v27  ;;  %v1184_v42 = vadd.f32 %v1032_v0, %v780_v54  ;;  %v13951_v37 = vld [vmem:[#allocation16_spill] sm:$0xff]  ;;  %v13952_v0 = vld [vmem:[#allocation17_spill] sm:$0xff] }
 0x140   : > { %v1192_v58 = vadd.f32 %v1040_v38, %v788_v18  ;;  %v1093_v19 = vmul.f32 %v10362_v57, %v13951_v37  ;;  %v849_v38 = vmul.f32 %v10367_v48, %v13952_v0 }
 0x141   : > { %3370 = vmatmul.bf16.gmra.mxu2 %v10783_v36  ;;  %3428 = vmatmul.bf16.gmra.mxu3 %v10785_v20  ;;  %v1183_v20 = vadd.f32 %v1031_v21, %v779_v9  ;;  %v1191_v36 = vadd.f32 %v1039_v55, %v787_v12  ;;  %v1353_v9 = vadd.f32 %v10649_v61, %v1184_v42  ;;  %v8868_v21 = vld [vmem:[#allocation2 + $0x720] sm:$0xf]  ;;  %v9658_v55 = vld [vmem:[#allocation2 + $0x72c] sm:$0xf0] }
 0x142   : > { %v1361_v12 = vadd.f32 %v10649_v61, %v1192_v58  ;;  %v1245_v42 = vadd.f32 %v1093_v19, %v841_v46  ;;  %v850_v58 = vmul.f32 %v10374_v53, %v13952_v0  ;;  %v795_v19 = vmul.f32 %v10581_v43, %v10505_v60 }
 0x143   : > { %v1352_v27 = vadd.f32 %v10646_v35, %v1183_v20  ;;  %v1360_v1 = vadd.f32 %v10646_v35, %v1191_v36  ;;  %v1505_v62 = vmax.f32 %v1353_v9, 0.0  ;;  %v804_v9 = vmul.f32 %v10585_v31, %v10529_v44 }
 0x144   : > { %v3265_v25 = vpop.f32.mrf.mxu2  ;;  %v3323_v3 = vpop.f32.mrf.mxu3  ;;  %v1513_v8 = vmax.f32 %v1361_v12, 0.0  ;;  %v1048_v12 = vmul.f32 %v10590_v39, %v10531_v59 }
 0x145   : > { %v10809_v45 = vadd.f32 %v3323_v3, %v3265_v25  ;;  %3471 = vmatmul.bf16.gmra.mxu0 %v10789_v34  ;;  %3529 = vmatmul.bf16.gmra.mxu1 %v10793_v50  ;;  %v8741_v25 = vor.u32 %v9626_v17, %v8740_v15  ;;  %v1550_v3 = vmax.f32 %v1398_v51, 0.0  ;;  %v1551_v34 = vmax.f32 %v1399_v63, 0.0  ;;  %v13953_v51 = vld [vmem:[#allocation18_spill] sm:$0xff] }
 0x146   : > { %v1559_v50 = vmax.f32 %v1407_v10, 0.0  ;;  %v8869_v15 = vor.u32 %v9658_v55, %v8868_v21  ;;  %v1102_v63 = vmul.f32 %v10385_v22, %v13953_v51  ;;  %v1504_v10 = vmax.f32 %v1352_v27, 0.0 }
 0x147   : > { %13949 = vst [vmem:[#allocation81_spill] sm:$0xff] %v10809_v45  ;;  %v1558_v45 = vmax.f32 %v1406_v28, 0.0  ;;  %3575 = vmatpush.bf16.msra.mxu2 %v8741_v25  ;;  %v1101_v28 = vmul.f32 %v10362_v57, %v13953_v51  ;;  %v1512_v25 = vmax.f32 %v1360_v1, 0.0  ;;  %v842_v21 = vmul.f32 %v10374_v53, %v13950_v7 }
 0x148   : > { %v10833_v36 = vpack.c.bf16 %v1559_v50, %v1551_v34  ;;  %3633 = vmatpush.bf16.msra.mxu3 %v8869_v15  ;;  %v1094_v34 = vmul.f32 %v10385_v22, %v13951_v37  ;;  %v803_v50 = vmul.f32 %v10581_v43, %v10529_v44  ;;  %v796_v1 = vmul.f32 %v10585_v31, %v10505_v60 }
 0x149   : > { %v10831_v20 = vpack.c.bf16 %v1558_v45, %v1550_v3  ;;  %v1253_v24 = vadd.f32 %v1101_v28, %v849_v38  ;;  %v1047_v45 = vmul.f32 %v10583_v40, %v10531_v59  ;;  %v1055_v3 = vmul.f32 %v10583_v40, %v10541_v56 }
 0x14a   : > { %13956 = vst [vmem:[#allocation84_spill] sm:$0xff] %v10833_v36  ;;  %v1056_v55 = vmul.f32 %v10590_v39, %v10541_v56  ;;  %v10865_v38 = vpack.c.bf16 %v1513_v8, %v1505_v62  ;;  %v1254_v28 = vadd.f32 %v1102_v63, %v850_v58  ;;  %v1246_v59 = vadd.f32 %v1094_v34, %v842_v21 }
 0x14b   : > { %13955 = vst [vmem:[#allocation83_spill] sm:$0xff] %v10831_v20  ;;  %v1199_v44 = vadd.f32 %v1047_v45, %v795_v19  ;;  %v1207_v56 = vadd.f32 %v1055_v3, %v803_v50  ;;  %v13962_v45 = vld [vmem:[#allocation19_spill] sm:$0xff] }
 0x14c   : > { %v3267_v54 = vpop.f32.mrf.mxu2  ;;  %v3325_v18 = vpop.f32.mrf.mxu3  ;;  %13958 = vst [vmem:[#allocation86_spill] sm:$0xff] %v10865_v38  ;;  %v1423_v62 = vadd.f32 %v10435_v32, %v1254_v28  ;;  %v1415_v58 = vadd.f32 %v10435_v32, %v1246_v59  ;;  %v865_v3 = vmul.f32 %v10367_v48, %v13962_v45 }
 0x14d   : > { %v10829_v17 = vadd.f32 %v3325_v18, %v3267_v54  ;;  %v10863_v18 = vpack.c.bf16 %v1512_v25, %v1504_v10  ;;  %v1422_v10 = vadd.f32 %v10383_v16, %v1253_v24  ;;  %v13961_v25 = vld [vmem:[#allocation23_spill] sm:$0xff]  ;;  %v1368_v21 = vadd.f32 %v10646_v35, %v1199_v44 }
 0x14e   : > { %v1376_v34 = vadd.f32 %v10646_v35, %v1207_v56  ;;  %v1575_v59 = vmax.f32 %v1423_v62, 0.0  ;;  %v866_v56 = vmul.f32 %v10374_v53, %v13962_v45  ;;  %v9622_v45 = vld [vmem:[#allocation2 + $0x60c] sm:$0xf0] }
 0x14f   : > { %13954 = vst [vmem:[#allocation82_spill] sm:$0xff] %v10829_v17  ;;  %v1414_v17 = vadd.f32 %v10383_v16, %v1245_v42  ;;  %v1520_v62 = vmax.f32 %v1368_v21, 0.0 }
 0x150   : > { %13957 = vst [vmem:[#allocation85_spill] sm:$0xff] %v10863_v18 }
 0x151   : > { %3375 = vmatmul.bf16.gmra.mxu2 %v10831_v20  ;;  %3433 = vmatmul.bf16.gmra.mxu3 %v10833_v36  ;;  %v1566_v8 = vmax.f32 %v1414_v17, 0.0  ;;  %v1574_v17 = vmax.f32 %v1422_v10, 0.0  ;;  %v1110_v10 = vmul.f32 %v10385_v22, %v13961_v25 }
 0x152   : > { %v3230_v46 = vpop.f32.mrf.mxu0  ;;  %v3288_v27 = vpop.f32.mrf.mxu1 }
 0x153   : > { %v10861_v54 = vadd.f32 %v3288_v27, %v3230_v46  ;;  %v1200_v46 = vadd.f32 %v1048_v12, %v796_v1  ;;  %v1208_v27 = vadd.f32 %v1056_v55, %v804_v9  ;;  %v13963_v12 = vld [vmem:[#allocation25_spill] sm:$0xff]  ;;  %v10899_v60 = vpack.c.bf16 %v1574_v17, %v1566_v8 }
 0x154   : > { %v3270_v15 = vpop.f32.mrf.mxu2  ;;  %v3328_v36 = vpop.f32.mrf.mxu3  ;;  %v1117_v55 = vmul.f32 %v10362_v57, %v13963_v12 }
 0x155   : > { %v10867_v20 = vadd.f32 %v3328_v36, %v3270_v15  ;;  %3476 = vmatmul.bf16.gmra.mxu0 %v10863_v18  ;;  %3534 = vmatmul.bf16.gmra.mxu1 %v10865_v38  ;;  %v13960_v36 = vld [vmem:[#allocation22_spill] sm:$0xff]  ;;  %v1109_v15 = vmul.f32 %v10362_v57, %v13961_v25  ;;  %v1369_v19 = vadd.f32 %v10649_v61, %v1200_v46  ;;  %v1567_v46 = vmax.f32 %v1415_v58, 0.0 }
 0x156   : > { %v857_v63 = vmul.f32 %v10367_v48, %v13960_v36  ;;  %v1377_v24 = vadd.f32 %v10649_v61, %v1208_v27  ;;  %v858_v44 = vmul.f32 %v10374_v53, %v13960_v36  ;;  %13965 = vst [vmem:[#allocation88_spill] sm:$0xff] %v10899_v60  ;;  %v8852_v36 = vld [vmem:[#allocation2 + $0x700] sm:$0xf]  ;;  %v1269_v4 = vadd.f32 %v1117_v55, %v865_v3 }
 0x157   : > { %13959 = vst [vmem:[#allocation87_spill] sm:$0xff] %v10867_v20  ;;  %v1521_v18 = vmax.f32 %v1369_v19, 0.0  ;;  %v10901_v14 = vpack.c.bf16 %v1575_v59, %v1567_v46  ;;  %v1071_v19 = vmul.f32 %v10583_v40, %v13931_v6 }
 0x158   : > { %v1261_v27 = vadd.f32 %v1109_v15, %v857_v63  ;;  %v1529_v20 = vmax.f32 %v1377_v24, 0.0  ;;  %v1262_v8 = vadd.f32 %v1110_v10, %v858_v44  ;;  %v1438_v55 = vadd.f32 %v10383_v16, %v1269_v4 }
 0x159   : > { %13966 = vst [vmem:[#allocation89_spill] sm:$0xff] %v10901_v14  ;;  %v1064_v4 = vmul.f32 %v10590_v39, %v10145_v29 }
 0x15a   : > { %v3232_v38 = vpop.f32.mrf.mxu0  ;;  %v3290_v42 = vpop.f32.mrf.mxu1  ;;  %v1430_v58 = vadd.f32 %v10383_v16, %v1261_v27  ;;  %v10916_v59 = vpack.c.bf16 %v1529_v20, %v1521_v18  ;;  %v812_v20 = vmul.f32 %v10585_v31, %v10147_v30  ;;  %v1431_v18 = vadd.f32 %v10435_v32, %v1262_v8 }
 0x15b   : > { %v10883_v50 = vadd.f32 %v3290_v42, %v3232_v38  ;;  %v1118_v38 = vmul.f32 %v10385_v22, %v13963_v12  ;;  %v1528_v42 = vmax.f32 %v1376_v34, 0.0  ;;  %v819_v34 = vmul.f32 %v10581_v43, %v10172_v47 }
 0x15c   : > { %v3272_v1 = vpop.f32.mrf.mxu2  ;;  %v3330_v9 = vpop.f32.mrf.mxu3  ;;  %13968 = vst [vmem:[#allocation91_spill] sm:$0xff] %v10916_v59  ;;  %v1590_v10 = vmax.f32 %v1438_v55, 0.0  ;;  %v1087_v8 = vmul.f32 %v10583_v40, %v13942_v13  ;;  %v9488_v55 = vld [vmem:[#allocation2 + $0x1e4] sm:$0xf] }
 0x15d   : > { %v10895_v28 = vadd.f32 %v3330_v9, %v3272_v1  ;;  %v1270_v12 = vadd.f32 %v1118_v38, %v866_v56  ;;  %v8725_v1 = vor.u32 %v9622_v45, %v8724_v33  ;;  %v9654_v9 = vld [vmem:[#allocation2 + $0x70c] sm:$0xf0]  ;;  %v820_v33 = vmul.f32 %v10585_v31, %v10172_v47 }
 0x15e   : > { %v8853_v63 = vor.u32 %v9654_v9, %v8852_v36  ;;  %v10914_v17 = vpack.c.bf16 %v1528_v42, %v1520_v62  ;;  %v1072_v36 = vmul.f32 %v10590_v39, %v13931_v6  ;;  %v811_v56 = vmul.f32 %v10581_v43, %v10147_v30 }
 0x15f   : > { %13964 = vst [vmem:[#allocation23_spill] sm:$0xff] %v10895_v28  ;;  %3576 = vmatpush.bf16.msra.mxu2 %v8725_v1  ;;  %v1439_v44 = vadd.f32 %v10435_v32, %v1270_v12  ;;  %v1063_v38 = vmul.f32 %v10583_v40, %v10145_v29  ;;  %v1223_v12 = vadd.f32 %v1071_v19, %v819_v34  ;;  %v1582_v42 = vmax.f32 %v1430_v58, 0.0 }
 0x160   : > { %13967 = vst [vmem:[#allocation90_spill] sm:$0xff] %v10914_v17  ;;  %3634 = vmatpush.bf16.msra.mxu3 %v8853_v63  ;;  %v1224_v27 = vadd.f32 %v1072_v36, %v820_v33  ;;  %v1216_v9 = vadd.f32 %v1064_v4, %v812_v20  ;;  %v1079_v63 = vmul.f32 %v10583_v40, %v13941_v23  ;;  %v9456_v33 = vld [vmem:[#allocation2 + $0xe4] sm:$0xf]  ;;  %v8070_v36 = vld [vmem:[#allocation2 + $0xf0] sm:$0xf0] }
 0x161   : > { %3380 = vmatmul.bf16.gmra.mxu2 %v10899_v60  ;;  %3438 = vmatmul.bf16.gmra.mxu3 %v10901_v14  ;;  %v1215_v62 = vadd.f32 %v1063_v38, %v811_v56  ;;  %v1591_v1 = vmax.f32 %v1439_v44, 0.0  ;;  %v827_v19 = vmul.f32 %v10581_v43, %v13944_v5  ;;  %v10947_v38 = vpack.c.bf16 %v1590_v10, %v1582_v42  ;;  %v13972_v14 = vld [vmem:[#allocation24_spill] sm:$0xff] }
 0x162   : > { %v3235_v15 = vpop.f32.mrf.mxu0  ;;  %v3293_v21 = vpop.f32.mrf.mxu1  ;;  %v1393_v58 = vadd.f32 %v10649_v61, %v1224_v27  ;;  %v8073_v4 = vor.u32 %v9456_v33, %v8070_v36  ;;  %v873_v60 = vmul.f32 %v10367_v48, %v13972_v14  ;;  %v836_v48 = vmul.f32 %v10585_v31, %v13940_v41 }
 0x163   : > { %v10912_v24 = vadd.f32 %v3293_v21, %v3235_v15  ;;  %13970 = vst [vmem:[#allocation93_spill] sm:$0xff] %v10947_v38  ;;  %v1384_v20 = vadd.f32 %v10646_v35, %v1215_v62  ;;  %v874_v62 = vmul.f32 %v10374_v53, %v13972_v14 }
 0x164   : > { %v3275_v45 = vpop.f32.mrf.mxu2  ;;  %v3333_v3 = vpop.f32.mrf.mxu3  ;;  %3685 = vmatpush.bf16.msra.mxu0 %v8073_v4  ;;  %v1545_v10 = vmax.f32 %v1393_v58, 0.0 }
 0x165   : > { %v10926_v46 = vadd.f32 %v3333_v3, %v3275_v45  ;;  %3481 = vmatmul.bf16.gmra.mxu0 %v10914_v17  ;;  %3539 = vmatmul.bf16.gmra.mxu1 %v10916_v59  ;;  %v1583_v45 = vmax.f32 %v1431_v18, 0.0  ;;  %v1392_v3 = vadd.f32 %v10646_v35, %v1223_v12  ;;  %v835_v59 = vmul.f32 %v10581_v43, %v13940_v41  ;;  %v8198_v18 = vld [vmem:[#allocation2 + $0x1f0] sm:$0xf0] }
 0x166   : > { %v8201_v27 = vor.u32 %v9488_v55, %v8198_v18 }
 0x167   : > { %13969 = vst [vmem:[#allocation92_spill] sm:$0xff] %v10926_v46  ;;  %v10950_v12 = vpack.c.bf16 %v1591_v1, %v1583_v45  ;;  %v1544_v17 = vmax.f32 %v1392_v3, 0.0  ;;  %v13973_v46 = vld [vmem:[#allocation26_spill] sm:$0xff]  ;;  %v1080_v1 = vmul.f32 %v10590_v39, %v13941_v23 }
 0x168   : > { %v1126_v42 = vmul.f32 %v10385_v22, %v13973_v46  ;;  %3743 = vmatpush.bf16.msra.mxu1 %v8201_v27  ;;  %v828_v22 = vmul.f32 %v10585_v31, %v13944_v5  ;;  %v8326_v45 = vld [vmem:[#allocation2 + $0x2f0] sm:$0xf0] }
 0x169   : > { %13971 = vst [vmem:[#allocation94_spill] sm:$0xff] %v10950_v12 }
 0x16a   : > { %v3237_v15 = vpop.f32.mrf.mxu0  ;;  %v3295_v21 = vpop.f32.mrf.mxu1  ;;  %v1278_v4 = vadd.f32 %v1126_v42, %v874_v62  ;;  %v1232_v18 = vadd.f32 %v1080_v1, %v828_v22 }
 0x16b   : > { %v10942_v34 = vadd.f32 %v3295_v21, %v3237_v15  ;;  %v1385_v15 = vadd.f32 %v10649_v61, %v1216_v9  ;;  %v1231_v21 = vadd.f32 %v1079_v63, %v827_v19  ;;  %v1536_v9 = vmax.f32 %v1384_v20, 0.0  ;;  %v9520_v63 = vld [vmem:[#allocation2 + $0x2e4] sm:$0xf] }
 0x16c   : > { %v3277_v44 = vpop.f32.mrf.mxu2  ;;  %v3335_v56 = vpop.f32.mrf.mxu3  ;;  %v8329_v36 = vor.u32 %v9520_v63, %v8326_v45  ;;  %v1447_v42 = vadd.f32 %v10435_v32, %v1278_v4  ;;  %v851_v4 = vmul.f32 %v10581_v43, %v13952_v0 }
 0x16d   : > { %v1125_v44 = vmul.f32 %v10362_v57, %v13973_v46  ;;  %v1239_v56 = vadd.f32 %v1087_v8, %v835_v59  ;;  %v1088_v57 = vmul.f32 %v10590_v39, %v13942_v13  ;;  %v1537_v59 = vmax.f32 %v1385_v15, 0.0  ;;  %v9552_v15 = vld [vmem:[#allocation2 + $0x3e4] sm:$0xf] }
 0x16e   : > { %v1400_v53 = vadd.f32 %v10646_v35, %v1231_v21  ;;  %v10972_v58 = vpack.c.bf16 %v1544_v17, %v1536_v9  ;;  %v8454_v21 = vld [vmem:[#allocation2 + $0x3f0] sm:$0xf0]  ;;  %3801 = vmatpush.bf16.msrb.mxu2 %v8329_v36  ;;  %v1401_v9 = vadd.f32 %v10649_v61, %v1232_v18  ;;  %v1095_v18 = vmul.f32 %v10583_v40, %v13951_v37 }
 0x16f   : > { %v1277_v19 = vadd.f32 %v1125_v44, %v873_v60  ;;  %v1408_v33 = vadd.f32 %v10646_v35, %v1239_v56  ;;  %v10977_v20 = vpack.c.bf16 %v1545_v10, %v1537_v59  ;;  %v8457_v28 = vor.u32 %v9552_v15, %v8454_v21 }
 0x170   : > { %13974 = vst [vmem:[#allocation24_spill] sm:$0xff] %v10972_v58  ;;  %v1552_v44 = vmax.f32 %v1400_v53, 0.0  ;;  %v709_v56 = vperm.slane %v10568_v26, 4  ;;  %v961_v10 = vperm.slane %v10568_v26, 5  ;;  %v1553_v45 = vmax.f32 %v1401_v9, 0.0 }
 0x171   : > { %3385 = vmatmul.bf16.gmra.mxu2 %v10947_v38  ;;  %3443 = vmatmul.bf16.gmra.mxu3 %v10950_v12  ;;  %13975 = vst [vmem:[#allocation26_spill] sm:$0xff] %v10977_v20  ;;  %v1240_v38 = vadd.f32 %v1088_v57, %v836_v48  ;;  %v1446_v60 = vadd.f32 %v10383_v16, %v1277_v19  ;;  %v1560_v1 = vmax.f32 %v1408_v33, 0.0  ;;  %v710_v48 = vperm.slane %v10568_v26, 6  ;;  %v9484_v9 = vld [vmem:[#allocation2 + $0x1c4] sm:$0xf] }
 0x172   : > { %v3240_v3 = vpop.f32.mrf.mxu0  ;;  %v3298_v8 = vpop.f32.mrf.mxu1  ;;  %3859 = vmatpush.bf16.msrb.mxu3 %v8457_v28  ;;  %v962_v57 = vperm.slane %v10568_v26, 7  ;;  %v10992_v22 = vperm.slane %v709_v56, 0  ;;  %v10994_v63 = vperm.slane %v961_v10, 1  ;;  %v843_v26 = vmul.f32 %v10581_v43, %v13950_v7 }
 0x173   : > { %v10975_v55 = vadd.f32 %v3298_v8, %v3240_v3  ;;  %v1598_v53 = vmax.f32 %v1446_v60, 0.0  ;;  %v10998_v32 = vpack.c.bf16 %v1560_v1, %v1552_v44  ;;  %v11000_v19 = vperm.slane %v710_v48, 0  ;;  %v8054_v1 = vld [vmem:[#allocation2 + $0xd0] sm:$0xf0] }
 0x174   : > { %v3346_v27 = vpop.f32.mrf.mxu2  ;;  %v3404_v12 = vpop.f32.mrf.mxu3  ;;  %v11002_v33 = vperm.slane %v962_v57, 1  ;;  %v1103_v15 = vmul.f32 %v10583_v40, %v13953_v51  ;;  %v733_v56 = vmul.f32 %v10992_v22, %v10280_v2  ;;  %v1104_v10 = vmul.f32 %v10590_v39, %v13953_v51 }
 0x175   : > { %v3347_v17 = vadd.f32 %v3346_v27, %v10861_v54  ;;  %3486 = vmatmul.bf16.gmra.mxu0 %v10972_v58  ;;  %3544 = vmatmul.bf16.gmra.mxu1 %v10977_v20  ;;  %v1409_v54 = vadd.f32 %v10649_v61, %v1240_v38  ;;  %13976 = vst [vmem:[#allocation95_spill] sm:$0xff] %v10998_v32 }
 0x176   : > { %v11013_v21 = vpack.c.bf16 %v1598_v53, %v1598_v53  ;;  %v993_v27 = vmul.f32 %v10994_v63, %v10302_v52  ;;  %v742_v48 = vmul.f32 %v11000_v19, %v10260_v49  ;;  %v1096_v53 = vmul.f32 %v10590_v39, %v13951_v37  ;;  %v13980_v37 = vld [vmem:[#allocation65_spill] sm:$0xff] }
 0x177   : > { %v10985_v62 = vadd.f32 %v3404_v12, %v3347_v17  ;;  %v1599_v12 = vmax.f32 %v1447_v42, 0.0  ;;  %v1561_v38 = vmax.f32 %v1409_v54, 0.0  ;;  %v994_v17 = vmul.f32 %v11002_v33, %v10302_v52  ;;  %v9452_v42 = vld [vmem:[#allocation2 + $0xc4] sm:$0xf] }
 0x178   : > { %13977 = vst [vmem:[#allocation96_spill] sm:$0xff] %v11013_v21  ;;  %v741_v54 = vmul.f32 %v10992_v22, %v10260_v49  ;;  %v734_v52 = vmul.f32 %v11000_v19, %v10280_v2  ;;  %v8057_v57 = vor.u32 %v9452_v42, %v8054_v1  ;;  %v985_v2 = vmul.f32 %v10994_v63, %v10286_v11 }
 0x179   : > { %v11023_v44 = vpack.c.bf16 %v1599_v12, %v1599_v12  ;;  %v986_v49 = vmul.f32 %v11002_v33, %v10286_v11  ;;  %v1146_v42 = vadd.f32 %v994_v17, %v742_v48  ;;  %v13981_v48 = vld [vmem:[#allocation22_spill] sm:$0xff] }
 0x17a   : > { %v3242_v16 = vpop.f32.mrf.mxu0  ;;  %v3300_v59 = vpop.f32.mrf.mxu1  ;;  %3686 = vmatpush.bf16.msra.mxu0 %v8057_v57  ;;  %v859_v57 = vmul.f32 %v10581_v43, %v13981_v48 }
 0x17b   : > { %v10996_v28 = vadd.f32 %v3300_v59, %v3242_v16  ;;  %13978 = vst [vmem:[#allocation97_spill] sm:$0xff] %v11023_v44  ;;  %v8182_v16 = vld [vmem:[#allocation2 + $0x1d0] sm:$0xf0]  ;;  %v844_v59 = vmul.f32 %v10585_v31, %v13950_v7  ;;  %v11050_v7 = vperm.slane %v13980_v37, 6  ;;  %v1138_v51 = vadd.f32 %v986_v49, %v734_v52  ;;  %v13982_v49 = vld [vmem:[#allocation19_spill] sm:$0xff] }
 0x17c   : > { %v3348_v3 = vpop.f32.mrf.mxu2  ;;  %v3406_v8 = vpop.f32.mrf.mxu3  ;;  %v8185_v12 = vor.u32 %v9484_v9, %v8182_v16  ;;  %v1137_v16 = vadd.f32 %v985_v2, %v733_v56 }
 0x17d   : > { %v3349_v36 = vadd.f32 %v3348_v3, %v10883_v50  ;;  %v852_v50 = vmul.f32 %v10585_v31, %v13952_v0 }
 0x17e   : > { %3744 = vmatpush.bf16.msra.mxu1 %v8185_v12 }
 0x17f   : > { %v11021_v60 = vadd.f32 %v3406_v8, %v3349_v36  ;;  %v1145_v36 = vadd.f32 %v993_v27, %v741_v54  ;;  %v1256_v20 = vadd.f32 %v1104_v10, %v852_v50  ;;  %v11053_v27 = vperm.slane %v13980_v37, 7  ;;  %v9516_v37 = vld [vmem:[#allocation2 + $0x2c4] sm:$0xf]  ;;  %v8310_v10 = vld [vmem:[#allocation2 + $0x2d0] sm:$0xf0] }
 0x181   : > { %3390 = vmatmul.bf16.gmra.mxu2 %v11013_v21  ;;  %3448 = vmatmul.bf16.gmra.mxu3 %v11023_v44  ;;  %v11047_v44 = vpack.c.bf16 %v1561_v38, %v1553_v45  ;;  %v1255_v21 = vadd.f32 %v1103_v15, %v851_v4  ;;  %v1247_v45 = vadd.f32 %v1095_v18, %v843_v26  ;;  %v8438_v18 = vld [vmem:[#allocation2 + $0x3d0] sm:$0xf0] }
 0x182   : > { %v3245_v3 = vpop.f32.mrf.mxu0  ;;  %v3303_v8 = vpop.f32.mrf.mxu1  ;;  %v1314_v38 = vadd.f32 %v11050_v7, %v1145_v36  ;;  %v1315_v4 = vadd.f32 %v11053_v27, %v1146_v42  ;;  %v1248_v15 = vadd.f32 %v1096_v53, %v844_v59  ;;  %v11064_v56 = vadd.f32 %v10649_v61, %v1256_v20 }
 0x183   : > { %v11045_v1 = vadd.f32 %v3303_v8, %v3245_v3  ;;  %13979 = vst [vmem:[#allocation98_spill] sm:$0xff] %v11047_v44  ;;  %v1424_v50 = vadd.f32 %v10646_v35, %v1255_v21  ;;  %v1307_v54 = vadd.f32 %v11053_v27, %v1138_v51  ;;  %v8313_v26 = vor.u32 %v9516_v37, %v8310_v10  ;;  %v13984_v10 = vld [vmem:[#allocation33_spill] sm:$0xff] }
 0x184   : > { %v3351_v58 = vpop.f32.mrf.mxu2  ;;  %v3409_v9 = vpop.f32.mrf.mxu3  ;;  %v1416_v52 = vadd.f32 %v10646_v35, %v1247_v45  ;;  %v1466_v12 = vmax.f32 %v1314_v38, 0.0  ;;  %v1467_v20 = vmax.f32 %v1315_v4, 0.0  ;;  %v1417_v3 = vadd.f32 %v10649_v61, %v1248_v15  ;;  %v13983_v38 = vld [vmem:[#allocation25_spill] sm:$0xff] }
 0x185   : > { %v3352_v11 = vadd.f32 %v3351_v58, %v10912_v24  ;;  %3491 = vmatmul.bf16.gmra.mxu0 %v10998_v32  ;;  %3549 = vmatmul.bf16.gmra.mxu1 %v11047_v44  ;;  %v9548_v24 = vld [vmem:[#allocation2 + $0x3c4] sm:$0xf]  ;;  %v1306_v58 = vadd.f32 %v11050_v7, %v1137_v16  ;;  %v1111_v8 = vmul.f32 %v10583_v40, %v13961_v25  ;;  %v1576_v51 = vmax.f32 %v1424_v50, 0.0 }
 0x186   : > { %v8441_v59 = vor.u32 %v9548_v24, %v8438_v18  ;;  %3802 = vmatpush.bf16.msrb.mxu2 %v8313_v26  ;;  %v1577_v36 = vmax.f32 %v11064_v56, 0.0  ;;  %v867_v42 = vmul.f32 %v10581_v43, %v13982_v49  ;;  %v1459_v45 = vmax.f32 %v1307_v54, 0.0  ;;  %v13985_v56 = vld [vmem:[#allocation34_spill] sm:$0xff]  ;;  %v13989_v54 = vld [vmem:[#allocation29_spill] sm:$0xff] }
 0x187   : > { %v11060_v17 = vadd.f32 %v3409_v9, %v3352_v11  ;;  %v1458_v11 = vmax.f32 %v1306_v58, 0.0  ;;  %v1119_v4 = vmul.f32 %v10583_v40, %v13983_v38  ;;  %v868_v15 = vmul.f32 %v10585_v31, %v13982_v49  ;;  %v13986_v26 = vld [vmem:[#allocation30_spill] sm:$0xff] }
 0x188   : > { %3860 = vmatpush.bf16.msrb.mxu3 %v8441_v59  ;;  %v757_v50 = vmul.f32 %v10992_v22, %v13984_v10  ;;  %v1001_v24 = vmul.f32 %v10994_v63, %v13985_v56  ;;  %v1009_v18 = vmul.f32 %v10994_v63, %v13986_v26  ;;  %v11092_v58 = vpack.c.bf16 %v1467_v20, %v1459_v45  ;;  %v8038_v20 = vld [vmem:[#allocation2 + $0xb0] sm:$0xf0]  ;;  %v9480_v45 = vld [vmem:[#allocation2 + $0x1a4] sm:$0xf] }
 0x189   : > { %v11090_v59 = vpack.c.bf16 %v1466_v12, %v1458_v11  ;;  %v1002_v44 = vmul.f32 %v11002_v33, %v13985_v56  ;;  %v1010_v12 = vmul.f32 %v11002_v33, %v13986_v26  ;;  %v9448_v11 = vld [vmem:[#allocation2 + $0xa4] sm:$0xf]  ;;  %v1568_v32 = vmax.f32 %v1416_v52, 0.0 }
 0x18a   : > { %v3247_v53 = vpop.f32.mrf.mxu0  ;;  %v3305_v21 = vpop.f32.mrf.mxu1  ;;  %13988 = vst [vmem:[#allocation22_spill] sm:$0xff] %v11092_v58  ;;  %v750_v49 = vmul.f32 %v11000_v19, %v13989_v54  ;;  %v1161_v0 = vadd.f32 %v1009_v18, %v757_v50  ;;  %v1271_v52 = vadd.f32 %v1119_v4, %v867_v42 }
 0x18b   : > { %v11074_v2 = vadd.f32 %v3305_v21, %v3247_v53  ;;  %13987 = vst [vmem:[#allocation65_spill] sm:$0xff] %v11090_v59  ;;  %v749_v53 = vmul.f32 %v10992_v22, %v13989_v54  ;;  %v1120_v21 = vmul.f32 %v10590_v39, %v13983_v38  ;;  %v8166_v38 = vld [vmem:[#allocation2 + $0x1b0] sm:$0xf0]  ;;  %v11112_v23 = vpack.c.bf16 %v1576_v51, %v1568_v32 }
 0x18c   : > { %v3353_v9 = vpop.f32.mrf.mxu2  ;;  %v3411_v16 = vpop.f32.mrf.mxu3  ;;  %v8169_v26 = vor.u32 %v9480_v45, %v8166_v38  ;;  %v1112_v54 = vmul.f32 %v10590_v39, %v13961_v25  ;;  %v1263_v38 = vadd.f32 %v1111_v8, %v859_v57  ;;  %v1330_v51 = vadd.f32 %v11050_v7, %v1161_v0  ;;  %v9440_v0 = vld [vmem:[#allocation2 + $0x64] sm:$0xf]  ;;  %v8134_v45 = vld [vmem:[#allocation2 + $0x170] sm:$0xf0] }
 0x18d   : > { %v3354_v37 = vadd.f32 %v3353_v9, %v10942_v34  ;;  %v758_v9 = vmul.f32 %v11000_v19, %v13984_v10  ;;  %v1569_v10 = vmax.f32 %v1417_v3, 0.0  ;;  %v1153_v56 = vadd.f32 %v1001_v24, %v749_v53  ;;  %13990 = vst [vmem:[#allocation33_spill] sm:$0xff] %v11112_v23  ;;  %v8006_v53 = vld [vmem:[#allocation2 + $0x70] sm:$0xf0] }
 0x18e   : > { %v1272_v41 = vadd.f32 %v1120_v21, %v868_v15  ;;  %3745 = vmatpush.bf16.msra.mxu1 %v8169_v26  ;;  %v9472_v21 = vld [vmem:[#allocation2 + $0x164] sm:$0xf] }
 0x18f   : > { %v11098_v34 = vadd.f32 %v3411_v16, %v3354_v37  ;;  %v860_v16 = vmul.f32 %v10585_v31, %v13981_v48  ;;  %v8041_v37 = vor.u32 %v9448_v11, %v8038_v20  ;;  %v11118_v20 = vpack.c.bf16 %v1577_v36, %v1569_v10  ;;  %v9476_v36 = vld [vmem:[#allocation2 + $0x184] sm:$0xf] }
 0x190   : > { %v1322_v32 = vadd.f32 %v11050_v7, %v1153_v56  ;;  %v11129_v42 = vadd.f32 %v10649_v61, %v1272_v41  ;;  %v9512_v41 = vld [vmem:[#allocation2 + $0x2a4] sm:$0xf]  ;;  %v1482_v10 = vmax.f32 %v1330_v51, 0.0  ;;  %v8137_v56 = vor.u32 %v9472_v21, %v8134_v45  ;;  %v7990_v21 = vld [vmem:[#allocation2 + $0x50] sm:$0xf0] }
 0x191   : > { %3577 = vmatmul.bf16.vlgmr.msra.gmra.mxu2 %v11090_v59  ;;  %3635 = vmatmul.bf16.vlgmr.msra.gmra.mxu3 %v11092_v58  ;;  %13991 = vst [vmem:[#allocation34_spill] sm:$0xff] %v11118_v20  ;;  %v1154_v59 = vadd.f32 %v1002_v44, %v750_v49  ;;  %v1162_v58 = vadd.f32 %v1010_v12, %v758_v9  ;;  %v9468_v45 = vld [vmem:[#allocation2 + $0x144] sm:$0xf] }
 0x192   : > { %v3250_v5 = vpop.f32.mrf.mxu0  ;;  %v3308_v13 = vpop.f32.mrf.mxu1  ;;  %3687 = vmatpush.bf16.msra.mxu0 %v8041_v37  ;;  %v11126_v44 = vadd.f32 %v10646_v35, %v1271_v52  ;;  %v1264_v49 = vadd.f32 %v1112_v54, %v860_v16  ;;  %v11136_v9 = vadd.f32 %v10646_v35, %v1263_v38  ;;  %v8009_v12 = vor.u32 %v9440_v0, %v8006_v53  ;;  %v8294_v16 = vld [vmem:[#allocation2 + $0x2b0] sm:$0xf0]  ;;  %v9436_v53 = vld [vmem:[#allocation2 + $0x44] sm:$0xf] }
 0x193   : > { %v11116_v11 = vadd.f32 %v3308_v13, %v3250_v5  ;;  %v9444_v13 = vld [vmem:[#allocation2 + $0x84] sm:$0xf]  ;;  %v8022_v5 = vld [vmem:[#allocation2 + $0x90] sm:$0xf0]  ;;  %v1323_v4 = vadd.f32 %v11053_v27, %v1154_v59  ;;  %v1331_v15 = vadd.f32 %v11053_v27, %v1162_v58  ;;  %v1474_v37 = vmax.f32 %v1322_v32, 0.0 }
 0x194   : > { %v3356_v3 = vpop.f32.mrf.mxu2  ;;  %v3414_v50 = vpop.f32.mrf.mxu3  ;;  %v8025_v57 = vor.u32 %v9444_v13, %v8022_v5  ;;  %v8297_v26 = vor.u32 %v9512_v41, %v8294_v16  ;;  %v1592_v58 = vmax.f32 %v11126_v44, 0.0  ;;  %v1433_v54 = vadd.f32 %v10649_v61, %v1264_v49 }
 0x195   : > { %v3357_v24 = vadd.f32 %v3356_v3, %v10975_v55  ;;  %3496 = vmatmul.bf16.gmra.mxu0 %v11112_v23  ;;  %3554 = vmatmul.bf16.gmra.mxu1 %v11118_v20  ;;  %v8150_v55 = vld [vmem:[#allocation2 + $0x190] sm:$0xf0]  ;;  %v875_v3 = vmul.f32 %v10581_v43, %v13972_v14  ;;  %v1483_v32 = vmax.f32 %v1331_v15, 0.0  ;;  %v1593_v51 = vmax.f32 %v11129_v42, 0.0  ;;  %v9464_v20 = vld [vmem:[#allocation2 + $0x124] sm:$0xf] }
 0x196   : > { %v8153_v18 = vor.u32 %v9476_v36, %v8150_v55  ;;  %3688 = vmatpush.bf16.msra.mxu0 %v8025_v57  ;;  %3803 = vmatpush.bf16.msrb.mxu2 %v8297_v26  ;;  %v13992_v36 = vld [vmem:[#allocation38_spill] sm:$0xff]  ;;  %v13993_v57 = vld [vmem:[#allocation37_spill] sm:$0xff]  ;;  %v13994_v55 = vld [vmem:[#allocation40_spill] sm:$0xff]  ;;  %v11156_v15 = vpack.c.bf16 %v1482_v10, %v1474_v37  ;;  %v876_v0 = vmul.f32 %v10585_v31, %v13972_v14 }
 0x197   : > { %v11131_v8 = vadd.f32 %v3414_v50, %v3357_v24  ;;  %v1127_v50 = vmul.f32 %v10583_v40, %v13973_v46  ;;  %v1475_v24 = vmax.f32 %v1323_v4, 0.0  ;;  %v765_v44 = vmul.f32 %v10992_v22, %v13992_v36  ;;  %v8118_v37 = vld [vmem:[#allocation2 + $0x150] sm:$0xf0]  ;;  %v9544_v10 = vld [vmem:[#allocation2 + $0x3a4] sm:$0xf] }
 0x198   : > { %3746 = vmatpush.bf16.msra.mxu1 %v8153_v18  ;;  %v773_v49 = vmul.f32 %v10992_v22, %v13993_v57  ;;  %v1017_v43 = vmul.f32 %v10994_v63, %v13994_v55  ;;  %v13995_v18 = vld [vmem:[#allocation45_spill] sm:$0xff]  ;;  %v766_v42 = vmul.f32 %v11000_v19, %v13992_v36  ;;  %v774_v41 = vmul.f32 %v11000_v19, %v13993_v57  ;;  %v8422_v26 = vld [vmem:[#allocation2 + $0x3b0] sm:$0xf0] }
 0x199   : > { %v1025_v40 = vmul.f32 %v10994_v63, %v13995_v18  ;;  %v7993_v16 = vor.u32 %v9436_v53, %v7990_v21  ;;  %v11170_v31 = vpack.c.bf16 %v1483_v32, %v1475_v24  ;;  %v7974_v36 = vld [vmem:[#allocation2 + $0x30] sm:$0xf0]  ;;  %v1584_v24 = vmax.f32 %v11136_v9, 0.0 }
 0x19a   : > { %v3252_v59 = vpop.f32.mrf.mxu0  ;;  %v3310_v52 = vpop.f32.mrf.mxu1  ;;  %3689 = vmatpush.bf16.msra.mxu0 %v8009_v12  ;;  %v1018_v12 = vmul.f32 %v11002_v33, %v13994_v55  ;;  %v1169_v57 = vadd.f32 %v1017_v43, %v765_v44  ;;  %v1128_v55 = vmul.f32 %v10590_v39, %v13973_v46  ;;  %v8102_v53 = vld [vmem:[#allocation2 + $0x130] sm:$0xf0]  ;;  %v1585_v32 = vmax.f32 %v1433_v54, 0.0 }
 0x19b   : > { %v11144_v38 = vadd.f32 %v3310_v52, %v3252_v59  ;;  %v8425_v52 = vor.u32 %v9544_v10, %v8422_v26  ;;  %v1177_v23 = vadd.f32 %v1025_v40, %v773_v49  ;;  %v8105_v44 = vor.u32 %v9464_v20, %v8102_v53  ;;  %v7958_v20 = vld [vmem:[#allocation2 + $0x10] sm:$0xf0] }
 0x19c   : > { %v3358_v13 = vpop.f32.mrf.mxu2  ;;  %v3416_v5 = vpop.f32.mrf.mxu3  ;;  %3747 = vmatpush.bf16.msra.mxu1 %v8137_v56  ;;  %v8121_v56 = vor.u32 %v9468_v45, %v8118_v37  ;;  %v1170_v21 = vadd.f32 %v1018_v12, %v766_v42  ;;  %v11178_v39 = vpack.c.bf16 %v1592_v58, %v1584_v24  ;;  %v11180_v43 = vpack.c.bf16 %v1593_v51, %v1585_v32  ;;  %v9460_v58 = vld [vmem:[#allocation2 + $0x104] sm:$0xf] }
 0x19d   : > { %v3359_v4 = vadd.f32 %v3358_v13, %v10996_v28  ;;  %v1026_v28 = vmul.f32 %v11002_v33, %v13995_v18  ;;  %v9432_v13 = vld [vmem:[#allocation2 + $0x24] sm:$0xf]  ;;  %3861 = vmatpush.bf16.msrb.mxu3 %v8425_v52  ;;  %v1338_v37 = vadd.f32 %v11050_v7, %v1169_v57  ;;  %v1346_v9 = vadd.f32 %v11050_v7, %v1177_v23 }
 0x19e   : > { %3690 = vmatpush.bf16.msra.mxu0 %v7993_v16  ;;  %v7977_v18 = vor.u32 %v9432_v13, %v7974_v36  ;;  %v1279_v54 = vadd.f32 %v1127_v50, %v875_v3  ;;  %v1280_v10 = vadd.f32 %v1128_v55, %v876_v0  ;;  %v1339_v51 = vadd.f32 %v11053_v27, %v1170_v21  ;;  %v8086_v3 = vld [vmem:[#allocation2 + $0x110] sm:$0xf0] }
 0x19f   : > { %v11168_v59 = vadd.f32 %v3416_v5, %v3359_v4  ;;  %v1178_v45 = vadd.f32 %v1026_v28, %v774_v41  ;;  %v8089_v0 = vor.u32 %v9460_v58, %v8086_v3  ;;  %v1490_v28 = vmax.f32 %v1338_v37, 0.0  ;;  %v13996_v21 = vld [vmem:[#allocation42_spill] sm:$0xff]  ;;  %v9540_v58 = vld [vmem:[#allocation2 + $0x384] sm:$0xf] }
 0x1a0   : > { %3748 = vmatpush.bf16.msra.mxu1 %v8121_v56  ;;  %v1498_v26 = vmax.f32 %v1346_v9, 0.0  ;;  %v1449_v56 = vadd.f32 %v10649_v61, %v1280_v10  ;;  %v1491_v36 = vmax.f32 %v1339_v51, 0.0  ;;  %v781_v61 = vmul.f32 %v10992_v22, %v13996_v21 }
 0x1a1   : > { %3582 = vmatmul.bf16.gmra.mxu2 %v11156_v15  ;;  %3640 = vmatmul.bf16.gmra.mxu3 %v11170_v31  ;;  %v1347_v12 = vadd.f32 %v11053_v27, %v1178_v45  ;;  %v13997_v45 = vld [vmem:[#allocation49_spill] sm:$0xff]  ;;  %v782_v9 = vmul.f32 %v11000_v19, %v13996_v21 }
 0x1a2   : > { %v3462_v5 = vpop.f32.mrf.mxu0  ;;  %v3520_v4 = vpop.f32.mrf.mxu1  ;;  %3691 = vmatpush.bf16.msra.mxu0 %v7977_v18  ;;  %v11196_v24 = vpack.c.bf16 %v1498_v26, %v1490_v28 }
 0x1a3   : > { %v3463_v49 = vadd.f32 %v3462_v5, %v10985_v62  ;;  %v9428_v62 = vld [vmem:[#allocation2 + $0x4] sm:$0xf]  ;;  %v1499_v57 = vmax.f32 %v1347_v12, 0.0  ;;  %v1601_v5 = vmax.f32 %v1449_v56, 0.0  ;;  %v8406_v12 = vld [vmem:[#allocation2 + $0x390] sm:$0xf0] }
 0x1a4   : > { %v3361_v40 = vpop.f32.mrf.mxu2  ;;  %v3419_v16 = vpop.f32.mrf.mxu3  ;;  %3749 = vmatpush.bf16.msra.mxu1 %v8105_v44  ;;  %v7961_v23 = vor.u32 %v9428_v62, %v7958_v20  ;;  %v789_v44 = vmul.f32 %v10992_v22, %v13997_v45  ;;  %v9508_v62 = vld [vmem:[#allocation2 + $0x284] sm:$0xf]  ;;  %v8278_v20 = vld [vmem:[#allocation2 + $0x290] sm:$0xf0] }
 0x1a5   : > { %v11184_v42 = vadd.f32 %v3520_v4, %v3463_v49  ;;  %v3362_v41 = vadd.f32 %v3361_v40, %v11045_v1  ;;  %3501 = vmatmul.bf16.gmra.mxu0 %v11178_v39  ;;  %3559 = vmatmul.bf16.gmra.mxu1 %v11180_v43  ;;  %v1448_v1 = vadd.f32 %v10646_v35, %v1279_v54  ;;  %v13998_v40 = vld [vmem:[#allocation46_spill] sm:$0xff] }
 0x1a6   : > { %3692 = vmatpush.bf16.msra.mxu0 %v7961_v23  ;;  %v11205_v49 = vpack.c.bf16 %v1499_v57, %v1491_v36  ;;  %v1034_v10 = vmul.f32 %v11002_v33, %v13998_v40  ;;  %v8281_v51 = vor.u32 %v9508_v62, %v8278_v20  ;;  %v8409_v23 = vor.u32 %v9540_v58, %v8406_v12  ;;  %v14001_v20 = vld [vmem:[#allocation54_spill] sm:$0xff] }
 0x1a7   : > { %v11191_v50 = vadd.f32 %v3419_v16, %v3362_v41  ;;  %v1600_v32 = vmax.f32 %v1448_v1, 0.0  ;;  %v13999_v16 = vld [vmem:[#allocation47_spill] sm:$0xff]  ;;  %v805_v58 = vmul.f32 %v10992_v22, %v14001_v20 }
 0x1a8   : > { %3750 = vmatpush.bf16.msra.mxu1 %v8089_v0  ;;  %v1041_v37 = vmul.f32 %v10994_v63, %v13999_v16  ;;  %v1042_v41 = vmul.f32 %v11002_v33, %v13999_v16  ;;  %3804 = vmatpush.bf16.msrb.mxu2 %v8281_v51  ;;  %v14002_v51 = vld [vmem:[#allocation55_spill] sm:$0xff] }
 0x1a9   : > { %v11223_v28 = vpack.c.bf16 %v1600_v32, %v1600_v32  ;;  %3862 = vmatpush.bf16.msrb.mxu3 %v8409_v23  ;;  %v1049_v12 = vmul.f32 %v10994_v63, %v14002_v51 }
 0x1aa   : > { %v3464_v52 = vpop.f32.mrf.mxu0  ;;  %v3522_v13 = vpop.f32.mrf.mxu1  ;;  %v1193_v1 = vadd.f32 %v1041_v37, %v789_v44 }
 0x1ab   : > { %v3465_v55 = vadd.f32 %v3464_v52, %v11021_v60  ;;  %v1033_v60 = vmul.f32 %v10994_v63, %v13998_v40  ;;  %v11226_v52 = vpack.c.bf16 %v1601_v5, %v1601_v5 }
 0x1ac   : > { %v3363_v18 = vpop.f32.mrf.mxu2  ;;  %v3421_v53 = vpop.f32.mrf.mxu3 }
 0x1ad   : > { %v11198_v4 = vadd.f32 %v3522_v13, %v3465_v55  ;;  %v3364_v35 = vadd.f32 %v3363_v18, %v11074_v2  ;;  %v790_v2 = vmul.f32 %v11000_v19, %v13997_v45  ;;  %v1185_v26 = vadd.f32 %v1033_v60, %v781_v61 }
 0x1ae   : > { %v1186_v13 = vadd.f32 %v1034_v10, %v782_v9 }
 0x1af   : > { %v11213_v54 = vadd.f32 %v3421_v53, %v3364_v35  ;;  %v1194_v36 = vadd.f32 %v1042_v41, %v790_v2  ;;  %v1354_v32 = vadd.f32 %v11050_v7, %v1185_v26  ;;  %v1362_v35 = vadd.f32 %v11050_v7, %v1193_v1  ;;  %v14000_v2 = vld [vmem:[#allocation53_spill] sm:$0xff] }
 0x1b0   : > { %v1355_v5 = vadd.f32 %v11053_v27, %v1186_v13  ;;  %v797_v10 = vmul.f32 %v10992_v22, %v14000_v2  ;;  %v806_v26 = vmul.f32 %v11000_v19, %v14001_v20 }
 0x1b1   : > { %3587 = vmatmul.bf16.gmra.mxu2 %v11196_v24  ;;  %3645 = vmatmul.bf16.gmra.mxu3 %v11205_v49  ;;  %v1363_v21 = vadd.f32 %v11053_v27, %v1194_v36  ;;  %v1506_v44 = vmax.f32 %v1354_v32, 0.0  ;;  %v1514_v40 = vmax.f32 %v1362_v35, 0.0  ;;  %v9504_v36 = vld [vmem:[#allocation2 + $0x264] sm:$0xf] }
 0x1b2   : > { %v3467_v3 = vpop.f32.mrf.mxu0  ;;  %v3525_v0 = vpop.f32.mrf.mxu1  ;;  %v1507_v60 = vmax.f32 %v1355_v5, 0.0  ;;  %v1201_v32 = vadd.f32 %v1049_v12, %v797_v10 }
 0x1b3   : > { %v3468_v56 = vadd.f32 %v3467_v3, %v11060_v17  ;;  %v1515_v16 = vmax.f32 %v1363_v21, 0.0  ;;  %v11249_v23 = vpack.c.bf16 %v1514_v40, %v1506_v44 }
 0x1b4   : > { %v3366_v57 = vpop.f32.mrf.mxu2  ;;  %v3424_v55 = vpop.f32.mrf.mxu3  ;;  %v1370_v10 = vadd.f32 %v11050_v7, %v1201_v32  ;;  %v1073_v32 = vmul.f32 %v10994_v63, %v13931_v6 }
 0x1b5   : > { %v11228_v18 = vadd.f32 %v3525_v0, %v3468_v56  ;;  %v3367_v53 = vadd.f32 %v3366_v57, %v11116_v11  ;;  %3506 = vmatmul.bf16.gmra.mxu0 %v11223_v28  ;;  %3564 = vmatmul.bf16.gmra.mxu1 %v11226_v52  ;;  %v798_v0 = vmul.f32 %v11000_v19, %v14000_v2  ;;  %v8262_v57 = vld [vmem:[#allocation2 + $0x270] sm:$0xf0]  ;;  %v9536_v2 = vld [vmem:[#allocation2 + $0x364] sm:$0xf] }
 0x1b6   : > { %v1050_v56 = vmul.f32 %v11002_v33, %v14002_v51  ;;  %v8265_v35 = vor.u32 %v9504_v36, %v8262_v57 }
 0x1b7   : > { %v11235_v17 = vadd.f32 %v3424_v55, %v3367_v53 }
 0x1b8   : > { %3805 = vmatpush.bf16.msrb.mxu2 %v8265_v35 }
 0x1ba   : > { %v3469_v61 = vpop.f32.mrf.mxu0  ;;  %v3527_v45 = vpop.f32.mrf.mxu1 }
 0x1bb   : > { %v3470_v11 = vadd.f32 %v3469_v61, %v11098_v34  ;;  %v14003_v34 = vld [vmem:[#allocation58_spill] sm:$0xff]  ;;  %v1202_v61 = vadd.f32 %v1050_v56, %v798_v0  ;;  %v1522_v0 = vmax.f32 %v1370_v10, 0.0 }
 0x1bc   : > { %v3368_v37 = vpop.f32.mrf.mxu2  ;;  %v3426_v9 = vpop.f32.mrf.mxu3  ;;  %v1057_v3 = vmul.f32 %v10994_v63, %v14003_v34  ;;  %v1058_v13 = vmul.f32 %v11002_v33, %v14003_v34 }
 0x1bd   : > { %v11242_v41 = vadd.f32 %v3527_v45, %v3470_v11  ;;  %v3369_v62 = vadd.f32 %v3368_v37, %v11144_v38  ;;  %v11259_v38 = vpack.c.bf16 %v1515_v16, %v1507_v60  ;;  %v14004_v60 = vld [vmem:[#allocation70_spill] sm:$0xff]  ;;  %v14005_v37 = vld [vmem:[#allocation35_spill] sm:$0xff]  ;;  %v1371_v51 = vadd.f32 %v11053_v27, %v1202_v61 }
 0x1be   : > { %v1209_v21 = vadd.f32 %v1057_v3, %v805_v58  ;;  %v1210_v45 = vadd.f32 %v1058_v13, %v806_v26  ;;  %v813_v61 = vmul.f32 %v10992_v22, %v10147_v30 }
 0x1bf   : > { %v11257_v1 = vadd.f32 %v3426_v9, %v3369_v62  ;;  %v14006_v9 = vld [vmem:[#allocation36_spill] sm:$0xff]  ;;  %v8390_v62 = vld [vmem:[#allocation2 + $0x370] sm:$0xf0]  ;;  %v1523_v13 = vmax.f32 %v1371_v51, 0.0 }
 0x1c0   : > { %v8393_v20 = vor.u32 %v9536_v2, %v8390_v62  ;;  %v1378_v58 = vadd.f32 %v11050_v7, %v1209_v21  ;;  %v1379_v12 = vadd.f32 %v11053_v27, %v1210_v45  ;;  %v822_v45 = vmul.f32 %v11000_v19, %v10172_v47 }
 0x1c1   : > { %3592 = vmatmul.bf16.gmra.mxu2 %v11249_v23  ;;  %3650 = vmatmul.bf16.gmra.mxu3 %v11259_v38  ;;  %v814_v62 = vmul.f32 %v11000_v19, %v10147_v30  ;;  %v14012_v30 = vld [vmem:[#allocation44_spill] sm:$0xff] }
 0x1c2   : > { %v3472_v55 = vpop.f32.mrf.mxu0  ;;  %v3530_v53 = vpop.f32.mrf.mxu1  ;;  %3863 = vmatpush.bf16.msrb.mxu3 %v8393_v20  ;;  %v1530_v56 = vmax.f32 %v1378_v58, 0.0  ;;  %v1531_v36 = vmax.f32 %v1379_v12, 0.0 }
 0x1c3   : > { %v3473_v5 = vadd.f32 %v3472_v55, %v11131_v8 }
 0x1c4   : > { %v3371_v44 = vpop.f32.mrf.mxu2  ;;  %v3429_v40 = vpop.f32.mrf.mxu3 }
 0x1c5   : > { %v11268_v11 = vadd.f32 %v3530_v53, %v3473_v5  ;;  %v3372_v16 = vadd.f32 %v3371_v44, %v14004_v60  ;;  %3693 = vmatmul.bf16.vlgmr.msra.gmra.mxu0 %v14005_v37  ;;  %3751 = vmatmul.bf16.vlgmr.msra.gmra.mxu1 %v14006_v9  ;;  %v821_v53 = vmul.f32 %v10992_v22, %v10172_v47  ;;  %v14007_v5 = vld [vmem:[#allocation71_spill] sm:$0xff] }
 0x1c6   : > { %v11297_v60 = vpack.c.bf16 %v1531_v36, %v1523_v13  ;;  %v1066_v47 = vmul.f32 %v11002_v33, %v10145_v29  ;;  %v14011_v13 = vld [vmem:[#allocation43_spill] sm:$0xff] }
 0x1c7   : > { %v11274_v8 = vadd.f32 %v3429_v40, %v3372_v16  ;;  %v11295_v40 = vpack.c.bf16 %v1530_v56, %v1522_v0  ;;  %v1074_v16 = vmul.f32 %v11002_v33, %v13931_v6  ;;  %v1225_v2 = vadd.f32 %v1073_v32, %v821_v53  ;;  %v8246_v53 = vld [vmem:[#allocation2 + $0x250] sm:$0xf0]  ;;  %v9532_v32 = vld [vmem:[#allocation2 + $0x344] sm:$0xf] }
 0x1c8   : > { %14009 = vst [vmem:[#allocation29_spill] sm:$0xff] %v11297_v60  ;;  %v1218_v36 = vadd.f32 %v1066_v47, %v814_v62 }
 0x1c9   : > { %14008 = vst [vmem:[#allocation30_spill] sm:$0xff] %v11295_v40  ;;  %v1226_v12 = vadd.f32 %v1074_v16, %v822_v45  ;;  %v1394_v6 = vadd.f32 %v11050_v7, %v1225_v2 }
 0x1ca   : > { %v3474_v34 = vpop.f32.mrf.mxu0  ;;  %v3532_v3 = vpop.f32.mrf.mxu1 }
 0x1cb   : > { %v3475_v26 = vadd.f32 %v3474_v34, %v11168_v59  ;;  %v1065_v59 = vmul.f32 %v10994_v63, %v10145_v29 }
 0x1cc   : > { %v3373_v57 = vpop.f32.mrf.mxu2  ;;  %v3431_v55 = vpop.f32.mrf.mxu3 }
 0x1cd   : > { %v11284_v35 = vadd.f32 %v3532_v3, %v3475_v26  ;;  %v3374_v21 = vadd.f32 %v3373_v57, %v14007_v5  ;;  %v1217_v51 = vadd.f32 %v1065_v59, %v813_v61  ;;  %v14010_v26 = vld [vmem:[#allocation75_spill] sm:$0xff]  ;;  %v1546_v61 = vmax.f32 %v1394_v6, 0.0 }
 0x1ce   : > { %v1387_v59 = vadd.f32 %v11053_v27, %v1218_v36  ;;  %v14016_v36 = vld [vmem:[#allocation13_spill] sm:$0xff] }
 0x1cf   : > { %v11293_v44 = vadd.f32 %v3431_v55, %v3374_v21  ;;  %v1386_v57 = vadd.f32 %v11050_v7, %v1217_v51  ;;  %v9500_v55 = vld [vmem:[#allocation2 + $0x244] sm:$0xf]  ;;  %v8374_v21 = vld [vmem:[#allocation2 + $0x350] sm:$0xf0] }
 0x1d0   : > { %v8249_v5 = vor.u32 %v9500_v55, %v8246_v53  ;;  %v8377_v45 = vor.u32 %v9532_v32, %v8374_v21  ;;  %v1539_v6 = vmax.f32 %v1387_v59, 0.0  ;;  %v1081_v55 = vmul.f32 %v10994_v63, %v14016_v36  ;;  %v14017_v53 = vld [vmem:[#allocation12_spill] sm:$0xff] }
 0x1d1   : > { %3597 = vmatmul.bf16.gmra.mxu2 %v11295_v40  ;;  %3655 = vmatmul.bf16.gmra.mxu3 %v11297_v60  ;;  %v1538_v47 = vmax.f32 %v1386_v57, 0.0  ;;  %v1090_v21 = vmul.f32 %v11002_v33, %v14017_v53 }
 0x1d2   : > { %v3477_v10 = vpop.f32.mrf.mxu0  ;;  %v3535_v20 = vpop.f32.mrf.mxu1  ;;  %3806 = vmatpush.bf16.msrb.mxu2 %v8249_v5  ;;  %3864 = vmatpush.bf16.msrb.mxu3 %v8377_v45  ;;  %v1082_v5 = vmul.f32 %v11002_v33, %v14016_v36 }
 0x1d3   : > { %v3478_v58 = vadd.f32 %v3477_v10, %v11191_v50  ;;  %v1395_v50 = vadd.f32 %v11053_v27, %v1226_v12  ;;  %v14013_v12 = vld [vmem:[#allocation76_spill] sm:$0xff] }
 0x1d4   : > { %v3376_v34 = vpop.f32.mrf.mxu2  ;;  %v3434_v3 = vpop.f32.mrf.mxu3 }
 0x1d5   : > { %v11309_v0 = vadd.f32 %v3535_v20, %v3478_v58  ;;  %v3377_v56 = vadd.f32 %v3376_v34, %v14010_v26  ;;  %3698 = vmatmul.bf16.gmra.mxu0 %v14011_v13  ;;  %3756 = vmatmul.bf16.gmra.mxu1 %v14012_v30  ;;  %v1547_v10 = vmax.f32 %v1395_v50, 0.0  ;;  %v14015_v26 = vld [vmem:[#allocation9_spill] sm:$0xff]  ;;  %v14032_v30 = vld [vmem:[#allocation60_spill] sm:$0xff] }
 0x1d6   : > { %v838_v57 = vmul.f32 %v11000_v19, %v14015_v26 }
 0x1d7   : > { %v11314_v29 = vadd.f32 %v3434_v3, %v3377_v56  ;;  %v11323_v3 = vpack.c.bf16 %v1546_v61, %v1538_v47  ;;  %v837_v56 = vmul.f32 %v10992_v22, %v14015_v26  ;;  %v11335_v32 = vpack.c.bf16 %v1547_v10, %v1539_v6  ;;  %v14019_v61 = vld [vmem:[#allocation8_spill] sm:$0xff]  ;;  %v14020_v26 = vld [vmem:[#allocation81_spill] sm:$0xff] }
 0x1d8   : > { %v829_v59 = vmul.f32 %v10992_v22, %v14019_v61  ;;  %v830_v45 = vmul.f32 %v11000_v19, %v14019_v61 }
 0x1d9   : > { %14014 = vst [vmem:[#allocation38_spill] sm:$0xff] %v11323_v3 }
 0x1da   : > { %v3479_v16 = vpop.f32.mrf.mxu0  ;;  %v3537_v2 = vpop.f32.mrf.mxu1  ;;  %14018 = vst [vmem:[#allocation37_spill] sm:$0xff] %v11335_v32 }
 0x1db   : > { %v3480_v62 = vadd.f32 %v3479_v16, %v11213_v54  ;;  %v1089_v54 = vmul.f32 %v10994_v63, %v14017_v53  ;;  %v14021_v53 = vld [vmem:[#allocation51_spill] sm:$0xff] }
 0x1dc   : > { %v3378_v20 = vpop.f32.mrf.mxu2  ;;  %v3436_v58 = vpop.f32.mrf.mxu3 }
 0x1dd   : > { %v11320_v51 = vadd.f32 %v3537_v2, %v3480_v62  ;;  %v3379_v34 = vadd.f32 %v3378_v20, %v14013_v12  ;;  %v1233_v62 = vadd.f32 %v1081_v55, %v829_v59  ;;  %v1241_v47 = vadd.f32 %v1089_v54, %v837_v56  ;;  %v9496_v54 = vld [vmem:[#allocation2 + $0x224] sm:$0xf] }
 0x1de   : > { %v1234_v20 = vadd.f32 %v1082_v5, %v830_v45 }
 0x1df   : > { %v11333_v50 = vadd.f32 %v3436_v58, %v3379_v34  ;;  %v1242_v58 = vadd.f32 %v1090_v21, %v838_v57  ;;  %v1402_v61 = vadd.f32 %v11050_v7, %v1233_v62  ;;  %v8230_v57 = vld [vmem:[#allocation2 + $0x230] sm:$0xf0] }
 0x1e0   : > { %v8233_v5 = vor.u32 %v9496_v54, %v8230_v57  ;;  %v14025_v54 = vld [vmem:[#allocation17_spill] sm:$0xff] }
 0x1e1   : > { %3602 = vmatmul.bf16.gmra.mxu2 %v11323_v3  ;;  %3660 = vmatmul.bf16.gmra.mxu3 %v11335_v32  ;;  %v14022_v32 = vld [vmem:[#allocation52_spill] sm:$0xff]  ;;  %v1410_v3 = vadd.f32 %v11050_v7, %v1241_v47  ;;  %v1411_v56 = vadd.f32 %v11053_v27, %v1242_v58  ;;  %v1554_v45 = vmax.f32 %v1402_v61, 0.0  ;;  %v8358_v58 = vld [vmem:[#allocation2 + $0x330] sm:$0xf0]  ;;  %v853_v57 = vmul.f32 %v10992_v22, %v14025_v54 }
 0x1e2   : > { %v3482_v16 = vpop.f32.mrf.mxu0  ;;  %v3540_v2 = vpop.f32.mrf.mxu1  ;;  %3807 = vmatpush.bf16.msrb.mxu2 %v8233_v5  ;;  %v14026_v61 = vld [vmem:[#allocation18_spill] sm:$0xff] }
 0x1e3   : > { %v3483_v10 = vadd.f32 %v3482_v16, %v11235_v17  ;;  %v1403_v17 = vadd.f32 %v11053_v27, %v1234_v20  ;;  %v1562_v16 = vmax.f32 %v1410_v3, 0.0  ;;  %v1563_v62 = vmax.f32 %v1411_v56, 0.0 }
 0x1e4   : > { %v3381_v12 = vpop.f32.mrf.mxu2  ;;  %v3439_v34 = vpop.f32.mrf.mxu3  ;;  %v1105_v3 = vmul.f32 %v10994_v63, %v14026_v61  ;;  %v854_v56 = vmul.f32 %v11000_v19, %v14025_v54 }
 0x1e5   : > { %v11348_v6 = vadd.f32 %v3540_v2, %v3483_v10  ;;  %v3382_v36 = vadd.f32 %v3381_v12, %v14020_v26  ;;  %3703 = vmatmul.bf16.gmra.mxu0 %v14021_v53  ;;  %3761 = vmatmul.bf16.gmra.mxu1 %v14022_v32  ;;  %v1555_v10 = vmax.f32 %v1403_v17, 0.0  ;;  %v14023_v26 = vld [vmem:[#allocation82_spill] sm:$0xff]  ;;  %v11363_v32 = vpack.c.bf16 %v1562_v16, %v1554_v45  ;;  %v14029_v16 = vld [vmem:[#allocation16_spill] sm:$0xff] }
 0x1e7   : > { %v11355_v55 = vadd.f32 %v3439_v34, %v3382_v36  ;;  %v9528_v36 = vld [vmem:[#allocation2 + $0x324] sm:$0xf]  ;;  %14024 = vst [vmem:[#allocation40_spill] sm:$0xff] %v11363_v32  ;;  %v11371_v17 = vpack.c.bf16 %v1563_v62, %v1555_v10  ;;  %v1098_v62 = vmul.f32 %v11002_v33, %v14029_v16 }
 0x1e8   : > { %v8361_v5 = vor.u32 %v9528_v36, %v8358_v58 }
 0x1e9   : > { %14027 = vst [vmem:[#allocation45_spill] sm:$0xff] %v11371_v17 }
 0x1ea   : > { %v3484_v21 = vpop.f32.mrf.mxu0  ;;  %v3542_v59 = vpop.f32.mrf.mxu1  ;;  %3865 = vmatpush.bf16.msrb.mxu3 %v8361_v5 }
 0x1eb   : > { %v3485_v2 = vadd.f32 %v3484_v21, %v11257_v1  ;;  %v1106_v21 = vmul.f32 %v11002_v33, %v14026_v61 }
 0x1ec   : > { %v3383_v12 = vpop.f32.mrf.mxu2  ;;  %v3441_v47 = vpop.f32.mrf.mxu3 }
 0x1ed   : > { %v11360_v34 = vadd.f32 %v3542_v59, %v3485_v2  ;;  %v3384_v20 = vadd.f32 %v3383_v12, %v14023_v26  ;;  %v14028_v59 = vld [vmem:[#allocation10_spill] sm:$0xff]  ;;  %v1097_v2 = vmul.f32 %v10994_v63, %v14029_v16  ;;  %v1258_v36 = vadd.f32 %v1106_v21, %v854_v56 }
 0x1ee   : > { %v845_v45 = vmul.f32 %v10992_v22, %v14028_v59  ;;  %v846_v10 = vmul.f32 %v11000_v19, %v14028_v59 }
 0x1ef   : > { %v11369_v1 = vadd.f32 %v3441_v47, %v3384_v20  ;;  %v1257_v20 = vadd.f32 %v1105_v3, %v853_v57 }
 0x1f0   : > { %v1249_v61 = vadd.f32 %v1097_v2, %v845_v45  ;;  %v1250_v59 = vadd.f32 %v1098_v62, %v846_v10 }
 0x1f1   : > { %3607 = vmatmul.bf16.gmra.mxu2 %v11363_v32  ;;  %3665 = vmatmul.bf16.gmra.mxu3 %v11371_v17  ;;  %v14030_v32 = vld [vmem:[#allocation87_spill] sm:$0xff]  ;;  %v1426_v16 = vadd.f32 %v11050_v7, %v1257_v20 }
 0x1f2   : > { %v3487_v12 = vpop.f32.mrf.mxu0  ;;  %v3545_v47 = vpop.f32.mrf.mxu1  ;;  %v14031_v17 = vld [vmem:[#allocation59_spill] sm:$0xff]  ;;  %v1418_v57 = vadd.f32 %v11050_v7, %v1249_v61  ;;  %v1419_v3 = vadd.f32 %v11053_v27, %v1250_v59  ;;  %v14035_v61 = vld [vmem:[#allocation25_spill] sm:$0xff] }
 0x1f3   : > { %v3488_v26 = vadd.f32 %v3487_v12, %v11274_v8  ;;  %v1427_v8 = vadd.f32 %v11053_v27, %v1258_v36  ;;  %v861_v36 = vmul.f32 %v10992_v22, %v13981_v48  ;;  %v1121_v59 = vmul.f32 %v10994_v63, %v14035_v61 }
 0x1f4   : > { %v3386_v58 = vpop.f32.mrf.mxu2  ;;  %v3444_v54 = vpop.f32.mrf.mxu3  ;;  %v1570_v62 = vmax.f32 %v1418_v57, 0.0  ;;  %v1571_v20 = vmax.f32 %v1419_v3, 0.0  ;;  %v1122_v57 = vmul.f32 %v11002_v33, %v14035_v61  ;;  %v9492_v3 = vld [vmem:[#allocation2 + $0x204] sm:$0xf] }
 0x1f5   : > { %v11388_v5 = vadd.f32 %v3545_v47, %v3488_v26  ;;  %v3387_v53 = vadd.f32 %v3386_v58, %v14030_v32  ;;  %3708 = vmatmul.bf16.gmra.mxu0 %v14031_v17  ;;  %3766 = vmatmul.bf16.gmra.mxu1 %v14032_v30  ;;  %v1578_v32 = vmax.f32 %v1426_v16, 0.0  ;;  %v1579_v2 = vmax.f32 %v1427_v8, 0.0  ;;  %v14034_v58 = vld [vmem:[#allocation19_spill] sm:$0xff] }
 0x1f7   : > { %v11393_v13 = vadd.f32 %v3444_v54, %v3387_v53  ;;  %v14033_v53 = vld [vmem:[#allocation23_spill] sm:$0xff]  ;;  %v869_v54 = vmul.f32 %v10992_v22, %v14034_v58  ;;  %v11413_v8 = vpack.c.bf16 %v1578_v32, %v1570_v62  ;;  %v8342_v32 = vld [vmem:[#allocation2 + $0x310] sm:$0xf0] }
 0x1f9   : > { %14036 = vst [vmem:[#allocation42_spill] sm:$0xff] %v11413_v8  ;;  %v1273_v61 = vadd.f32 %v1121_v59, %v869_v54 }
 0x1fa   : > { %v3489_v56 = vpop.f32.mrf.mxu0  ;;  %v3547_v21 = vpop.f32.mrf.mxu1 }
 0x1fb   : > { %v3490_v45 = vadd.f32 %v3489_v56, %v11293_v44  ;;  %v870_v44 = vmul.f32 %v11000_v19, %v14034_v58  ;;  %v11415_v56 = vpack.c.bf16 %v1579_v2, %v1571_v20 }
 0x1fc   : > { %v3388_v12 = vpop.f32.mrf.mxu2  ;;  %v3446_v47 = vpop.f32.mrf.mxu3 }
 0x1fd   : > { %v11400_v26 = vadd.f32 %v3547_v21, %v3490_v45  ;;  %v3389_v10 = vadd.f32 %v3388_v12, %v14033_v53  ;;  %14037 = vst [vmem:[#allocation49_spill] sm:$0xff] %v11415_v56  ;;  %v8214_v21 = vld [vmem:[#allocation2 + $0x210] sm:$0xf0]  ;;  %v9524_v45 = vld [vmem:[#allocation2 + $0x304] sm:$0xf]  ;;  %v1113_v12 = vmul.f32 %v10994_v63, %v13961_v25  ;;  %v862_v53 = vmul.f32 %v11000_v19, %v13981_v48 }
 0x1fe   : > { %v8345_v2 = vor.u32 %v9524_v45, %v8342_v32  ;;  %v1274_v30 = vadd.f32 %v1122_v57, %v870_v44 }
 0x1ff   : > { %v11411_v16 = vadd.f32 %v3446_v47, %v3389_v10  ;;  %v1114_v47 = vmul.f32 %v11002_v33, %v13961_v25  ;;  %v8217_v10 = vor.u32 %v9492_v3, %v8214_v21  ;;  %v1265_v60 = vadd.f32 %v1113_v12, %v861_v36  ;;  %v14038_v3 = vld [vmem:[#allocation92_spill] sm:$0xff] }
 0x200   : > { %3866 = vmatpush.bf16.msrb.mxu3 %v8345_v2 }
 0x201   : > { %3612 = vmatmul.bf16.gmra.mxu2 %v11413_v8  ;;  %3670 = vmatmul.bf16.gmra.mxu3 %v11415_v56  ;;  %v1266_v40 = vadd.f32 %v1114_v47, %v862_v53  ;;  %v14039_v8 = vld [vmem:[#allocation63_spill] sm:$0xff]  ;;  %v14040_v56 = vld [vmem:[#allocation64_spill] sm:$0xff]  ;;  %v1434_v54 = vadd.f32 %v11050_v7, %v1265_v60  ;;  %v877_v60 = vmul.f32 %v10992_v22, %v13972_v14 }
 0x202   : > { %v3492_v62 = vpop.f32.mrf.mxu0  ;;  %v3550_v20 = vpop.f32.mrf.mxu1  ;;  %3808 = vmatpush.bf16.msrb.mxu2 %v8217_v10  ;;  %v1442_v10 = vadd.f32 %v11050_v7, %v1273_v61  ;;  %v9616_v61 = vld [vmem:[#allocation2 + $0x5e4] sm:$0xf] }
 0x203   : > { %v3493_v58 = vadd.f32 %v3492_v62, %v11314_v29  ;;  %v1443_v29 = vadd.f32 %v11053_v27, %v1274_v30  ;;  %v1435_v59 = vadd.f32 %v11053_v27, %v1266_v40  ;;  %v1586_v32 = vmax.f32 %v1434_v54, 0.0  ;;  %v9648_v22 = vld [vmem:[#allocation2 + $0x6e4] sm:$0xf] }
 0x204   : > { %v3391_v17 = vpop.f32.mrf.mxu2  ;;  %v3449_v48 = vpop.f32.mrf.mxu3  ;;  %v1594_v12 = vmax.f32 %v1442_v10, 0.0  ;;  %v1129_v40 = vmul.f32 %v10994_v63, %v13973_v46  ;;  %v878_v30 = vmul.f32 %v11000_v19, %v13972_v14  ;;  %v1130_v10 = vmul.f32 %v11002_v33, %v13973_v46  ;;  %v8838_v63 = vld [vmem:[#allocation2 + $0x6f0] sm:$0xf0] }
 0x205   : > { %v11428_v25 = vadd.f32 %v3550_v20, %v3493_v58  ;;  %v3392_v21 = vadd.f32 %v3391_v17, %v14038_v3  ;;  %3713 = vmatmul.bf16.gmra.mxu0 %v14039_v8  ;;  %3771 = vmatmul.bf16.gmra.mxu1 %v14040_v56  ;;  %v1595_v17 = vmax.f32 %v1443_v29, 0.0  ;;  %v1587_v2 = vmax.f32 %v1435_v59, 0.0  ;;  %v9584_v20 = vld [vmem:[#allocation2 + $0x4e4] sm:$0xf]  ;;  %v8582_v58 = vld [vmem:[#allocation2 + $0x4f0] sm:$0xf0] }
 0x206   : > { %v11448_v3 = vpack.c.bf16 %v1594_v12, %v1586_v32  ;;  %v8841_v14 = vor.u32 %v9648_v22, %v8838_v63  ;;  %v8966_v32 = vld [vmem:[#allocation2 + $0x7f0] sm:$0xf0] }
 0x207   : > { %v11433_v45 = vadd.f32 %v3449_v48, %v3392_v21  ;;  %v8710_v48 = vld [vmem:[#allocation2 + $0x5f0] sm:$0xf0]  ;;  %v11450_v21 = vpack.c.bf16 %v1595_v17, %v1587_v2 }
 0x208   : > { %14041 = vst [vmem:[#allocation46_spill] sm:$0xff] %v11448_v3  ;;  %v8713_v29 = vor.u32 %v9616_v61, %v8710_v48  ;;  %4033 = vmatpush.bf16.msra.mxu2 %v8841_v14  ;;  %v14043_v17 = vld [vmem:[#allocation14_spill] sm:$0xff] }
 0x209   : > { %14042 = vst [vmem:[#allocation47_spill] sm:$0xff] %v11450_v21 }
 0x20a   : > { %v3494_v36 = vpop.f32.mrf.mxu0  ;;  %v3552_v44 = vpop.f32.mrf.mxu1  ;;  %3975 = vmatpush.bf16.msrb.mxu1 %v8713_v29 }
 0x20b   : > { %v3495_v57 = vadd.f32 %v3494_v36, %v11333_v50  ;;  %v8585_v50 = vor.u32 %v9584_v20, %v8582_v58  ;;  %v1281_v36 = vadd.f32 %v1129_v40, %v877_v60 }
 0x20c   : > { %v3393_v53 = vpop.f32.mrf.mxu2  ;;  %v3451_v47 = vpop.f32.mrf.mxu3 }
 0x20d   : > { %v11440_v62 = vadd.f32 %v3552_v44, %v3495_v57  ;;  %3917 = vmatpush.bf16.msrb.mxu0 %v8585_v50  ;;  %v1282_v44 = vadd.f32 %v1130_v10, %v878_v30  ;;  %v14044_v53 = vld [vmem:[#allocation15_spill] sm:$0xff]  ;;  %v9680_v47 = vld [vmem:[#allocation2 + $0x7e4] sm:$0xf] }
 0x20e   : > { %v8969_v2 = vor.u32 %v9680_v47, %v8966_v32  ;;  %v14047_v32 = vld [vmem:[#allocation20_spill] sm:$0xff] }
 0x20f   : > { %v1451_v58 = vadd.f32 %v11053_v27, %v1282_v44  ;;  %v9580_v27 = vld [vmem:[#allocation2 + $0x4c4] sm:$0xf] }
 0x210   : > { %4091 = vmatpush.bf16.msra.mxu3 %v8969_v2  ;;  %v14048_v2 = vld [vmem:[#allocation21_spill] sm:$0xff] }
 0x211   : > { %3617 = vmatmul.bf16.gmra.mxu2 %v11448_v3  ;;  %3675 = vmatmul.bf16.gmra.mxu3 %v11450_v21 }
 0x212   : > { %v3497_v54 = vpop.f32.mrf.mxu0  ;;  %v3555_v59 = vpop.f32.mrf.mxu1 }
 0x213   : > { %v3498_v19 = vadd.f32 %v3497_v54, %v11355_v55  ;;  %v1450_v55 = vadd.f32 %v11050_v7, %v1281_v36  ;;  %v8566_v54 = vld [vmem:[#allocation2 + $0x4d0] sm:$0xf0] }
 0x214   : > { %v3578_v57 = vpop.f32.mrf.mxu2  ;;  %v3636_v12 = vpop.f32.mrf.mxu3  ;;  %v8569_v14 = vor.u32 %v9580_v27, %v8566_v54 }
 0x215   : > { %v11457_v46 = vadd.f32 %v3555_v59, %v3498_v19  ;;  %v3579_v33 = vadd.f32 %v3578_v57, %v11184_v42  ;;  %3718 = vmatmul.bf16.gmra.mxu0 %v14043_v17  ;;  %3776 = vmatmul.bf16.gmra.mxu1 %v14044_v53  ;;  %v1602_v30 = vmax.f32 %v1450_v55, 0.0  ;;  %v1603_v42 = vmax.f32 %v1451_v58, 0.0  ;;  %v9612_v59 = vld [vmem:[#allocation2 + $0x5c4] sm:$0xf]  ;;  %v8694_v19 = vld [vmem:[#allocation2 + $0x5d0] sm:$0xf0] }
 0x216   : > { %3918 = vmatpush.bf16.msrb.mxu0 %v8569_v14  ;;  %v9644_v58 = vld [vmem:[#allocation2 + $0x6c4] sm:$0xf] }
 0x217   : > { %v11462_v20 = vadd.f32 %v3636_v12, %v3579_v33  ;;  %v11472_v63 = vpack.c.bf16 %v1602_v30, %v1602_v30  ;;  %v11474_v7 = vpack.c.bf16 %v1603_v42, %v1603_v42  ;;  %v8950_v30 = vld [vmem:[#allocation2 + $0x7d0] sm:$0xf0]  ;;  %v9576_v14 = vld [vmem:[#allocation2 + $0x4a4] sm:$0xf] }
 0x219   : > { %14045 = vst [vmem:[#allocation53_spill] sm:$0xff] %v11472_v63 }
 0x21a   : > { %v3499_v61 = vpop.f32.mrf.mxu0  ;;  %v3557_v60 = vpop.f32.mrf.mxu1  ;;  %14046 = vst [vmem:[#allocation54_spill] sm:$0xff] %v11474_v7 }
 0x21b   : > { %v3500_v40 = vadd.f32 %v3499_v61, %v11369_v1  ;;  %v8697_v1 = vor.u32 %v9612_v59, %v8694_v19  ;;  %v8822_v61 = vld [vmem:[#allocation2 + $0x6d0] sm:$0xf0] }
 0x21c   : > { %v3580_v50 = vpop.f32.mrf.mxu2  ;;  %v3638_v48 = vpop.f32.mrf.mxu3  ;;  %v8550_v19 = vld [vmem:[#allocation2 + $0x4b0] sm:$0xf0] }
 0x21d   : > { %v11467_v10 = vadd.f32 %v3557_v60, %v3500_v40  ;;  %v3581_v29 = vadd.f32 %v3580_v50, %v11198_v4  ;;  %3976 = vmatpush.bf16.msrb.mxu1 %v8697_v1  ;;  %v9676_v60 = vld [vmem:[#allocation2 + $0x7c4] sm:$0xf]  ;;  %v8825_v40 = vor.u32 %v9644_v58, %v8822_v61 }
 0x21e   : > { %v8953_v42 = vor.u32 %v9676_v60, %v8950_v30  ;;  %v9608_v1 = vld [vmem:[#allocation2 + $0x5a4] sm:$0xf] }
 0x21f   : > { %v11470_v22 = vadd.f32 %v3638_v48, %v3581_v29  ;;  %4034 = vmatpush.bf16.msra.mxu2 %v8825_v40  ;;  %v9572_v61 = vld [vmem:[#allocation2 + $0x484] sm:$0xf] }
 0x220   : > { %4092 = vmatpush.bf16.msra.mxu3 %v8953_v42  ;;  %v9604_v60 = vld [vmem:[#allocation2 + $0x584] sm:$0xf] }
 0x221   : > { %3622 = vmatmul.bf16.gmra.mxu2 %v11472_v63  ;;  %3680 = vmatmul.bf16.gmra.mxu3 %v11474_v7 }
 0x222   : > { %v3502_v36 = vpop.f32.mrf.mxu0  ;;  %v3560_v44 = vpop.f32.mrf.mxu1 }
 0x223   : > { %v3503_v4 = vadd.f32 %v3502_v36, %v11393_v13  ;;  %v8553_v36 = vor.u32 %v9576_v14, %v8550_v19  ;;  %v8518_v19 = vld [vmem:[#allocation2 + $0x470] sm:$0xf0] }
 0x224   : > { %v3583_v57 = vpop.f32.mrf.mxu2  ;;  %v3641_v12 = vpop.f32.mrf.mxu3 }
 0x225   : > { %v11479_v33 = vadd.f32 %v3560_v44, %v3503_v4  ;;  %v3584_v47 = vadd.f32 %v3583_v57, %v11228_v18  ;;  %3723 = vmatmul.bf16.gmra.mxu0 %v14047_v32  ;;  %3781 = vmatmul.bf16.gmra.mxu1 %v14048_v2  ;;  %v8678_v44 = vld [vmem:[#allocation2 + $0x5b0] sm:$0xf0]  ;;  %v14051_v4 = vld [vmem:[#allocation48_spill] sm:$0xff] }
 0x226   : > { %v14052_v57 = vld [vmem:[#allocation50_spill] sm:$0xff]  ;;  %3919 = vmatpush.bf16.msrb.mxu0 %v8553_v36 }
 0x227   : > { %v11484_v55 = vadd.f32 %v3641_v12, %v3584_v47  ;;  %v8681_v12 = vor.u32 %v9608_v1, %v8678_v44  ;;  %v9600_v1 = vld [vmem:[#allocation2 + $0x564] sm:$0xf]  ;;  %v8646_v44 = vld [vmem:[#allocation2 + $0x570] sm:$0xf0] }
 0x229   : > { %14049 = vst [vmem:[#allocation55_spill] sm:$0xff] %v11484_v55  ;;  %3977 = vmatpush.bf16.msrb.mxu1 %v8681_v12  ;;  %v9640_v12 = vld [vmem:[#allocation2 + $0x6a4] sm:$0xf] }
 0x22a   : > { %v3504_v13 = vpop.f32.mrf.mxu0  ;;  %v3562_v50 = vpop.f32.mrf.mxu1 }
 0x22b   : > { %v3505_v48 = vadd.f32 %v3504_v13, %v11411_v16  ;;  %v8662_v13 = vld [vmem:[#allocation2 + $0x590] sm:$0xf0] }
 0x22c   : > { %v3585_v29 = vpop.f32.mrf.mxu2  ;;  %v3643_v18 = vpop.f32.mrf.mxu3 }
 0x22d   : > { %v11487_v27 = vadd.f32 %v3562_v50, %v3505_v48  ;;  %v3586_v54 = vadd.f32 %v3585_v29, %v11242_v41  ;;  %v8534_v41 = vld [vmem:[#allocation2 + $0x490] sm:$0xf0]  ;;  %v14053_v29 = vld [vmem:[#allocation27_spill] sm:$0xff] }
 0x22e   : > { %v8537_v42 = vor.u32 %v9572_v61, %v8534_v41  ;;  %v9564_v41 = vld [vmem:[#allocation2 + $0x444] sm:$0xf] }
 0x22f   : > { %v11490_v59 = vadd.f32 %v3643_v18, %v3586_v54  ;;  %v14054_v18 = vld [vmem:[#allocation28_spill] sm:$0xff]  ;;  %v8665_v54 = vor.u32 %v9604_v60, %v8662_v13  ;;  %v8502_v60 = vld [vmem:[#allocation2 + $0x450] sm:$0xf0] }
 0x230   : > { %3920 = vmatpush.bf16.msrb.mxu0 %v8537_v42  ;;  %v8505_v13 = vor.u32 %v9564_v41, %v8502_v60 }
 0x231   : > { %14050 = vst [vmem:[#allocation58_spill] sm:$0xff] %v11490_v59  ;;  %3809 = vmatmul.bf16.vlgmr.msrb.gmra.mxu2 %v14051_v4  ;;  %3867 = vmatmul.bf16.vlgmr.msrb.gmra.mxu3 %v14052_v57  ;;  %v8300_v57 = vld [vmem:[#allocation2 + $0x2a8] sm:$0xf] }
 0x232   : > { %v3507_v16 = vpop.f32.mrf.mxu0  ;;  %v3565_v47 = vpop.f32.mrf.mxu1  ;;  %3978 = vmatpush.bf16.msrb.mxu1 %v8665_v54  ;;  %v9672_v54 = vld [vmem:[#allocation2 + $0x7a4] sm:$0xf] }
 0x233   : > { %v3508_v58 = vadd.f32 %v3507_v16, %v11433_v45  ;;  %v9568_v45 = vld [vmem:[#allocation2 + $0x464] sm:$0xf]  ;;  %v8806_v16 = vld [vmem:[#allocation2 + $0x6b0] sm:$0xf0] }
 0x234   : > { %v3588_v40 = vpop.f32.mrf.mxu2  ;;  %v3646_v30 = vpop.f32.mrf.mxu3  ;;  %v8521_v36 = vor.u32 %v9568_v45, %v8518_v19 }
 0x235   : > { %v11495_v50 = vadd.f32 %v3565_v47, %v3508_v58  ;;  %v3589_v48 = vadd.f32 %v3588_v40, %v11268_v11  ;;  %3728 = vmatmul.bf16.gmra.mxu0 %v14053_v29  ;;  %3786 = vmatmul.bf16.gmra.mxu1 %v14054_v18  ;;  %v8649_v47 = vor.u32 %v9600_v1, %v8646_v44  ;;  %v9596_v40 = vld [vmem:[#allocation2 + $0x544] sm:$0xf]  ;;  %v8486_v44 = vld [vmem:[#allocation2 + $0x430] sm:$0xf0]  ;;  %v9475_v29 = vld [vmem:[#allocation2 + $0x174] sm:$0xf0] }
 0x236   : > { %v8809_v58 = vor.u32 %v9640_v12, %v8806_v16  ;;  %3921 = vmatpush.bf16.msrb.mxu0 %v8521_v36  ;;  %v9560_v36 = vld [vmem:[#allocation2 + $0x424] sm:$0xf] }
 0x237   : > { %v11500_v14 = vadd.f32 %v3646_v30, %v3589_v48  ;;  %3979 = vmatpush.bf16.msrb.mxu1 %v8649_v47  ;;  %v8630_v48 = vld [vmem:[#allocation2 + $0x550] sm:$0xf0]  ;;  %v9592_v12 = vld [vmem:[#allocation2 + $0x524] sm:$0xf]  ;;  %v8489_v16 = vor.u32 %v9560_v36, %v8486_v44 }
 0x238   : > { %4035 = vmatpush.bf16.msra.mxu2 %v8809_v58  ;;  %v8633_v19 = vor.u32 %v9596_v40, %v8630_v48  ;;  %v8614_v47 = vld [vmem:[#allocation2 + $0x530] sm:$0xf0]  ;;  %v14057_v58 = vld [vmem:[#allocation56_spill] sm:$0xff] }
 0x239   : > { %14055 = vst [vmem:[#allocation70_spill] sm:$0xff] %v11500_v14  ;;  %v8934_v14 = vld [vmem:[#allocation2 + $0x7b0] sm:$0xf0] }
 0x23a   : > { %v3509_v61 = vpop.f32.mrf.mxu0  ;;  %v3567_v11 = vpop.f32.mrf.mxu1  ;;  %v8937_v18 = vor.u32 %v9672_v54, %v8934_v14  ;;  %3922 = vmatpush.bf16.msrb.mxu0 %v8505_v13  ;;  %v9556_v14 = vld [vmem:[#allocation2 + $0x404] sm:$0xf]  ;;  %v8470_v40 = vld [vmem:[#allocation2 + $0x410] sm:$0xf0] }
 0x23b   : > { %3980 = vmatpush.bf16.msrb.mxu1 %v8633_v19  ;;  %v14058_v61 = vld [vmem:[#allocation57_spill] sm:$0xff]  ;;  %v8617_v11 = vor.u32 %v9592_v12, %v8614_v47  ;;  %v8473_v13 = vor.u32 %v9556_v14, %v8470_v40  ;;  %v8598_v48 = vld [vmem:[#allocation2 + $0x510] sm:$0xf0]  ;;  %v14060_v19 = vld [vmem:[#allocation32_spill] sm:$0xff] }
 0x23c   : > { %v3590_v30 = vpop.f32.mrf.mxu2  ;;  %v3648_v42 = vpop.f32.mrf.mxu3  ;;  %4093 = vmatpush.bf16.msra.mxu3 %v8937_v18  ;;  %v8790_v40 = vld [vmem:[#allocation2 + $0x690] sm:$0xf0] }
 0x23d   : > { %v3591_v45 = vadd.f32 %v3590_v30, %v11284_v35  ;;  %v9588_v30 = vld [vmem:[#allocation2 + $0x504] sm:$0xf] }
 0x23e   : > { %3923 = vmatpush.bf16.msrb.mxu0 %v8489_v16  ;;  %v8601_v36 = vor.u32 %v9588_v30, %v8598_v48  ;;  %v14063_v30 = vld [vmem:[#allocation61_spill] sm:$0xff] }
 0x23f   : > { %v11503_v1 = vadd.f32 %v3648_v42, %v3591_v45  ;;  %3981 = vmatpush.bf16.msrb.mxu1 %v8617_v11  ;;  %v14059_v45 = vld [vmem:[#allocation31_spill] sm:$0xff] }
 0x241   : > { %14056 = vst [vmem:[#allocation35_spill] sm:$0xff] %v11503_v1  ;;  %3814 = vmatmul.bf16.gmra.mxu2 %v14057_v58  ;;  %3872 = vmatmul.bf16.gmra.mxu3 %v14058_v61  ;;  %v9483_v1 = vld [vmem:[#allocation2 + $0x1b4] sm:$0xf0] }
 0x242   : > { %v3694_v41 = vpop.f32.mrf.mxu0  ;;  %v3752_v60 = vpop.f32.mrf.mxu1  ;;  %3924 = vmatpush.bf16.msrb.mxu0 %v8473_v13 }
 0x243   : > { %v11507_v35 = vadd.f32 %v3752_v60, %v3694_v41  ;;  %3982 = vmatpush.bf16.msrb.mxu1 %v8601_v36 }
 0x244   : > { %v3593_v18 = vpop.f32.mrf.mxu2  ;;  %v3651_v42 = vpop.f32.mrf.mxu3 }
 0x245   : > { %v3594_v54 = vadd.f32 %v3593_v18, %v11309_v0  ;;  %3733 = vmatmul.bf16.gmra.mxu0 %v14059_v45  ;;  %3791 = vmatmul.bf16.gmra.mxu1 %v14060_v19  ;;  %v9636_v0 = vld [vmem:[#allocation2 + $0x684] sm:$0xf]  ;;  %v8918_v19 = vld [vmem:[#allocation2 + $0x790] sm:$0xf0] }
 0x246   : > { %v9668_v18 = vld [vmem:[#allocation2 + $0x784] sm:$0xf]  ;;  %v8793_v45 = vor.u32 %v9636_v0, %v8790_v40 }
 0x247   : > { %v11512_v44 = vadd.f32 %v3651_v42, %v3594_v54  ;;  %v14064_v42 = vld [vmem:[#allocation62_spill] sm:$0xff]  ;;  %v8921_v13 = vor.u32 %v9668_v18, %v8918_v19 }
 0x248   : > { %4036 = vmatpush.bf16.msra.mxu2 %v8793_v45 }
 0x249   : > { %14061 = vst [vmem:[#allocation36_spill] sm:$0xff] %v11512_v44  ;;  %4094 = vmatpush.bf16.msra.mxu3 %v8921_v13  ;;  %v14069_v13 = vld [vmem:[#allocation66_spill] sm:$0xff] }
 0x24a   : > { %v3696_v12 = vpop.f32.mrf.mxu0  ;;  %v3754_v16 = vpop.f32.mrf.mxu1  ;;  %v9555_v44 = vld [vmem:[#allocation2 + $0x3f4] sm:$0xf0] }
 0x24b   : > { %v11514_v47 = vadd.f32 %v3754_v16, %v3696_v12 }
 0x24c   : > { %v3595_v11 = vpop.f32.mrf.mxu2  ;;  %v3653_v41 = vpop.f32.mrf.mxu3 }
 0x24d   : > { %v3596_v60 = vadd.f32 %v3595_v11, %v11320_v51  ;;  %v14065_v11 = vld [vmem:[#allocation39_spill] sm:$0xff] }
 0x24f   : > { %v11517_v14 = vadd.f32 %v3653_v41, %v3596_v60  ;;  %v14066_v41 = vld [vmem:[#allocation41_spill] sm:$0xff] }
 0x251   : > { %14062 = vst [vmem:[#allocation71_spill] sm:$0xff] %v11517_v14  ;;  %3819 = vmatmul.bf16.gmra.mxu2 %v14063_v30  ;;  %3877 = vmatmul.bf16.gmra.mxu3 %v14064_v42 }
 0x252   : > { %v3699_v48 = vpop.f32.mrf.mxu0  ;;  %v3757_v54 = vpop.f32.mrf.mxu1 }
 0x253   : > { %v11521_v36 = vadd.f32 %v3757_v54, %v3699_v48  ;;  %v14070_v54 = vld [vmem:[#allocation67_spill] sm:$0xff] }
 0x254   : > { %v3598_v12 = vpop.f32.mrf.mxu2  ;;  %v3656_v51 = vpop.f32.mrf.mxu3 }
 0x255   : > { %v3599_v16 = vadd.f32 %v3598_v12, %v11348_v6  ;;  %3738 = vmatmul.bf16.gmra.mxu0 %v14065_v11  ;;  %3796 = vmatmul.bf16.gmra.mxu1 %v14066_v41  ;;  %v9632_v6 = vld [vmem:[#allocation2 + $0x664] sm:$0xf]  ;;  %v8774_v12 = vld [vmem:[#allocation2 + $0x670] sm:$0xf0] }
 0x257   : > { %v11526_v60 = vadd.f32 %v3656_v51, %v3599_v16  ;;  %v8777_v51 = vor.u32 %v9632_v6, %v8774_v12 }
 0x259   : > { %14067 = vst [vmem:[#allocation75_spill] sm:$0xff] %v11526_v60  ;;  %v9664_v60 = vld [vmem:[#allocation2 + $0x764] sm:$0xf]  ;;  %4037 = vmatpush.bf16.msra.mxu2 %v8777_v51 }
 0x25a   : > { %v3701_v0 = vpop.f32.mrf.mxu0  ;;  %v3759_v40 = vpop.f32.mrf.mxu1 }
 0x25b   : > { %v11528_v42 = vadd.f32 %v3759_v40, %v3701_v0  ;;  %v8902_v0 = vld [vmem:[#allocation2 + $0x770] sm:$0xf0] }
 0x25c   : > { %v3600_v19 = vpop.f32.mrf.mxu2  ;;  %v3658_v18 = vpop.f32.mrf.mxu3  ;;  %v8905_v14 = vor.u32 %v9664_v60, %v8902_v0  ;;  %v14075_v60 = vld [vmem:[#allocation11_spill] sm:$0xff] }
 0x25d   : > { %v3601_v45 = vadd.f32 %v3600_v19, %v11360_v34  ;;  %v14071_v19 = vld [vmem:[#allocation68_spill] sm:$0xff] }
 0x25e   : > { %4095 = vmatpush.bf16.msra.mxu3 %v8905_v14 }
 0x25f   : > { %v11531_v48 = vadd.f32 %v3658_v18, %v3601_v45  ;;  %v14072_v18 = vld [vmem:[#allocation69_spill] sm:$0xff] }
 0x261   : > { %14068 = vst [vmem:[#allocation76_spill] sm:$0xff] %v11531_v48  ;;  %3824 = vmatmul.bf16.gmra.mxu2 %v14069_v13  ;;  %3882 = vmatmul.bf16.gmra.mxu3 %v14070_v54 }
 0x262   : > { %v3704_v11 = vpop.f32.mrf.mxu0  ;;  %v3762_v41 = vpop.f32.mrf.mxu1 }
 0x263   : > { %v11535_v16 = vadd.f32 %v3762_v41, %v3704_v11 }
 0x264   : > { %v3603_v40 = vpop.f32.mrf.mxu2  ;;  %v3661_v30 = vpop.f32.mrf.mxu3 }
 0x265   : > { %v3604_v34 = vadd.f32 %v3603_v40, %v11388_v5  ;;  %3925 = vmatmul.bf16.vlgmr.msrb.gmra.mxu0 %v14071_v19  ;;  %3983 = vmatmul.bf16.vlgmr.msrb.gmra.mxu1 %v14072_v18  ;;  %v14076_v5 = vld [vmem:[#allocation72_spill] sm:$0xff] }
 0x267   : > { %v11540_v45 = vadd.f32 %v3661_v30, %v3604_v34 }
 0x269   : > { %14073 = vst [vmem:[#allocation9_spill] sm:$0xff] %v11540_v45 }
 0x26a   : > { %v3706_v54 = vpop.f32.mrf.mxu0  ;;  %v3764_v13 = vpop.f32.mrf.mxu1 }
 0x26b   : > { %v11542_v6 = vadd.f32 %v3764_v13, %v3706_v54  ;;  %v14077_v13 = vld [vmem:[#allocation73_spill] sm:$0xff]  ;;  %v14078_v54 = vld [vmem:[#allocation74_spill] sm:$0xff] }
 0x26c   : > { %v3605_v11 = vpop.f32.mrf.mxu2  ;;  %v3663_v41 = vpop.f32.mrf.mxu3 }
 0x26d   : > { %v3606_v12 = vadd.f32 %v3605_v11, %v11400_v26  ;;  %v9628_v26 = vld [vmem:[#allocation2 + $0x644] sm:$0xf]  ;;  %v8758_v11 = vld [vmem:[#allocation2 + $0x650] sm:$0xf0] }
 0x26f   : > { %v11545_v48 = vadd.f32 %v3663_v41, %v3606_v12  ;;  %v9660_v41 = vld [vmem:[#allocation2 + $0x744] sm:$0xf]  ;;  %v8761_v12 = vor.u32 %v9628_v26, %v8758_v11 }
 0x271   : > { %14074 = vst [vmem:[#allocation13_spill] sm:$0xff] %v11545_v48  ;;  %3829 = vmatmul.bf16.gmra.mxu2 %v14075_v60  ;;  %3887 = vmatmul.bf16.gmra.mxu3 %v14076_v5  ;;  %v8886_v60 = vld [vmem:[#allocation2 + $0x750] sm:$0xf0] }
 0x272   : > { %v3709_v51 = vpop.f32.mrf.mxu0  ;;  %v3767_v0 = vpop.f32.mrf.mxu1  ;;  %v8889_v5 = vor.u32 %v9660_v41, %v8886_v60  ;;  %4038 = vmatpush.bf16.msra.mxu2 %v8761_v12 }
 0x273   : > { %v11549_v40 = vadd.f32 %v3767_v0, %v3709_v51 }
 0x274   : > { %v3608_v14 = vpop.f32.mrf.mxu2  ;;  %v3666_v30 = vpop.f32.mrf.mxu3  ;;  %4096 = vmatpush.bf16.msra.mxu3 %v8889_v5  ;;  %v14084_v5 = vld [vmem:[#allocation80_spill] sm:$0xff] }
 0x275   : > { %v3609_v34 = vadd.f32 %v3608_v14, %v11428_v25  ;;  %3930 = vmatmul.bf16.gmra.mxu0 %v14077_v13  ;;  %3988 = vmatmul.bf16.gmra.mxu1 %v14078_v54 }
 0x277   : > { %v11554_v45 = vadd.f32 %v3666_v30, %v3609_v34  ;;  %v14081_v30 = vld [vmem:[#allocation77_spill] sm:$0xff]  ;;  %v14082_v34 = vld [vmem:[#allocation78_spill] sm:$0xff] }
 0x279   : > { %14079 = vst [vmem:[#allocation12_spill] sm:$0xff] %v11554_v45 }
 0x27a   : > { %v3711_v48 = vpop.f32.mrf.mxu0  ;;  %v3769_v18 = vpop.f32.mrf.mxu1 }
 0x27b   : > { %v11556_v51 = vadd.f32 %v3769_v18, %v3711_v48  ;;  %v14083_v18 = vld [vmem:[#allocation79_spill] sm:$0xff] }
 0x27c   : > { %v3610_v0 = vpop.f32.mrf.mxu2  ;;  %v3668_v25 = vpop.f32.mrf.mxu3 }
 0x27d   : > { %v3611_v14 = vadd.f32 %v3610_v0, %v11440_v62  ;;  %v9624_v62 = vld [vmem:[#allocation2 + $0x624] sm:$0xf]  ;;  %v8742_v0 = vld [vmem:[#allocation2 + $0x630] sm:$0xf0] }
 0x27f   : > { %v11559_v13 = vadd.f32 %v3668_v25, %v3611_v14  ;;  %v8745_v25 = vor.u32 %v9624_v62, %v8742_v0 }
 0x281   : > { %14080 = vst [vmem:[#allocation8_spill] sm:$0xff] %v11559_v13  ;;  %3834 = vmatmul.bf16.gmra.mxu2 %v14081_v30  ;;  %3892 = vmatmul.bf16.gmra.mxu3 %v14082_v34 }
 0x282   : > { %v3714_v45 = vpop.f32.mrf.mxu0  ;;  %v3772_v26 = vpop.f32.mrf.mxu1  ;;  %4039 = vmatpush.bf16.msra.mxu2 %v8745_v25 }
 0x283   : > { %v11563_v11 = vadd.f32 %v3772_v26, %v3714_v45  ;;  %v9656_v45 = vld [vmem:[#allocation2 + $0x724] sm:$0xf]  ;;  %v8870_v26 = vld [vmem:[#allocation2 + $0x730] sm:$0xf0] }
 0x284   : > { %v3613_v60 = vpop.f32.mrf.mxu2  ;;  %v3671_v41 = vpop.f32.mrf.mxu3  ;;  %v8873_v19 = vor.u32 %v9656_v45, %v8870_v26  ;;  %v14090_v45 = vld [vmem:[#allocation86_spill] sm:$0xff] }
 0x285   : > { %v3614_v48 = vadd.f32 %v3613_v60, %v11457_v46  ;;  %3935 = vmatmul.bf16.gmra.mxu0 %v14083_v18  ;;  %3993 = vmatmul.bf16.gmra.mxu1 %v14084_v5  ;;  %v14089_v5 = vld [vmem:[#allocation85_spill] sm:$0xff] }
 0x286   : > { %4097 = vmatpush.bf16.msra.mxu3 %v8873_v19 }
 0x287   : > { %v11568_v12 = vadd.f32 %v3671_v41, %v3614_v48  ;;  %v14087_v41 = vld [vmem:[#allocation83_spill] sm:$0xff]  ;;  %v14088_v48 = vld [vmem:[#allocation84_spill] sm:$0xff] }
 0x289   : > { %14085 = vst [vmem:[#allocation81_spill] sm:$0xff] %v11568_v12 }
 0x28a   : > { %v3716_v14 = vpop.f32.mrf.mxu0  ;;  %v3774_v30 = vpop.f32.mrf.mxu1 }
 0x28b   : > { %v11570_v34 = vadd.f32 %v3774_v30, %v3716_v14 }
 0x28c   : > { %v3615_v13 = vpop.f32.mrf.mxu2  ;;  %v3673_v54 = vpop.f32.mrf.mxu3 }
 0x28d   : > { %v3616_v46 = vadd.f32 %v3615_v13, %v11467_v10 }
 0x28f   : > { %v11573_v60 = vadd.f32 %v3673_v54, %v3616_v46 }
 0x291   : > { %14086 = vst [vmem:[#allocation82_spill] sm:$0xff] %v11573_v60  ;;  %3839 = vmatmul.bf16.gmra.mxu2 %v14087_v41  ;;  %3897 = vmatmul.bf16.gmra.mxu3 %v14088_v48  ;;  %v8726_v41 = vld [vmem:[#allocation2 + $0x610] sm:$0xf0]  ;;  %v9652_v60 = vld [vmem:[#allocation2 + $0x704] sm:$0xf] }
 0x292   : > { %v3719_v62 = vpop.f32.mrf.mxu0  ;;  %v3777_v0 = vpop.f32.mrf.mxu1 }
 0x293   : > { %v11577_v12 = vadd.f32 %v3777_v0, %v3719_v62  ;;  %v9620_v0 = vld [vmem:[#allocation2 + $0x604] sm:$0xf] }
 0x294   : > { %v3618_v30 = vpop.f32.mrf.mxu2  ;;  %v3676_v25 = vpop.f32.mrf.mxu3 }
 0x295   : > { %v3619_v14 = vadd.f32 %v3618_v30, %v11479_v33  ;;  %3940 = vmatmul.bf16.gmra.mxu0 %v14089_v5  ;;  %3998 = vmatmul.bf16.gmra.mxu1 %v14090_v45  ;;  %v8729_v33 = vor.u32 %v9620_v0, %v8726_v41  ;;  %v8854_v30 = vld [vmem:[#allocation2 + $0x710] sm:$0xf0]  ;;  %v14093_v5 = vld [vmem:[#allocation88_spill] sm:$0xff]  ;;  %v14094_v45 = vld [vmem:[#allocation89_spill] sm:$0xff] }
 0x297   : > { %v11582_v10 = vadd.f32 %v3676_v25, %v3619_v14  ;;  %v8857_v25 = vor.u32 %v9652_v60, %v8854_v30  ;;  %4040 = vmatpush.bf16.msra.mxu2 %v8729_v33  ;;  %v8076_v60 = vld [vmem:[#allocation2 + $0xe8] sm:$0xf]  ;;  %v9459_v30 = vld [vmem:[#allocation2 + $0xf4] sm:$0xf0] }
 0x298   : > { %v8204_v33 = vld [vmem:[#allocation2 + $0x1e8] sm:$0xf] }
 0x299   : > { %14091 = vst [vmem:[#allocation17_spill] sm:$0xff] %v11582_v10  ;;  %4098 = vmatpush.bf16.msra.mxu3 %v8857_v25  ;;  %v8077_v25 = vor.u32 %v9459_v30, %v8076_v60  ;;  %v14101_v30 = vld [vmem:[#allocation26_spill] sm:$0xff] }
 0x29a   : > { %v3721_v19 = vpop.f32.mrf.mxu0  ;;  %v3779_v13 = vpop.f32.mrf.mxu1 }
 0x29b   : > { %v11584_v54 = vadd.f32 %v3779_v13, %v3721_v19  ;;  %4149 = vmatpush.bf16.msra.mxu0 %v8077_v25 }
 0x29c   : > { %v3620_v26 = vpop.f32.mrf.mxu2  ;;  %v3678_v46 = vpop.f32.mrf.mxu3 }
 0x29d   : > { %v3621_v48 = vadd.f32 %v3620_v26, %v11487_v27  ;;  %v14095_v26 = vld [vmem:[#allocation90_spill] sm:$0xff] }
 0x29f   : > { %v11587_v62 = vadd.f32 %v3678_v46, %v3621_v48  ;;  %v14096_v46 = vld [vmem:[#allocation91_spill] sm:$0xff] }
 0x2a1   : > { %14092 = vst [vmem:[#allocation18_spill] sm:$0xff] %v11587_v62  ;;  %3844 = vmatmul.bf16.gmra.mxu2 %v14093_v5  ;;  %3902 = vmatmul.bf16.gmra.mxu3 %v14094_v45  ;;  %v9491_v62 = vld [vmem:[#allocation2 + $0x1f4] sm:$0xf0] }
 0x2a2   : > { %v3724_v14 = vpop.f32.mrf.mxu0  ;;  %v3782_v10 = vpop.f32.mrf.mxu1  ;;  %v8205_v18 = vor.u32 %v9491_v62, %v8204_v33 }
 0x2a3   : > { %v11591_v19 = vadd.f32 %v3782_v10, %v3724_v14 }
 0x2a4   : > { %v3623_v13 = vpop.f32.mrf.mxu2  ;;  %v3681_v27 = vpop.f32.mrf.mxu3  ;;  %4207 = vmatpush.bf16.msra.mxu1 %v8205_v18  ;;  %v14100_v18 = vld [vmem:[#allocation24_spill] sm:$0xff] }
 0x2a5   : > { %v3624_v48 = vadd.f32 %v3623_v13, %v11495_v50  ;;  %3945 = vmatmul.bf16.gmra.mxu0 %v14095_v26  ;;  %4003 = vmatmul.bf16.gmra.mxu1 %v14096_v46  ;;  %v14098_v50 = vld [vmem:[#allocation93_spill] sm:$0xff]  ;;  %v14099_v13 = vld [vmem:[#allocation94_spill] sm:$0xff]  ;;  %v8460_v26 = vld [vmem:[#allocation2 + $0x3e8] sm:$0xf] }
 0x2a6   : > { %v8461_v60 = vor.u32 %v9555_v44, %v8460_v26  ;;  %v8060_v44 = vld [vmem:[#allocation2 + $0xc8] sm:$0xf]  ;;  %v9455_v26 = vld [vmem:[#allocation2 + $0xd4] sm:$0xf0] }
 0x2a7   : > { %v11596_v41 = vadd.f32 %v3681_v27, %v3624_v48  ;;  %v8332_v27 = vld [vmem:[#allocation2 + $0x2e8] sm:$0xf]  ;;  %v9523_v48 = vld [vmem:[#allocation2 + $0x2f4] sm:$0xf0] }
 0x2a8   : > { %4323 = vmatpush.bf16.msrb.mxu3 %v8461_v60  ;;  %v14103_v60 = vld [vmem:[#allocation97_spill] sm:$0xff] }
 0x2a9   : > { %14097 = vst [vmem:[#allocation10_spill] sm:$0xff] %v11596_v41 }
 0x2aa   : > { %v3726_v0 = vpop.f32.mrf.mxu0  ;;  %v3784_v5 = vpop.f32.mrf.mxu1 }
 0x2ab   : > { %v11598_v45 = vadd.f32 %v3784_v5, %v3726_v0  ;;  %v8333_v5 = vor.u32 %v9523_v48, %v8332_v27 }
 0x2ac   : > { %v3625_v10 = vpop.f32.mrf.mxu2  ;;  %v3683_v14 = vpop.f32.mrf.mxu3 }
 0x2ad   : > { %4265 = vmatpush.bf16.msrb.mxu2 %v8333_v5  ;;  %v8061_v5 = vor.u32 %v9455_v26, %v8060_v44  ;;  %v8316_v26 = vld [vmem:[#allocation2 + $0x2c8] sm:$0xf] }
 0x2af   : > { %4150 = vmatpush.bf16.msra.mxu0 %v8061_v5 }
 0x2b1   : > { %3849 = vmatmul.bf16.gmra.mxu2 %v14098_v50  ;;  %3907 = vmatmul.bf16.gmra.mxu3 %v14099_v13 }
 0x2b2   : > { %v3729_v41 = vpop.f32.mrf.mxu0  ;;  %v3787_v46 = vpop.f32.mrf.mxu1 }
 0x2b3   : > { %v11602_v0 = vadd.f32 %v3787_v46, %v3729_v41 }
 0x2b4   : > { %v3810_v10 = vpop.f32.mrf.mxu2  ;;  %v3868_v14 = vpop.f32.mrf.mxu3 }
 0x2b5   : > { %v3811_v62 = vadd.f32 %v3810_v10, %v11507_v35  ;;  %3950 = vmatmul.bf16.gmra.mxu0 %v14100_v18  ;;  %4008 = vmatmul.bf16.gmra.mxu1 %v14101_v30  ;;  %v8188_v35 = vld [vmem:[#allocation2 + $0x1c8] sm:$0xf]  ;;  %v9487_v10 = vld [vmem:[#allocation2 + $0x1d4] sm:$0xf0] }
 0x2b6   : > { %v14102_v18 = vld [vmem:[#allocation96_spill] sm:$0xff] }
 0x2b7   : > { %v11607_v33 = vadd.f32 %v3868_v14, %v3811_v62  ;;  %v8189_v14 = vor.u32 %v9487_v10, %v8188_v35  ;;  %v9551_v10 = vld [vmem:[#allocation2 + $0x3d4] sm:$0xf0] }
 0x2b9   : > { %4208 = vmatpush.bf16.msra.mxu1 %v8189_v14 }
 0x2ba   : > { %v3731_v25 = vpop.f32.mrf.mxu0  ;;  %v3789_v13 = vpop.f32.mrf.mxu1 }
 0x2bb   : > { %v11609_v27 = vadd.f32 %v3789_v13, %v3731_v25 }
 0x2bc   : > { %v3812_v46 = vpop.f32.mrf.mxu2  ;;  %v3870_v41 = vpop.f32.mrf.mxu3 }
 0x2bd   : > { %v3813_v48 = vadd.f32 %v3812_v46, %v11514_v47 }
 0x2bf   : > { %v11612_v50 = vadd.f32 %v3870_v41, %v3813_v48  ;;  %v14104_v41 = vld [vmem:[#allocation95_spill] sm:$0xff]  ;;  %v14105_v48 = vld [vmem:[#allocation98_spill] sm:$0xff] }
 0x2c1   : > { %3854 = vmatmul.bf16.gmra.mxu2 %v14102_v18  ;;  %3912 = vmatmul.bf16.gmra.mxu3 %v14103_v60  ;;  %v9519_v18 = vld [vmem:[#allocation2 + $0x2d4] sm:$0xf0]  ;;  %v8444_v60 = vld [vmem:[#allocation2 + $0x3c8] sm:$0xf] }
 0x2c2   : > { %v3734_v62 = vpop.f32.mrf.mxu0  ;;  %v3792_v30 = vpop.f32.mrf.mxu1  ;;  %v8317_v35 = vor.u32 %v9519_v18, %v8316_v26  ;;  %v8445_v61 = vor.u32 %v9551_v10, %v8444_v60  ;;  %v14106_v18 = vld [vmem:[#allocation65_spill] sm:$0xff]  ;;  %v14107_v60 = vld [vmem:[#allocation22_spill] sm:$0xff] }
 0x2c3   : > { %v11616_v13 = vadd.f32 %v3792_v30, %v3734_v62 }
 0x2c4   : > { %v3815_v25 = vpop.f32.mrf.mxu2  ;;  %v3873_v47 = vpop.f32.mrf.mxu3  ;;  %4266 = vmatpush.bf16.msrb.mxu2 %v8317_v35  ;;  %4324 = vmatpush.bf16.msrb.mxu3 %v8445_v61 }
 0x2c5   : > { %v3816_v46 = vadd.f32 %v3815_v25, %v11521_v36  ;;  %3955 = vmatmul.bf16.gmra.mxu0 %v14104_v41  ;;  %4013 = vmatmul.bf16.gmra.mxu1 %v14105_v48  ;;  %v8172_v48 = vld [vmem:[#allocation2 + $0x1a8] sm:$0xf] }
 0x2c6   : > { %v8173_v26 = vor.u32 %v9483_v1, %v8172_v48 }
 0x2c7   : > { %v11621_v44 = vadd.f32 %v3873_v47, %v3816_v46  ;;  %v8044_v47 = vld [vmem:[#allocation2 + $0xa8] sm:$0xf]  ;;  %v9451_v46 = vld [vmem:[#allocation2 + $0xb4] sm:$0xf0] }
 0x2c8   : > { %v8045_v58 = vor.u32 %v9451_v46, %v8044_v47  ;;  %4209 = vmatpush.bf16.msra.mxu1 %v8173_v26  ;;  %v9447_v47 = vld [vmem:[#allocation2 + $0x94] sm:$0xf0]  ;;  %v8156_v46 = vld [vmem:[#allocation2 + $0x188] sm:$0xf] }
 0x2ca   : > { %v3736_v5 = vpop.f32.mrf.mxu0  ;;  %v3794_v30 = vpop.f32.mrf.mxu1  ;;  %4151 = vmatpush.bf16.msra.mxu0 %v8045_v58  ;;  %v8012_v58 = vld [vmem:[#allocation2 + $0x68] sm:$0xf] }
 0x2cb   : > { %v11623_v14 = vadd.f32 %v3794_v30, %v3736_v5 }
 0x2cc   : > { %v3817_v62 = vpop.f32.mrf.mxu2  ;;  %v3875_v36 = vpop.f32.mrf.mxu3 }
 0x2cd   : > { %v3818_v25 = vadd.f32 %v3817_v62, %v11528_v42  ;;  %v14108_v62 = vld [vmem:[#allocation33_spill] sm:$0xff] }
 0x2cf   : > { %v11626_v41 = vadd.f32 %v3875_v36, %v3818_v25  ;;  %v14109_v36 = vld [vmem:[#allocation34_spill] sm:$0xff]  ;;  %v8028_v25 = vld [vmem:[#allocation2 + $0x88] sm:$0xf] }
 0x2d1   : > { %4041 = vmatmul.bf16.vlgmr.msra.gmra.mxu2 %v14106_v18  ;;  %4099 = vmatmul.bf16.vlgmr.msra.gmra.mxu3 %v14107_v60  ;;  %v8029_v18 = vor.u32 %v9447_v47, %v8028_v25  ;;  %v9479_v60 = vld [vmem:[#allocation2 + $0x194] sm:$0xf0]  ;;  %v8124_v47 = vld [vmem:[#allocation2 + $0x148] sm:$0xf] }
 0x2d2   : > { %v3739_v35 = vpop.f32.mrf.mxu0  ;;  %v3797_v10 = vpop.f32.mrf.mxu1  ;;  %v8157_v48 = vor.u32 %v9479_v60, %v8156_v46  ;;  %v7996_v60 = vld [vmem:[#allocation2 + $0x48] sm:$0xf]  ;;  %v9471_v46 = vld [vmem:[#allocation2 + $0x154] sm:$0xf0] }
 0x2d3   : > { %v11630_v61 = vadd.f32 %v3797_v10, %v3739_v35  ;;  %v9443_v35 = vld [vmem:[#allocation2 + $0x74] sm:$0xf0]  ;;  %v8140_v10 = vld [vmem:[#allocation2 + $0x168] sm:$0xf]  ;;  %4152 = vmatpush.bf16.msra.mxu0 %v8029_v18 }
 0x2d4   : > { %v3820_v5 = vpop.f32.mrf.mxu2  ;;  %v3878_v42 = vpop.f32.mrf.mxu3  ;;  %v8013_v26 = vor.u32 %v9443_v35, %v8012_v58  ;;  %4210 = vmatpush.bf16.msra.mxu1 %v8157_v48  ;;  %v8428_v58 = vld [vmem:[#allocation2 + $0x3a8] sm:$0xf]  ;;  %v9547_v35 = vld [vmem:[#allocation2 + $0x3b4] sm:$0xf0] }
 0x2d5   : > { %v3821_v30 = vadd.f32 %v3820_v5, %v11535_v16  ;;  %3960 = vmatmul.bf16.gmra.mxu0 %v14108_v62  ;;  %4018 = vmatmul.bf16.gmra.mxu1 %v14109_v36  ;;  %v9515_v16 = vld [vmem:[#allocation2 + $0x2b4] sm:$0xf0]  ;;  %v8141_v5 = vor.u32 %v9475_v29, %v8140_v10  ;;  %v8125_v29 = vor.u32 %v9471_v46, %v8124_v47 }
 0x2d6   : > { %v8301_v62 = vor.u32 %v9515_v16, %v8300_v57  ;;  %v8429_v57 = vor.u32 %v9547_v35, %v8428_v58  ;;  %v9467_v10 = vld [vmem:[#allocation2 + $0x134] sm:$0xf0] }
 0x2d7   : > { %v11635_v1 = vadd.f32 %v3878_v42, %v3821_v30  ;;  %4153 = vmatpush.bf16.msra.mxu0 %v8013_v26  ;;  %v9439_v30 = vld [vmem:[#allocation2 + $0x54] sm:$0xf0] }
 0x2d8   : > { %4267 = vmatpush.bf16.msrb.mxu2 %v8301_v62  ;;  %4211 = vmatpush.bf16.msra.mxu1 %v8141_v5  ;;  %v7997_v18 = vor.u32 %v9439_v30, %v7996_v60  ;;  %v8108_v62 = vld [vmem:[#allocation2 + $0x128] sm:$0xf]  ;;  %v9431_v47 = vld [vmem:[#allocation2 + $0x14] sm:$0xf0] }
 0x2d9   : > { %4325 = vmatpush.bf16.msrb.mxu3 %v8429_v57  ;;  %v8109_v26 = vor.u32 %v9467_v10, %v8108_v62  ;;  %v7964_v30 = vld [vmem:[#allocation2 + $0x8] sm:$0xf]  ;;  %v9463_v58 = vld [vmem:[#allocation2 + $0x114] sm:$0xf0] }
 0x2da   : > { %v3741_v36 = vpop.f32.mrf.mxu0  ;;  %v3799_v4 = vpop.f32.mrf.mxu1  ;;  %v7965_v46 = vor.u32 %v9431_v47, %v7964_v30 }
 0x2db   : > { %v7980_v36 = vld [vmem:[#allocation2 + $0x28] sm:$0xf]  ;;  %v9435_v4 = vld [vmem:[#allocation2 + $0x34] sm:$0xf0]  ;;  %4154 = vmatpush.bf16.msra.mxu0 %v7997_v18 }
 0x2dc   : > { %v3822_v59 = vpop.f32.mrf.mxu2  ;;  %v3880_v25 = vpop.f32.mrf.mxu3  ;;  %v7981_v48 = vor.u32 %v9435_v4, %v7980_v36  ;;  %4212 = vmatpush.bf16.msra.mxu1 %v8125_v29  ;;  %v8092_v18 = vld [vmem:[#allocation2 + $0x108] sm:$0xf] }
 0x2dd   : > { %v3823_v42 = vadd.f32 %v3822_v59, %v11542_v6 }
 0x2df   : > { %v11638_v55 = vadd.f32 %v3880_v25, %v3823_v42  ;;  %4155 = vmatpush.bf16.msra.mxu0 %v7981_v48 }
 0x2e0   : > { %4213 = vmatpush.bf16.msra.mxu1 %v8109_v26  ;;  %v8412_v26 = vld [vmem:[#allocation2 + $0x388] sm:$0xf] }
 0x2e1   : > { %4046 = vmatmul.bf16.gmra.mxu2 %v11156_v15  ;;  %4104 = vmatmul.bf16.gmra.mxu3 %v11170_v31 }
 0x2e2   : > { %v3926_v59 = vpop.f32.mrf.mxu0  ;;  %v3984_v6 = vpop.f32.mrf.mxu1 }
 0x2e3   : > { %v3927_v16 = vadd.f32 %v3926_v59, %v11607_v33  ;;  %v8093_v33 = vor.u32 %v9463_v58, %v8092_v18  ;;  %4156 = vmatpush.bf16.msra.mxu0 %v7965_v46  ;;  %v8284_v59 = vld [vmem:[#allocation2 + $0x288] sm:$0xf] }
 0x2e4   : > { %v3825_v5 = vpop.f32.mrf.mxu2  ;;  %v3883_v25 = vpop.f32.mrf.mxu3 }
 0x2e5   : > { %v11643_v42 = vadd.f32 %v3984_v6, %v3927_v16  ;;  %v3826_v60 = vadd.f32 %v3825_v5, %v11549_v40  ;;  %3965 = vmatmul.bf16.gmra.mxu0 %v11178_v39  ;;  %4023 = vmatmul.bf16.gmra.mxu1 %v11180_v43  ;;  %v9511_v6 = vld [vmem:[#allocation2 + $0x294] sm:$0xf0] }
 0x2e6   : > { %4214 = vmatpush.bf16.msra.mxu1 %v8093_v33  ;;  %v8285_v16 = vor.u32 %v9511_v6, %v8284_v59  ;;  %v9543_v5 = vld [vmem:[#allocation2 + $0x394] sm:$0xf0] }
 0x2e7   : > { %v11648_v35 = vadd.f32 %v3883_v25, %v3826_v60  ;;  %v8413_v25 = vor.u32 %v9543_v5, %v8412_v26  ;;  %v9507_v59 = vld [vmem:[#allocation2 + $0x274] sm:$0xf0] }
 0x2e8   : > { %4268 = vmatpush.bf16.msrb.mxu2 %v8285_v16 }
 0x2e9   : > { %4326 = vmatpush.bf16.msrb.mxu3 %v8413_v25 }
 0x2ea   : > { %v3928_v29 = vpop.f32.mrf.mxu0  ;;  %v3986_v57 = vpop.f32.mrf.mxu1 }
 0x2eb   : > { %v3929_v36 = vadd.f32 %v3928_v29, %v11612_v50 }
 0x2ec   : > { %v3827_v40 = vpop.f32.mrf.mxu2  ;;  %v3885_v4 = vpop.f32.mrf.mxu3 }
 0x2ed   : > { %v11651_v62 = vadd.f32 %v3986_v57, %v3929_v36  ;;  %v3828_v48 = vadd.f32 %v3827_v40, %v11556_v51 }
 0x2ef   : > { %v11654_v10 = vadd.f32 %v3885_v4, %v3828_v48 }
 0x2f1   : > { %4051 = vmatmul.bf16.gmra.mxu2 %v11196_v24  ;;  %4109 = vmatmul.bf16.gmra.mxu3 %v11205_v49 }
 0x2f2   : > { %v3931_v60 = vpop.f32.mrf.mxu0  ;;  %v3989_v50 = vpop.f32.mrf.mxu1 }
 0x2f3   : > { %v3932_v30 = vadd.f32 %v3931_v60, %v11621_v44 }
 0x2f4   : > { %v3830_v47 = vpop.f32.mrf.mxu2  ;;  %v3888_v51 = vpop.f32.mrf.mxu3 }
 0x2f5   : > { %v11659_v18 = vadd.f32 %v3989_v50, %v3932_v30  ;;  %v3831_v46 = vadd.f32 %v3830_v47, %v11563_v11  ;;  %3970 = vmatmul.bf16.gmra.mxu0 %v11223_v28  ;;  %4028 = vmatmul.bf16.gmra.mxu1 %v11226_v52  ;;  %v8268_v11 = vld [vmem:[#allocation2 + $0x268] sm:$0xf]  ;;  %v9539_v30 = vld [vmem:[#allocation2 + $0x374] sm:$0xf0] }
 0x2f6   : > { %v8269_v16 = vor.u32 %v9507_v59, %v8268_v11  ;;  %v8396_v50 = vld [vmem:[#allocation2 + $0x368] sm:$0xf]  ;;  %v14111_v11 = vld [vmem:[#allocation29_spill] sm:$0xff] }
 0x2f7   : > { %v11664_v58 = vadd.f32 %v3888_v51, %v3831_v46  ;;  %v8397_v47 = vor.u32 %v9539_v30, %v8396_v50  ;;  %v8252_v50 = vld [vmem:[#allocation2 + $0x248] sm:$0xf]  ;;  %v9503_v30 = vld [vmem:[#allocation2 + $0x254] sm:$0xf0] }
 0x2f8   : > { %4269 = vmatpush.bf16.msrb.mxu2 %v8269_v16 }
 0x2f9   : > { %4327 = vmatpush.bf16.msrb.mxu3 %v8397_v47  ;;  %v8380_v47 = vld [vmem:[#allocation2 + $0x348] sm:$0xf] }
 0x2fa   : > { %v3933_v33 = vpop.f32.mrf.mxu0  ;;  %v3991_v29 = vpop.f32.mrf.mxu1 }
 0x2fb   : > { %v3934_v57 = vadd.f32 %v3933_v33, %v11626_v41 }
 0x2fc   : > { %v3832_v36 = vpop.f32.mrf.mxu2  ;;  %v3890_v40 = vpop.f32.mrf.mxu3 }
 0x2fd   : > { %v11667_v44 = vadd.f32 %v3991_v29, %v3934_v57  ;;  %v3833_v4 = vadd.f32 %v3832_v36, %v11570_v34 }
 0x2ff   : > { %v11670_v48 = vadd.f32 %v3890_v40, %v3833_v4  ;;  %v14110_v4 = vld [vmem:[#allocation30_spill] sm:$0xff] }
 0x301   : > { %4056 = vmatmul.bf16.gmra.mxu2 %v11249_v23  ;;  %4114 = vmatmul.bf16.gmra.mxu3 %v11259_v38 }
 0x302   : > { %v3936_v6 = vpop.f32.mrf.mxu0  ;;  %v3994_v26 = vpop.f32.mrf.mxu1 }
 0x303   : > { %v3937_v5 = vadd.f32 %v3936_v6, %v11635_v1 }
 0x304   : > { %v3835_v41 = vpop.f32.mrf.mxu2  ;;  %v3893_v25 = vpop.f32.mrf.mxu3 }
 0x305   : > { %v11675_v60 = vadd.f32 %v3994_v26, %v3937_v5  ;;  %v3836_v34 = vadd.f32 %v3835_v41, %v11577_v12  ;;  %4157 = vmatmul.bf16.vlgmr.msra.gmra.mxu0 %v14005_v37  ;;  %4215 = vmatmul.bf16.vlgmr.msra.gmra.mxu1 %v14006_v9 }
 0x307   : > { %v11680_v51 = vadd.f32 %v3893_v25, %v3836_v34  ;;  %v14112_v25 = vld [vmem:[#allocation43_spill] sm:$0xff]  ;;  %v14113_v34 = vld [vmem:[#allocation44_spill] sm:$0xff] }
 0x30a   : > { %v3938_v46 = vpop.f32.mrf.mxu0  ;;  %v3996_v33 = vpop.f32.mrf.mxu1 }
 0x30b   : > { %v3939_v1 = vadd.f32 %v3938_v46, %v11638_v55  ;;  %v8253_v46 = vor.u32 %v9503_v30, %v8252_v50 }
 0x30c   : > { %v3837_v29 = vpop.f32.mrf.mxu2  ;;  %v3895_v57 = vpop.f32.mrf.mxu3 }
 0x30d   : > { %v11683_v36 = vadd.f32 %v3996_v33, %v3939_v1  ;;  %v3838_v12 = vadd.f32 %v3837_v29, %v11584_v54  ;;  %v9535_v33 = vld [vmem:[#allocation2 + $0x354] sm:$0xf0]  ;;  %4270 = vmatpush.bf16.msrb.mxu2 %v8253_v46 }
 0x30e   : > { %v8381_v1 = vor.u32 %v9535_v33, %v8380_v47 }
 0x30f   : > { %v11686_v40 = vadd.f32 %v3895_v57, %v3838_v12 }
 0x310   : > { %4328 = vmatpush.bf16.msrb.mxu3 %v8381_v1  ;;  %v14116_v1 = vld [vmem:[#allocation51_spill] sm:$0xff] }
 0x311   : > { %4061 = vmatmul.bf16.gmra.mxu2 %v14110_v4  ;;  %4119 = vmatmul.bf16.gmra.mxu3 %v14111_v11 }
 0x312   : > { %v3941_v59 = vpop.f32.mrf.mxu0  ;;  %v3999_v6 = vpop.f32.mrf.mxu1 }
 0x313   : > { %v3942_v26 = vadd.f32 %v3941_v59, %v11648_v35 }
 0x314   : > { %v3840_v16 = vpop.f32.mrf.mxu2  ;;  %v3898_v5 = vpop.f32.mrf.mxu3 }
 0x315   : > { %v11691_v41 = vadd.f32 %v3999_v6, %v3942_v26  ;;  %v3841_v55 = vadd.f32 %v3840_v16, %v11591_v19  ;;  %4162 = vmatmul.bf16.gmra.mxu0 %v14112_v25  ;;  %4220 = vmatmul.bf16.gmra.mxu1 %v14113_v34  ;;  %v14114_v16 = vld [vmem:[#allocation38_spill] sm:$0xff] }
 0x317   : > { %v11696_v54 = vadd.f32 %v3898_v5, %v3841_v55  ;;  %v14115_v5 = vld [vmem:[#allocation37_spill] sm:$0xff] }
 0x31a   : > { %v3943_v29 = vpop.f32.mrf.mxu0  ;;  %v4001_v35 = vpop.f32.mrf.mxu1 }
 0x31b   : > { %v3944_v57 = vadd.f32 %v3943_v29, %v11654_v10  ;;  %v14117_v29 = vld [vmem:[#allocation52_spill] sm:$0xff] }
 0x31c   : > { %v3842_v12 = vpop.f32.mrf.mxu2  ;;  %v3900_v19 = vpop.f32.mrf.mxu3 }
 0x31d   : > { %v11699_v59 = vadd.f32 %v4001_v35, %v3944_v57  ;;  %v3843_v6 = vadd.f32 %v3842_v12, %v11598_v45  ;;  %v8236_v35 = vld [vmem:[#allocation2 + $0x228] sm:$0xf]  ;;  %v9499_v57 = vld [vmem:[#allocation2 + $0x234] sm:$0xf0] }
 0x31e   : > { %v8237_v12 = vor.u32 %v9499_v57, %v8236_v35 }
 0x31f   : > { %v11702_v26 = vadd.f32 %v3900_v19, %v3843_v6 }
 0x320   : > { %4271 = vmatpush.bf16.msrb.mxu2 %v8237_v12 }
 0x321   : > { %4066 = vmatmul.bf16.gmra.mxu2 %v14114_v16  ;;  %4124 = vmatmul.bf16.gmra.mxu3 %v14115_v5  ;;  %v8014_v16 = vld [vmem:[#allocation2 + $0x78] sm:$0xf0] }
 0x322   : > { %v3946_v55 = vpop.f32.mrf.mxu0  ;;  %v4004_v50 = vpop.f32.mrf.mxu1 }
 0x323   : > { %v3947_v30 = vadd.f32 %v3946_v55, %v11664_v58 }
 0x324   : > { %v3845_v47 = vpop.f32.mrf.mxu2  ;;  %v3903_v46 = vpop.f32.mrf.mxu3 }
 0x325   : > { %v11707_v10 = vadd.f32 %v4004_v50, %v3947_v30  ;;  %v3846_v33 = vadd.f32 %v3845_v47, %v11602_v0  ;;  %4167 = vmatmul.bf16.gmra.mxu0 %v14116_v1  ;;  %4225 = vmatmul.bf16.gmra.mxu1 %v14117_v29  ;;  %v8364_v30 = vld [vmem:[#allocation2 + $0x328] sm:$0xf]  ;;  %v9531_v47 = vld [vmem:[#allocation2 + $0x334] sm:$0xf0] }
 0x326   : > { %v8365_v1 = vor.u32 %v9531_v47, %v8364_v30 }
 0x327   : > { %v11712_v45 = vadd.f32 %v3903_v46, %v3846_v33  ;;  %v14118_v46 = vld [vmem:[#allocation40_spill] sm:$0xff]  ;;  %v14119_v33 = vld [vmem:[#allocation45_spill] sm:$0xff] }
 0x328   : > { %4329 = vmatpush.bf16.msrb.mxu3 %v8365_v1 }
 0x32a   : > { %v3948_v19 = vpop.f32.mrf.mxu0  ;;  %v4006_v6 = vpop.f32.mrf.mxu1 }
 0x32b   : > { %v3949_v58 = vadd.f32 %v3948_v19, %v11670_v48 }
 0x32c   : > { %v3847_v55 = vpop.f32.mrf.mxu2  ;;  %v3905_v5 = vpop.f32.mrf.mxu3 }
 0x32d   : > { %v11715_v50 = vadd.f32 %v4006_v6, %v3949_v58  ;;  %v3848_v0 = vadd.f32 %v3847_v55, %v11609_v27  ;;  %v14120_v58 = vld [vmem:[#allocation59_spill] sm:$0xff]  ;;  %v14121_v55 = vld [vmem:[#allocation60_spill] sm:$0xff] }
 0x32f   : > { %v11718_v29 = vadd.f32 %v3905_v5, %v3848_v0  ;;  %v1860_v5 = vld [vmem:[#allocation4] sm:$0xf] }
 0x330   : > { %5116 = vst [vmem:[#allocation1] ss:$9 sm:$0xff] %v1860_v5 }
 0x331   : > { %4071 = vmatmul.bf16.gmra.mxu2 %v14118_v46  ;;  %4129 = vmatmul.bf16.gmra.mxu3 %v14119_v33 }
 0x332   : > { %v3951_v35 = vpop.f32.mrf.mxu0  ;;  %v4009_v57 = vpop.f32.mrf.mxu1 }
 0x333   : > { %v3952_v48 = vadd.f32 %v3951_v35, %v11680_v51 }
 0x334   : > { %v3850_v12 = vpop.f32.mrf.mxu2  ;;  %v3908_v19 = vpop.f32.mrf.mxu3 }
 0x335   : > { %v11723_v6 = vadd.f32 %v4009_v57, %v3952_v48  ;;  %v3851_v27 = vadd.f32 %v3850_v12, %v11616_v13  ;;  %4172 = vmatmul.bf16.gmra.mxu0 %v14120_v58  ;;  %4230 = vmatmul.bf16.gmra.mxu1 %v14121_v55  ;;  %v14122_v13 = vld [vmem:[#allocation42_spill] sm:$0xff]  ;;  %v14123_v12 = vld [vmem:[#allocation49_spill] sm:$0xff] }
 0x337   : > { %v11728_v1 = vadd.f32 %v3908_v19, %v3851_v27 }
 0x33a   : > { %v3953_v0 = vpop.f32.mrf.mxu0  ;;  %v4011_v30 = vpop.f32.mrf.mxu1 }
 0x33b   : > { %v3954_v47 = vadd.f32 %v3953_v0, %v11686_v40  ;;  %v9495_v0 = vld [vmem:[#allocation2 + $0x214] sm:$0xf0] }
 0x33c   : > { %v3852_v33 = vpop.f32.mrf.mxu2  ;;  %v3910_v51 = vpop.f32.mrf.mxu3 }
 0x33d   : > { %v11731_v35 = vadd.f32 %v4011_v30, %v3954_v47  ;;  %v3853_v57 = vadd.f32 %v3852_v33, %v11623_v14  ;;  %v8220_v33 = vld [vmem:[#allocation2 + $0x208] sm:$0xf] }
 0x33e   : > { %v8348_v30 = vld [vmem:[#allocation2 + $0x308] sm:$0xf] }
 0x33f   : > { %v11734_v48 = vadd.f32 %v3910_v51, %v3853_v57  ;;  %v8221_v57 = vor.u32 %v9495_v0, %v8220_v33  ;;  %v5117_v0 = vld [vmem:[#allocation1] sm:$0xff] }
 0x341   : > { %4076 = vmatmul.bf16.gmra.mxu2 %v14122_v13  ;;  %4134 = vmatmul.bf16.gmra.mxu3 %v14123_v12  ;;  %v9527_v12 = vld [vmem:[#allocation2 + $0x314] sm:$0xf0] }
 0x342   : > { %v3956_v55 = vpop.f32.mrf.mxu0  ;;  %v4014_v5 = vpop.f32.mrf.mxu1  ;;  %4272 = vmatpush.bf16.msrb.mxu2 %v8221_v57 }
 0x343   : > { %v3957_v19 = vadd.f32 %v3956_v55, %v11696_v54  ;;  %v8349_v55 = vor.u32 %v9527_v12, %v8348_v30  ;;  %v8844_v30 = vld [vmem:[#allocation2 + $0x6e8] sm:$0xf] }
 0x344   : > { %v3855_v27 = vpop.f32.mrf.mxu2  ;;  %v3913_v58 = vpop.f32.mrf.mxu3 }
 0x345   : > { %v11739_v46 = vadd.f32 %v4014_v5, %v3957_v19  ;;  %v3856_v40 = vadd.f32 %v3855_v27, %v11630_v61  ;;  %4177 = vmatmul.bf16.gmra.mxu0 %v14039_v8  ;;  %4235 = vmatmul.bf16.gmra.mxu1 %v14040_v56  ;;  %v8588_v27 = vld [vmem:[#allocation2 + $0x4e8] sm:$0xf]  ;;  %v9587_v56 = vld [vmem:[#allocation2 + $0x4f4] sm:$0xf0] }
 0x346   : > { %4330 = vmatpush.bf16.msrb.mxu3 %v8349_v55  ;;  %v9619_v8 = vld [vmem:[#allocation2 + $0x5f4] sm:$0xf0] }
 0x347   : > { %v11744_v14 = vadd.f32 %v3913_v58, %v3856_v40  ;;  %v8716_v58 = vld [vmem:[#allocation2 + $0x5e8] sm:$0xf]  ;;  %v8589_v40 = vor.u32 %v9587_v56, %v8588_v27 }
 0x348   : > { %v8717_v13 = vor.u32 %v9619_v8, %v8716_v58 }
 0x349   : > { %4381 = vmatpush.bf16.msrb.mxu0 %v8589_v40 }
 0x34a   : > { %v3958_v47 = vpop.f32.mrf.mxu0  ;;  %v4016_v51 = vpop.f32.mrf.mxu1  ;;  %4439 = vmatpush.bf16.msrb.mxu1 %v8717_v13  ;;  %v5121_v13 = vpack.i.b16 %v5117_v0, %v5117_v0 }
 0x34b   : > { %v3959_v54 = vadd.f32 %v3958_v47, %v11702_v26  ;;  %v9651_v47 = vld [vmem:[#allocation2 + $0x6f4] sm:$0xf0] }
 0x34c   : > { %v3857_v5 = vpop.f32.mrf.mxu2  ;;  %v3915_v19 = vpop.f32.mrf.mxu3  ;;  %v8845_v55 = vor.u32 %v9651_v47, %v8844_v30 }
 0x34d   : > { %v11747_v61 = vadd.f32 %v4016_v51, %v3959_v54  ;;  %v5118_v54 = vld [vmem:[#allocation1 + $0x9] sm:$0xff]  ;;  %v9683_v19 = vld [vmem:[#allocation2 + $0x7f4] sm:$0xf0] }
 0x34e   : > { %v8972_v5 = vld [vmem:[#allocation2 + $0x7e8] sm:$0xf]  ;;  %4497 = vmatpush.bf16.msra.mxu2 %v8845_v55  ;;  %v5124_v58 = vpack.i.b16 %v5118_v54, %v5118_v54 }
 0x351   : > { %4081 = vmatmul.bf16.gmra.mxu2 %v11448_v3  ;;  %4139 = vmatmul.bf16.gmra.mxu3 %v11450_v21  ;;  %v9659_v21 = vld [vmem:[#allocation2 + $0x734] sm:$0xf0] }
 0x352   : > { %v3961_v33 = vpop.f32.mrf.mxu0  ;;  %v4019_v26 = vpop.f32.mrf.mxu1 }
 0x353   : > { %v3962_v12 = vadd.f32 %v3961_v33, %v11712_v45  ;;  %v8973_v45 = vor.u32 %v9683_v19, %v8972_v5  ;;  %v5123_v33 = vperm.slane %v5121_v13, 0 }
 0x354   : > { %v4042_v51 = vpop.f32.mrf.mxu2  ;;  %v4100_v57 = vpop.f32.mrf.mxu3 }
 0x355   : > { %v11752_v56 = vadd.f32 %v4019_v26, %v3962_v12  ;;  %v4043_v8 = vadd.f32 %v4042_v51, %v11643_v42  ;;  %4182 = vmatmul.bf16.gmra.mxu0 %v14043_v17  ;;  %4240 = vmatmul.bf16.gmra.mxu1 %v14044_v53  ;;  %v5126_v12 = vperm.slane %v5124_v58, 0  ;;  %v11762_v55 = vunpack.c.l.bf16 %v5123_v33  ;;  %v8572_v58 = vld [vmem:[#allocation2 + $0x4c8] sm:$0xf] }
 0x356   : > { %4555 = vmatpush.bf16.msra.mxu3 %v8973_v45  ;;  %v8700_v33 = vld [vmem:[#allocation2 + $0x5c8] sm:$0xf] }
 0x357   : > { %v4101_v27 = vadd.f32 %v4100_v57, %v4043_v8  ;;  %14124 = vst [vmem:[#allocation16_spill] sm:$0xff] %v11762_v55  ;;  %v11764_v54 = vunpack.c.l.bf16 %v5126_v12 }
 0x359   : > { %v5077_v40 = vpack.c.bf16 %v4101_v27, %v11462_v20  ;;  %14125 = vst [vmem:[#allocation87_spill] sm:$0xff] %v11764_v54 }
 0x35a   : > { %v3963_v30 = vpop.f32.mrf.mxu0  ;;  %v4021_v26 = vpop.f32.mrf.mxu1 }
 0x35b   : > { %v3964_v42 = vadd.f32 %v3963_v30, %v11718_v29  ;;  %v5133_v0 = vunpack.c.l.bf16 %v5077_v40  ;;  %v5134_v57 = vunpack.c.h.bf16 %v5077_v40  ;;  %v9583_v40 = vld [vmem:[#allocation2 + $0x4d4] sm:$0xf0] }
 0x35c   : > { %v4044_v47 = vpop.f32.mrf.mxu2  ;;  %v4102_v51 = vpop.f32.mrf.mxu3 }
 0x35d   : > { %v11759_v17 = vadd.f32 %v4021_v26, %v3964_v42  ;;  %v4045_v53 = vadd.f32 %v4044_v47, %v11651_v62  ;;  %v5213_v29 = vadd.f32 %v11762_v55, %v5133_v0  ;;  %v5214_v13 = vadd.f32 %v11764_v54, %v5134_v57  ;;  %v9615_v26 = vld [vmem:[#allocation2 + $0x5d4] sm:$0xf0] }
 0x35f   : > { %v4103_v8 = vadd.f32 %v4102_v51, %v4045_v53  ;;  %v5403_v0 = vmax.f32 %v5213_v29, 0.0  ;;  %v5404_v57 = vmax.f32 %v5214_v13, 0.0 }
 0x361   : > { %v5079_v20 = vpack.c.bf16 %v4103_v8, %v11470_v22  ;;  %4086 = vmatmul.bf16.gmra.mxu2 %v11472_v63  ;;  %4144 = vmatmul.bf16.gmra.mxu3 %v11474_v7  ;;  %v8573_v22 = vor.u32 %v9583_v40, %v8572_v58  ;;  %v8828_v40 = vld [vmem:[#allocation2 + $0x6c8] sm:$0xf]  ;;  %v9663_v7 = vld [vmem:[#allocation2 + $0x754] sm:$0xf0] }
 0x362   : > { %v3966_v5 = vpop.f32.mrf.mxu0  ;;  %v4024_v19 = vpop.f32.mrf.mxu1 }
 0x363   : > { %v5137_v62 = vunpack.c.l.bf16 %v5079_v20  ;;  %v5138_v45 = vunpack.c.h.bf16 %v5079_v20  ;;  %v3967_v27 = vadd.f32 %v3966_v5, %v11728_v1  ;;  %4382 = vmatpush.bf16.msrb.mxu0 %v8573_v22  ;;  %v8701_v1 = vor.u32 %v9615_v26, %v8700_v33  ;;  %v8956_v22 = vld [vmem:[#allocation2 + $0x7c8] sm:$0xf] }
 0x364   : > { %v4047_v53 = vpop.f32.mrf.mxu2  ;;  %v4105_v30 = vpop.f32.mrf.mxu3 }
 0x365   : > { %v5217_v12 = vadd.f32 %v11762_v55, %v5137_v62  ;;  %v5218_v42 = vadd.f32 %v11764_v54, %v5138_v45  ;;  %v11774_v47 = vadd.f32 %v4024_v19, %v3967_v27  ;;  %v4048_v51 = vadd.f32 %v4047_v53, %v11659_v18  ;;  %4187 = vmatmul.bf16.gmra.mxu0 %v14047_v32  ;;  %v14128_v19 = vld [vmem:[#allocation55_spill] sm:$0xff]  ;;  %v9647_v53 = vld [vmem:[#allocation2 + $0x6d4] sm:$0xf0] }
 0x366   : > { %4245 = vmatmul.bf16.gmra.mxu1 %v14048_v2  ;;  %v8829_v26 = vor.u32 %v9647_v53, %v8828_v40  ;;  %v14136_v2 = vld [vmem:[#allocation56_spill] sm:$0xff] }
 0x367   : > { %v5407_v8 = vmax.f32 %v5217_v12, 0.0  ;;  %v5408_v20 = vmax.f32 %v5218_v42, 0.0  ;;  %v4106_v5 = vadd.f32 %v4105_v30, %v4048_v51  ;;  %4440 = vmatpush.bf16.msrb.mxu1 %v8701_v1  ;;  %v9679_v12 = vld [vmem:[#allocation2 + $0x7d4] sm:$0xf0] }
 0x368   : > { %v8957_v51 = vor.u32 %v9679_v12, %v8956_v22  ;;  %4498 = vmatpush.bf16.msra.mxu2 %v8829_v26  ;;  %v14129_v1 = vld [vmem:[#allocation58_spill] sm:$0xff] }
 0x369   : > { %v11779_v58 = vpack.c.bf16 %v5407_v8, %v5403_v0  ;;  %v11781_v62 = vpack.c.bf16 %v5408_v20, %v5404_v57  ;;  %v11784_v45 = vpack.c.bf16 %v4106_v5, %v14128_v19  ;;  %v14130_v8 = vld [vmem:[#allocation48_spill] sm:$0xff]  ;;  %v9611_v22 = vld [vmem:[#allocation2 + $0x5b4] sm:$0xf0] }
 0x36a   : > { %v3968_v18 = vpop.f32.mrf.mxu0  ;;  %v4026_v27 = vpop.f32.mrf.mxu1  ;;  %4556 = vmatpush.bf16.msra.mxu3 %v8957_v51 }
 0x36b   : > { %14126 = vst [vmem:[#allocation23_spill] sm:$0xff] %v11779_v58  ;;  %v3969_v29 = vadd.f32 %v3968_v18, %v11734_v48  ;;  %v14131_v48 = vld [vmem:[#allocation50_spill] sm:$0xff]  ;;  %v8556_v18 = vld [vmem:[#allocation2 + $0x4a8] sm:$0xf] }
 0x36c   : > { %14127 = vst [vmem:[#allocation19_spill] sm:$0xff] %v11781_v62  ;;  %v4049_v33 = vpop.f32.mrf.mxu2  ;;  %v4107_v13 = vpop.f32.mrf.mxu3  ;;  %v14133_v62 = vld [vmem:[#allocation28_spill] sm:$0xff] }
 0x36d   : > { %v11787_v30 = vadd.f32 %v4026_v27, %v3969_v29  ;;  %v4050_v42 = vadd.f32 %v4049_v33, %v11667_v44  ;;  %v9579_v27 = vld [vmem:[#allocation2 + $0x4b4] sm:$0xf0]  ;;  %v8684_v29 = vld [vmem:[#allocation2 + $0x5a8] sm:$0xf] }
 0x36e   : > { %v8557_v53 = vor.u32 %v9579_v27, %v8556_v18  ;;  %v8540_v33 = vld [vmem:[#allocation2 + $0x488] sm:$0xf]  ;;  %v8685_v51 = vor.u32 %v9611_v22, %v8684_v29  ;;  %v14134_v18 = vld [vmem:[#allocation70_spill] sm:$0xff] }
 0x36f   : > { %v4108_v0 = vadd.f32 %v4107_v13, %v4050_v42  ;;  %v9575_v13 = vld [vmem:[#allocation2 + $0x494] sm:$0xf0]  ;;  %v14132_v42 = vld [vmem:[#allocation27_spill] sm:$0xff] }
 0x370   : > { %4383 = vmatpush.bf16.msrb.mxu0 %v8557_v53  ;;  %4441 = vmatpush.bf16.msrb.mxu1 %v8685_v51  ;;  %v9643_v53 = vld [vmem:[#allocation2 + $0x6b4] sm:$0xf0] }
 0x371   : > { %v11791_v57 = vpack.c.bf16 %v4108_v0, %v14129_v1  ;;  %4273 = vmatmul.bf16.vlgmr.msrb.gmra.mxu2 %v14130_v8  ;;  %4331 = vmatmul.bf16.vlgmr.msrb.gmra.mxu3 %v14131_v48  ;;  %v8668_v0 = vld [vmem:[#allocation2 + $0x588] sm:$0xf]  ;;  %v9607_v1 = vld [vmem:[#allocation2 + $0x594] sm:$0xf0] }
 0x372   : > { %v3971_v20 = vpop.f32.mrf.mxu0  ;;  %v4029_v5 = vpop.f32.mrf.mxu1  ;;  %v8669_v58 = vor.u32 %v9607_v1, %v8668_v0  ;;  %v9603_v8 = vld [vmem:[#allocation2 + $0x574] sm:$0xf0]  ;;  %v8636_v0 = vld [vmem:[#allocation2 + $0x548] sm:$0xf] }
 0x373   : > { %v3972_v19 = vadd.f32 %v3971_v20, %v11744_v14  ;;  %v8541_v14 = vor.u32 %v9575_v13, %v8540_v33  ;;  %v9567_v51 = vld [vmem:[#allocation2 + $0x454] sm:$0xf0] }
 0x374   : > { %v4052_v40 = vpop.f32.mrf.mxu2  ;;  %v4110_v44 = vpop.f32.mrf.mxu3  ;;  %4442 = vmatpush.bf16.msrb.mxu1 %v8669_v58  ;;  %v9599_v1 = vld [vmem:[#allocation2 + $0x554] sm:$0xf0]  ;;  %v8940_v58 = vld [vmem:[#allocation2 + $0x7a8] sm:$0xf] }
 0x375   : > { %v11796_v26 = vadd.f32 %v4029_v5, %v3972_v19  ;;  %v4053_v12 = vadd.f32 %v4052_v40, %v11675_v60  ;;  %4192 = vmatmul.bf16.gmra.mxu0 %v14132_v42  ;;  %v8524_v60 = vld [vmem:[#allocation2 + $0x468] sm:$0xf]  ;;  %v9571_v19 = vld [vmem:[#allocation2 + $0x474] sm:$0xf0] }
 0x376   : > { %4250 = vmatmul.bf16.gmra.mxu1 %v14133_v62  ;;  %4384 = vmatpush.bf16.msrb.mxu0 %v8541_v14  ;;  %v8652_v40 = vld [vmem:[#allocation2 + $0x568] sm:$0xf]  ;;  %v8525_v42 = vor.u32 %v9571_v19, %v8524_v60  ;;  %v9675_v14 = vld [vmem:[#allocation2 + $0x7b4] sm:$0xf0]  ;;  %v14135_v60 = vld [vmem:[#allocation35_spill] sm:$0xff] }
 0x377   : > { %v4111_v20 = vadd.f32 %v4110_v44, %v4053_v12  ;;  %v8812_v62 = vld [vmem:[#allocation2 + $0x6a8] sm:$0xf]  ;;  %v8653_v33 = vor.u32 %v9603_v8, %v8652_v40 }
 0x378   : > { %v8813_v13 = vor.u32 %v9643_v53, %v8812_v62  ;;  %v8508_v12 = vld [vmem:[#allocation2 + $0x448] sm:$0xf] }
 0x379   : > { %v11802_v27 = vpack.c.bf16 %v4111_v20, %v14134_v18  ;;  %4443 = vmatpush.bf16.msrb.mxu1 %v8653_v33  ;;  %v8637_v18 = vor.u32 %v9599_v1, %v8636_v0  ;;  %v8492_v40 = vld [vmem:[#allocation2 + $0x428] sm:$0xf]  ;;  %v14138_v1 = vld [vmem:[#allocation31_spill] sm:$0xff] }
 0x37a   : > { %v3973_v48 = vpop.f32.mrf.mxu0  ;;  %v4031_v5 = vpop.f32.mrf.mxu1  ;;  %4385 = vmatpush.bf16.msrb.mxu0 %v8525_v42  ;;  %4499 = vmatpush.bf16.msra.mxu2 %v8813_v13  ;;  %v9595_v13 = vld [vmem:[#allocation2 + $0x534] sm:$0xf0] }
 0x37b   : > { %v8509_v48 = vor.u32 %v9567_v51, %v8508_v12  ;;  %v8941_v5 = vor.u32 %v9675_v14, %v8940_v58  ;;  %v8476_v12 = vld [vmem:[#allocation2 + $0x408] sm:$0xf]  ;;  %v9559_v51 = vld [vmem:[#allocation2 + $0x414] sm:$0xf0] }
 0x37c   : > { %v4054_v29 = vpop.f32.mrf.mxu2  ;;  %v4112_v22 = vpop.f32.mrf.mxu3  ;;  %v8604_v14 = vld [vmem:[#allocation2 + $0x508] sm:$0xf] }
 0x37d   : > { %v4055_v44 = vadd.f32 %v4054_v29, %v11683_v36  ;;  %v14137_v36 = vld [vmem:[#allocation57_spill] sm:$0xff]  ;;  %4557 = vmatpush.bf16.msra.mxu3 %v8941_v5  ;;  %4444 = vmatpush.bf16.msrb.mxu1 %v8637_v18  ;;  %v9563_v29 = vld [vmem:[#allocation2 + $0x434] sm:$0xf0]  ;;  %v8477_v18 = vor.u32 %v9559_v51, %v8476_v12 }
 0x37e   : > { %4386 = vmatpush.bf16.msrb.mxu0 %v8509_v48  ;;  %v8493_v33 = vor.u32 %v9563_v29, %v8492_v40  ;;  %v9591_v48 = vld [vmem:[#allocation2 + $0x514] sm:$0xf0] }
 0x37f   : > { %v4113_v20 = vadd.f32 %v4112_v22, %v4055_v44  ;;  %v8620_v22 = vld [vmem:[#allocation2 + $0x528] sm:$0xf]  ;;  %v14143_v12 = vld [vmem:[#allocation62_spill] sm:$0xff] }
 0x380   : > { %v8621_v58 = vor.u32 %v9595_v13, %v8620_v22 }
 0x381   : > { %v11806_v19 = vpack.c.bf16 %v4113_v20, %v14135_v60  ;;  %4278 = vmatmul.bf16.gmra.mxu2 %v14136_v2  ;;  %4336 = vmatmul.bf16.gmra.mxu3 %v14137_v36  ;;  %v14139_v20 = vld [vmem:[#allocation32_spill] sm:$0xff]  ;;  %v8605_v60 = vor.u32 %v9591_v48, %v8604_v14  ;;  %v9639_v48 = vld [vmem:[#allocation2 + $0x694] sm:$0xf0] }
 0x382   : > { %v4158_v62 = vpop.f32.mrf.mxu0  ;;  %v4216_v8 = vpop.f32.mrf.mxu1  ;;  %4387 = vmatpush.bf16.msrb.mxu0 %v8493_v33  ;;  %4445 = vmatpush.bf16.msrb.mxu1 %v8621_v58  ;;  %v8796_v14 = vld [vmem:[#allocation2 + $0x688] sm:$0xf] }
 0x383   : > { %v11810_v42 = vadd.f32 %v4216_v8, %v4158_v62  ;;  %v14140_v62 = vld [vmem:[#allocation36_spill] sm:$0xff] }
 0x384   : > { %v4057_v53 = vpop.f32.mrf.mxu2  ;;  %v4115_v44 = vpop.f32.mrf.mxu3 }
 0x385   : > { %v4058_v0 = vadd.f32 %v4057_v53, %v11691_v41  ;;  %4197 = vmatmul.bf16.gmra.mxu0 %v14138_v1  ;;  %v9667_v1 = vld [vmem:[#allocation2 + $0x774] sm:$0xf0] }
 0x386   : > { %4255 = vmatmul.bf16.gmra.mxu1 %v14139_v20  ;;  %4388 = vmatpush.bf16.msrb.mxu0 %v8477_v18  ;;  %v14141_v20 = vld [vmem:[#allocation71_spill] sm:$0xff]  ;;  %v8924_v18 = vld [vmem:[#allocation2 + $0x788] sm:$0xf] }
 0x387   : > { %v4116_v5 = vadd.f32 %v4115_v44, %v4058_v0  ;;  %4446 = vmatpush.bf16.msrb.mxu1 %v8605_v60  ;;  %v14142_v44 = vld [vmem:[#allocation61_spill] sm:$0xff] }
 0x389   : > { %v11816_v8 = vpack.c.bf16 %v4116_v5, %v14140_v62  ;;  %v8797_v62 = vor.u32 %v9639_v48, %v8796_v14 }
 0x38a   : > { %v4160_v40 = vpop.f32.mrf.mxu0  ;;  %v4218_v29 = vpop.f32.mrf.mxu1 }
 0x38b   : > { %v11818_v36 = vadd.f32 %v4218_v29, %v4160_v40  ;;  %v9671_v40 = vld [vmem:[#allocation2 + $0x794] sm:$0xf0]  ;;  %v14144_v29 = vld [vmem:[#allocation39_spill] sm:$0xff]  ;;  %4500 = vmatpush.bf16.msra.mxu2 %v8797_v62 }
 0x38c   : > { %v4059_v41 = vpop.f32.mrf.mxu2  ;;  %v4117_v22 = vpop.f32.mrf.mxu3  ;;  %v14149_v62 = vld [vmem:[#allocation67_spill] sm:$0xff] }
 0x38d   : > { %v4060_v53 = vadd.f32 %v4059_v41, %v11699_v59  ;;  %v14145_v41 = vld [vmem:[#allocation41_spill] sm:$0xff] }
 0x38f   : > { %v4118_v13 = vadd.f32 %v4117_v22, %v4060_v53  ;;  %v14146_v53 = vld [vmem:[#allocation75_spill] sm:$0xff] }
 0x391   : > { %v11822_v33 = vpack.c.bf16 %v4118_v13, %v14141_v20  ;;  %4283 = vmatmul.bf16.gmra.mxu2 %v14142_v44  ;;  %4341 = vmatmul.bf16.gmra.mxu3 %v14143_v12  ;;  %v8925_v20 = vor.u32 %v9671_v40, %v8924_v18  ;;  %v14148_v18 = vld [vmem:[#allocation66_spill] sm:$0xff] }
 0x392   : > { %v4163_v51 = vpop.f32.mrf.mxu0  ;;  %v4221_v0 = vpop.f32.mrf.mxu1 }
 0x393   : > { %v11826_v58 = vadd.f32 %v4221_v0, %v4163_v51  ;;  %4558 = vmatpush.bf16.msra.mxu3 %v8925_v20  ;;  %v8780_v20 = vld [vmem:[#allocation2 + $0x668] sm:$0xf] }
 0x394   : > { %v4062_v5 = vpop.f32.mrf.mxu2  ;;  %v4120_v60 = vpop.f32.mrf.mxu3 }
 0x395   : > { %v4063_v59 = vadd.f32 %v4062_v5, %v11707_v10  ;;  %4202 = vmatmul.bf16.gmra.mxu0 %v14144_v29  ;;  %v14147_v5 = vld [vmem:[#allocation76_spill] sm:$0xff] }
 0x396   : > { %4260 = vmatmul.bf16.gmra.mxu1 %v14145_v41 }
 0x397   : > { %v4121_v22 = vadd.f32 %v4120_v60, %v4063_v59 }
 0x399   : > { %v11832_v13 = vpack.c.bf16 %v4121_v22, %v14146_v53  ;;  %v9635_v22 = vld [vmem:[#allocation2 + $0x674] sm:$0xf0]  ;;  %v8908_v53 = vld [vmem:[#allocation2 + $0x768] sm:$0xf] }
 0x39a   : > { %v4165_v51 = vpop.f32.mrf.mxu0  ;;  %v4223_v0 = vpop.f32.mrf.mxu1  ;;  %v8781_v41 = vor.u32 %v9635_v22, %v8780_v20 }
 0x39b   : > { %v11834_v12 = vadd.f32 %v4223_v0, %v4165_v51 }
 0x39c   : > { %v4064_v44 = vpop.f32.mrf.mxu2  ;;  %v4122_v14 = vpop.f32.mrf.mxu3  ;;  %4501 = vmatpush.bf16.msra.mxu2 %v8781_v41  ;;  %v14155_v41 = vld [vmem:[#allocation72_spill] sm:$0xff] }
 0x39d   : > { %v4065_v48 = vadd.f32 %v4064_v44, %v11715_v50  ;;  %v14150_v44 = vld [vmem:[#allocation68_spill] sm:$0xff] }
 0x39f   : > { %v4123_v10 = vadd.f32 %v4122_v14, %v4065_v48  ;;  %v8909_v14 = vor.u32 %v9667_v1, %v8908_v53  ;;  %v14151_v48 = vld [vmem:[#allocation69_spill] sm:$0xff]  ;;  %v14154_v1 = vld [vmem:[#allocation11_spill] sm:$0xff] }
 0x3a1   : > { %v11838_v29 = vpack.c.bf16 %v4123_v10, %v14147_v5  ;;  %4288 = vmatmul.bf16.gmra.mxu2 %v14148_v18  ;;  %4346 = vmatmul.bf16.gmra.mxu3 %v14149_v62  ;;  %v14152_v5 = vld [vmem:[#allocation9_spill] sm:$0xff] }
 0x3a2   : > { %v4168_v60 = vpop.f32.mrf.mxu0  ;;  %v4226_v40 = vpop.f32.mrf.mxu1  ;;  %4559 = vmatpush.bf16.msra.mxu3 %v8909_v14 }
 0x3a3   : > { %v11842_v59 = vadd.f32 %v4226_v40, %v4168_v60 }
 0x3a4   : > { %v4067_v51 = vpop.f32.mrf.mxu2  ;;  %v4125_v0 = vpop.f32.mrf.mxu3 }
 0x3a5   : > { %v4068_v50 = vadd.f32 %v4067_v51, %v11723_v6  ;;  %4389 = vmatmul.bf16.vlgmr.msrb.gmra.mxu0 %v14150_v44  ;;  %v14153_v51 = vld [vmem:[#allocation13_spill] sm:$0xff] }
 0x3a6   : > { %4447 = vmatmul.bf16.vlgmr.msrb.gmra.mxu1 %v14151_v48 }
 0x3a7   : > { %v4126_v10 = vadd.f32 %v4125_v0, %v4068_v50 }
 0x3a9   : > { %v11848_v60 = vpack.c.bf16 %v4126_v10, %v14152_v5  ;;  %v14156_v5 = vld [vmem:[#allocation73_spill] sm:$0xff] }
 0x3aa   : > { %v4170_v40 = vpop.f32.mrf.mxu0  ;;  %v4228_v62 = vpop.f32.mrf.mxu1 }
 0x3ab   : > { %v11850_v18 = vadd.f32 %v4228_v62, %v4170_v40  ;;  %v14157_v40 = vld [vmem:[#allocation74_spill] sm:$0xff] }
 0x3ac   : > { %v4069_v2 = vpop.f32.mrf.mxu2  ;;  %v4127_v20 = vpop.f32.mrf.mxu3 }
 0x3ad   : > { %v4070_v22 = vadd.f32 %v4069_v2, %v11731_v35  ;;  %v14158_v35 = vld [vmem:[#allocation12_spill] sm:$0xff] }
 0x3af   : > { %v4128_v6 = vadd.f32 %v4127_v20, %v4070_v22 }
 0x3b1   : > { %v11854_v44 = vpack.c.bf16 %v4128_v6, %v14153_v51  ;;  %4293 = vmatmul.bf16.gmra.mxu2 %v14154_v1  ;;  %4351 = vmatmul.bf16.gmra.mxu3 %v14155_v41  ;;  %v8764_v41 = vld [vmem:[#allocation2 + $0x648] sm:$0xf]  ;;  %v9631_v1 = vld [vmem:[#allocation2 + $0x654] sm:$0xf0] }
 0x3b2   : > { %v4173_v53 = vpop.f32.mrf.mxu0  ;;  %v4231_v0 = vpop.f32.mrf.mxu1  ;;  %v8765_v32 = vor.u32 %v9631_v1, %v8764_v41 }
 0x3b3   : > { %v11858_v50 = vadd.f32 %v4231_v0, %v4173_v53  ;;  %v8892_v53 = vld [vmem:[#allocation2 + $0x748] sm:$0xf] }
 0x3b4   : > { %v4072_v14 = vpop.f32.mrf.mxu2  ;;  %v4130_v10 = vpop.f32.mrf.mxu3  ;;  %4502 = vmatpush.bf16.msra.mxu2 %v8765_v32 }
 0x3b5   : > { %v4073_v62 = vadd.f32 %v4072_v14, %v11739_v46  ;;  %4394 = vmatmul.bf16.gmra.mxu0 %v14156_v5  ;;  %v8893_v14 = vor.u32 %v9663_v7, %v8892_v53  ;;  %v14165_v7 = vld [vmem:[#allocation80_spill] sm:$0xff] }
 0x3b6   : > { %4452 = vmatmul.bf16.gmra.mxu1 %v14157_v40 }
 0x3b7   : > { %v4131_v2 = vadd.f32 %v4130_v10, %v4073_v62  ;;  %4560 = vmatpush.bf16.msra.mxu3 %v8893_v14  ;;  %v14160_v10 = vld [vmem:[#allocation8_spill] sm:$0xff] }
 0x3b8   : > { %v8748_v14 = vld [vmem:[#allocation2 + $0x628] sm:$0xf] }
 0x3b9   : > { %v11864_v20 = vpack.c.bf16 %v4131_v2, %v14158_v35  ;;  %v14162_v2 = vld [vmem:[#allocation77_spill] sm:$0xff]  ;;  %v14163_v35 = vld [vmem:[#allocation78_spill] sm:$0xff] }
 0x3ba   : > { %v4175_v22 = vpop.f32.mrf.mxu0  ;;  %v4233_v6 = vpop.f32.mrf.mxu1 }
 0x3bb   : > { %14159 = vst [vmem:[#allocation25_spill] sm:$0xff] %v11864_v20  ;;  %v11866_v51 = vadd.f32 %v4233_v6, %v4175_v22 }
 0x3bc   : > { %v4074_v0 = vpop.f32.mrf.mxu2  ;;  %v4132_v48 = vpop.f32.mrf.mxu3 }
 0x3bd   : > { %v4075_v46 = vadd.f32 %v4074_v0, %v11747_v61  ;;  %v14164_v61 = vld [vmem:[#allocation79_spill] sm:$0xff] }
 0x3bf   : > { %v4133_v40 = vadd.f32 %v4132_v48, %v4075_v46  ;;  %v14166_v48 = vld [vmem:[#allocation81_spill] sm:$0xff] }
 0x3c1   : > { %v11870_v62 = vpack.c.bf16 %v4133_v40, %v14160_v10  ;;  %4298 = vmatmul.bf16.gmra.mxu2 %v14162_v2  ;;  %4356 = vmatmul.bf16.gmra.mxu3 %v14163_v35  ;;  %v9627_v10 = vld [vmem:[#allocation2 + $0x634] sm:$0xf0]  ;;  %v8876_v2 = vld [vmem:[#allocation2 + $0x728] sm:$0xf] }
 0x3c2   : > { %v4178_v22 = vpop.f32.mrf.mxu0  ;;  %v4236_v6 = vpop.f32.mrf.mxu1  ;;  %v8749_v35 = vor.u32 %v9627_v10, %v8748_v14 }
 0x3c3   : > { %14161 = vst [vmem:[#allocation92_spill] sm:$0xff] %v11870_v62  ;;  %v11874_v5 = vadd.f32 %v4236_v6, %v4178_v22  ;;  %v8302_v62 = vld [vmem:[#allocation2 + $0x2b8] sm:$0xf0] }
 0x3c4   : > { %v4077_v63 = vpop.f32.mrf.mxu2  ;;  %v4135_v1 = vpop.f32.mrf.mxu3  ;;  %4503 = vmatpush.bf16.msra.mxu2 %v8749_v35  ;;  %v14174_v35 = vld [vmem:[#allocation17_spill] sm:$0xff] }
 0x3c5   : > { %v4078_v41 = vadd.f32 %v4077_v63, %v11752_v56  ;;  %4399 = vmatmul.bf16.gmra.mxu0 %v14164_v61  ;;  %v8877_v56 = vor.u32 %v9659_v21, %v8876_v2  ;;  %v14173_v21 = vld [vmem:[#allocation86_spill] sm:$0xff] }
 0x3c6   : > { %4457 = vmatmul.bf16.gmra.mxu1 %v14165_v7 }
 0x3c7   : > { %v4136_v32 = vadd.f32 %v4135_v1, %v4078_v41  ;;  %4561 = vmatpush.bf16.msra.mxu3 %v8877_v56  ;;  %v14168_v1 = vld [vmem:[#allocation82_spill] sm:$0xff] }
 0x3c9   : > { %v11880_v40 = vpack.c.bf16 %v4136_v32, %v14166_v48  ;;  %v14170_v32 = vld [vmem:[#allocation83_spill] sm:$0xff]  ;;  %v14171_v48 = vld [vmem:[#allocation84_spill] sm:$0xff] }
 0x3ca   : > { %v4180_v53 = vpop.f32.mrf.mxu0  ;;  %v4238_v0 = vpop.f32.mrf.mxu1 }
 0x3cb   : > { %14167 = vst [vmem:[#allocation30_spill] sm:$0xff] %v11880_v40  ;;  %v11882_v46 = vadd.f32 %v4238_v0, %v4180_v53 }
 0x3cc   : > { %v4079_v22 = vpop.f32.mrf.mxu2  ;;  %v4137_v6 = vpop.f32.mrf.mxu3 }
 0x3cd   : > { %v4080_v63 = vadd.f32 %v4079_v22, %v11759_v17  ;;  %v14172_v17 = vld [vmem:[#allocation85_spill] sm:$0xff] }
 0x3cf   : > { %v4138_v7 = vadd.f32 %v4137_v6, %v4080_v63 }
 0x3d1   : > { %v11886_v41 = vpack.c.bf16 %v4138_v7, %v14168_v1  ;;  %4303 = vmatmul.bf16.gmra.mxu2 %v14170_v32  ;;  %4361 = vmatmul.bf16.gmra.mxu3 %v14171_v48  ;;  %v8732_v48 = vld [vmem:[#allocation2 + $0x608] sm:$0xf]  ;;  %v9623_v32 = vld [vmem:[#allocation2 + $0x614] sm:$0xf0] }
 0x3d2   : > { %v4183_v53 = vpop.f32.mrf.mxu0  ;;  %v4241_v0 = vpop.f32.mrf.mxu1 }
 0x3d3   : > { %14169 = vst [vmem:[#allocation29_spill] sm:$0xff] %v11886_v41  ;;  %v11890_v61 = vadd.f32 %v4241_v0, %v4183_v53  ;;  %v14176_v41 = vld [vmem:[#allocation18_spill] sm:$0xff] }
 0x3d4   : > { %v4082_v14 = vpop.f32.mrf.mxu2  ;;  %v4140_v10 = vpop.f32.mrf.mxu3 }
 0x3d5   : > { %v4083_v3 = vadd.f32 %v4082_v14, %v11774_v47  ;;  %4404 = vmatmul.bf16.gmra.mxu0 %v14172_v17  ;;  %v8860_v47 = vld [vmem:[#allocation2 + $0x708] sm:$0xf]  ;;  %v8733_v14 = vor.u32 %v9623_v32, %v8732_v48  ;;  %v9655_v17 = vld [vmem:[#allocation2 + $0x714] sm:$0xf0]  ;;  %v14181_v48 = vld [vmem:[#allocation91_spill] sm:$0xff] }
 0x3d6   : > { %4462 = vmatmul.bf16.gmra.mxu1 %v14173_v21  ;;  %v14180_v32 = vld [vmem:[#allocation90_spill] sm:$0xff] }
 0x3d7   : > { %v4141_v2 = vadd.f32 %v4140_v10, %v4083_v3  ;;  %v14178_v3 = vld [vmem:[#allocation88_spill] sm:$0xff]  ;;  %v14179_v10 = vld [vmem:[#allocation89_spill] sm:$0xff]  ;;  %4504 = vmatpush.bf16.msra.mxu2 %v8733_v14 }
 0x3d9   : > { %v11896_v7 = vpack.c.bf16 %v4141_v2, %v14174_v35  ;;  %v8861_v2 = vor.u32 %v9655_v17, %v8860_v47 }
 0x3da   : > { %v4185_v22 = vpop.f32.mrf.mxu0  ;;  %v4243_v6 = vpop.f32.mrf.mxu1 }
 0x3db   : > { %14175 = vst [vmem:[#allocation43_spill] sm:$0xff] %v11896_v7  ;;  %v11898_v63 = vadd.f32 %v4243_v6, %v4185_v22  ;;  %4562 = vmatpush.bf16.msra.mxu3 %v8861_v2  ;;  %v8206_v7 = vld [vmem:[#allocation2 + $0x1f8] sm:$0xf0] }
 0x3dc   : > { %v4084_v56 = vpop.f32.mrf.mxu2  ;;  %v4142_v1 = vpop.f32.mrf.mxu3 }
 0x3dd   : > { %v4085_v53 = vadd.f32 %v4084_v56, %v11787_v30 }
 0x3df   : > { %v4143_v0 = vadd.f32 %v4142_v1, %v4085_v53  ;;  %v14182_v53 = vld [vmem:[#allocation10_spill] sm:$0xff] }
 0x3e1   : > { %v11902_v21 = vpack.c.bf16 %v4143_v0, %v14176_v41  ;;  %4308 = vmatmul.bf16.gmra.mxu2 %v14178_v3  ;;  %4366 = vmatmul.bf16.gmra.mxu3 %v14179_v10  ;;  %v9489_v3 = vld [vmem:[#allocation2 + $0x1ec] sm:$0xf] }
 0x3e2   : > { %v4188_v35 = vpop.f32.mrf.mxu0 }
 0x3e3   : > { %14177 = vst [vmem:[#allocation44_spill] sm:$0xff] %v11902_v21  ;;  %v4246_v22 = vpop.f32.mrf.mxu1 }
 0x3e4   : > { %v11906_v6 = vadd.f32 %v4246_v22, %v4188_v35  ;;  %v4087_v30 = vpop.f32.mrf.mxu2  ;;  %v4145_v56 = vpop.f32.mrf.mxu3  ;;  %v9457_v35 = vld [vmem:[#allocation2 + $0xec] sm:$0xf]  ;;  %v8078_v22 = vld [vmem:[#allocation2 + $0xf8] sm:$0xf0] }
 0x3e5   : > { %v4088_v1 = vadd.f32 %v4087_v30, %v11796_v26  ;;  %4409 = vmatmul.bf16.gmra.mxu0 %v14180_v32  ;;  %v8081_v21 = vor.u32 %v9457_v35, %v8078_v22  ;;  %v8209_v26 = vor.u32 %v9489_v3, %v8206_v7  ;;  %v14185_v30 = vld [vmem:[#allocation93_spill] sm:$0xff]  ;;  %v8462_v35 = vld [vmem:[#allocation2 + $0x3f8] sm:$0xf0]  ;;  %v14189_v22 = vld [vmem:[#allocation26_spill] sm:$0xff] }
 0x3e6   : > { %4467 = vmatmul.bf16.gmra.mxu1 %v14181_v48  ;;  %v9553_v48 = vld [vmem:[#allocation2 + $0x3ec] sm:$0xf] }
 0x3e7   : > { %v4146_v41 = vadd.f32 %v4145_v56, %v4088_v1  ;;  %4613 = vmatpush.bf16.msra.mxu0 %v8081_v21  ;;  %4671 = vmatpush.bf16.msra.mxu1 %v8209_v26  ;;  %v14186_v56 = vld [vmem:[#allocation94_spill] sm:$0xff]  ;;  %v9521_v1 = vld [vmem:[#allocation2 + $0x2ec] sm:$0xf]  ;;  %v14188_v21 = vld [vmem:[#allocation24_spill] sm:$0xff]  ;;  %v8465_v3 = vor.u32 %v9553_v48, %v8462_v35 }
 0x3e8   : > { %v9453_v32 = vld [vmem:[#allocation2 + $0xcc] sm:$0xf]  ;;  %v8190_v48 = vld [vmem:[#allocation2 + $0x1d8] sm:$0xf0]  ;;  %v14191_v35 = vld [vmem:[#allocation96_spill] sm:$0xff] }
 0x3e9   : > { %v11912_v0 = vpack.c.bf16 %v4146_v41, %v14182_v53  ;;  %v8334_v41 = vld [vmem:[#allocation2 + $0x2f8] sm:$0xf0]  ;;  %4787 = vmatpush.bf16.msrb.mxu3 %v8465_v3 }
 0x3ea   : > { %v4190_v10 = vpop.f32.mrf.mxu0 }
 0x3eb   : > { %14183 = vst [vmem:[#allocation55_spill] sm:$0xff] %v11912_v0  ;;  %v4248_v17 = vpop.f32.mrf.mxu1  ;;  %v8337_v0 = vor.u32 %v9521_v1, %v8334_v41 }
 0x3ec   : > { %v11914_v47 = vadd.f32 %v4248_v17, %v4190_v10  ;;  %v4089_v14 = vpop.f32.mrf.mxu2  ;;  %v4147_v2 = vpop.f32.mrf.mxu3 }
 0x3ed   : > { %4729 = vmatpush.bf16.msrb.mxu2 %v8337_v0 }
 0x3ee   : > { %14184 = vst [vmem:[#allocation58_spill] sm:$0xff] %v11914_v47 }
 0x3f1   : > { %4313 = vmatmul.bf16.gmra.mxu2 %v14185_v30  ;;  %4371 = vmatmul.bf16.gmra.mxu3 %v14186_v56 }
 0x3f2   : > { %v4193_v53 = vpop.f32.mrf.mxu0 }
 0x3f3   : > { %v4251_v10 = vpop.f32.mrf.mxu1 }
 0x3f4   : > { %v11918_v17 = vadd.f32 %v4251_v10, %v4193_v53  ;;  %v4274_v14 = vpop.f32.mrf.mxu2  ;;  %v4332_v2 = vpop.f32.mrf.mxu3 }
 0x3f5   : > { %v4275_v7 = vadd.f32 %v4274_v14, %v11810_v42  ;;  %4414 = vmatmul.bf16.gmra.mxu0 %v14188_v21  ;;  %v8062_v42 = vld [vmem:[#allocation2 + $0xd8] sm:$0xf0]  ;;  %v9485_v14 = vld [vmem:[#allocation2 + $0x1cc] sm:$0xf] }
 0x3f6   : > { %14187 = vst [vmem:[#allocation70_spill] sm:$0xff] %v11918_v17  ;;  %4472 = vmatmul.bf16.gmra.mxu1 %v14189_v22  ;;  %v8065_v21 = vor.u32 %v9453_v32, %v8062_v42  ;;  %v9517_v42 = vld [vmem:[#allocation2 + $0x2cc] sm:$0xf] }
 0x3f7   : > { %v11923_v26 = vadd.f32 %v4332_v2, %v4275_v7  ;;  %v14192_v2 = vld [vmem:[#allocation97_spill] sm:$0xff]  ;;  %v8193_v7 = vor.u32 %v9485_v14, %v8190_v48  ;;  %v8446_v48 = vld [vmem:[#allocation2 + $0x3d8] sm:$0xf0] }
 0x3f8   : > { %4614 = vmatpush.bf16.msra.mxu0 %v8065_v21 }
 0x3f9   : > { %4672 = vmatpush.bf16.msra.mxu1 %v8193_v7 }
 0x3fa   : > { %v4195_v56 = vpop.f32.mrf.mxu0 }
 0x3fb   : > { %v4253_v1 = vpop.f32.mrf.mxu1 }
 0x3fc   : > { %v11925_v41 = vadd.f32 %v4253_v1, %v4195_v56  ;;  %v4276_v53 = vpop.f32.mrf.mxu2  ;;  %v4334_v10 = vpop.f32.mrf.mxu3 }
 0x3fd   : > { %v4277_v0 = vadd.f32 %v4276_v53, %v11818_v36 }
 0x3fe   : > { %14190 = vst [vmem:[#allocation35_spill] sm:$0xff] %v11925_v41 }
 0x3ff   : > { %v11928_v30 = vadd.f32 %v4334_v10, %v4277_v0  ;;  %v14194_v10 = vld [vmem:[#allocation95_spill] sm:$0xff]  ;;  %v14195_v0 = vld [vmem:[#allocation98_spill] sm:$0xff] }
 0x401   : > { %4318 = vmatmul.bf16.gmra.mxu2 %v14191_v35  ;;  %4376 = vmatmul.bf16.gmra.mxu3 %v14192_v2  ;;  %v8318_v35 = vld [vmem:[#allocation2 + $0x2d8] sm:$0xf0]  ;;  %v9549_v2 = vld [vmem:[#allocation2 + $0x3cc] sm:$0xf] }
 0x402   : > { %v4198_v3 = vpop.f32.mrf.mxu0  ;;  %v8321_v14 = vor.u32 %v9517_v42, %v8318_v35  ;;  %v8449_v21 = vor.u32 %v9549_v2, %v8446_v48  ;;  %v8046_v35 = vld [vmem:[#allocation2 + $0xb8] sm:$0xf0]  ;;  %v9481_v42 = vld [vmem:[#allocation2 + $0x1ac] sm:$0xf]  ;;  %v5145_v2 = vunpack.c.l.bf16 %v11791_v57 }
 0x403   : > { %v4256_v56 = vpop.f32.mrf.mxu1 }
 0x404   : > { %v11932_v1 = vadd.f32 %v4256_v56, %v4198_v3  ;;  %v4279_v22 = vpop.f32.mrf.mxu2  ;;  %v4337_v36 = vpop.f32.mrf.mxu3  ;;  %4730 = vmatpush.bf16.msrb.mxu2 %v8321_v14  ;;  %4788 = vmatpush.bf16.msrb.mxu3 %v8449_v21  ;;  %v5141_v3 = vunpack.c.l.bf16 %v11784_v45  ;;  %v5146_v14 = vunpack.c.h.bf16 %v11791_v57  ;;  %v8174_v21 = vld [vmem:[#allocation2 + $0x1b8] sm:$0xf0]  ;;  %v5225_v57 = vadd.f32 %v11762_v55, %v5145_v2 }
 0x405   : > { %v4280_v53 = vadd.f32 %v4279_v22, %v11826_v58  ;;  %4419 = vmatmul.bf16.gmra.mxu0 %v14194_v10  ;;  %v9449_v10 = vld [vmem:[#allocation2 + $0xac] sm:$0xf] }
 0x406   : > { %14193 = vst [vmem:[#allocation36_spill] sm:$0xff] %v11932_v1  ;;  %4477 = vmatmul.bf16.gmra.mxu1 %v14195_v0  ;;  %v8049_v48 = vor.u32 %v9449_v10, %v8046_v35 }
 0x407   : > { %v11937_v32 = vadd.f32 %v4337_v36, %v4280_v53  ;;  %v5142_v36 = vunpack.c.h.bf16 %v11784_v45 }
 0x408   : > { %4615 = vmatpush.bf16.msra.mxu0 %v8049_v48  ;;  %v9477_v48 = vld [vmem:[#allocation2 + $0x18c] sm:$0xf] }
 0x409   : > { %v5222_v45 = vadd.f32 %v11764_v54, %v5142_v36 }
 0x40a   : > { %v4200_v40 = vpop.f32.mrf.mxu0 }
 0x40b   : > { %v4258_v7 = vpop.f32.mrf.mxu1 }
 0x40c   : > { %v11940_v56 = vadd.f32 %v4258_v7, %v4200_v40  ;;  %v4281_v58 = vpop.f32.mrf.mxu2  ;;  %v4339_v22 = vpop.f32.mrf.mxu3  ;;  %v5221_v40 = vadd.f32 %v11762_v55, %v5141_v3  ;;  %v14197_v7 = vld [vmem:[#allocation65_spill] sm:$0xff]  ;;  %v5226_v3 = vadd.f32 %v11764_v54, %v5146_v14 }
 0x40d   : > { %v4282_v0 = vadd.f32 %v4281_v58, %v11834_v12  ;;  %v8177_v12 = vor.u32 %v9481_v42, %v8174_v21  ;;  %v9445_v42 = vld [vmem:[#allocation2 + $0x8c] sm:$0xf]  ;;  %v8030_v21 = vld [vmem:[#allocation2 + $0x98] sm:$0xf0] }
 0x40e   : > { %14196 = vst [vmem:[#allocation71_spill] sm:$0xff] %v11940_v56  ;;  %v14198_v56 = vld [vmem:[#allocation22_spill] sm:$0xff]  ;;  %v5411_v10 = vmax.f32 %v5221_v40, 0.0  ;;  %v8033_v36 = vor.u32 %v9445_v42, %v8030_v21  ;;  %v9441_v40 = vld [vmem:[#allocation2 + $0x6c] sm:$0xf] }
 0x40f   : > { %v11944_v53 = vadd.f32 %v4339_v22, %v4282_v0  ;;  %4673 = vmatpush.bf16.msra.mxu1 %v8177_v12  ;;  %v8158_v12 = vld [vmem:[#allocation2 + $0x198] sm:$0xf0]  ;;  %v9473_v14 = vld [vmem:[#allocation2 + $0x16c] sm:$0xf] }
 0x410   : > { %v8161_v2 = vor.u32 %v9477_v48, %v8158_v12  ;;  %4616 = vmatpush.bf16.msra.mxu0 %v8033_v36  ;;  %v9437_v48 = vld [vmem:[#allocation2 + $0x4c] sm:$0xf]  ;;  %v7998_v36 = vld [vmem:[#allocation2 + $0x58] sm:$0xf0] }
 0x411   : > { %4505 = vmatmul.bf16.vlgmr.msra.gmra.mxu2 %v14197_v7  ;;  %4563 = vmatmul.bf16.vlgmr.msra.gmra.mxu3 %v14198_v56  ;;  %v14200_v7 = vld [vmem:[#allocation33_spill] sm:$0xff]  ;;  %v14201_v56 = vld [vmem:[#allocation34_spill] sm:$0xff]  ;;  %v8001_v12 = vor.u32 %v9437_v48, %v7998_v36 }
 0x412   : > { %v4203_v58 = vpop.f32.mrf.mxu0 }
 0x413   : > { %v4261_v0 = vpop.f32.mrf.mxu1  ;;  %4674 = vmatpush.bf16.msra.mxu1 %v8161_v2 }
 0x414   : > { %v11952_v22 = vadd.f32 %v4261_v0, %v4203_v58  ;;  %v4284_v1 = vpop.f32.mrf.mxu2  ;;  %v4342_v41 = vpop.f32.mrf.mxu3  ;;  %v5415_v58 = vmax.f32 %v5225_v57, 0.0  ;;  %v5412_v0 = vmax.f32 %v5222_v45, 0.0 }
 0x415   : > { %v4285_v35 = vadd.f32 %v4284_v1, %v11842_v59  ;;  %4424 = vmatmul.bf16.gmra.mxu0 %v14200_v7  ;;  %v8017_v59 = vor.u32 %v9441_v40, %v8014_v16  ;;  %v8142_v1 = vld [vmem:[#allocation2 + $0x178] sm:$0xf0]  ;;  %v9513_v7 = vld [vmem:[#allocation2 + $0x2ac] sm:$0xf] }
 0x416   : > { %14199 = vst [vmem:[#allocation75_spill] sm:$0xff] %v11952_v22  ;;  %4482 = vmatmul.bf16.gmra.mxu1 %v14201_v56  ;;  %v5416_v22 = vmax.f32 %v5226_v3, 0.0  ;;  %v11961_v20 = vpack.c.bf16 %v5415_v58, %v5411_v10  ;;  %v8145_v42 = vor.u32 %v9473_v14, %v8142_v1  ;;  %v8305_v57 = vor.u32 %v9513_v7, %v8302_v62  ;;  %v9469_v10 = vld [vmem:[#allocation2 + $0x14c] sm:$0xf]  ;;  %v8126_v58 = vld [vmem:[#allocation2 + $0x158] sm:$0xf0] }
 0x417   : > { %v11959_v17 = vadd.f32 %v4342_v41, %v4285_v35  ;;  %v5149_v41 = vunpack.c.l.bf16 %v11802_v27  ;;  %4617 = vmatpush.bf16.msra.mxu0 %v8017_v59  ;;  %v8430_v62 = vld [vmem:[#allocation2 + $0x3b8] sm:$0xf0]  ;;  %v8129_v2 = vor.u32 %v9469_v10, %v8126_v58  ;;  %v9433_v14 = vld [vmem:[#allocation2 + $0x2c] sm:$0xf]  ;;  %v5153_v59 = vunpack.c.l.bf16 %v11806_v19 }
 0x418   : > { %v11963_v47 = vpack.c.bf16 %v5416_v22, %v5412_v0  ;;  %4731 = vmatpush.bf16.msrb.mxu2 %v8305_v57  ;;  %4675 = vmatpush.bf16.msra.mxu1 %v8145_v42  ;;  %v5150_v22 = vunpack.c.h.bf16 %v11802_v27  ;;  %v9545_v0 = vld [vmem:[#allocation2 + $0x3ac] sm:$0xf]  ;;  %v7982_v1 = vld [vmem:[#allocation2 + $0x38] sm:$0xf0] }
 0x419   : > { %v8433_v40 = vor.u32 %v9545_v0, %v8430_v62  ;;  %v7985_v42 = vor.u32 %v9433_v14, %v7982_v1  ;;  %v9465_v57 = vld [vmem:[#allocation2 + $0x12c] sm:$0xf]  ;;  %v5229_v27 = vadd.f32 %v11762_v55, %v5149_v41  ;;  %v5233_v10 = vadd.f32 %v11762_v55, %v5153_v59 }
 0x41a   : > { %v4205_v45 = vpop.f32.mrf.mxu0  ;;  %v9429_v62 = vld [vmem:[#allocation2 + $0xc] sm:$0xf] }
 0x41b   : > { %v4263_v3 = vpop.f32.mrf.mxu1  ;;  %4618 = vmatpush.bf16.msra.mxu0 %v8001_v12  ;;  %v8110_v45 = vld [vmem:[#allocation2 + $0x138] sm:$0xf0]  ;;  %4789 = vmatpush.bf16.msrb.mxu3 %v8433_v40  ;;  %v5419_v12 = vmax.f32 %v5229_v27, 0.0  ;;  %v5423_v14 = vmax.f32 %v5233_v10, 0.0 }
 0x41c   : > { %v4286_v35 = vpop.f32.mrf.mxu2  ;;  %v4344_v21 = vpop.f32.mrf.mxu3  ;;  %4676 = vmatpush.bf16.msra.mxu1 %v8129_v2  ;;  %v8113_v48 = vor.u32 %v9465_v57, %v8110_v45  ;;  %v9461_v2 = vld [vmem:[#allocation2 + $0x10c] sm:$0xf]  ;;  %v8094_v40 = vld [vmem:[#allocation2 + $0x118] sm:$0xf0] }
 0x41d   : > { %v4287_v16 = vadd.f32 %v4286_v35, %v11850_v18  ;;  %v5154_v18 = vunpack.c.h.bf16 %v11806_v19  ;;  %v5230_v35 = vadd.f32 %v11764_v54, %v5150_v22  ;;  %v7966_v22 = vld [vmem:[#allocation2 + $0x18] sm:$0xf0]  ;;  %v11986_v57 = vpack.c.bf16 %v5423_v14, %v5419_v12  ;;  %v9509_v12 = vld [vmem:[#allocation2 + $0x28c] sm:$0xf] }
 0x41f   : > { %v11968_v7 = vadd.f32 %v4344_v21, %v4287_v16  ;;  %4619 = vmatpush.bf16.msra.mxu0 %v7985_v42  ;;  %v5234_v41 = vadd.f32 %v11764_v54, %v5154_v18  ;;  %v5420_v1 = vmax.f32 %v5230_v35, 0.0  ;;  %v8097_v18 = vor.u32 %v9461_v2, %v8094_v40  ;;  %v8414_v2 = vld [vmem:[#allocation2 + $0x398] sm:$0xf0] }
 0x420   : > { %4677 = vmatpush.bf16.msra.mxu1 %v8113_v48  ;;  %v5158_v48 = vunpack.c.h.bf16 %v11816_v8 }
 0x421   : > { %4510 = vmatmul.bf16.gmra.mxu2 %v11156_v15  ;;  %4568 = vmatmul.bf16.gmra.mxu3 %v11170_v31  ;;  %v5424_v42 = vmax.f32 %v5234_v41, 0.0  ;;  %v8286_v41 = vld [vmem:[#allocation2 + $0x298] sm:$0xf0] }
 0x422   : > { %v4390_v3 = vpop.f32.mrf.mxu0  ;;  %v5238_v40 = vadd.f32 %v11764_v54, %v5158_v48 }
 0x423   : > { %v4391_v21 = vadd.f32 %v4390_v3, %v11923_v26  ;;  %v4448_v16 = vpop.f32.mrf.mxu1  ;;  %v7969_v26 = vor.u32 %v9429_v62, %v7966_v22  ;;  %v5161_v62 = vunpack.c.l.bf16 %v11822_v33  ;;  %v8289_v22 = vor.u32 %v9509_v12, %v8286_v41 }
 0x424   : > { %v4289_v19 = vpop.f32.mrf.mxu2  ;;  %v4347_v36 = vpop.f32.mrf.mxu3  ;;  %4678 = vmatpush.bf16.msra.mxu1 %v8097_v18 }
 0x425   : > { %v11979_v58 = vadd.f32 %v4448_v16, %v4391_v21  ;;  %v4290_v0 = vadd.f32 %v4289_v19, %v11858_v50  ;;  %4429 = vmatmul.bf16.gmra.mxu0 %v11178_v39  ;;  %v11988_v50 = vpack.c.bf16 %v5424_v42, %v5420_v1  ;;  %4732 = vmatpush.bf16.msrb.mxu2 %v8289_v22  ;;  %v5165_v22 = vunpack.c.l.bf16 %v11832_v13 }
 0x426   : > { %4487 = vmatmul.bf16.gmra.mxu1 %v11180_v43  ;;  %4620 = vmatpush.bf16.msra.mxu0 %v7969_v26 }
 0x427   : > { %v11984_v59 = vadd.f32 %v4347_v36, %v4290_v0  ;;  %v5157_v36 = vunpack.c.l.bf16 %v11816_v8  ;;  %v9541_v0 = vld [vmem:[#allocation2 + $0x38c] sm:$0xf] }
 0x429   : > { %v5237_v8 = vadd.f32 %v11762_v55, %v5157_v36 }
 0x42a   : > { %v4392_v45 = vpop.f32.mrf.mxu0 }
 0x42b   : > { %v4393_v27 = vadd.f32 %v4392_v45, %v11928_v30  ;;  %v4450_v3 = vpop.f32.mrf.mxu1  ;;  %v5162_v30 = vunpack.c.h.bf16 %v11822_v33  ;;  %v5241_v33 = vadd.f32 %v11762_v55, %v5161_v62 }
 0x42c   : > { %v4291_v21 = vpop.f32.mrf.mxu2  ;;  %v4349_v16 = vpop.f32.mrf.mxu3 }
 0x42d   : > { %v11991_v19 = vadd.f32 %v4450_v3, %v4393_v27  ;;  %v4292_v35 = vadd.f32 %v4291_v21, %v11866_v51  ;;  %v8417_v51 = vor.u32 %v9541_v0, %v8414_v2  ;;  %v5242_v45 = vadd.f32 %v11764_v54, %v5162_v30 }
 0x42e   : > { %v5427_v21 = vmax.f32 %v5237_v8, 0.0 }
 0x42f   : > { %v11996_v10 = vadd.f32 %v4349_v16, %v4292_v35  ;;  %4790 = vmatpush.bf16.msrb.mxu3 %v8417_v51  ;;  %v5431_v16 = vmax.f32 %v5241_v33, 0.0  ;;  %v5428_v35 = vmax.f32 %v5238_v40, 0.0  ;;  %v5169_v40 = vunpack.c.l.bf16 %v11838_v29 }
 0x431   : > { %4515 = vmatmul.bf16.gmra.mxu2 %v11196_v24  ;;  %4573 = vmatmul.bf16.gmra.mxu3 %v11205_v49  ;;  %v12014_v48 = vpack.c.bf16 %v5431_v16, %v5427_v21 }
 0x432   : > { %v4395_v26 = vpop.f32.mrf.mxu0 }
 0x433   : > { %v4396_v14 = vadd.f32 %v4395_v26, %v11937_v32  ;;  %v4453_v1 = vpop.f32.mrf.mxu1  ;;  %v5432_v32 = vmax.f32 %v5242_v45, 0.0  ;;  %v5166_v26 = vunpack.c.h.bf16 %v11832_v13 }
 0x434   : > { %v4294_v42 = vpop.f32.mrf.mxu2  ;;  %v4352_v18 = vpop.f32.mrf.mxu3 }
 0x435   : > { %v12007_v27 = vadd.f32 %v4453_v1, %v4396_v14  ;;  %v4295_v3 = vadd.f32 %v4294_v42, %v11874_v5  ;;  %4434 = vmatmul.bf16.gmra.mxu0 %v11223_v28  ;;  %v12016_v12 = vpack.c.bf16 %v5432_v32, %v5428_v35  ;;  %v5170_v14 = vunpack.c.h.bf16 %v11838_v29  ;;  %v8270_v1 = vld [vmem:[#allocation2 + $0x278] sm:$0xf0] }
 0x436   : > { %4492 = vmatmul.bf16.gmra.mxu1 %v11226_v52  ;;  %v5245_v42 = vadd.f32 %v11762_v55, %v5165_v22  ;;  %v5249_v29 = vadd.f32 %v11762_v55, %v5169_v40 }
 0x437   : > { %v12012_v36 = vadd.f32 %v4352_v18, %v4295_v3  ;;  %v5250_v16 = vadd.f32 %v11764_v54, %v5170_v14 }
 0x439   : > { %v5440_v22 = vmax.f32 %v5250_v16, 0.0 }
 0x43a   : > { %v4397_v41 = vpop.f32.mrf.mxu0 }
 0x43b   : > { %v4398_v0 = vadd.f32 %v4397_v41, %v11944_v53  ;;  %v4455_v62 = vpop.f32.mrf.mxu1  ;;  %v9505_v53 = vld [vmem:[#allocation2 + $0x26c] sm:$0xf] }
 0x43c   : > { %v4296_v30 = vpop.f32.mrf.mxu2  ;;  %v4354_v5 = vpop.f32.mrf.mxu3  ;;  %v8273_v33 = vor.u32 %v9505_v53, %v8270_v1  ;;  %v9537_v41 = vld [vmem:[#allocation2 + $0x36c] sm:$0xf] }
 0x43d   : > { %v12020_v2 = vadd.f32 %v4455_v62, %v4398_v0  ;;  %v4297_v51 = vadd.f32 %v4296_v30, %v11882_v46  ;;  %v5246_v46 = vadd.f32 %v11764_v54, %v5166_v26  ;;  %v8398_v0 = vld [vmem:[#allocation2 + $0x378] sm:$0xf0]  ;;  %v5435_v62 = vmax.f32 %v5245_v42, 0.0 }
 0x43e   : > { %4733 = vmatpush.bf16.msrb.mxu2 %v8273_v33  ;;  %v5439_v30 = vmax.f32 %v5249_v29, 0.0  ;;  %v5174_v33 = vunpack.c.h.bf16 %v11848_v60 }
 0x43f   : > { %v12024_v8 = vadd.f32 %v4354_v5, %v4297_v51  ;;  %v5436_v5 = vmax.f32 %v5246_v46, 0.0 }
 0x440   : > { %v12042_v26 = vpack.c.bf16 %v5439_v30, %v5435_v62 }
 0x441   : > { %4520 = vmatmul.bf16.gmra.mxu2 %v11249_v23  ;;  %4578 = vmatmul.bf16.gmra.mxu3 %v11259_v38  ;;  %v12044_v40 = vpack.c.bf16 %v5440_v22, %v5436_v5  ;;  %v9501_v22 = vld [vmem:[#allocation2 + $0x24c] sm:$0xf] }
 0x442   : > { %v4400_v18 = vpop.f32.mrf.mxu0  ;;  %14202 = vst [vmem:[#allocation76_spill] sm:$0xff] %v12042_v26  ;;  %v14231_v26 = vld [vmem:[#allocation75_spill] sm:$0xff] }
 0x443   : > { %v4401_v13 = vadd.f32 %v4400_v18, %v11959_v17  ;;  %v4458_v45 = vpop.f32.mrf.mxu1  ;;  %v8401_v17 = vor.u32 %v9537_v41, %v8398_v0  ;;  %14203 = vst [vmem:[#allocation9_spill] sm:$0xff] %v12044_v40  ;;  %v5173_v18 = vunpack.c.l.bf16 %v11848_v60 }
 0x444   : > { %v4299_v3 = vpop.f32.mrf.mxu2  ;;  %v4357_v21 = vpop.f32.mrf.mxu3 }
 0x445   : > { %v12035_v35 = vadd.f32 %v4458_v45, %v4401_v13  ;;  %v4300_v32 = vadd.f32 %v4299_v3, %v11890_v61  ;;  %4621 = vmatmul.bf16.vlgmr.msra.gmra.mxu0 %v14005_v37  ;;  %4791 = vmatpush.bf16.msrb.mxu3 %v8401_v17  ;;  %v5177_v13 = vunpack.c.l.bf16 %v11854_v44  ;;  %v5178_v45 = vunpack.c.h.bf16 %v11854_v44 }
 0x446   : > { %4679 = vmatmul.bf16.vlgmr.msra.gmra.mxu1 %v14006_v9  ;;  %v5253_v3 = vadd.f32 %v11762_v55, %v5173_v18 }
 0x447   : > { %v12040_v51 = vadd.f32 %v4357_v21, %v4300_v32  ;;  %v5254_v21 = vadd.f32 %v11764_v54, %v5174_v33  ;;  %v5257_v32 = vadd.f32 %v11762_v55, %v5177_v13  ;;  %v5258_v41 = vadd.f32 %v11764_v54, %v5178_v45 }
 0x448   : > { %v5443_v62 = vmax.f32 %v5253_v3, 0.0 }
 0x449   : > { %v5447_v17 = vmax.f32 %v5257_v32, 0.0  ;;  %v5444_v30 = vmax.f32 %v5254_v21, 0.0  ;;  %v5448_v5 = vmax.f32 %v5258_v41, 0.0  ;;  %v14207_v21 = vld [vmem:[#allocation25_spill] sm:$0xff] }
 0x44a   : > { %v4402_v14 = vpop.f32.mrf.mxu0 }
 0x44b   : > { %v4403_v61 = vadd.f32 %v4402_v14, %v11968_v7  ;;  %v4460_v37 = vpop.f32.mrf.mxu1  ;;  %v8254_v14 = vld [vmem:[#allocation2 + $0x258] sm:$0xf0] }
 0x44c   : > { %v4301_v53 = vpop.f32.mrf.mxu2  ;;  %v4359_v1 = vpop.f32.mrf.mxu3 }
 0x44d   : > { %v12047_v42 = vadd.f32 %v4460_v37, %v4403_v61  ;;  %v4302_v9 = vadd.f32 %v4301_v53, %v11898_v63  ;;  %v9533_v61 = vld [vmem:[#allocation2 + $0x34c] sm:$0xf]  ;;  %v8257_v37 = vor.u32 %v9501_v22, %v8254_v14  ;;  %v8382_v53 = vld [vmem:[#allocation2 + $0x358] sm:$0xf0] }
 0x44f   : > { %v12052_v46 = vadd.f32 %v4359_v1, %v4302_v9  ;;  %v12070_v1 = vpack.c.bf16 %v5447_v17, %v5443_v62  ;;  %v12072_v9 = vpack.c.bf16 %v5448_v5, %v5444_v30  ;;  %4734 = vmatpush.bf16.msrb.mxu2 %v8257_v37 }
 0x451   : > { %4525 = vmatmul.bf16.gmra.mxu2 %v14110_v4  ;;  %4583 = vmatmul.bf16.gmra.mxu3 %v14111_v11  ;;  %14204 = vst [vmem:[#allocation13_spill] sm:$0xff] %v12070_v1 }
 0x452   : > { %v4405_v7 = vpop.f32.mrf.mxu0  ;;  %14205 = vst [vmem:[#allocation12_spill] sm:$0xff] %v12072_v9 }
 0x453   : > { %v4406_v63 = vadd.f32 %v4405_v7, %v11984_v59  ;;  %v4463_v29 = vpop.f32.mrf.mxu1  ;;  %v14206_v7 = vld [vmem:[#allocation58_spill] sm:$0xff] }
 0x454   : > { %v4304_v16 = vpop.f32.mrf.mxu2  ;;  %v4362_v60 = vpop.f32.mrf.mxu3 }
 0x455   : > { %v12063_v0 = vadd.f32 %v4463_v29, %v4406_v63  ;;  %v4305_v44 = vadd.f32 %v4304_v16, %v11906_v6  ;;  %4626 = vmatmul.bf16.gmra.mxu0 %v14112_v25  ;;  %v8385_v6 = vor.u32 %v9533_v61, %v8382_v53  ;;  %v5181_v63 = vunpack.c.l.bf16 %v14207_v21 }
 0x456   : > { %4684 = vmatmul.bf16.gmra.mxu1 %v14113_v34  ;;  %v5182_v29 = vunpack.c.h.bf16 %v14207_v21 }
 0x457   : > { %v12068_v59 = vadd.f32 %v4362_v60, %v4305_v44  ;;  %4792 = vmatpush.bf16.msrb.mxu3 %v8385_v6  ;;  %v14208_v60 = vld [vmem:[#allocation92_spill] sm:$0xff]  ;;  %v14209_v44 = vld [vmem:[#allocation38_spill] sm:$0xff]  ;;  %v5261_v17 = vadd.f32 %v11762_v55, %v5181_v63  ;;  %v9497_v63 = vld [vmem:[#allocation2 + $0x22c] sm:$0xf] }
 0x458   : > { %v5185_v32 = vunpack.c.l.bf16 %v14208_v60  ;;  %v5186_v41 = vunpack.c.h.bf16 %v14208_v60  ;;  %v5262_v30 = vadd.f32 %v11764_v54, %v5182_v29  ;;  %v8238_v29 = vld [vmem:[#allocation2 + $0x238] sm:$0xf0] }
 0x459   : > { %v8241_v60 = vor.u32 %v9497_v63, %v8238_v29  ;;  %v14219_v63 = vld [vmem:[#allocation40_spill] sm:$0xff]  ;;  %v14220_v29 = vld [vmem:[#allocation45_spill] sm:$0xff] }
 0x45a   : > { %v4407_v18 = vpop.f32.mrf.mxu0  ;;  %v5265_v37 = vadd.f32 %v11762_v55, %v5185_v32  ;;  %v5266_v53 = vadd.f32 %v11764_v54, %v5186_v41 }
 0x45b   : > { %v4408_v25 = vadd.f32 %v4407_v18, %v11996_v10  ;;  %v4465_v34 = vpop.f32.mrf.mxu1  ;;  %v14210_v10 = vld [vmem:[#allocation37_spill] sm:$0xff]  ;;  %v14211_v18 = vld [vmem:[#allocation70_spill] sm:$0xff]  ;;  %4735 = vmatpush.bf16.msrb.mxu2 %v8241_v60 }
 0x45c   : > { %v4306_v33 = vpop.f32.mrf.mxu2  ;;  %v4364_v13 = vpop.f32.mrf.mxu3  ;;  %v5456_v21 = vmax.f32 %v5266_v53, 0.0  ;;  %v8366_v53 = vld [vmem:[#allocation2 + $0x338] sm:$0xf0] }
 0x45d   : > { %v12075_v45 = vadd.f32 %v4465_v34, %v4408_v25  ;;  %v4307_v3 = vadd.f32 %v4306_v33, %v14206_v7  ;;  %v14212_v34 = vld [vmem:[#allocation51_spill] sm:$0xff]  ;;  %v14213_v33 = vld [vmem:[#allocation52_spill] sm:$0xff]  ;;  %v5455_v7 = vmax.f32 %v5265_v37, 0.0 }
 0x45f   : > { %v12080_v16 = vadd.f32 %v4364_v13, %v4307_v3  ;;  %v5451_v13 = vmax.f32 %v5261_v17, 0.0  ;;  %v5452_v3 = vmax.f32 %v5262_v30, 0.0  ;;  %v14216_v30 = vld [vmem:[#allocation35_spill] sm:$0xff] }
 0x461   : > { %4530 = vmatmul.bf16.gmra.mxu2 %v14209_v44  ;;  %4588 = vmatmul.bf16.gmra.mxu3 %v14210_v10  ;;  %v12098_v32 = vpack.c.bf16 %v5455_v7, %v5451_v13  ;;  %v12100_v41 = vpack.c.bf16 %v5456_v21, %v5452_v3  ;;  %v14218_v3 = vld [vmem:[#allocation29_spill] sm:$0xff] }
 0x462   : > { %v4410_v62 = vpop.f32.mrf.mxu0  ;;  %v5193_v21 = vunpack.c.l.bf16 %v14218_v3 }
 0x463   : > { %v4411_v5 = vadd.f32 %v4410_v62, %v12012_v36  ;;  %v4468_v22 = vpop.f32.mrf.mxu1  ;;  %14214 = vst [vmem:[#allocation8_spill] sm:$0xff] %v12098_v32 }
 0x464   : > { %v4309_v14 = vpop.f32.mrf.mxu2  ;;  %v4367_v61 = vpop.f32.mrf.mxu3  ;;  %14215 = vst [vmem:[#allocation81_spill] sm:$0xff] %v12100_v41  ;;  %v14223_v41 = vld [vmem:[#allocation60_spill] sm:$0xff] }
 0x465   : > { %v12091_v6 = vadd.f32 %v4468_v22, %v4411_v5  ;;  %v4310_v25 = vadd.f32 %v4309_v14, %v14211_v18  ;;  %4631 = vmatmul.bf16.gmra.mxu0 %v14212_v34 }
 0x466   : > { %4689 = vmatmul.bf16.gmra.mxu1 %v14213_v33 }
 0x467   : > { %v12096_v36 = vadd.f32 %v4367_v61, %v4310_v25  ;;  %v9529_v61 = vld [vmem:[#allocation2 + $0x32c] sm:$0xf]  ;;  %v14217_v25 = vld [vmem:[#allocation30_spill] sm:$0xff] }
 0x468   : > { %v5189_v34 = vunpack.c.l.bf16 %v14217_v25  ;;  %v5190_v33 = vunpack.c.h.bf16 %v14217_v25  ;;  %v8369_v13 = vor.u32 %v9529_v61, %v8366_v53  ;;  %v14221_v25 = vld [vmem:[#allocation36_spill] sm:$0xff] }
 0x46a   : > { %v4412_v62 = vpop.f32.mrf.mxu0  ;;  %4793 = vmatpush.bf16.msrb.mxu3 %v8369_v13 }
 0x46b   : > { %v4413_v5 = vadd.f32 %v4412_v62, %v12024_v8  ;;  %v4470_v22 = vpop.f32.mrf.mxu1  ;;  %v5194_v8 = vunpack.c.h.bf16 %v14218_v3  ;;  %v5269_v62 = vadd.f32 %v11762_v55, %v5189_v34  ;;  %v14222_v3 = vld [vmem:[#allocation59_spill] sm:$0xff] }
 0x46c   : > { %v4311_v14 = vpop.f32.mrf.mxu2  ;;  %v4369_v18 = vpop.f32.mrf.mxu3 }
 0x46d   : > { %v12103_v17 = vadd.f32 %v4470_v22, %v4413_v5  ;;  %v4312_v37 = vadd.f32 %v4311_v14, %v14216_v30  ;;  %v5270_v5 = vadd.f32 %v11764_v54, %v5190_v33  ;;  %v5274_v61 = vadd.f32 %v11764_v54, %v5194_v8 }
 0x46e   : > { %v5459_v34 = vmax.f32 %v5269_v62, 0.0  ;;  %v14227_v62 = vld [vmem:[#allocation43_spill] sm:$0xff] }
 0x46f   : > { %v12108_v7 = vadd.f32 %v4369_v18, %v4312_v37  ;;  %v5273_v37 = vadd.f32 %v11762_v55, %v5193_v21  ;;  %v5460_v33 = vmax.f32 %v5270_v5, 0.0  ;;  %v5464_v9 = vmax.f32 %v5274_v61, 0.0  ;;  %v8222_v61 = vld [vmem:[#allocation2 + $0x218] sm:$0xf0] }
 0x470   : > { %v5198_v5 = vunpack.c.h.bf16 %v14227_v62 }
 0x471   : > { %4535 = vmatmul.bf16.gmra.mxu2 %v14219_v63  ;;  %4593 = vmatmul.bf16.gmra.mxu3 %v14220_v29  ;;  %v5463_v32 = vmax.f32 %v5273_v37, 0.0  ;;  %v12128_v1 = vpack.c.bf16 %v5464_v9, %v5460_v33  ;;  %v5197_v37 = vunpack.c.l.bf16 %v14227_v62  ;;  %v9525_v9 = vld [vmem:[#allocation2 + $0x30c] sm:$0xf] }
 0x472   : > { %v4415_v60 = vpop.f32.mrf.mxu0 }
 0x473   : > { %v4416_v22 = vadd.f32 %v4415_v60, %v12040_v51  ;;  %v4473_v14 = vpop.f32.mrf.mxu1  ;;  %v12126_v60 = vpack.c.bf16 %v5463_v32, %v5459_v34  ;;  %14225 = vst [vmem:[#allocation17_spill] sm:$0xff] %v12128_v1  ;;  %v9493_v32 = vld [vmem:[#allocation2 + $0x20c] sm:$0xf]  ;;  %v14229_v1 = vld [vmem:[#allocation42_spill] sm:$0xff] }
 0x474   : > { %v4314_v30 = vpop.f32.mrf.mxu2  ;;  %v4372_v18 = vpop.f32.mrf.mxu3  ;;  %v8225_v33 = vor.u32 %v9493_v32, %v8222_v61 }
 0x475   : > { %v12119_v53 = vadd.f32 %v4473_v14, %v4416_v22  ;;  %v4315_v13 = vadd.f32 %v4314_v30, %v14221_v25  ;;  %4636 = vmatmul.bf16.gmra.mxu0 %v14222_v3  ;;  %14224 = vst [vmem:[#allocation82_spill] sm:$0xff] %v12126_v60  ;;  %v14226_v3 = vld [vmem:[#allocation71_spill] sm:$0xff] }
 0x476   : > { %4694 = vmatmul.bf16.gmra.mxu1 %v14223_v41  ;;  %4736 = vmatpush.bf16.msrb.mxu2 %v8225_v33  ;;  %v14233_v33 = vld [vmem:[#allocation64_spill] sm:$0xff] }
 0x477   : > { %v12124_v51 = vadd.f32 %v4372_v18, %v4315_v13  ;;  %v14228_v13 = vld [vmem:[#allocation44_spill] sm:$0xff] }
 0x478   : > { %v5201_v34 = vunpack.c.l.bf16 %v14228_v13 }
 0x47a   : > { %v4417_v21 = vpop.f32.mrf.mxu0  ;;  %v5281_v32 = vadd.f32 %v11762_v55, %v5201_v34 }
 0x47b   : > { %v4418_v8 = vadd.f32 %v4417_v21, %v12052_v46  ;;  %v4475_v22 = vpop.f32.mrf.mxu1  ;;  %v5202_v46 = vunpack.c.h.bf16 %v14228_v13  ;;  %v8350_v21 = vld [vmem:[#allocation2 + $0x318] sm:$0xf0] }
 0x47c   : > { %v4316_v14 = vpop.f32.mrf.mxu2  ;;  %v4374_v30 = vpop.f32.mrf.mxu3 }
 0x47d   : > { %v12131_v25 = vadd.f32 %v4475_v22, %v4418_v8  ;;  %v4317_v41 = vadd.f32 %v4316_v14, %v14226_v3  ;;  %v14230_v8 = vld [vmem:[#allocation49_spill] sm:$0xff]  ;;  %v8353_v22 = vor.u32 %v9525_v9, %v8350_v21  ;;  %v5277_v3 = vadd.f32 %v11762_v55, %v5197_v37  ;;  %v14232_v21 = vld [vmem:[#allocation63_spill] sm:$0xff] }
 0x47e   : > { %v5282_v61 = vadd.f32 %v11764_v54, %v5202_v46  ;;  %v8958_v55 = vld [vmem:[#allocation2 + $0x7d8] sm:$0xf0] }
 0x47f   : > { %v12136_v18 = vadd.f32 %v4374_v30, %v4317_v41  ;;  %v5278_v30 = vadd.f32 %v11764_v54, %v5198_v5  ;;  %4794 = vmatpush.bf16.msrb.mxu3 %v8353_v22  ;;  %v5467_v37 = vmax.f32 %v5277_v3, 0.0  ;;  %v5471_v5 = vmax.f32 %v5281_v32, 0.0  ;;  %v9617_v3 = vld [vmem:[#allocation2 + $0x5ec] sm:$0xf] }
 0x481   : > { %4540 = vmatmul.bf16.gmra.mxu2 %v14229_v1  ;;  %4598 = vmatmul.bf16.gmra.mxu3 %v14230_v8  ;;  %v5468_v8 = vmax.f32 %v5278_v30, 0.0  ;;  %v12154_v22 = vpack.c.bf16 %v5471_v5, %v5467_v37  ;;  %v8718_v30 = vld [vmem:[#allocation2 + $0x5f8] sm:$0xf0] }
 0x482   : > { %v4420_v14 = vpop.f32.mrf.mxu0  ;;  %v8846_v37 = vld [vmem:[#allocation2 + $0x6f8] sm:$0xf0] }
 0x483   : > { %v4421_v41 = vadd.f32 %v4420_v14, %v12068_v59  ;;  %v4478_v62 = vpop.f32.mrf.mxu1  ;;  %v5472_v59 = vmax.f32 %v5282_v61, 0.0  ;;  %14234 = vst [vmem:[#allocation18_spill] sm:$0xff] %v12154_v22  ;;  %v8721_v61 = vor.u32 %v9617_v3, %v8718_v30  ;;  %v8974_v3 = vld [vmem:[#allocation2 + $0x7f8] sm:$0xf0] }
 0x484   : > { %v4319_v60 = vpop.f32.mrf.mxu2  ;;  %v4377_v40 = vpop.f32.mrf.mxu3 }
 0x485   : > { %v12147_v13 = vadd.f32 %v4478_v62, %v4421_v41  ;;  %v4320_v9 = vadd.f32 %v4319_v60, %v14231_v26  ;;  %4641 = vmatmul.bf16.gmra.mxu0 %v14232_v21  ;;  %v12156_v1 = vpack.c.bf16 %v5472_v59, %v5468_v8  ;;  %v9585_v21 = vld [vmem:[#allocation2 + $0x4ec] sm:$0xf]  ;;  %4903 = vmatpush.bf16.msrb.mxu1 %v8721_v61 }
 0x486   : > { %4699 = vmatmul.bf16.gmra.mxu1 %v14233_v33  ;;  %v8590_v33 = vld [vmem:[#allocation2 + $0x4f8] sm:$0xf0]  ;;  %v9649_v8 = vld [vmem:[#allocation2 + $0x6ec] sm:$0xf] }
 0x487   : > { %v12152_v14 = vadd.f32 %v4377_v40, %v4320_v9  ;;  %14235 = vst [vmem:[#allocation10_spill] sm:$0xff] %v12156_v1  ;;  %v8593_v32 = vor.u32 %v9585_v21, %v8590_v33  ;;  %v14236_v40 = vld [vmem:[#allocation46_spill] sm:$0xff]  ;;  %v14237_v9 = vld [vmem:[#allocation47_spill] sm:$0xff]  ;;  %v9681_v33 = vld [vmem:[#allocation2 + $0x7ec] sm:$0xf] }
 0x488   : > { %v14238_v21 = vld [vmem:[#allocation14_spill] sm:$0xff]  ;;  %v8977_v30 = vor.u32 %v9681_v33, %v8974_v3  ;;  %v8702_v33 = vld [vmem:[#allocation2 + $0x5d8] sm:$0xf0]  ;;  %v9609_v1 = vld [vmem:[#allocation2 + $0x5ac] sm:$0xf] }
 0x489   : > { %4845 = vmatpush.bf16.msrb.mxu0 %v8593_v32  ;;  %v14239_v32 = vld [vmem:[#allocation15_spill] sm:$0xff] }
 0x48a   : > { %v4422_v34 = vpop.f32.mrf.mxu0  ;;  %5019 = vmatpush.bf16.msra.mxu3 %v8977_v30 }
 0x48b   : > { %v4423_v46 = vadd.f32 %v4422_v34, %v12080_v16  ;;  %v4480_v41 = vpop.f32.mrf.mxu1  ;;  %v8849_v16 = vor.u32 %v9649_v8, %v8846_v37 }
 0x48c   : > { %v4321_v62 = vpop.f32.mrf.mxu2  ;;  %v4379_v26 = vpop.f32.mrf.mxu3 }
 0x48d   : > { %v12159_v60 = vadd.f32 %v4480_v41, %v4423_v46  ;;  %4961 = vmatpush.bf16.msra.mxu2 %v8849_v16 }
 0x491   : > { %4545 = vmatmul.bf16.gmra.mxu2 %v14236_v40  ;;  %4603 = vmatmul.bf16.gmra.mxu3 %v14237_v9 }
 0x492   : > { %v4425_v5 = vpop.f32.mrf.mxu0 }
 0x493   : > { %v4426_v59 = vadd.f32 %v4425_v5, %v12096_v36  ;;  %v4483_v34 = vpop.f32.mrf.mxu1 }
 0x494   : > { %v4506_v46 = vpop.f32.mrf.mxu2  ;;  %v4564_v41 = vpop.f32.mrf.mxu3 }
 0x495   : > { %v12164_v62 = vadd.f32 %v4483_v34, %v4426_v59  ;;  %v4507_v26 = vadd.f32 %v4506_v46, %v11979_v58  ;;  %4646 = vmatmul.bf16.gmra.mxu0 %v14238_v21  ;;  %v9581_v34 = vld [vmem:[#allocation2 + $0x4cc] sm:$0xf]  ;;  %v8574_v46 = vld [vmem:[#allocation2 + $0x4d8] sm:$0xf0] }
 0x496   : > { %4704 = vmatmul.bf16.gmra.mxu1 %v14239_v32  ;;  %v9613_v21 = vld [vmem:[#allocation2 + $0x5cc] sm:$0xf]  ;;  %v8577_v32 = vor.u32 %v9581_v34, %v8574_v46 }
 0x497   : > { %v12169_v54 = vadd.f32 %v4564_v41, %v4507_v26  ;;  %v14240_v41 = vld [vmem:[#allocation53_spill] sm:$0xff]  ;;  %v14241_v26 = vld [vmem:[#allocation54_spill] sm:$0xff]  ;;  %v8705_v3 = vor.u32 %v9613_v21, %v8702_v33  ;;  %v8830_v21 = vld [vmem:[#allocation2 + $0x6d8] sm:$0xf0] }
 0x498   : > { %4846 = vmatpush.bf16.msrb.mxu0 %v8577_v32  ;;  %v9645_v46 = vld [vmem:[#allocation2 + $0x6cc] sm:$0xf] }
 0x499   : > { %4904 = vmatpush.bf16.msrb.mxu1 %v8705_v3  ;;  %v9677_v33 = vld [vmem:[#allocation2 + $0x7cc] sm:$0xf]  ;;  %v8833_v32 = vor.u32 %v9645_v46, %v8830_v21  ;;  %v8686_v21 = vld [vmem:[#allocation2 + $0x5b8] sm:$0xf0] }
 0x49a   : > { %v4427_v61 = vpop.f32.mrf.mxu0 }
 0x49b   : > { %v4428_v36 = vadd.f32 %v4427_v61, %v12108_v7  ;;  %v4485_v8 = vpop.f32.mrf.mxu1  ;;  %4962 = vmatpush.bf16.msra.mxu2 %v8833_v32 }
 0x49c   : > { %v4508_v37 = vpop.f32.mrf.mxu2  ;;  %v4566_v5 = vpop.f32.mrf.mxu3 }
 0x49d   : > { %v12172_v16 = vadd.f32 %v4485_v8, %v4428_v36  ;;  %v4509_v58 = vadd.f32 %v4508_v37, %v11991_v19 }
 0x49f   : > { %v12175_v59 = vadd.f32 %v4566_v5, %v4509_v58  ;;  %v14242_v5 = vld [vmem:[#allocation20_spill] sm:$0xff]  ;;  %v14243_v58 = vld [vmem:[#allocation21_spill] sm:$0xff] }
 0x4a1   : > { %4550 = vmatmul.bf16.gmra.mxu2 %v14240_v41  ;;  %4608 = vmatmul.bf16.gmra.mxu3 %v14241_v26 }
 0x4a2   : > { %v4430_v7 = vpop.f32.mrf.mxu0 }
 0x4a3   : > { %v4431_v30 = vadd.f32 %v4430_v7, %v12124_v51  ;;  %v4488_v61 = vpop.f32.mrf.mxu1  ;;  %v8961_v51 = vor.u32 %v9677_v33, %v8958_v55  ;;  %v14246_v55 = vld [vmem:[#allocation48_spill] sm:$0xff]  ;;  %v14247_v33 = vld [vmem:[#allocation50_spill] sm:$0xff] }
 0x4a4   : > { %v4511_v36 = vpop.f32.mrf.mxu2  ;;  %v4569_v19 = vpop.f32.mrf.mxu3 }
 0x4a5   : > { %v12180_v8 = vadd.f32 %v4488_v61, %v4431_v30  ;;  %v4512_v37 = vadd.f32 %v4511_v36, %v12007_v27  ;;  %4651 = vmatmul.bf16.gmra.mxu0 %v14242_v5  ;;  %5020 = vmatpush.bf16.msra.mxu3 %v8961_v51 }
 0x4a6   : > { %4709 = vmatmul.bf16.gmra.mxu1 %v14243_v58  ;;  %v8558_v58 = vld [vmem:[#allocation2 + $0x4b8] sm:$0xf0] }
 0x4a7   : > { %v12185_v34 = vadd.f32 %v4569_v19, %v4512_v37  ;;  %v9577_v37 = vld [vmem:[#allocation2 + $0x4ac] sm:$0xf] }
 0x4a8   : > { %v8561_v46 = vor.u32 %v9577_v37, %v8558_v58  ;;  %v14248_v58 = vld [vmem:[#allocation27_spill] sm:$0xff] }
 0x4a9   : > { %14244 = vst [vmem:[#allocation34_spill] sm:$0xff] %v12185_v34 }
 0x4aa   : > { %v4432_v7 = vpop.f32.mrf.mxu0  ;;  %4847 = vmatpush.bf16.msrb.mxu0 %v8561_v46 }
 0x4ab   : > { %v4433_v3 = vadd.f32 %v4432_v7, %v12136_v18  ;;  %v4490_v30 = vpop.f32.mrf.mxu1  ;;  %v8689_v18 = vor.u32 %v9609_v1, %v8686_v21  ;;  %v14249_v1 = vld [vmem:[#allocation28_spill] sm:$0xff] }
 0x4ac   : > { %v4513_v61 = vpop.f32.mrf.mxu2  ;;  %v4571_v27 = vpop.f32.mrf.mxu3 }
 0x4ad   : > { %v12188_v36 = vadd.f32 %v4490_v30, %v4433_v3  ;;  %v4514_v5 = vadd.f32 %v4513_v61, %v12020_v2  ;;  %4905 = vmatpush.bf16.msrb.mxu1 %v8689_v18  ;;  %v9573_v30 = vld [vmem:[#allocation2 + $0x48c] sm:$0xf]  ;;  %v8542_v61 = vld [vmem:[#allocation2 + $0x498] sm:$0xf0] }
 0x4ae   : > { %v8526_v18 = vld [vmem:[#allocation2 + $0x478] sm:$0xf0] }
 0x4af   : > { %v12191_v19 = vadd.f32 %v4571_v27, %v4514_v5  ;;  %v9605_v27 = vld [vmem:[#allocation2 + $0x58c] sm:$0xf] }
 0x4b1   : > { %14245 = vst [vmem:[#allocation58_spill] sm:$0xff] %v12191_v19  ;;  %4737 = vmatmul.bf16.vlgmr.msrb.gmra.mxu2 %v14246_v55  ;;  %4795 = vmatmul.bf16.vlgmr.msrb.gmra.mxu3 %v14247_v33  ;;  %v8545_v55 = vor.u32 %v9573_v30, %v8542_v61  ;;  %v8670_v33 = vld [vmem:[#allocation2 + $0x598] sm:$0xf0] }
 0x4b2   : > { %v4435_v32 = vpop.f32.mrf.mxu0  ;;  %v8673_v46 = vor.u32 %v9605_v27, %v8670_v33  ;;  %v8654_v19 = vld [vmem:[#allocation2 + $0x578] sm:$0xf0] }
 0x4b3   : > { %v4436_v51 = vadd.f32 %v4435_v32, %v12152_v14  ;;  %v4493_v7 = vpop.f32.mrf.mxu1  ;;  %4848 = vmatpush.bf16.msrb.mxu0 %v8545_v55  ;;  %v9569_v14 = vld [vmem:[#allocation2 + $0x46c] sm:$0xf]  ;;  %v8510_v27 = vld [vmem:[#allocation2 + $0x458] sm:$0xf0] }
 0x4b4   : > { %v4516_v3 = vpop.f32.mrf.mxu2  ;;  %v4574_v2 = vpop.f32.mrf.mxu3  ;;  %v9601_v32 = vld [vmem:[#allocation2 + $0x56c] sm:$0xf]  ;;  %4906 = vmatpush.bf16.msrb.mxu1 %v8673_v46  ;;  %v8529_v22 = vor.u32 %v9569_v14, %v8526_v18  ;;  %v8942_v14 = vld [vmem:[#allocation2 + $0x7b8] sm:$0xf0] }
 0x4b5   : > { %v12196_v5 = vadd.f32 %v4493_v7, %v4436_v51  ;;  %v4517_v37 = vadd.f32 %v4516_v3, %v12035_v35  ;;  %4656 = vmatmul.bf16.gmra.mxu0 %v14248_v58  ;;  %v9641_v51 = vld [vmem:[#allocation2 + $0x6ac] sm:$0xf]  ;;  %v8814_v7 = vld [vmem:[#allocation2 + $0x6b8] sm:$0xf0]  ;;  %v8657_v34 = vor.u32 %v9601_v32, %v8654_v19 }
 0x4b6   : > { %4714 = vmatmul.bf16.gmra.mxu1 %v14249_v1  ;;  %v8817_v35 = vor.u32 %v9641_v51, %v8814_v7  ;;  %v8638_v1 = vld [vmem:[#allocation2 + $0x558] sm:$0xf0]  ;;  %v9673_v46 = vld [vmem:[#allocation2 + $0x7ac] sm:$0xf] }
 0x4b7   : > { %v12201_v21 = vadd.f32 %v4574_v2, %v4517_v37  ;;  %4849 = vmatpush.bf16.msrb.mxu0 %v8529_v22  ;;  %v9565_v2 = vld [vmem:[#allocation2 + $0x44c] sm:$0xf]  ;;  %v8494_v22 = vld [vmem:[#allocation2 + $0x438] sm:$0xf0] }
 0x4b8   : > { %4963 = vmatpush.bf16.msra.mxu2 %v8817_v35  ;;  %4907 = vmatpush.bf16.msrb.mxu1 %v8657_v34  ;;  %v9597_v37 = vld [vmem:[#allocation2 + $0x54c] sm:$0xf]  ;;  %v8513_v33 = vor.u32 %v9565_v2, %v8510_v27  ;;  %v8622_v7 = vld [vmem:[#allocation2 + $0x538] sm:$0xf0]  ;;  %v14251_v35 = vld [vmem:[#allocation56_spill] sm:$0xff] }
 0x4b9   : > { %14250 = vst [vmem:[#allocation25_spill] sm:$0xff] %v12201_v21  ;;  %v8641_v18 = vor.u32 %v9597_v37, %v8638_v1  ;;  %v8945_v21 = vor.u32 %v9673_v46, %v8942_v14  ;;  %v9561_v32 = vld [vmem:[#allocation2 + $0x42c] sm:$0xf]  ;;  %v14253_v1 = vld [vmem:[#allocation31_spill] sm:$0xff] }
 0x4ba   : > { %v4437_v3 = vpop.f32.mrf.mxu0  ;;  %v9593_v51 = vld [vmem:[#allocation2 + $0x52c] sm:$0xf]  ;;  %v8497_v34 = vor.u32 %v9561_v32, %v8494_v22  ;;  %v8606_v14 = vld [vmem:[#allocation2 + $0x518] sm:$0xf0] }
 0x4bb   : > { %v4495_v58 = vpop.f32.mrf.mxu1  ;;  %4850 = vmatpush.bf16.msrb.mxu0 %v8513_v33  ;;  %5021 = vmatpush.bf16.msra.mxu3 %v8945_v21  ;;  %v14252_v3 = vld [vmem:[#allocation57_spill] sm:$0xff] }
 0x4bc   : > { %v4518_v30 = vpop.f32.mrf.mxu2  ;;  %v4576_v61 = vpop.f32.mrf.mxu3  ;;  %4908 = vmatpush.bf16.msrb.mxu1 %v8641_v18  ;;  %v9557_v37 = vld [vmem:[#allocation2 + $0x40c] sm:$0xf]  ;;  %v14254_v18 = vld [vmem:[#allocation32_spill] sm:$0xff] }
 0x4bd   : > { %v4519_v55 = vadd.f32 %v4518_v30, %v12047_v42  ;;  %v8625_v42 = vor.u32 %v9593_v51, %v8622_v7  ;;  %v9589_v33 = vld [vmem:[#allocation2 + $0x50c] sm:$0xf] }
 0x4be   : > { %v8609_v32 = vor.u32 %v9589_v33, %v8606_v14  ;;  %v14256_v33 = vld [vmem:[#allocation61_spill] sm:$0xff] }
 0x4bf   : > { %v12204_v19 = vadd.f32 %v4576_v61, %v4519_v55  ;;  %4851 = vmatpush.bf16.msrb.mxu0 %v8497_v34  ;;  %v8478_v55 = vld [vmem:[#allocation2 + $0x418] sm:$0xf0] }
 0x4c0   : > { %4909 = vmatpush.bf16.msrb.mxu1 %v8625_v42  ;;  %v8481_v46 = vor.u32 %v9557_v37, %v8478_v55  ;;  %v8926_v55 = vld [vmem:[#allocation2 + $0x798] sm:$0xf0] }
 0x4c1   : > { %4742 = vmatmul.bf16.gmra.mxu2 %v14251_v35  ;;  %4800 = vmatmul.bf16.gmra.mxu3 %v14252_v3 }
 0x4c2   : > { %v4622_v58 = vpop.f32.mrf.mxu0 }
 0x4c3   : > { %v4680_v30 = vpop.f32.mrf.mxu1  ;;  %4852 = vmatpush.bf16.msrb.mxu0 %v8481_v46 }
 0x4c4   : > { %v12208_v2 = vadd.f32 %v4680_v30, %v4622_v58  ;;  %v4521_v61 = vpop.f32.mrf.mxu2  ;;  %v4579_v27 = vpop.f32.mrf.mxu3  ;;  %4910 = vmatpush.bf16.msrb.mxu1 %v8609_v32  ;;  %v9637_v58 = vld [vmem:[#allocation2 + $0x68c] sm:$0xf]  ;;  %v8798_v30 = vld [vmem:[#allocation2 + $0x698] sm:$0xf0] }
 0x4c5   : > { %v4522_v21 = vadd.f32 %v4521_v61, %v12063_v0  ;;  %4661 = vmatmul.bf16.gmra.mxu0 %v14253_v1  ;;  %v9669_v61 = vld [vmem:[#allocation2 + $0x78c] sm:$0xf]  ;;  %v8801_v37 = vor.u32 %v9637_v58, %v8798_v30 }
 0x4c6   : > { %4719 = vmatmul.bf16.gmra.mxu1 %v14254_v18 }
 0x4c7   : > { %v12213_v22 = vadd.f32 %v4579_v27, %v4522_v21  ;;  %v14257_v27 = vld [vmem:[#allocation62_spill] sm:$0xff]  ;;  %v8929_v21 = vor.u32 %v9669_v61, %v8926_v55  ;;  %4964 = vmatpush.bf16.msra.mxu2 %v8801_v37 }
 0x4c9   : > { %5022 = vmatpush.bf16.msra.mxu3 %v8929_v21  ;;  %v8782_v21 = vld [vmem:[#allocation2 + $0x678] sm:$0xf0] }
 0x4ca   : > { %v4624_v51 = vpop.f32.mrf.mxu0 }
 0x4cb   : > { %v4682_v34 = vpop.f32.mrf.mxu1 }
 0x4cc   : > { %v12215_v7 = vadd.f32 %v4682_v34, %v4624_v51  ;;  %v4523_v35 = vpop.f32.mrf.mxu2  ;;  %v4581_v3 = vpop.f32.mrf.mxu3  ;;  %v14258_v51 = vld [vmem:[#allocation39_spill] sm:$0xff]  ;;  %v14259_v34 = vld [vmem:[#allocation41_spill] sm:$0xff] }
 0x4cd   : > { %v4524_v42 = vadd.f32 %v4523_v35, %v12075_v45 }
 0x4cf   : > { %v12218_v0 = vadd.f32 %v4581_v3, %v4524_v42 }
 0x4d1   : > { %14255 = vst [vmem:[#allocation92_spill] sm:$0xff] %v12218_v0  ;;  %4747 = vmatmul.bf16.gmra.mxu2 %v14256_v33  ;;  %4805 = vmatmul.bf16.gmra.mxu3 %v14257_v27  ;;  %v14262_v33 = vld [vmem:[#allocation66_spill] sm:$0xff]  ;;  %v14263_v27 = vld [vmem:[#allocation67_spill] sm:$0xff] }
 0x4d2   : > { %v4627_v1 = vpop.f32.mrf.mxu0  ;;  %v9689_v0 = vld [vmem:[%s13598_s5 + $0x24] sm:$0xf0] }
 0x4d3   : > { %v4685_v46 = vpop.f32.mrf.mxu1 }
 0x4d4   : > { %v12222_v14 = vadd.f32 %v4685_v46, %v4627_v1  ;;  %v4526_v18 = vpop.f32.mrf.mxu2  ;;  %v4584_v45 = vpop.f32.mrf.mxu3 }
 0x4d5   : > { %v4527_v32 = vadd.f32 %v4526_v18, %v12091_v6  ;;  %4666 = vmatmul.bf16.gmra.mxu0 %v14258_v51  ;;  %v9633_v6 = vld [vmem:[#allocation2 + $0x66c] sm:$0xf] }
 0x4d6   : > { %4724 = vmatmul.bf16.gmra.mxu1 %v14259_v34  ;;  %v8785_v46 = vor.u32 %v9633_v6, %v8782_v21  ;;  %v9665_v34 = vld [vmem:[#allocation2 + $0x76c] sm:$0xf] }
 0x4d7   : > { %v12227_v35 = vadd.f32 %v4584_v45, %v4527_v32 }
 0x4d8   : > { %4965 = vmatpush.bf16.msra.mxu2 %v8785_v46 }
 0x4d9   : > { %14260 = vst [vmem:[#allocation38_spill] sm:$0xff] %v12227_v35 }
 0x4da   : > { %v4629_v3 = vpop.f32.mrf.mxu0 }
 0x4db   : > { %v4687_v42 = vpop.f32.mrf.mxu1 }
 0x4dc   : > { %v12229_v58 = vadd.f32 %v4687_v42, %v4629_v3  ;;  %v4528_v30 = vpop.f32.mrf.mxu2  ;;  %v4586_v61 = vpop.f32.mrf.mxu3  ;;  %v8910_v3 = vld [vmem:[#allocation2 + $0x778] sm:$0xf0]  ;;  %v14264_v42 = vld [vmem:[#allocation68_spill] sm:$0xff] }
 0x4dd   : > { %v4529_v37 = vadd.f32 %v4528_v30, %v12103_v17  ;;  %v8913_v30 = vor.u32 %v9665_v34, %v8910_v3 }
 0x4df   : > { %v12232_v55 = vadd.f32 %v4586_v61, %v4529_v37  ;;  %v14265_v61 = vld [vmem:[#allocation69_spill] sm:$0xff]  ;;  %5023 = vmatpush.bf16.msra.mxu3 %v8913_v30 }
 0x4e0   : > { %v14270_v30 = vld [vmem:[#allocation73_spill] sm:$0xff] }
 0x4e1   : > { %14261 = vst [vmem:[#allocation37_spill] sm:$0xff] %v12232_v55  ;;  %4752 = vmatmul.bf16.gmra.mxu2 %v14262_v33  ;;  %4810 = vmatmul.bf16.gmra.mxu3 %v14263_v27  ;;  %v14268_v55 = vld [vmem:[#allocation11_spill] sm:$0xff] }
 0x4e2   : > { %v4632_v1 = vpop.f32.mrf.mxu0 }
 0x4e3   : > { %v4690_v18 = vpop.f32.mrf.mxu1 }
 0x4e4   : > { %v12236_v45 = vadd.f32 %v4690_v18, %v4632_v1  ;;  %v4531_v32 = vpop.f32.mrf.mxu2  ;;  %v4589_v51 = vpop.f32.mrf.mxu3 }
 0x4e5   : > { %v4532_v17 = vadd.f32 %v4531_v32, %v12119_v53  ;;  %4853 = vmatmul.bf16.vlgmr.msrb.gmra.mxu0 %v14264_v42  ;;  %v14269_v53 = vld [vmem:[#allocation72_spill] sm:$0xff] }
 0x4e6   : > { %4911 = vmatmul.bf16.vlgmr.msrb.gmra.mxu1 %v14265_v61  ;;  %v14271_v61 = vld [vmem:[#allocation74_spill] sm:$0xff] }
 0x4e7   : > { %v12241_v37 = vadd.f32 %v4589_v51, %v4532_v17 }
 0x4e9   : > { %14266 = vst [vmem:[#allocation70_spill] sm:$0xff] %v12241_v37  ;;  %v14283_v37 = vld [vmem:[#allocation86_spill] sm:$0xff] }
 0x4ea   : > { %v4634_v33 = vpop.f32.mrf.mxu0 }
 0x4eb   : > { %v4692_v27 = vpop.f32.mrf.mxu1 }
 0x4ec   : > { %v12243_v6 = vadd.f32 %v4692_v27, %v4634_v33  ;;  %v4533_v21 = vpop.f32.mrf.mxu2  ;;  %v4591_v1 = vpop.f32.mrf.mxu3  ;;  %v8766_v27 = vld [vmem:[#allocation2 + $0x658] sm:$0xf0] }
 0x4ed   : > { %v4534_v46 = vadd.f32 %v4533_v21, %v12131_v25  ;;  %v9629_v25 = vld [vmem:[#allocation2 + $0x64c] sm:$0xf] }
 0x4ee   : > { %v9661_v21 = vld [vmem:[#allocation2 + $0x74c] sm:$0xf] }
 0x4ef   : > { %v12246_v18 = vadd.f32 %v4591_v1, %v4534_v46  ;;  %v8894_v1 = vld [vmem:[#allocation2 + $0x758] sm:$0xf0] }
 0x4f0   : > { %v8897_v46 = vor.u32 %v9661_v21, %v8894_v1 }
 0x4f1   : > { %14267 = vst [vmem:[#allocation51_spill] sm:$0xff] %v12246_v18  ;;  %4757 = vmatmul.bf16.gmra.mxu2 %v14268_v55  ;;  %4815 = vmatmul.bf16.gmra.mxu3 %v14269_v53  ;;  %v8769_v55 = vor.u32 %v9629_v25, %v8766_v27 }
 0x4f2   : > { %v4637_v32 = vpop.f32.mrf.mxu0  ;;  %5024 = vmatpush.bf16.msra.mxu3 %v8897_v46  ;;  %v14276_v46 = vld [vmem:[#allocation79_spill] sm:$0xff] }
 0x4f3   : > { %v4695_v34 = vpop.f32.mrf.mxu1  ;;  %4966 = vmatpush.bf16.msra.mxu2 %v8769_v55 }
 0x4f4   : > { %v12250_v3 = vadd.f32 %v4695_v34, %v4637_v32  ;;  %v4536_v51 = vpop.f32.mrf.mxu2  ;;  %v4594_v17 = vpop.f32.mrf.mxu3 }
 0x4f5   : > { %v4537_v42 = vadd.f32 %v4536_v51, %v12147_v13  ;;  %4858 = vmatmul.bf16.gmra.mxu0 %v14270_v30 }
 0x4f6   : > { %4916 = vmatmul.bf16.gmra.mxu1 %v14271_v61 }
 0x4f7   : > { %v12255_v33 = vadd.f32 %v4594_v17, %v4537_v42  ;;  %v14274_v17 = vld [vmem:[#allocation77_spill] sm:$0xff]  ;;  %v14275_v42 = vld [vmem:[#allocation78_spill] sm:$0xff] }
 0x4f9   : > { %14272 = vst [vmem:[#allocation52_spill] sm:$0xff] %v12255_v33  ;;  %v8878_v33 = vld [vmem:[#allocation2 + $0x738] sm:$0xf0] }
 0x4fa   : > { %v4639_v53 = vpop.f32.mrf.mxu0 }
 0x4fb   : > { %v4697_v32 = vpop.f32.mrf.mxu1 }
 0x4fc   : > { %v12257_v34 = vadd.f32 %v4697_v32, %v4639_v53  ;;  %v4538_v18 = vpop.f32.mrf.mxu2  ;;  %v4596_v13 = vpop.f32.mrf.mxu3  ;;  %v14277_v53 = vld [vmem:[#allocation80_spill] sm:$0xff] }
 0x4fd   : > { %v4539_v51 = vadd.f32 %v4538_v18, %v12159_v60  ;;  %v9625_v60 = vld [vmem:[#allocation2 + $0x62c] sm:$0xf]  ;;  %v8750_v18 = vld [vmem:[#allocation2 + $0x638] sm:$0xf0] }
 0x4ff   : > { %v12260_v30 = vadd.f32 %v4596_v13, %v4539_v51  ;;  %v8753_v13 = vor.u32 %v9625_v60, %v8750_v18 }
 0x501   : > { %14273 = vst [vmem:[#allocation35_spill] sm:$0xff] %v12260_v30  ;;  %4762 = vmatmul.bf16.gmra.mxu2 %v14274_v17  ;;  %4820 = vmatmul.bf16.gmra.mxu3 %v14275_v42  ;;  %v9657_v30 = vld [vmem:[#allocation2 + $0x72c] sm:$0xf] }
 0x502   : > { %v4642_v61 = vpop.f32.mrf.mxu0  ;;  %4967 = vmatpush.bf16.msra.mxu2 %v8753_v13 }
 0x503   : > { %v4700_v25 = vpop.f32.mrf.mxu1 }
 0x504   : > { %v12264_v27 = vadd.f32 %v4700_v25, %v4642_v61  ;;  %v4541_v21 = vpop.f32.mrf.mxu2  ;;  %v4599_v55 = vpop.f32.mrf.mxu3 }
 0x505   : > { %v4542_v1 = vadd.f32 %v4541_v21, %v12164_v62  ;;  %4863 = vmatmul.bf16.gmra.mxu0 %v14276_v46  ;;  %v8881_v21 = vor.u32 %v9657_v30, %v8878_v33 }
 0x506   : > { %4921 = vmatmul.bf16.gmra.mxu1 %v14277_v53 }
 0x507   : > { %v12269_v32 = vadd.f32 %v4599_v55, %v4542_v1  ;;  %5025 = vmatpush.bf16.msra.mxu3 %v8881_v21  ;;  %v14280_v55 = vld [vmem:[#allocation83_spill] sm:$0xff]  ;;  %v14281_v1 = vld [vmem:[#allocation84_spill] sm:$0xff] }
 0x509   : > { %14278 = vst [vmem:[#allocation30_spill] sm:$0xff] %v12269_v32  ;;  %v14282_v32 = vld [vmem:[#allocation85_spill] sm:$0xff] }
 0x50a   : > { %v4644_v51 = vpop.f32.mrf.mxu0 }
 0x50b   : > { %v4702_v17 = vpop.f32.mrf.mxu1 }
 0x50c   : > { %v12271_v42 = vadd.f32 %v4702_v17, %v4644_v51  ;;  %v4543_v61 = vpop.f32.mrf.mxu2  ;;  %v4601_v25 = vpop.f32.mrf.mxu3 }
 0x50d   : > { %v4544_v62 = vadd.f32 %v4543_v61, %v12172_v16 }
 0x50f   : > { %v12274_v46 = vadd.f32 %v4601_v25, %v4544_v62 }
 0x511   : > { %14279 = vst [vmem:[#allocation29_spill] sm:$0xff] %v12274_v46  ;;  %4767 = vmatmul.bf16.gmra.mxu2 %v14280_v55  ;;  %4825 = vmatmul.bf16.gmra.mxu3 %v14281_v1  ;;  %v9621_v1 = vld [vmem:[#allocation2 + $0x60c] sm:$0xf] }
 0x512   : > { %v4647_v53 = vpop.f32.mrf.mxu0 }
 0x513   : > { %v4705_v60 = vpop.f32.mrf.mxu1 }
 0x514   : > { %v12278_v18 = vadd.f32 %v4705_v60, %v4647_v53  ;;  %v4546_v13 = vpop.f32.mrf.mxu2  ;;  %v4604_v51 = vpop.f32.mrf.mxu3  ;;  %v8734_v53 = vld [vmem:[#allocation2 + $0x618] sm:$0xf0]  ;;  %v9653_v60 = vld [vmem:[#allocation2 + $0x70c] sm:$0xf] }
 0x515   : > { %v4547_v17 = vadd.f32 %v4546_v13, %v12180_v8  ;;  %4868 = vmatmul.bf16.gmra.mxu0 %v14282_v32  ;;  %v8737_v8 = vor.u32 %v9621_v1, %v8734_v53  ;;  %v8862_v13 = vld [vmem:[#allocation2 + $0x718] sm:$0xf0]  ;;  %v14286_v32 = vld [vmem:[#allocation88_spill] sm:$0xff] }
 0x516   : > { %4926 = vmatmul.bf16.gmra.mxu1 %v14283_v37  ;;  %v14287_v37 = vld [vmem:[#allocation89_spill] sm:$0xff] }
 0x517   : > { %v12283_v16 = vadd.f32 %v4604_v51, %v4547_v17  ;;  %v8865_v51 = vor.u32 %v9653_v60, %v8862_v13  ;;  %4968 = vmatpush.bf16.msra.mxu2 %v8737_v8  ;;  %v9036_v13 = vld [vmem:[%s13598_s5 + $0x70] sm:$0xf] }
 0x519   : > { %14284 = vst [vmem:[#allocation40_spill] sm:$0xff] %v12283_v16  ;;  %5026 = vmatpush.bf16.msra.mxu3 %v8865_v51 }
 0x51a   : > { %v4649_v33 = vpop.f32.mrf.mxu0 }
 0x51b   : > { %v4707_v30 = vpop.f32.mrf.mxu1 }
 0x51c   : > { %v12285_v61 = vadd.f32 %v4707_v30, %v4649_v33  ;;  %v4548_v25 = vpop.f32.mrf.mxu2  ;;  %v4606_v62 = vpop.f32.mrf.mxu3 }
 0x51d   : > { %v4549_v21 = vadd.f32 %v4548_v25, %v12188_v36 }
 0x51f   : > { %v12288_v55 = vadd.f32 %v4606_v62, %v4549_v21  ;;  %v14288_v62 = vld [vmem:[#allocation90_spill] sm:$0xff]  ;;  %v14289_v21 = vld [vmem:[#allocation91_spill] sm:$0xff] }
 0x521   : > { %14285 = vst [vmem:[#allocation45_spill] sm:$0xff] %v12288_v55  ;;  %4772 = vmatmul.bf16.gmra.mxu2 %v14286_v32  ;;  %4830 = vmatmul.bf16.gmra.mxu3 %v14287_v37 }
 0x522   : > { %v4652_v17 = vpop.f32.mrf.mxu0 }
 0x523   : > { %v4710_v33 = vpop.f32.mrf.mxu1 }
 0x524   : > { %v12292_v30 = vadd.f32 %v4710_v33, %v4652_v17  ;;  %v4551_v16 = vpop.f32.mrf.mxu2  ;;  %v4609_v36 = vpop.f32.mrf.mxu3  ;;  %v9715_v17 = vld [vmem:[%s13598_s5 + $0xf4] sm:$0xf0] }
 0x525   : > { %v4552_v25 = vadd.f32 %v4551_v16, %v12196_v5  ;;  %4873 = vmatmul.bf16.gmra.mxu0 %v14288_v62  ;;  %v9699_v5 = vld [vmem:[%s13598_s5 + $0x74] sm:$0xf0]  ;;  %v9100_v16 = vld [vmem:[%s13598_s5 + $0xf0] sm:$0xf] }
 0x526   : > { %4931 = vmatmul.bf16.gmra.mxu1 %v14289_v21  ;;  %v9037_v51 = vor.u32 %v9699_v5, %v9036_v13  ;;  %v9101_v33 = vor.u32 %v9715_v17, %v9100_v16  ;;  %v9164_v62 = vld [vmem:[%s13598_s5 + $0x170] sm:$0xf]  ;;  %v9731_v21 = vld [vmem:[%s13598_s5 + $0x174] sm:$0xf0] }
 0x527   : > { %v12297_v1 = vadd.f32 %v4609_v36, %v4552_v25  ;;  %v14291_v36 = vld [vmem:[#allocation93_spill] sm:$0xff]  ;;  %v14292_v25 = vld [vmem:[#allocation94_spill] sm:$0xff]  ;;  %v9228_v16 = vld [vmem:[%s13598_s5 + $0x1f0] sm:$0xf] }
 0x528   : > { %5904 = vmatpush.bf16.msra.mxu0 %v9037_v51  ;;  %5962 = vmatpush.bf16.msra.mxu1 %v9101_v33  ;;  %v9747_v51 = vld [vmem:[%s13598_s5 + $0x1f4] sm:$0xf0]  ;;  %v14293_v33 = vld [vmem:[#allocation24_spill] sm:$0xff] }
 0x529   : > { %14290 = vst [vmem:[#allocation36_spill] sm:$0xff] %v12297_v1 }
 0x52a   : > { %v4654_v53 = vpop.f32.mrf.mxu0 }
 0x52b   : > { %v4712_v32 = vpop.f32.mrf.mxu1 }
 0x52c   : > { %v12299_v37 = vadd.f32 %v4712_v32, %v4654_v53  ;;  %v4553_v60 = vpop.f32.mrf.mxu2  ;;  %v4611_v8 = vpop.f32.mrf.mxu3  ;;  %v9165_v32 = vor.u32 %v9731_v21, %v9164_v62 }
 0x52e   : > { %6020 = vmatpush.bf16.msrb.mxu2 %v9165_v32 }
 0x531   : > { %4777 = vmatmul.bf16.gmra.mxu2 %v14291_v36  ;;  %4835 = vmatmul.bf16.gmra.mxu3 %v14292_v25  ;;  %v9229_v36 = vor.u32 %v9747_v51, %v9228_v16  ;;  %v14294_v25 = vld [vmem:[#allocation26_spill] sm:$0xff]  ;;  %v9713_v51 = vld [vmem:[%s13598_s5 + $0xe4] sm:$0xf0] }
 0x532   : > { %v4657_v53 = vpop.f32.mrf.mxu0 }
 0x533   : > { %v4715_v60 = vpop.f32.mrf.mxu1  ;;  %6078 = vmatpush.bf16.msrb.mxu3 %v9229_v36 }
 0x534   : > { %v12321_v8 = vadd.f32 %v4715_v60, %v4657_v53  ;;  %v4738_v13 = vpop.f32.mrf.mxu2  ;;  %v4796_v5 = vpop.f32.mrf.mxu3 }
 0x535   : > { %v4739_v17 = vadd.f32 %v4738_v13, %v12208_v2  ;;  %4878 = vmatmul.bf16.gmra.mxu0 %v14293_v33  ;;  %v9028_v2 = vld [vmem:[%s13598_s5 + $0x60] sm:$0xf]  ;;  %v9697_v13 = vld [vmem:[%s13598_s5 + $0x64] sm:$0xf0] }
 0x536   : > { %4936 = vmatmul.bf16.gmra.mxu1 %v14294_v25  ;;  %v9029_v16 = vor.u32 %v9697_v13, %v9028_v2  ;;  %v14298_v2 = vld [vmem:[#allocation98_spill] sm:$0xff] }
 0x537   : > { %v12332_v62 = vadd.f32 %v4796_v5, %v4739_v17  ;;  %v9092_v5 = vld [vmem:[%s13598_s5 + $0xe0] sm:$0xf] }
 0x538   : > { %5905 = vmatpush.bf16.msra.mxu0 %v9029_v16  ;;  %v9729_v16 = vld [vmem:[%s13598_s5 + $0x164] sm:$0xf0] }
 0x53a   : > { %v4659_v21 = vpop.f32.mrf.mxu0 }
 0x53b   : > { %v4717_v53 = vpop.f32.mrf.mxu1 }
 0x53c   : > { %v12334_v32 = vadd.f32 %v4717_v53, %v4659_v21  ;;  %v4740_v60 = vpop.f32.mrf.mxu2  ;;  %v4798_v1 = vpop.f32.mrf.mxu3 }
 0x53d   : > { %v4741_v55 = vadd.f32 %v4740_v60, %v12215_v7  ;;  %v14295_v7 = vld [vmem:[#allocation96_spill] sm:$0xff]  ;;  %v14297_v60 = vld [vmem:[#allocation95_spill] sm:$0xff] }
 0x53f   : > { %v12337_v46 = vadd.f32 %v4798_v1, %v4741_v55  ;;  %v14296_v55 = vld [vmem:[#allocation97_spill] sm:$0xff]  ;;  %v9093_v1 = vor.u32 %v9713_v51, %v9092_v5  ;;  %v9156_v5 = vld [vmem:[%s13598_s5 + $0x160] sm:$0xf] }
 0x540   : > { %v9220_v51 = vld [vmem:[%s13598_s5 + $0x1e0] sm:$0xf] }
 0x541   : > { %4782 = vmatmul.bf16.gmra.mxu2 %v14295_v7  ;;  %4840 = vmatmul.bf16.gmra.mxu3 %v14296_v55  ;;  %v9157_v7 = vor.u32 %v9729_v16, %v9156_v5  ;;  %v9695_v5 = vld [vmem:[%s13598_s5 + $0x54] sm:$0xf0]  ;;  %v9084_v16 = vld [vmem:[%s13598_s5 + $0xd0] sm:$0xf] }
 0x542   : > { %v4662_v17 = vpop.f32.mrf.mxu0  ;;  %5963 = vmatpush.bf16.msra.mxu1 %v9093_v1 }
 0x543   : > { %v4720_v33 = vpop.f32.mrf.mxu1  ;;  %6021 = vmatpush.bf16.msrb.mxu2 %v9157_v7  ;;  %v9711_v7 = vld [vmem:[%s13598_s5 + $0xd4] sm:$0xf0] }
 0x544   : > { %v12353_v36 = vadd.f32 %v4720_v33, %v4662_v17  ;;  %v4743_v25 = vpop.f32.mrf.mxu2  ;;  %v4801_v21 = vpop.f32.mrf.mxu3 }
 0x545   : > { %v4744_v53 = vadd.f32 %v4743_v25, %v12222_v14  ;;  %4883 = vmatmul.bf16.gmra.mxu0 %v14297_v60  ;;  %v9745_v14 = vld [vmem:[%s13598_s5 + $0x1e4] sm:$0xf0] }
 0x546   : > { %4941 = vmatmul.bf16.gmra.mxu1 %v14298_v2  ;;  %v9221_v55 = vor.u32 %v9745_v14, %v9220_v51  ;;  %v9020_v2 = vld [vmem:[%s13598_s5 + $0x50] sm:$0xf]  ;;  %v14300_v14 = vld [vmem:[#allocation22_spill] sm:$0xff] }
 0x547   : > { %v12358_v13 = vadd.f32 %v4801_v21, %v4744_v53  ;;  %v9021_v51 = vor.u32 %v9695_v5, %v9020_v2  ;;  %v14301_v2 = vld [vmem:[#allocation33_spill] sm:$0xff]  ;;  %v9012_v5 = vld [vmem:[%s13598_s5 + $0x40] sm:$0xf] }
 0x548   : > { %6079 = vmatpush.bf16.msrb.mxu3 %v9221_v55  ;;  %v9085_v55 = vor.u32 %v9711_v7, %v9084_v16  ;;  %v9693_v16 = vld [vmem:[%s13598_s5 + $0x44] sm:$0xf0] }
 0x549   : > { %5906 = vmatpush.bf16.msra.mxu0 %v9021_v51  ;;  %v9076_v51 = vld [vmem:[%s13598_s5 + $0xc0] sm:$0xf]  ;;  %v9013_v7 = vor.u32 %v9693_v16, %v9012_v5 }
 0x54a   : > { %v4664_v1 = vpop.f32.mrf.mxu0  ;;  %5964 = vmatpush.bf16.msra.mxu1 %v9085_v55  ;;  %v9004_v55 = vld [vmem:[%s13598_s5 + $0x30] sm:$0xf] }
 0x54b   : > { %v4722_v17 = vpop.f32.mrf.mxu1 }
 0x54c   : > { %v12372_v33 = vadd.f32 %v4722_v17, %v4664_v1  ;;  %v4745_v25 = vpop.f32.mrf.mxu2  ;;  %v4803_v21 = vpop.f32.mrf.mxu3 }
 0x54d   : > { %v4746_v53 = vadd.f32 %v4745_v25, %v12229_v58  ;;  %v14299_v58 = vld [vmem:[#allocation65_spill] sm:$0xff]  ;;  %5907 = vmatpush.bf16.msra.mxu0 %v9013_v7 }
 0x54f   : > { %v12375_v60 = vadd.f32 %v4803_v21, %v4746_v53 }
 0x551   : > { %4969 = vmatmul.bf16.vlgmr.msra.gmra.mxu2 %v14299_v58  ;;  %5027 = vmatmul.bf16.vlgmr.msra.gmra.mxu3 %v14300_v14 }
 0x552   : > { %v4667_v1 = vpop.f32.mrf.mxu0 }
 0x553   : > { %v4725_v17 = vpop.f32.mrf.mxu1 }
 0x554   : > { %v12391_v25 = vadd.f32 %v4725_v17, %v4667_v1  ;;  %v4748_v21 = vpop.f32.mrf.mxu2  ;;  %v4806_v53 = vpop.f32.mrf.mxu3  ;;  %v9691_v1 = vld [vmem:[%s13598_s5 + $0x34] sm:$0xf0] }
 0x555   : > { %v4749_v35 = vadd.f32 %v4748_v21, %v12236_v45  ;;  %4888 = vmatmul.bf16.gmra.mxu0 %v14301_v2  ;;  %v9709_v45 = vld [vmem:[%s13598_s5 + $0xc4] sm:$0xf0]  ;;  %v9005_v17 = vor.u32 %v9691_v1, %v9004_v55  ;;  %v9148_v21 = vld [vmem:[%s13598_s5 + $0x150] sm:$0xf]  ;;  %v8996_v1 = vld [vmem:[%s13598_s5 + $0x20] sm:$0xf] }
 0x556   : > { %4946 = vmatmul.bf16.gmra.mxu1 %v14201_v56  ;;  %v9077_v14 = vor.u32 %v9709_v45, %v9076_v51  ;;  %v9068_v56 = vld [vmem:[%s13598_s5 + $0xb0] sm:$0xf] }
 0x557   : > { %v12408_v58 = vadd.f32 %v4806_v53, %v4749_v35  ;;  %v9707_v35 = vld [vmem:[%s13598_s5 + $0xb4] sm:$0xf0]  ;;  %5908 = vmatpush.bf16.msra.mxu0 %v9005_v17  ;;  %v9705_v17 = vld [vmem:[%s13598_s5 + $0xa4] sm:$0xf0] }
 0x558   : > { %v9727_v53 = vld [vmem:[%s13598_s5 + $0x154] sm:$0xf0]  ;;  %5965 = vmatpush.bf16.msra.mxu1 %v9077_v14  ;;  %v9069_v2 = vor.u32 %v9707_v35, %v9068_v56  ;;  %v9060_v14 = vld [vmem:[%s13598_s5 + $0xa0] sm:$0xf]  ;;  %v8997_v56 = vor.u32 %v9689_v0, %v8996_v1  ;;  %v8988_v0 = vld [vmem:[%s13598_s5 + $0x10] sm:$0xf] }
 0x559   : > { %v9149_v5 = vor.u32 %v9727_v53, %v9148_v21  ;;  %v9743_v35 = vld [vmem:[%s13598_s5 + $0x1d4] sm:$0xf0]  ;;  %v9061_v53 = vor.u32 %v9705_v17, %v9060_v14 }
 0x55a   : > { %v4669_v16 = vpop.f32.mrf.mxu0 }
 0x55b   : > { %v4727_v51 = vpop.f32.mrf.mxu1  ;;  %6022 = vmatpush.bf16.msrb.mxu2 %v9149_v5  ;;  %v9687_v5 = vld [vmem:[%s13598_s5 + $0x14] sm:$0xf0]  ;;  %5909 = vmatpush.bf16.msra.mxu0 %v8997_v56 }
 0x55c   : > { %v4750_v7 = vpop.f32.mrf.mxu2  ;;  %v4808_v45 = vpop.f32.mrf.mxu3  ;;  %5966 = vmatpush.bf16.msra.mxu1 %v9069_v2  ;;  %v8989_v16 = vor.u32 %v9687_v5, %v8988_v0  ;;  %v9052_v51 = vld [vmem:[%s13598_s5 + $0x90] sm:$0xf] }
 0x55d   : > { %v4751_v55 = vadd.f32 %v4750_v7, %v12243_v6  ;;  %v9212_v6 = vld [vmem:[%s13598_s5 + $0x1d0] sm:$0xf]  ;;  %v9703_v7 = vld [vmem:[%s13598_s5 + $0x94] sm:$0xf0] }
 0x55e   : > { %v9213_v2 = vor.u32 %v9743_v35, %v9212_v6  ;;  %v9053_v14 = vor.u32 %v9703_v7, %v9052_v51 }
 0x55f   : > { %v12447_v21 = vadd.f32 %v4808_v45, %v4751_v55  ;;  %5910 = vmatpush.bf16.msra.mxu0 %v8989_v16 }
 0x560   : > { %5967 = vmatpush.bf16.msra.mxu1 %v9061_v53  ;;  %6080 = vmatpush.bf16.msrb.mxu3 %v9213_v2 }
 0x561   : > { %4974 = vmatmul.bf16.gmra.mxu2 %v11156_v15  ;;  %5032 = vmatmul.bf16.gmra.mxu3 %v11170_v31  ;;  %v8980_v15 = vld [vmem:[%s13598_s5] sm:$0xf]  ;;  %v9685_v31 = vld [vmem:[%s13598_s5 + $0x4] sm:$0xf0] }
 0x562   : > { %v4854_v45 = vpop.f32.mrf.mxu0  ;;  %v8981_v53 = vor.u32 %v9685_v31, %v8980_v15 }
 0x563   : > { %v4855_v55 = vadd.f32 %v4854_v45, %v12332_v62  ;;  %v4912_v1 = vpop.f32.mrf.mxu1  ;;  %v9044_v62 = vld [vmem:[%s13598_s5 + $0x80] sm:$0xf] }
 0x564   : > { %v4753_v56 = vpop.f32.mrf.mxu2  ;;  %v4811_v17 = vpop.f32.mrf.mxu3  ;;  %5968 = vmatpush.bf16.msra.mxu1 %v9053_v14  ;;  %5911 = vmatpush.bf16.msra.mxu0 %v8981_v53  ;;  %v9725_v14 = vld [vmem:[%s13598_s5 + $0x144] sm:$0xf0] }
 0x565   : > { %v12464_v6 = vadd.f32 %v4912_v1, %v4855_v55  ;;  %v4754_v35 = vadd.f32 %v4753_v56, %v12250_v3  ;;  %4893 = vmatmul.bf16.gmra.mxu0 %v11178_v39  ;;  %v9701_v3 = vld [vmem:[%s13598_s5 + $0x84] sm:$0xf0]  ;;  %v9140_v1 = vld [vmem:[%s13598_s5 + $0x140] sm:$0xf] }
 0x566   : > { %4951 = vmatmul.bf16.gmra.mxu1 %v11180_v43  ;;  %v9045_v2 = vor.u32 %v9701_v3, %v9044_v62  ;;  %v9141_v56 = vor.u32 %v9725_v14, %v9140_v1 }
 0x567   : > { %v12481_v39 = vadd.f32 %v4811_v17, %v4754_v35  ;;  %v9741_v17 = vld [vmem:[%s13598_s5 + $0x1c4] sm:$0xf0] }
 0x568   : > { %5969 = vmatpush.bf16.msra.mxu1 %v9045_v2  ;;  %6023 = vmatpush.bf16.msrb.mxu2 %v9141_v56 }
 0x56a   : > { %v4856_v0 = vpop.f32.mrf.mxu0 }
 0x56b   : > { %v4857_v5 = vadd.f32 %v4856_v0, %v12337_v46  ;;  %v4914_v16 = vpop.f32.mrf.mxu1  ;;  %v9204_v46 = vld [vmem:[%s13598_s5 + $0x1c0] sm:$0xf] }
 0x56c   : > { %v4755_v51 = vpop.f32.mrf.mxu2  ;;  %v4813_v7 = vpop.f32.mrf.mxu3 }
 0x56d   : > { %v12484_v45 = vadd.f32 %v4914_v16, %v4857_v5  ;;  %v4756_v43 = vadd.f32 %v4755_v51, %v12257_v34  ;;  %v9205_v34 = vor.u32 %v9741_v17, %v9204_v46  ;;  %v9196_v17 = vld [vmem:[%s13598_s5 + $0x1b0] sm:$0xf] }
 0x56f   : > { %v12487_v55 = vadd.f32 %v4813_v7, %v4756_v43  ;;  %6081 = vmatpush.bf16.msrb.mxu3 %v9205_v34  ;;  %v9739_v34 = vld [vmem:[%s13598_s5 + $0x1b4] sm:$0xf0] }
 0x571   : > { %4979 = vmatmul.bf16.gmra.mxu2 %v11196_v24  ;;  %5037 = vmatmul.bf16.gmra.mxu3 %v11205_v49 }
 0x572   : > { %v4859_v35 = vpop.f32.mrf.mxu0 }
 0x573   : > { %v4860_v15 = vadd.f32 %v4859_v35, %v12358_v13  ;;  %v4917_v31 = vpop.f32.mrf.mxu1  ;;  %v14303_v35 = vld [vmem:[#allocation19_spill] sm:$0xff] }
 0x574   : > { %v4758_v62 = vpop.f32.mrf.mxu2  ;;  %v4816_v53 = vpop.f32.mrf.mxu3 }
 0x575   : > { %v12504_v3 = vadd.f32 %v4917_v31, %v4860_v15  ;;  %v4759_v2 = vadd.f32 %v4758_v62, %v12264_v27  ;;  %4898 = vmatmul.bf16.gmra.mxu0 %v11223_v28  ;;  %v9132_v28 = vld [vmem:[%s13598_s5 + $0x130] sm:$0xf] }
 0x576   : > { %4956 = vmatmul.bf16.gmra.mxu1 %v11226_v52  ;;  %v9723_v52 = vld [vmem:[%s13598_s5 + $0x134] sm:$0xf0] }
 0x577   : > { %v12509_v24 = vadd.f32 %v4816_v53, %v4759_v2 }
 0x57a   : > { %v4861_v49 = vpop.f32.mrf.mxu0 }
 0x57b   : > { %v4862_v0 = vadd.f32 %v4861_v49, %v12375_v60  ;;  %v4919_v5 = vpop.f32.mrf.mxu1  ;;  %v9133_v60 = vor.u32 %v9723_v52, %v9132_v28 }
 0x57c   : > { %v4760_v16 = vpop.f32.mrf.mxu2  ;;  %v4818_v13 = vpop.f32.mrf.mxu3 }
 0x57d   : > { %v12512_v51 = vadd.f32 %v4919_v5, %v4862_v0  ;;  %v4761_v7 = vadd.f32 %v4760_v16, %v12271_v42  ;;  %6024 = vmatpush.bf16.msrb.mxu2 %v9133_v60 }
 0x57f   : > { %v12515_v43 = vadd.f32 %v4818_v13, %v4761_v7 }
 0x581   : > { %4984 = vmatmul.bf16.gmra.mxu2 %v11249_v23  ;;  %5042 = vmatmul.bf16.gmra.mxu3 %v11259_v38  ;;  %v14302_v38 = vld [vmem:[#allocation23_spill] sm:$0xff] }
 0x582   : > { %v4864_v27 = vpop.f32.mrf.mxu0 }
 0x583   : > { %v4865_v1 = vadd.f32 %v4864_v27, %v12408_v58  ;;  %v4922_v14 = vpop.f32.mrf.mxu1  ;;  %v9197_v58 = vor.u32 %v9739_v34, %v9196_v17 }
 0x584   : > { %v4763_v42 = vpop.f32.mrf.mxu2  ;;  %v4821_v46 = vpop.f32.mrf.mxu3 }
 0x585   : > { %v12526_v56 = vadd.f32 %v4922_v14, %v4865_v1  ;;  %v4764_v23 = vadd.f32 %v4763_v42, %v12278_v18  ;;  %5912 = vmatmul.bf16.vlgmr.msra.gmra.mxu0 %v14302_v38  ;;  %6082 = vmatpush.bf16.msrb.mxu3 %v9197_v58 }
 0x586   : > { %5970 = vmatmul.bf16.vlgmr.msra.gmra.mxu1 %v14303_v35 }
 0x587   : > { %v12537_v15 = vadd.f32 %v4821_v46, %v4764_v23 }
 0x58a   : > { %v4866_v31 = vpop.f32.mrf.mxu0 }
 0x58b   : > { %v4867_v62 = vadd.f32 %v4866_v31, %v12447_v21  ;;  %v4924_v18 = vpop.f32.mrf.mxu1 }
 0x58c   : > { %v4765_v53 = vpop.f32.mrf.mxu2  ;;  %v4823_v2 = vpop.f32.mrf.mxu3 }
 0x58d   : > { %v12540_v49 = vadd.f32 %v4924_v18, %v4867_v62  ;;  %v4766_v0 = vadd.f32 %v4765_v53, %v12285_v61 }
 0x58f   : > { %v12543_v5 = vadd.f32 %v4823_v2, %v4766_v0 }
 0x591   : > { %4989 = vmatmul.bf16.gmra.mxu2 %v14110_v4  ;;  %5047 = vmatmul.bf16.gmra.mxu3 %v14111_v11  ;;  %v9124_v4 = vld [vmem:[%s13598_s5 + $0x120] sm:$0xf]  ;;  %v9721_v11 = vld [vmem:[%s13598_s5 + $0x124] sm:$0xf0] }
 0x592   : > { %v4869_v16 = vpop.f32.mrf.mxu0  ;;  %v9125_v60 = vor.u32 %v9721_v11, %v9124_v4  ;;  %v9180_v11 = vld [vmem:[%s13598_s5 + $0x190] sm:$0xf] }
 0x593   : > { %v4870_v13 = vadd.f32 %v4869_v16, %v12481_v39  ;;  %v4927_v7 = vpop.f32.mrf.mxu1  ;;  %v9188_v39 = vld [vmem:[%s13598_s5 + $0x1a0] sm:$0xf] }
 0x594   : > { %v4768_v28 = vpop.f32.mrf.mxu2  ;;  %v4826_v52 = vpop.f32.mrf.mxu3  ;;  %6025 = vmatpush.bf16.msrb.mxu2 %v9125_v60 }
 0x595   : > { %v12548_v21 = vadd.f32 %v4927_v7, %v4870_v13  ;;  %v4769_v27 = vadd.f32 %v4768_v28, %v12292_v30  ;;  %5917 = vmatmul.bf16.gmra.mxu0 %v11961_v20  ;;  %v9737_v30 = vld [vmem:[%s13598_s5 + $0x1a4] sm:$0xf0] }
 0x596   : > { %5975 = vmatmul.bf16.gmra.mxu1 %v11963_v47  ;;  %v9189_v1 = vor.u32 %v9737_v30, %v9188_v39  ;;  %v9735_v39 = vld [vmem:[%s13598_s5 + $0x194] sm:$0xf0] }
 0x597   : > { %v12553_v61 = vadd.f32 %v4826_v52, %v4769_v27  ;;  %v9181_v60 = vor.u32 %v9735_v39, %v9180_v11  ;;  %v9108_v39 = vld [vmem:[%s13598_s5 + $0x100] sm:$0xf] }
 0x598   : > { %6083 = vmatpush.bf16.msrb.mxu3 %v9189_v1 }
 0x59a   : > { %v4871_v14 = vpop.f32.mrf.mxu0 }
 0x59b   : > { %v4872_v42 = vadd.f32 %v4871_v14, %v12487_v55  ;;  %v4929_v46 = vpop.f32.mrf.mxu1 }
 0x59c   : > { %v4770_v23 = vpop.f32.mrf.mxu2  ;;  %v4828_v17 = vpop.f32.mrf.mxu3  ;;  %6084 = vmatpush.bf16.msrb.mxu3 %v9181_v60  ;;  %v9172_v60 = vld [vmem:[%s13598_s5 + $0x180] sm:$0xf] }
 0x59d   : > { %v12568_v34 = vadd.f32 %v4929_v46, %v4872_v42  ;;  %v4771_v58 = vadd.f32 %v4770_v23, %v12299_v37 }
 0x59f   : > { %v12571_v31 = vadd.f32 %v4828_v17, %v4771_v58 }
 0x5a1   : > { %4994 = vmatmul.bf16.gmra.mxu2 %v14209_v44  ;;  %5052 = vmatmul.bf16.gmra.mxu3 %v14210_v10  ;;  %v9116_v44 = vld [vmem:[%s13598_s5 + $0x110] sm:$0xf]  ;;  %v9719_v10 = vld [vmem:[%s13598_s5 + $0x114] sm:$0xf0] }
 0x5a2   : > { %v4874_v62 = vpop.f32.mrf.mxu0 }
 0x5a3   : > { %v4875_v18 = vadd.f32 %v4874_v62, %v12509_v24  ;;  %v4932_v53 = vpop.f32.mrf.mxu1  ;;  %v9117_v24 = vor.u32 %v9719_v10, %v9116_v44  ;;  %v14304_v44 = vld [vmem:[#allocation42_spill] sm:$0xff]  ;;  %v14305_v10 = vld [vmem:[#allocation49_spill] sm:$0xff] }
 0x5a4   : > { %v4773_v2 = vpop.f32.mrf.mxu2  ;;  %v4831_v55 = vpop.f32.mrf.mxu3 }
 0x5a5   : > { %v12576_v0 = vadd.f32 %v4932_v53, %v4875_v18  ;;  %v4774_v16 = vadd.f32 %v4773_v2, %v12321_v8  ;;  %5922 = vmatmul.bf16.gmra.mxu0 %v11986_v57  ;;  %6026 = vmatpush.bf16.msrb.mxu2 %v9117_v24 }
 0x5a6   : > { %5980 = vmatmul.bf16.gmra.mxu1 %v11988_v50 }
 0x5a7   : > { %v12581_v37 = vadd.f32 %v4831_v55, %v4774_v16  ;;  %v5119_v55 = vld [vmem:[#allocation1 + $0x12] sm:$0xff]  ;;  %v5583_v16 = vld [vmem:[%s13599_s6] sm:$0x3] }
 0x5aa   : > { %v4876_v13 = vpop.f32.mrf.mxu0 }
 0x5ab   : > { %v4877_v7 = vadd.f32 %v4876_v13, %v12515_v43  ;;  %v4934_v8 = vpop.f32.mrf.mxu1 }
 0x5ac   : > { %v4775_v28 = vpop.f32.mrf.mxu2  ;;  %v4833_v52 = vpop.f32.mrf.mxu3 }
 0x5ad   : > { %v12590_v27 = vadd.f32 %v4934_v8, %v4877_v7  ;;  %v4776_v4 = vadd.f32 %v4775_v28, %v12334_v32 }
 0x5af   : > { %v12599_v30 = vadd.f32 %v4833_v52, %v4776_v4  ;;  %v14306_v52 = vld [vmem:[#allocation76_spill] sm:$0xff]  ;;  %v14307_v4 = vld [vmem:[#allocation9_spill] sm:$0xff] }
 0x5b1   : > { %4999 = vmatmul.bf16.gmra.mxu2 %v14219_v63  ;;  %5057 = vmatmul.bf16.gmra.mxu3 %v14220_v29 }
 0x5b2   : > { %v4879_v43 = vpop.f32.mrf.mxu0 }
 0x5b3   : > { %v4880_v1 = vadd.f32 %v4879_v43, %v12537_v15  ;;  %v4937_v32 = vpop.f32.mrf.mxu1 }
 0x5b4   : > { %v4778_v14 = vpop.f32.mrf.mxu2  ;;  %v4836_v42 = vpop.f32.mrf.mxu3 }
 0x5b5   : > { %v12604_v46 = vadd.f32 %v4937_v32, %v4880_v1  ;;  %v4779_v23 = vadd.f32 %v4778_v14, %v12353_v36  ;;  %5927 = vmatmul.bf16.gmra.mxu0 %v12014_v48  ;;  %v5120_v36 = vld [vmem:[#allocation1 + $0x1b] sm:$0xff]  ;;  %v9733_v1 = vld [vmem:[%s13598_s5 + $0x184] sm:$0xf0] }
 0x5b6   : > { %5985 = vmatmul.bf16.gmra.mxu1 %v12016_v12  ;;  %6388 = vst [vmem:[#allocation1] ss:$9 sm:$0xff] %v5583_v16 }
 0x5b7   : > { %v12609_v17 = vadd.f32 %v4836_v42, %v4779_v23  ;;  %v9173_v42 = vor.u32 %v9733_v1, %v9172_v60  ;;  %v5127_v60 = vpack.i.b16 %v5119_v55, %v5119_v55 }
 0x5b9   : > { %6085 = vmatpush.bf16.msrb.mxu3 %v9173_v42 }
 0x5ba   : > { %v4881_v58 = vpop.f32.mrf.mxu0 }
 0x5bb   : > { %v4882_v63 = vadd.f32 %v4881_v58, %v12543_v5  ;;  %v4939_v29 = vpop.f32.mrf.mxu1 }
 0x5bc   : > { %v4780_v62 = vpop.f32.mrf.mxu2  ;;  %v4838_v18 = vpop.f32.mrf.mxu3 }
 0x5bd   : > { %v12612_v15 = vadd.f32 %v4939_v29, %v4882_v63  ;;  %v4781_v53 = vadd.f32 %v4780_v62, %v12372_v33  ;;  %v9698_v29 = vld [vmem:[%s13598_s5 + $0x74] sm:$0xf]  ;;  %v9038_v62 = vld [vmem:[%s13598_s5 + $0x78] sm:$0xf0] }
 0x5bf   : > { %v12615_v2 = vadd.f32 %v4838_v18, %v4781_v53  ;;  %v9041_v18 = vor.u32 %v9698_v29, %v9038_v62  ;;  %v9102_v53 = vld [vmem:[%s13598_s5 + $0xf8] sm:$0xf0] }
 0x5c1   : > { %5004 = vmatmul.bf16.gmra.mxu2 %v14304_v44  ;;  %5062 = vmatmul.bf16.gmra.mxu3 %v14305_v10 }
 0x5c2   : > { %v4884_v5 = vpop.f32.mrf.mxu0  ;;  %6136 = vmatpush.bf16.msrb.mxu0 %v9041_v18 }
 0x5c3   : > { %v4885_v24 = vadd.f32 %v4884_v5, %v12553_v61  ;;  %v4942_v13 = vpop.f32.mrf.mxu1  ;;  %v9717_v61 = vld [vmem:[%s13598_s5 + $0x104] sm:$0xf0] }
 0x5c4   : > { %v4783_v7 = vpop.f32.mrf.mxu2  ;;  %v4841_v8 = vpop.f32.mrf.mxu3 }
 0x5c5   : > { %v12623_v33 = vadd.f32 %v4942_v13, %v4885_v24  ;;  %v4784_v28 = vadd.f32 %v4783_v7, %v12391_v25  ;;  %5932 = vmatmul.bf16.gmra.mxu0 %v14306_v52  ;;  %v9109_v25 = vor.u32 %v9717_v61, %v9108_v39  ;;  %v9730_v24 = vld [vmem:[%s13598_s5 + $0x174] sm:$0xf]  ;;  %v9166_v13 = vld [vmem:[%s13598_s5 + $0x178] sm:$0xf0] }
 0x5c6   : > { %5990 = vmatmul.bf16.gmra.mxu1 %v14307_v4  ;;  %v9230_v61 = vld [vmem:[%s13598_s5 + $0x1f8] sm:$0xf0] }
 0x5c7   : > { %v12628_v11 = vadd.f32 %v4841_v8, %v4784_v28  ;;  %6027 = vmatpush.bf16.msrb.mxu2 %v9109_v25  ;;  %v9169_v28 = vor.u32 %v9730_v24, %v9166_v13 }
 0x5ca   : > { %v4886_v43 = vpop.f32.mrf.mxu0 }
 0x5cb   : > { %v4887_v32 = vadd.f32 %v4886_v43, %v12571_v31  ;;  %v4944_v14 = vpop.f32.mrf.mxu1  ;;  %v9714_v31 = vld [vmem:[%s13598_s5 + $0xf4] sm:$0xf]  ;;  %v14309_v43 = vld [vmem:[#allocation12_spill] sm:$0xff]  ;;  %6252 = vmatpush.bf16.msra.mxu2 %v9169_v28  ;;  %v9696_v28 = vld [vmem:[%s13598_s5 + $0x64] sm:$0xf] }
 0x5cc   : > { %v4785_v23 = vpop.f32.mrf.mxu2  ;;  %v4843_v58 = vpop.f32.mrf.mxu3  ;;  %v9105_v16 = vor.u32 %v9714_v31, %v9102_v53 }
 0x5cd   : > { %v12643_v63 = vadd.f32 %v4944_v14, %v4887_v32  ;;  %v5130_v32 = vpack.i.b16 %v5120_v36, %v5120_v36  ;;  %v5129_v14 = vperm.slane %v5127_v60, 0 }
 0x5ce   : > { %6194 = vmatpush.bf16.msrb.mxu1 %v9105_v16 }
 0x5cf   : > { %v5132_v23 = vperm.slane %v5130_v32, 0  ;;  %v12682_v16 = vunpack.c.l.bf16 %v5129_v14  ;;  %v14310_v32 = vld [vmem:[#allocation8_spill] sm:$0xff]  ;;  %v14311_v14 = vld [vmem:[#allocation81_spill] sm:$0xff] }
 0x5d1   : > { %5009 = vmatmul.bf16.gmra.mxu2 %v14236_v40  ;;  %5067 = vmatmul.bf16.gmra.mxu3 %v14237_v9  ;;  %v14308_v9 = vld [vmem:[#allocation13_spill] sm:$0xff]  ;;  %v12684_v36 = vunpack.c.l.bf16 %v5132_v23 }
 0x5d2   : > { %v4889_v44 = vpop.f32.mrf.mxu0 }
 0x5d3   : > { %v4890_v10 = vadd.f32 %v4889_v44, %v12581_v37  ;;  %v4947_v5 = vpop.f32.mrf.mxu1  ;;  %v9746_v37 = vld [vmem:[%s13598_s5 + $0x1f4] sm:$0xf] }
 0x5d4   : > { %v4970_v7 = vpop.f32.mrf.mxu2  ;;  %v5028_v8 = vpop.f32.mrf.mxu3  ;;  %v9233_v25 = vor.u32 %v9746_v37, %v9230_v61 }
 0x5d5   : > { %v12666_v39 = vadd.f32 %v4947_v5, %v4890_v10  ;;  %v4971_v40 = vadd.f32 %v4970_v7, %v12464_v6  ;;  %5937 = vmatmul.bf16.gmra.mxu0 %v14308_v9 }
 0x5d6   : > { %5995 = vmatmul.bf16.gmra.mxu1 %v14309_v43  ;;  %6310 = vmatpush.bf16.msra.mxu3 %v9233_v25 }
 0x5d7   : > { %v5029_v1 = vadd.f32 %v5028_v8, %v4971_v40 }
 0x5d9   : > { %v5078_v6 = vpack.c.bf16 %v5029_v1, %v12169_v54 }
 0x5da   : > { %v4891_v42 = vpop.f32.mrf.mxu0 }
 0x5db   : > { %v4892_v58 = vadd.f32 %v4891_v42, %v12599_v30  ;;  %v4949_v29 = vpop.f32.mrf.mxu1  ;;  %v5135_v53 = vunpack.c.l.bf16 %v5078_v6  ;;  %v5136_v44 = vunpack.c.h.bf16 %v5078_v6 }
 0x5dc   : > { %v4972_v62 = vpop.f32.mrf.mxu2  ;;  %v5030_v31 = vpop.f32.mrf.mxu3 }
 0x5dd   : > { %v12679_v18 = vadd.f32 %v4949_v29, %v4892_v58  ;;  %v4973_v55 = vadd.f32 %v4972_v62, %v12484_v45  ;;  %v5215_v30 = vadd.f32 %v12682_v16, %v5135_v53  ;;  %v5216_v24 = vadd.f32 %v12684_v36, %v5136_v44  ;;  %v14312_v53 = vld [vmem:[#allocation34_spill] sm:$0xff] }
 0x5df   : > { %v5031_v10 = vadd.f32 %v5030_v31, %v4973_v55  ;;  %v5405_v6 = vmax.f32 %v5215_v30, 0.0  ;;  %v5406_v23 = vmax.f32 %v5216_v24, 0.0  ;;  %v9728_v30 = vld [vmem:[%s13598_s5 + $0x164] sm:$0xf] }
 0x5e0   : > { %v9744_v24 = vld [vmem:[%s13598_s5 + $0x1e4] sm:$0xf] }
 0x5e1   : > { %v5080_v54 = vpack.c.bf16 %v5031_v10, %v12175_v59  ;;  %5014 = vmatmul.bf16.gmra.mxu2 %v14240_v41  ;;  %5072 = vmatmul.bf16.gmra.mxu3 %v14241_v26  ;;  %v9030_v59 = vld [vmem:[%s13598_s5 + $0x68] sm:$0xf0]  ;;  %v9712_v41 = vld [vmem:[%s13598_s5 + $0xe4] sm:$0xf] }
 0x5e2   : > { %v4894_v5 = vpop.f32.mrf.mxu0  ;;  %v9033_v37 = vor.u32 %v9696_v28, %v9030_v59 }
 0x5e3   : > { %v5139_v13 = vunpack.c.l.bf16 %v5080_v54  ;;  %v5140_v45 = vunpack.c.h.bf16 %v5080_v54  ;;  %v4895_v7 = vadd.f32 %v4894_v5, %v12609_v17  ;;  %v4952_v8 = vpop.f32.mrf.mxu1  ;;  %v9094_v17 = vld [vmem:[%s13598_s5 + $0xe8] sm:$0xf0] }
 0x5e4   : > { %v4975_v26 = vpop.f32.mrf.mxu2  ;;  %v5033_v40 = vpop.f32.mrf.mxu3  ;;  %6137 = vmatpush.bf16.msrb.mxu0 %v9033_v37  ;;  %v9097_v42 = vor.u32 %v9712_v41, %v9094_v17  ;;  %v9158_v5 = vld [vmem:[%s13598_s5 + $0x168] sm:$0xf0]  ;;  %v14313_v37 = vld [vmem:[#allocation58_spill] sm:$0xff] }
 0x5e5   : > { %v5219_v61 = vadd.f32 %v12682_v16, %v5139_v13  ;;  %v5220_v60 = vadd.f32 %v12684_v36, %v5140_v45  ;;  %v12706_v25 = vadd.f32 %v4952_v8, %v4895_v7  ;;  %v4976_v1 = vadd.f32 %v4975_v26, %v12504_v3  ;;  %5942 = vmatmul.bf16.gmra.mxu0 %v14310_v32 }
 0x5e6   : > { %6000 = vmatmul.bf16.gmra.mxu1 %v14311_v14  ;;  %v9161_v7 = vor.u32 %v9728_v30, %v9158_v5 }
 0x5e7   : > { %v5409_v58 = vmax.f32 %v5219_v61, 0.0  ;;  %v5410_v29 = vmax.f32 %v5220_v60, 0.0  ;;  %v5034_v62 = vadd.f32 %v5033_v40, %v4976_v1  ;;  %6195 = vmatpush.bf16.msrb.mxu1 %v9097_v42 }
 0x5e8   : > { %6253 = vmatpush.bf16.msra.mxu2 %v9161_v7  ;;  %v9708_v7 = vld [vmem:[%s13598_s5 + $0xc4] sm:$0xf] }
 0x5e9   : > { %v12711_v31 = vpack.c.bf16 %v5409_v58, %v5405_v6  ;;  %v12713_v55 = vpack.c.bf16 %v5410_v29, %v5406_v23  ;;  %v5082_v44 = vpack.c.bf16 %v5034_v62, %v14312_v53  ;;  %v9694_v58 = vld [vmem:[%s13598_s5 + $0x54] sm:$0xf]  ;;  %v9022_v29 = vld [vmem:[%s13598_s5 + $0x58] sm:$0xf0] }
 0x5ea   : > { %v4896_v10 = vpop.f32.mrf.mxu0  ;;  %v9710_v62 = vld [vmem:[%s13598_s5 + $0xd4] sm:$0xf] }
 0x5eb   : > { %v4897_v3 = vadd.f32 %v4896_v10, %v12615_v2  ;;  %v4954_v54 = vpop.f32.mrf.mxu1  ;;  %v9222_v2 = vld [vmem:[%s13598_s5 + $0x1e8] sm:$0xf0]  ;;  %v5143_v59 = vunpack.c.l.bf16 %v5082_v44  ;;  %v5144_v26 = vunpack.c.h.bf16 %v5082_v44  ;;  %v9025_v10 = vor.u32 %v9694_v58, %v9022_v29 }
 0x5ec   : > { %v4977_v13 = vpop.f32.mrf.mxu2  ;;  %v5035_v45 = vpop.f32.mrf.mxu3  ;;  %v9225_v41 = vor.u32 %v9744_v24, %v9222_v2  ;;  %v14314_v24 = vld [vmem:[#allocation82_spill] sm:$0xff]  ;;  %v9078_v2 = vld [vmem:[%s13598_s5 + $0xc8] sm:$0xf0] }
 0x5ed   : > { %v12729_v8 = vadd.f32 %v4954_v54, %v4897_v3  ;;  %v4978_v28 = vadd.f32 %v4977_v13, %v12512_v51  ;;  %v5223_v60 = vadd.f32 %v12682_v16, %v5143_v59  ;;  %v5224_v23 = vadd.f32 %v12684_v36, %v5144_v26  ;;  %v9692_v3 = vld [vmem:[%s13598_s5 + $0x44] sm:$0xf]  ;;  %v9014_v54 = vld [vmem:[%s13598_s5 + $0x48] sm:$0xf0]  ;;  %6138 = vmatpush.bf16.msrb.mxu0 %v9025_v10 }
 0x5ee   : > { %6311 = vmatpush.bf16.msra.mxu3 %v9225_v41 }
 0x5ef   : > { %v5036_v40 = vadd.f32 %v5035_v45, %v4978_v28  ;;  %v14315_v28 = vld [vmem:[#allocation17_spill] sm:$0xff]  ;;  %v5413_v59 = vmax.f32 %v5223_v60, 0.0 }
 0x5f0   : > { %v9690_v60 = vld [vmem:[%s13598_s5 + $0x34] sm:$0xf] }
 0x5f1   : > { %v5084_v17 = vpack.c.bf16 %v5036_v40, %v14313_v37  ;;  %6028 = vmatmul.bf16.vlgmr.msrb.gmra.mxu2 %v12711_v31  ;;  %6086 = vmatmul.bf16.vlgmr.msrb.gmra.mxu3 %v12713_v55  ;;  %v5414_v37 = vmax.f32 %v5224_v23, 0.0  ;;  %v9006_v23 = vld [vmem:[%s13598_s5 + $0x38] sm:$0xf0] }
 0x5f2   : > { %v4899_v61 = vpop.f32.mrf.mxu0  ;;  %v9009_v10 = vor.u32 %v9690_v60, %v9006_v23 }
 0x5f3   : > { %v5147_v1 = vunpack.c.l.bf16 %v5084_v17  ;;  %v5148_v6 = vunpack.c.h.bf16 %v5084_v17  ;;  %v4900_v42 = vadd.f32 %v4899_v61, %v12628_v11  ;;  %v4957_v51 = vpop.f32.mrf.mxu1  ;;  %v9086_v11 = vld [vmem:[%s13598_s5 + $0xd8] sm:$0xf0]  ;;  %v9081_v61 = vor.u32 %v9708_v7, %v9078_v2  ;;  %v8998_v7 = vld [vmem:[%s13598_s5 + $0x28] sm:$0xf0]  ;;  %v9704_v2 = vld [vmem:[%s13598_s5 + $0xa4] sm:$0xf] }
 0x5f4   : > { %v4980_v53 = vpop.f32.mrf.mxu2  ;;  %v5038_v44 = vpop.f32.mrf.mxu3  ;;  %v9089_v41 = vor.u32 %v9710_v62, %v9086_v11  ;;  %v9706_v62 = vld [vmem:[%s13598_s5 + $0xb4] sm:$0xf]  ;;  %v9070_v11 = vld [vmem:[%s13598_s5 + $0xb8] sm:$0xf0] }
 0x5f5   : > { %v12756_v30 = vadd.f32 %v4957_v51, %v4900_v42  ;;  %v4981_v5 = vadd.f32 %v4980_v53, %v12526_v56  ;;  %5947 = vmatmul.bf16.gmra.mxu0 %v14314_v24  ;;  %v5227_v13 = vadd.f32 %v12682_v16, %v5147_v1  ;;  %v5228_v45 = vadd.f32 %v12684_v36, %v5148_v6  ;;  %v14316_v1 = vld [vmem:[#allocation25_spill] sm:$0xff] }
 0x5f6   : > { %6005 = vmatmul.bf16.gmra.mxu1 %v14315_v28  ;;  %v9017_v56 = vor.u32 %v9692_v3, %v9014_v54  ;;  %v9726_v3 = vld [vmem:[%s13598_s5 + $0x154] sm:$0xf]  ;;  %v9150_v54 = vld [vmem:[%s13598_s5 + $0x158] sm:$0xf0] }
 0x5f7   : > { %v5039_v26 = vadd.f32 %v5038_v44, %v4981_v5  ;;  %v5417_v40 = vmax.f32 %v5227_v13, 0.0  ;;  %v5418_v17 = vmax.f32 %v5228_v45, 0.0  ;;  %6196 = vmatpush.bf16.msrb.mxu1 %v9089_v41  ;;  %v9073_v13 = vor.u32 %v9706_v62, %v9070_v11  ;;  %v9688_v45 = vld [vmem:[%s13598_s5 + $0x24] sm:$0xf] }
 0x5f8   : > { %6139 = vmatpush.bf16.msrb.mxu0 %v9017_v56  ;;  %v9153_v41 = vor.u32 %v9726_v3, %v9150_v54  ;;  %v9001_v56 = vor.u32 %v9688_v45, %v8998_v7  ;;  %v9684_v45 = vld [vmem:[%s13598_s5 + $0x4] sm:$0xf]  ;;  %v8982_v7 = vld [vmem:[%s13598_s5 + $0x8] sm:$0xf0] }
 0x5f9   : > { %v5086_v6 = vpack.c.bf16 %v5039_v26, %v14316_v1  ;;  %v12770_v42 = vpack.c.bf16 %v5417_v40, %v5413_v59  ;;  %v12772_v51 = vpack.c.bf16 %v5418_v17, %v5414_v37  ;;  %v9742_v26 = vld [vmem:[%s13598_s5 + $0x1d4] sm:$0xf]  ;;  %v9214_v40 = vld [vmem:[%s13598_s5 + $0x1d8] sm:$0xf0] }
 0x5fa   : > { %v4901_v58 = vpop.f32.mrf.mxu0  ;;  %6254 = vmatpush.bf16.msra.mxu2 %v9153_v41  ;;  %v9217_v1 = vor.u32 %v9742_v26, %v9214_v40  ;;  %v9700_v26 = vld [vmem:[%s13598_s5 + $0x84] sm:$0xf]  ;;  %v9046_v40 = vld [vmem:[%s13598_s5 + $0x88] sm:$0xf0] }
 0x5fb   : > { %v4959_v29 = vpop.f32.mrf.mxu1  ;;  %6197 = vmatpush.bf16.msrb.mxu1 %v9081_v61  ;;  %v5151_v59 = vunpack.c.l.bf16 %v5086_v6  ;;  %v5152_v37 = vunpack.c.h.bf16 %v5086_v6 }
 0x5fc   : > { %v4982_v53 = vpop.f32.mrf.mxu2  ;;  %v5040_v44 = vpop.f32.mrf.mxu3  ;;  %6140 = vmatpush.bf16.msrb.mxu0 %v9009_v10  ;;  %6312 = vmatpush.bf16.msra.mxu3 %v9217_v1  ;;  %v9702_v10 = vld [vmem:[%s13598_s5 + $0x94] sm:$0xf]  ;;  %v8985_v1 = vor.u32 %v9684_v45, %v8982_v7  ;;  %v14321_v7 = vld [vmem:[#allocation87_spill] sm:$0xff] }
 0x5fd   : > { %v4983_v5 = vadd.f32 %v4982_v53, %v12540_v49  ;;  %v9062_v49 = vld [vmem:[%s13598_s5 + $0xa8] sm:$0xf0]  ;;  %v5231_v60 = vadd.f32 %v12682_v16, %v5151_v59  ;;  %v5232_v6 = vadd.f32 %v12684_v36, %v5152_v37  ;;  %v14317_v59 = vld [vmem:[#allocation18_spill] sm:$0xff]  ;;  %v14318_v37 = vld [vmem:[#allocation55_spill] sm:$0xff] }
 0x5fe   : > { %v9065_v61 = vor.u32 %v9704_v2, %v9062_v49 }
 0x5ff   : > { %v5041_v17 = vadd.f32 %v5040_v44, %v4983_v5  ;;  %6198 = vmatpush.bf16.msrb.mxu1 %v9073_v13  ;;  %v9686_v44 = vld [vmem:[%s13598_s5 + $0x14] sm:$0xf]  ;;  %v9054_v13 = vld [vmem:[%s13598_s5 + $0x98] sm:$0xf0] }
 0x600   : > { %6141 = vmatpush.bf16.msrb.mxu0 %v9001_v56  ;;  %v9057_v49 = vor.u32 %v9702_v10, %v9054_v13 }
 0x601   : > { %v5088_v58 = vpack.c.bf16 %v5041_v17, %v12204_v19  ;;  %6033 = vmatmul.bf16.gmra.mxu2 %v12770_v42  ;;  %6091 = vmatmul.bf16.gmra.mxu3 %v12772_v51  ;;  %v8990_v19 = vld [vmem:[%s13598_s5 + $0x18] sm:$0xf0]  ;;  %v5205_v17 = vunpack.c.l.bf16 %v14318_v37 }
 0x602   : > { %v5913_v29 = vpop.f32.mrf.mxu0  ;;  %v8993_v5 = vor.u32 %v9686_v44, %v8990_v19  ;;  %v9049_v44 = vor.u32 %v9700_v26, %v9046_v40 }
 0x603   : > { %v5155_v23 = vunpack.c.l.bf16 %v5088_v58  ;;  %v5156_v62 = vunpack.c.h.bf16 %v5088_v58  ;;  %v5971_v53 = vpop.f32.mrf.mxu1  ;;  %6199 = vmatpush.bf16.msrb.mxu1 %v9065_v61  ;;  %v14319_v61 = vld [vmem:[#allocation10_spill] sm:$0xff] }
 0x604   : > { %v12825_v11 = vadd.f32 %v5971_v53, %v5913_v29  ;;  %v4985_v3 = vpop.f32.mrf.mxu2  ;;  %v5043_v54 = vpop.f32.mrf.mxu3  ;;  %6142 = vmatpush.bf16.msrb.mxu0 %v8993_v5  ;;  %v5206_v53 = vunpack.c.h.bf16 %v14318_v37  ;;  %v14322_v37 = vld [vmem:[#allocation92_spill] sm:$0xff] }
 0x605   : > { %v4986_v2 = vadd.f32 %v4985_v3, %v12548_v21  ;;  %5952 = vmatmul.bf16.gmra.mxu0 %v14317_v59  ;;  %v5235_v41 = vadd.f32 %v12682_v16, %v5155_v23  ;;  %v5236_v56 = vadd.f32 %v12684_v36, %v5156_v62  ;;  %v5421_v21 = vmax.f32 %v5231_v60, 0.0  ;;  %v14320_v60 = vld [vmem:[#allocation16_spill] sm:$0xff] }
 0x606   : > { %6010 = vmatmul.bf16.gmra.mxu1 %v14319_v61  ;;  %v5422_v23 = vmax.f32 %v5232_v6, 0.0  ;;  %v5285_v5 = vadd.f32 %v14320_v60, %v5205_v17 }
 0x607   : > { %v5044_v58 = vadd.f32 %v5043_v54, %v4986_v2  ;;  %v5425_v29 = vmax.f32 %v5235_v41, 0.0  ;;  %v5426_v62 = vmax.f32 %v5236_v56, 0.0  ;;  %6200 = vmatpush.bf16.msrb.mxu1 %v9057_v49  ;;  %v5286_v2 = vadd.f32 %v14321_v7, %v5206_v53  ;;  %v9142_v53 = vld [vmem:[%s13598_s5 + $0x148] sm:$0xf0] }
 0x608   : > { %6143 = vmatpush.bf16.msrb.mxu0 %v8985_v1  ;;  %v5475_v26 = vmax.f32 %v5285_v5, 0.0 }
 0x609   : > { %v5090_v19 = vpack.c.bf16 %v5044_v58, %v12213_v22  ;;  %v12850_v10 = vpack.c.bf16 %v5425_v29, %v5421_v21  ;;  %v12852_v3 = vpack.c.bf16 %v5426_v62, %v5422_v23  ;;  %v5476_v40 = vmax.f32 %v5286_v2, 0.0  ;;  %v9724_v62 = vld [vmem:[%s13598_s5 + $0x144] sm:$0xf] }
 0x60a   : > { %v5915_v13 = vpop.f32.mrf.mxu0  ;;  %v12863_v23 = vpack.c.bf16 %v5475_v26, %v5475_v26 }
 0x60b   : > { %v5973_v61 = vpop.f32.mrf.mxu1  ;;  %6201 = vmatpush.bf16.msrb.mxu1 %v9049_v44  ;;  %v5159_v56 = vunpack.c.l.bf16 %v5090_v19  ;;  %v5160_v22 = vunpack.c.h.bf16 %v5090_v19  ;;  %v9740_v44 = vld [vmem:[%s13598_s5 + $0x1c4] sm:$0xf]  ;;  %v12877_v5 = vpack.c.bf16 %v5476_v40, %v5476_v40 }
 0x60c   : > { %v12855_v45 = vadd.f32 %v5973_v61, %v5915_v13  ;;  %v4987_v54 = vpop.f32.mrf.mxu2  ;;  %v5045_v6 = vpop.f32.mrf.mxu3 }
 0x60d   : > { %v4988_v41 = vadd.f32 %v4987_v54, %v12568_v34  ;;  %v5239_v61 = vadd.f32 %v12682_v16, %v5159_v56  ;;  %v5240_v34 = vadd.f32 %v12684_v36, %v5160_v22  ;;  %v9145_v54 = vor.u32 %v9724_v62, %v9142_v53 }
 0x60f   : > { %v5046_v49 = vadd.f32 %v5045_v6, %v4988_v41  ;;  %v9206_v6 = vld [vmem:[%s13598_s5 + $0x1c8] sm:$0xf0]  ;;  %v5429_v22 = vmax.f32 %v5239_v61, 0.0  ;;  %6255 = vmatpush.bf16.msra.mxu2 %v9145_v54  ;;  %v5430_v40 = vmax.f32 %v5240_v34, 0.0  ;;  %v14324_v34 = vld [vmem:[#allocation37_spill] sm:$0xff] }
 0x610   : > { %v9209_v56 = vor.u32 %v9740_v44, %v9206_v6 }
 0x611   : > { %v5092_v21 = vpack.c.bf16 %v5046_v49, %v14322_v37  ;;  %6038 = vmatmul.bf16.gmra.mxu2 %v12850_v10  ;;  %6096 = vmatmul.bf16.gmra.mxu3 %v12852_v3 }
 0x612   : > { %v5918_v17 = vpop.f32.mrf.mxu0  ;;  %6313 = vmatpush.bf16.msra.mxu3 %v9209_v56 }
 0x613   : > { %v5163_v1 = vunpack.c.l.bf16 %v5092_v21  ;;  %v5164_v58 = vunpack.c.h.bf16 %v5092_v21  ;;  %v5976_v29 = vpop.f32.mrf.mxu1  ;;  %v14323_v21 = vld [vmem:[#allocation38_spill] sm:$0xff] }
 0x614   : > { %v12875_v19 = vadd.f32 %v5976_v29, %v5918_v17  ;;  %v4990_v13 = vpop.f32.mrf.mxu2  ;;  %v5048_v60 = vpop.f32.mrf.mxu3 }
 0x615   : > { %v4991_v7 = vadd.f32 %v4990_v13, %v12576_v0  ;;  %5957 = vmatmul.bf16.gmra.mxu0 %v12863_v23  ;;  %v5243_v2 = vadd.f32 %v12682_v16, %v5163_v1  ;;  %v5244_v41 = vadd.f32 %v12684_v36, %v5164_v58 }
 0x616   : > { %6015 = vmatmul.bf16.gmra.mxu1 %v12877_v5 }
 0x617   : > { %v5049_v49 = vadd.f32 %v5048_v60, %v4991_v7  ;;  %v5433_v26 = vmax.f32 %v5243_v2, 0.0  ;;  %v5434_v37 = vmax.f32 %v5244_v41, 0.0 }
 0x619   : > { %v5094_v17 = vpack.c.bf16 %v5049_v49, %v14323_v21  ;;  %v12888_v29 = vpack.c.bf16 %v5433_v26, %v5429_v22  ;;  %v12890_v0 = vpack.c.bf16 %v5434_v37, %v5430_v40  ;;  %v9134_v26 = vld [vmem:[%s13598_s5 + $0x138] sm:$0xf0] }
 0x61a   : > { %v5920_v62 = vpop.f32.mrf.mxu0 }
 0x61b   : > { %v5978_v1 = vpop.f32.mrf.mxu1  ;;  %v5167_v13 = vunpack.c.l.bf16 %v5094_v17  ;;  %v5168_v60 = vunpack.c.h.bf16 %v5094_v17 }
 0x61c   : > { %v12892_v53 = vadd.f32 %v5978_v1, %v5920_v62  ;;  %v4992_v58 = vpop.f32.mrf.mxu2  ;;  %v5050_v44 = vpop.f32.mrf.mxu3  ;;  %v9738_v62 = vld [vmem:[%s13598_s5 + $0x1b4] sm:$0xf]  ;;  %v9198_v1 = vld [vmem:[%s13598_s5 + $0x1b8] sm:$0xf0] }
 0x61d   : > { %v4993_v61 = vadd.f32 %v4992_v58, %v12590_v27  ;;  %v5247_v2 = vadd.f32 %v12682_v16, %v5167_v13  ;;  %v5248_v49 = vadd.f32 %v12684_v36, %v5168_v60  ;;  %v9722_v27 = vld [vmem:[%s13598_s5 + $0x134] sm:$0xf]  ;;  %v9201_v13 = vor.u32 %v9738_v62, %v9198_v1 }
 0x61e   : > { %v9137_v17 = vor.u32 %v9722_v27, %v9134_v26 }
 0x61f   : > { %v5051_v54 = vadd.f32 %v5050_v44, %v4993_v61  ;;  %v5437_v60 = vmax.f32 %v5247_v2, 0.0  ;;  %6314 = vmatpush.bf16.msra.mxu3 %v9201_v13 }
 0x620   : > { %6256 = vmatpush.bf16.msra.mxu2 %v9137_v17 }
 0x621   : > { %v5096_v6 = vpack.c.bf16 %v5051_v54, %v14324_v34  ;;  %6043 = vmatmul.bf16.gmra.mxu2 %v12888_v29  ;;  %6101 = vmatmul.bf16.gmra.mxu3 %v12890_v0 }
 0x622   : > { %v5923_v7 = vpop.f32.mrf.mxu0 }
 0x623   : > { %v5171_v41 = vunpack.c.l.bf16 %v5096_v6  ;;  %v5172_v56 = vunpack.c.h.bf16 %v5096_v6  ;;  %v5981_v22 = vpop.f32.mrf.mxu1  ;;  %v5438_v6 = vmax.f32 %v5248_v49, 0.0  ;;  %v14326_v49 = vld [vmem:[#allocation51_spill] sm:$0xff] }
 0x624   : > { %v12906_v40 = vadd.f32 %v5981_v22, %v5923_v7  ;;  %v4995_v37 = vpop.f32.mrf.mxu2  ;;  %v5053_v21 = vpop.f32.mrf.mxu3  ;;  %v14325_v22 = vld [vmem:[#allocation70_spill] sm:$0xff] }
 0x625   : > { %v4996_v58 = vadd.f32 %v4995_v37, %v12604_v46  ;;  %6144 = vmatmul.bf16.vlgmr.msrb.gmra.mxu0 %v14302_v38  ;;  %v5251_v44 = vadd.f32 %v12682_v16, %v5171_v41  ;;  %v5252_v61 = vadd.f32 %v12684_v36, %v5172_v56 }
 0x626   : > { %6202 = vmatmul.bf16.vlgmr.msrb.gmra.mxu1 %v14303_v35 }
 0x627   : > { %v5054_v54 = vadd.f32 %v5053_v21, %v4996_v58  ;;  %v5441_v34 = vmax.f32 %v5251_v44, 0.0  ;;  %v5442_v7 = vmax.f32 %v5252_v61, 0.0 }
 0x629   : > { %v5098_v27 = vpack.c.bf16 %v5054_v54, %v14325_v22  ;;  %v12920_v26 = vpack.c.bf16 %v5441_v34, %v5437_v60  ;;  %v12922_v46 = vpack.c.bf16 %v5442_v7, %v5438_v6 }
 0x62a   : > { %v5925_v38 = vpop.f32.mrf.mxu0 }
 0x62b   : > { %v5983_v41 = vpop.f32.mrf.mxu1  ;;  %v5175_v2 = vunpack.c.l.bf16 %v5098_v27  ;;  %v5176_v21 = vunpack.c.h.bf16 %v5098_v27 }
 0x62c   : > { %v12924_v37 = vadd.f32 %v5983_v41, %v5925_v38  ;;  %v4997_v56 = vpop.f32.mrf.mxu2  ;;  %v5055_v62 = vpop.f32.mrf.mxu3 }
 0x62d   : > { %v4998_v35 = vadd.f32 %v4997_v56, %v12612_v15  ;;  %v5255_v44 = vadd.f32 %v12682_v16, %v5175_v2  ;;  %v5256_v54 = vadd.f32 %v12684_v36, %v5176_v21  ;;  %v14327_v2 = vld [vmem:[#allocation52_spill] sm:$0xff] }
 0x62f   : > { %v5056_v17 = vadd.f32 %v5055_v62, %v4998_v35  ;;  %v5445_v38 = vmax.f32 %v5255_v44, 0.0  ;;  %v5446_v62 = vmax.f32 %v5256_v54, 0.0  ;;  %v9190_v54 = vld [vmem:[%s13598_s5 + $0x1a8] sm:$0xf0] }
 0x631   : > { %v5100_v1 = vpack.c.bf16 %v5056_v17, %v14326_v49  ;;  %6048 = vmatmul.bf16.gmra.mxu2 %v12920_v26  ;;  %6106 = vmatmul.bf16.gmra.mxu3 %v12922_v46 }
 0x632   : > { %v5928_v58 = vpop.f32.mrf.mxu0 }
 0x633   : > { %v5179_v61 = vunpack.c.l.bf16 %v5100_v1  ;;  %v5180_v13 = vunpack.c.h.bf16 %v5100_v1  ;;  %v5986_v60 = vpop.f32.mrf.mxu1 }
 0x634   : > { %v12932_v34 = vadd.f32 %v5986_v60, %v5928_v58  ;;  %v5000_v15 = vpop.f32.mrf.mxu2  ;;  %v5058_v6 = vpop.f32.mrf.mxu3  ;;  %v9736_v58 = vld [vmem:[%s13598_s5 + $0x1a4] sm:$0xf] }
 0x635   : > { %v5001_v7 = vadd.f32 %v5000_v15, %v12623_v33  ;;  %6149 = vmatmul.bf16.gmra.mxu0 %v11961_v20  ;;  %v5259_v22 = vadd.f32 %v12682_v16, %v5179_v61  ;;  %v5260_v27 = vadd.f32 %v12684_v36, %v5180_v13  ;;  %v9720_v20 = vld [vmem:[%s13598_s5 + $0x124] sm:$0xf] }
 0x636   : > { %6207 = vmatmul.bf16.gmra.mxu1 %v11963_v47  ;;  %v9126_v47 = vld [vmem:[%s13598_s5 + $0x128] sm:$0xf0] }
 0x637   : > { %v5059_v41 = vadd.f32 %v5058_v6, %v5001_v7  ;;  %v5449_v56 = vmax.f32 %v5259_v22, 0.0  ;;  %v5450_v35 = vmax.f32 %v5260_v27, 0.0  ;;  %v9129_v60 = vor.u32 %v9720_v20, %v9126_v47 }
 0x638   : > { %v9193_v6 = vor.u32 %v9736_v58, %v9190_v54 }
 0x639   : > { %v5102_v21 = vpack.c.bf16 %v5059_v41, %v14327_v2  ;;  %v12940_v17 = vpack.c.bf16 %v5449_v56, %v5445_v38  ;;  %v12942_v49 = vpack.c.bf16 %v5450_v35, %v5446_v62  ;;  %6257 = vmatpush.bf16.msra.mxu2 %v9129_v60  ;;  %v14328_v38 = vld [vmem:[#allocation35_spill] sm:$0xff] }
 0x63a   : > { %v5930_v33 = vpop.f32.mrf.mxu0  ;;  %6315 = vmatpush.bf16.msra.mxu3 %v9193_v6 }
 0x63b   : > { %v5988_v1 = vpop.f32.mrf.mxu1  ;;  %v5183_v7 = vunpack.c.l.bf16 %v5102_v21  ;;  %v5184_v22 = vunpack.c.h.bf16 %v5102_v21 }
 0x63c   : > { %v12953_v44 = vadd.f32 %v5988_v1, %v5930_v33  ;;  %v5002_v61 = vpop.f32.mrf.mxu2  ;;  %v5060_v13 = vpop.f32.mrf.mxu3 }
 0x63d   : > { %v5003_v15 = vadd.f32 %v5002_v61, %v12643_v63  ;;  %v5263_v62 = vadd.f32 %v12682_v16, %v5183_v7  ;;  %v5264_v63 = vadd.f32 %v12684_v36, %v5184_v22  ;;  %v14329_v7 = vld [vmem:[#allocation30_spill] sm:$0xff] }
 0x63f   : > { %v5061_v27 = vadd.f32 %v5060_v13, %v5003_v15  ;;  %v5453_v13 = vmax.f32 %v5263_v62, 0.0  ;;  %v5454_v15 = vmax.f32 %v5264_v63, 0.0  ;;  %v9182_v63 = vld [vmem:[%s13598_s5 + $0x198] sm:$0xf0] }
 0x641   : > { %v5104_v41 = vpack.c.bf16 %v5061_v27, %v14328_v38  ;;  %6053 = vmatmul.bf16.gmra.mxu2 %v12940_v17  ;;  %6111 = vmatmul.bf16.gmra.mxu3 %v12942_v49 }
 0x642   : > { %v5933_v56 = vpop.f32.mrf.mxu0 }
 0x643   : > { %v5187_v35 = vunpack.c.l.bf16 %v5104_v41  ;;  %v5188_v2 = vunpack.c.h.bf16 %v5104_v41  ;;  %v5991_v33 = vpop.f32.mrf.mxu1 }
 0x644   : > { %v12964_v1 = vadd.f32 %v5991_v33, %v5933_v56  ;;  %v5005_v20 = vpop.f32.mrf.mxu2  ;;  %v5063_v21 = vpop.f32.mrf.mxu3  ;;  %v9734_v33 = vld [vmem:[%s13598_s5 + $0x194] sm:$0xf] }
 0x645   : > { %v5006_v47 = vadd.f32 %v5005_v20, %v12666_v39  ;;  %6154 = vmatmul.bf16.gmra.mxu0 %v11986_v57  ;;  %v5267_v58 = vadd.f32 %v12682_v16, %v5187_v35  ;;  %v5268_v61 = vadd.f32 %v12684_v36, %v5188_v2  ;;  %v9718_v57 = vld [vmem:[%s13598_s5 + $0x114] sm:$0xf] }
 0x646   : > { %6212 = vmatmul.bf16.gmra.mxu1 %v11988_v50  ;;  %v9118_v50 = vld [vmem:[%s13598_s5 + $0x118] sm:$0xf0] }
 0x647   : > { %v5064_v60 = vadd.f32 %v5063_v21, %v5006_v47  ;;  %v5457_v54 = vmax.f32 %v5267_v58, 0.0  ;;  %v5458_v6 = vmax.f32 %v5268_v61, 0.0  ;;  %v9121_v2 = vor.u32 %v9718_v57, %v9118_v50 }
 0x648   : > { %v9185_v21 = vor.u32 %v9734_v33, %v9182_v63 }
 0x649   : > { %v5106_v22 = vpack.c.bf16 %v5064_v60, %v14329_v7  ;;  %v12972_v27 = vpack.c.bf16 %v5457_v54, %v5453_v13  ;;  %v12974_v38 = vpack.c.bf16 %v5458_v6, %v5454_v15  ;;  %6258 = vmatpush.bf16.msra.mxu2 %v9121_v2  ;;  %v14330_v13 = vld [vmem:[#allocation29_spill] sm:$0xff] }
 0x64a   : > { %v5935_v39 = vpop.f32.mrf.mxu0  ;;  %6316 = vmatpush.bf16.msra.mxu3 %v9185_v21 }
 0x64b   : > { %v5993_v41 = vpop.f32.mrf.mxu1  ;;  %v5191_v47 = vunpack.c.l.bf16 %v5106_v22  ;;  %v5192_v58 = vunpack.c.h.bf16 %v5106_v22 }
 0x64c   : > { %v12982_v56 = vadd.f32 %v5993_v41, %v5935_v39  ;;  %v5007_v62 = vpop.f32.mrf.mxu2  ;;  %v5065_v35 = vpop.f32.mrf.mxu3 }
 0x64d   : > { %v5008_v20 = vadd.f32 %v5007_v62, %v12679_v18  ;;  %v5271_v15 = vadd.f32 %v12682_v16, %v5191_v47  ;;  %v5272_v18 = vadd.f32 %v12684_v36, %v5192_v58  ;;  %v14331_v47 = vld [vmem:[#allocation40_spill] sm:$0xff] }
 0x64f   : > { %v5066_v61 = vadd.f32 %v5065_v35, %v5008_v20  ;;  %v5461_v2 = vmax.f32 %v5271_v15, 0.0  ;;  %v5462_v20 = vmax.f32 %v5272_v18, 0.0  ;;  %v9716_v18 = vld [vmem:[%s13598_s5 + $0x104] sm:$0xf] }
 0x651   : > { %v5108_v60 = vpack.c.bf16 %v5066_v61, %v14330_v13  ;;  %6058 = vmatmul.bf16.gmra.mxu2 %v12972_v27  ;;  %6116 = vmatmul.bf16.gmra.mxu3 %v12974_v38 }
 0x652   : > { %v5938_v54 = vpop.f32.mrf.mxu0 }
 0x653   : > { %v5195_v6 = vunpack.c.l.bf16 %v5108_v60  ;;  %v5196_v7 = vunpack.c.h.bf16 %v5108_v60  ;;  %v5996_v39 = vpop.f32.mrf.mxu1 }
 0x654   : > { %v12996_v41 = vadd.f32 %v5996_v39, %v5938_v54  ;;  %v5010_v57 = vpop.f32.mrf.mxu2  ;;  %v5068_v22 = vpop.f32.mrf.mxu3 }
 0x655   : > { %v5011_v50 = vadd.f32 %v5010_v57, %v12706_v25  ;;  %6159 = vmatmul.bf16.gmra.mxu0 %v12014_v48  ;;  %v5275_v62 = vadd.f32 %v12682_v16, %v5195_v6  ;;  %v5276_v35 = vadd.f32 %v12684_v36, %v5196_v7  ;;  %v9110_v57 = vld [vmem:[%s13598_s5 + $0x108] sm:$0xf0] }
 0x656   : > { %6217 = vmatmul.bf16.gmra.mxu1 %v12016_v12 }
 0x657   : > { %v5069_v33 = vadd.f32 %v5068_v22, %v5011_v50  ;;  %v5465_v63 = vmax.f32 %v5275_v62, 0.0  ;;  %v5466_v21 = vmax.f32 %v5276_v35, 0.0  ;;  %v9113_v22 = vor.u32 %v9716_v18, %v9110_v57  ;;  %v9732_v50 = vld [vmem:[%s13598_s5 + $0x184] sm:$0xf]  ;;  %v14332_v62 = vld [vmem:[#allocation45_spill] sm:$0xff] }
 0x659   : > { %v5110_v58 = vpack.c.bf16 %v5069_v33, %v14331_v47  ;;  %v13004_v61 = vpack.c.bf16 %v5465_v63, %v5461_v2  ;;  %v13006_v13 = vpack.c.bf16 %v5466_v21, %v5462_v20  ;;  %6259 = vmatpush.bf16.msra.mxu2 %v9113_v22 }
 0x65a   : > { %v5940_v25 = vpop.f32.mrf.mxu0 }
 0x65b   : > { %v5998_v60 = vpop.f32.mrf.mxu1  ;;  %v5199_v12 = vunpack.c.l.bf16 %v5110_v58  ;;  %v5200_v15 = vunpack.c.h.bf16 %v5110_v58 }
 0x65c   : > { %v13008_v48 = vadd.f32 %v5998_v60, %v5940_v25  ;;  %v5012_v54 = vpop.f32.mrf.mxu2  ;;  %v5070_v6 = vpop.f32.mrf.mxu3 }
 0x65d   : > { %v5013_v7 = vadd.f32 %v5012_v54, %v12729_v8  ;;  %v9174_v8 = vld [vmem:[%s13598_s5 + $0x188] sm:$0xf0]  ;;  %v5279_v63 = vadd.f32 %v12682_v16, %v5199_v12  ;;  %v5280_v58 = vadd.f32 %v12684_v36, %v5200_v15 }
 0x65e   : > { %v9177_v2 = vor.u32 %v9732_v50, %v9174_v8  ;;  %v14333_v50 = vld [vmem:[#allocation36_spill] sm:$0xff] }
 0x65f   : > { %v5071_v39 = vadd.f32 %v5070_v6, %v5013_v7  ;;  %v5469_v12 = vmax.f32 %v5279_v63, 0.0  ;;  %v5470_v22 = vmax.f32 %v5280_v58, 0.0  ;;  %v9763_v63 = vld [vmem:[%s13600_s7 + $0x78] sm:$0xff] }
 0x660   : > { %6317 = vmatpush.bf16.msra.mxu3 %v9177_v2  ;;  %6777 = vmatpush.bf16.msra.mxu1 %v9763_v63 }
 0x661   : > { %v5112_v35 = vpack.c.bf16 %v5071_v39, %v14332_v62  ;;  %6063 = vmatmul.bf16.gmra.mxu2 %v13004_v61  ;;  %6121 = vmatmul.bf16.gmra.mxu3 %v13006_v13 }
 0x662   : > { %v5943_v33 = vpop.f32.mrf.mxu0 }
 0x663   : > { %v5203_v20 = vunpack.c.l.bf16 %v5112_v35  ;;  %v5204_v21 = vunpack.c.h.bf16 %v5112_v35  ;;  %v6001_v47 = vpop.f32.mrf.mxu1 }
 0x664   : > { %v13028_v25 = vadd.f32 %v6001_v47, %v5943_v33  ;;  %v5015_v60 = vpop.f32.mrf.mxu2  ;;  %v5073_v54 = vpop.f32.mrf.mxu3 }
 0x665   : > { %v5016_v6 = vadd.f32 %v5015_v60, %v12756_v30  ;;  %6164 = vmatmul.bf16.gmra.mxu0 %v14306_v52  ;;  %v5283_v7 = vadd.f32 %v12682_v16, %v5203_v20  ;;  %v5284_v39 = vadd.f32 %v12684_v36, %v5204_v21 }
 0x666   : > { %6222 = vmatmul.bf16.gmra.mxu1 %v14307_v4  ;;  %v9755_v4 = vld [vmem:[%s13600_s7 + $0x38] sm:$0xff] }
 0x667   : > { %v5074_v18 = vadd.f32 %v5073_v54, %v5016_v6  ;;  %v5473_v57 = vmax.f32 %v5283_v7, 0.0  ;;  %v5474_v15 = vmax.f32 %v5284_v39, 0.0  ;;  %6719 = vmatpush.bf16.msra.mxu0 %v9755_v4 }
 0x669   : > { %v5114_v8 = vpack.c.bf16 %v5074_v18, %v14333_v50  ;;  %v13036_v62 = vpack.c.bf16 %v5473_v57, %v5469_v12  ;;  %v13038_v35 = vpack.c.bf16 %v5474_v15, %v5470_v22 }
 0x66a   : > { %v5945_v30 = vpop.f32.mrf.mxu0 }
 0x66b   : > { %v6003_v2 = vpop.f32.mrf.mxu1  ;;  %v5207_v47 = vunpack.c.l.bf16 %v5114_v8  ;;  %v5208_v58 = vunpack.c.h.bf16 %v5114_v8 }
 0x66c   : > { %v13040_v52 = vadd.f32 %v6003_v2, %v5945_v30  ;;  %v5017_v33 = vpop.f32.mrf.mxu2  ;;  %v5075_v20 = vpop.f32.mrf.mxu3 }
 0x66d   : > { %v5287_v18 = vadd.f32 %v12682_v16, %v5207_v47  ;;  %v5288_v57 = vadd.f32 %v12684_v36, %v5208_v58  ;;  %v9754_v16 = vld [vmem:[%s13600_s7 + $0x30] sm:$0xff] }
 0x66e   : > { %v9762_v36 = vld [vmem:[%s13600_s7 + $0x70] sm:$0xff]  ;;  %6720 = vmatpush.bf16.msra.mxu0 %v9754_v16 }
 0x66f   : > { %v5477_v50 = vmax.f32 %v5287_v18, 0.0  ;;  %v5478_v8 = vmax.f32 %v5288_v57, 0.0  ;;  %6778 = vmatpush.bf16.msra.mxu1 %v9762_v36 }
 0x671   : > { %6068 = vmatmul.bf16.gmra.mxu2 %v13036_v62  ;;  %6126 = vmatmul.bf16.gmra.mxu3 %v13038_v35 }
 0x672   : > { %v5948_v21 = vpop.f32.mrf.mxu0 }
 0x673   : > { %v6006_v60 = vpop.f32.mrf.mxu1 }
 0x674   : > { %v13050_v54 = vadd.f32 %v6006_v60, %v5948_v21  ;;  %v6029_v6 = vpop.f32.mrf.mxu2  ;;  %v6087_v7 = vpop.f32.mrf.mxu3 }
 0x675   : > { %v6030_v39 = vadd.f32 %v6029_v6, %v12825_v11  ;;  %6169 = vmatmul.bf16.gmra.mxu0 %v14308_v9  ;;  %v13064_v9 = vpack.c.bf16 %v5477_v50, %v5477_v50 }
 0x676   : > { %6227 = vmatmul.bf16.gmra.mxu1 %v14309_v43  ;;  %v13066_v43 = vpack.c.bf16 %v5478_v8, %v5478_v8  ;;  %v9753_v8 = vld [vmem:[%s13600_s7 + $0x28] sm:$0xff] }
 0x677   : > { %v13055_v12 = vadd.f32 %v6087_v7, %v6030_v39  ;;  %6721 = vmatpush.bf16.msra.mxu0 %v9753_v8 }
 0x67a   : > { %v5950_v22 = vpop.f32.mrf.mxu0 }
 0x67b   : > { %v6008_v15 = vpop.f32.mrf.mxu1 }
 0x67c   : > { %v13059_v30 = vadd.f32 %v6008_v15, %v5950_v22  ;;  %v6031_v2 = vpop.f32.mrf.mxu2  ;;  %v6089_v33 = vpop.f32.mrf.mxu3 }
 0x67d   : > { %v6032_v11 = vadd.f32 %v6031_v2, %v12855_v45 }
 0x67f   : > { %v13062_v20 = vadd.f32 %v6089_v33, %v6032_v11 }
 0x681   : > { %6073 = vmatmul.bf16.gmra.mxu2 %v13064_v9  ;;  %6131 = vmatmul.bf16.gmra.mxu3 %v13066_v43 }
 0x682   : > { %v5953_v4 = vpop.f32.mrf.mxu0 }
 0x683   : > { %v6011_v45 = vpop.f32.mrf.mxu1 }
 0x684   : > { %v13076_v63 = vadd.f32 %v6011_v45, %v5953_v4  ;;  %v6034_v21 = vpop.f32.mrf.mxu2  ;;  %v6092_v47 = vpop.f32.mrf.mxu3 }
 0x685   : > { %v6035_v58 = vadd.f32 %v6034_v21, %v12875_v19  ;;  %6174 = vmatmul.bf16.gmra.mxu0 %v14310_v32 }
 0x686   : > { %6232 = vmatmul.bf16.gmra.mxu1 %v14311_v14 }
 0x687   : > { %v13081_v60 = vadd.f32 %v6092_v47, %v6035_v58  ;;  %v14334_v58 = vld [vmem:[#allocation10_spill] sm:$0xff] }
 0x68a   : > { %v13083_v6 = vpop.f32.mrf.mxu0 }
 0x68b   : > { %v13085_v7 = vpop.f32.mrf.mxu1 }
 0x68c   : > { %v6036_v39 = vpop.f32.mrf.mxu2  ;;  %v6094_v18 = vpop.f32.mrf.mxu3 }
 0x68d   : > { %v6037_v57 = vadd.f32 %v6036_v39, %v12892_v53  ;;  %v9761_v53 = vld [vmem:[%s13600_s7 + $0x68] sm:$0xff] }
 0x68e   : > { %6779 = vmatpush.bf16.msra.mxu1 %v9761_v53 }
 0x68f   : > { %v13088_v22 = vadd.f32 %v6094_v18, %v6037_v57 }
 0x691   : > { %6260 = vmatmul.bf16.vlgmr.msra.gmra.mxu2 %v12711_v31  ;;  %6318 = vmatmul.bf16.vlgmr.msra.gmra.mxu3 %v12713_v55 }
 0x692   : > { %v5958_v19 = vpop.f32.mrf.mxu0 }
 0x693   : > { %v6016_v32 = vpop.f32.mrf.mxu1 }
 0x694   : > { %v13092_v15 = vadd.f32 %v6016_v32, %v5958_v19  ;;  %v6039_v14 = vpop.f32.mrf.mxu2  ;;  %v6097_v50 = vpop.f32.mrf.mxu3 }
 0x695   : > { %v6040_v2 = vadd.f32 %v6039_v14, %v12906_v40  ;;  %6179 = vmatmul.bf16.gmra.mxu0 %v14314_v24 }
 0x696   : > { %6237 = vmatmul.bf16.gmra.mxu1 %v14315_v28 }
 0x697   : > { %v13103_v31 = vadd.f32 %v6097_v50, %v6040_v2 }
 0x69a   : > { %v5960_v55 = vpop.f32.mrf.mxu0 }
 0x69b   : > { %v6018_v33 = vpop.f32.mrf.mxu1 }
 0x69c   : > { %v6041_v11 = vpop.f32.mrf.mxu2  ;;  %v6099_v16 = vpop.f32.mrf.mxu3 }
 0x69d   : > { %v6042_v36 = vadd.f32 %v6041_v11, %v12924_v37  ;;  %v9751_v11 = vld [vmem:[%s13600_s7 + $0x18] sm:$0xff] }
 0x69f   : > { %v13106_v4 = vadd.f32 %v6099_v16, %v6042_v36 }
 0x6a1   : > { %6265 = vmatmul.bf16.gmra.mxu2 %v12770_v42  ;;  %6323 = vmatmul.bf16.gmra.mxu3 %v12772_v51  ;;  %v9752_v42 = vld [vmem:[%s13600_s7 + $0x20] sm:$0xff] }
 0x6a2   : > { %v6145_v40 = vpop.f32.mrf.mxu0  ;;  %v9760_v51 = vld [vmem:[%s13600_s7 + $0x60] sm:$0xff]  ;;  %6722 = vmatpush.bf16.msra.mxu0 %v9752_v42 }
 0x6a3   : > { %v6203_v24 = vpop.f32.mrf.mxu1  ;;  %6780 = vmatpush.bf16.msra.mxu1 %v9760_v51 }
 0x6a4   : > { %v13110_v45 = vadd.f32 %v6203_v24, %v6145_v40  ;;  %v6044_v28 = vpop.f32.mrf.mxu2  ;;  %v6102_v21 = vpop.f32.mrf.mxu3 }
 0x6a5   : > { %v6045_v47 = vadd.f32 %v6044_v28, %v12932_v34  ;;  %6184 = vmatmul.bf16.gmra.mxu0 %v14317_v59 }
 0x6a6   : > { %6242 = vmatmul.bf16.gmra.mxu1 %v14334_v58  ;;  %6723 = vmatpush.bf16.msra.mxu0 %v9751_v11 }
 0x6a7   : > { %v13115_v39 = vadd.f32 %v6102_v21, %v6045_v47 }
 0x6aa   : > { %v13123_v37 = vpop.f32.mrf.mxu0 }
 0x6ab   : > { %v13125_v18 = vpop.f32.mrf.mxu1 }
 0x6ac   : > { %v6046_v34 = vpop.f32.mrf.mxu2  ;;  %v6104_v59 = vpop.f32.mrf.mxu3 }
 0x6ad   : > { %v6047_v57 = vadd.f32 %v6046_v34, %v12953_v44 }
 0x6af   : > { %v13128_v19 = vadd.f32 %v6104_v59, %v6047_v57 }
 0x6b1   : > { %6270 = vmatmul.bf16.gmra.mxu2 %v12850_v10  ;;  %6328 = vmatmul.bf16.gmra.mxu3 %v12852_v3 }
 0x6b2   : > { %v6150_v32 = vpop.f32.mrf.mxu0 }
 0x6b3   : > { %v6208_v14 = vpop.f32.mrf.mxu1 }
 0x6b4   : > { %v13132_v50 = vadd.f32 %v6208_v14, %v6150_v32  ;;  %v6049_v8 = vpop.f32.mrf.mxu2  ;;  %v6107_v53 = vpop.f32.mrf.mxu3 }
 0x6b5   : > { %v6050_v2 = vadd.f32 %v6049_v8, %v12964_v1  ;;  %6189 = vmatmul.bf16.gmra.mxu0 %v12863_v23  ;;  %v9759_v1 = vld [vmem:[%s13600_s7 + $0x58] sm:$0xff] }
 0x6b6   : > { %6247 = vmatmul.bf16.gmra.mxu1 %v12877_v5 }
 0x6b7   : > { %v13137_v55 = vadd.f32 %v6107_v53, %v6050_v2  ;;  %6781 = vmatpush.bf16.msra.mxu1 %v9759_v1 }
 0x6ba   : > { %v13139_v44 = vpop.f32.mrf.mxu0 }
 0x6bb   : > { %v13141_v33 = vpop.f32.mrf.mxu1 }
 0x6bc   : > { %v6051_v10 = vpop.f32.mrf.mxu2  ;;  %v6109_v3 = vpop.f32.mrf.mxu3 }
 0x6bd   : > { %v6052_v23 = vadd.f32 %v6051_v10, %v12982_v56 }
 0x6bf   : > { %v13150_v5 = vadd.f32 %v6109_v3, %v6052_v23 }
 0x6c1   : > { %6275 = vmatmul.bf16.gmra.mxu2 %v12888_v29  ;;  %6333 = vmatmul.bf16.gmra.mxu3 %v12890_v0  ;;  %v9750_v0 = vld [vmem:[%s13600_s7 + $0x10] sm:$0xff] }
 0x6c2   : > { %v6155_v16 = vpop.f32.mrf.mxu0  ;;  %6724 = vmatpush.bf16.msra.mxu0 %v9750_v0 }
 0x6c3   : > { %v6213_v36 = vpop.f32.mrf.mxu1 }
 0x6c4   : > { %v13154_v40 = vadd.f32 %v6213_v36, %v6155_v16  ;;  %v6054_v24 = vpop.f32.mrf.mxu2  ;;  %v6112_v28 = vpop.f32.mrf.mxu3 }
 0x6c5   : > { %v6055_v21 = vadd.f32 %v6054_v24, %v12996_v41  ;;  %v9758_v41 = vld [vmem:[%s13600_s7 + $0x50] sm:$0xff]  ;;  %v9749_v24 = vld [vmem:[%s13600_s7 + $0x8] sm:$0xff] }
 0x6c6   : > { %6782 = vmatpush.bf16.msra.mxu1 %v9758_v41  ;;  %6725 = vmatpush.bf16.msra.mxu0 %v9749_v24 }
 0x6c7   : > { %v13157_v47 = vadd.f32 %v6112_v28, %v6055_v21 }
 0x6ca   : > { %v13159_v58 = vpop.f32.mrf.mxu0 }
 0x6cb   : > { %v13161_v56 = vpop.f32.mrf.mxu1 }
 0x6cc   : > { %v6056_v42 = vpop.f32.mrf.mxu2  ;;  %v6114_v51 = vpop.f32.mrf.mxu3 }
 0x6cd   : > { %v6057_v29 = vadd.f32 %v6056_v42, %v13008_v48 }
 0x6cf   : > { %v13164_v34 = vadd.f32 %v6114_v51, %v6057_v29 }
 0x6d1   : > { %6280 = vmatmul.bf16.gmra.mxu2 %v12920_v26  ;;  %6338 = vmatmul.bf16.gmra.mxu3 %v12922_v46 }
 0x6d2   : > { %v6160_v59 = vpop.f32.mrf.mxu0 }
 0x6d3   : > { %v6218_v57 = vpop.f32.mrf.mxu1 }
 0x6d4   : > { %v13174_v32 = vadd.f32 %v6218_v57, %v6160_v59  ;;  %v6059_v48 = vpop.f32.mrf.mxu2  ;;  %v6117_v14 = vpop.f32.mrf.mxu3 }
 0x6d5   : > { %v6060_v8 = vadd.f32 %v6059_v48, %v13028_v25 }
 0x6d7   : > { %v13177_v53 = vadd.f32 %v6117_v14, %v6060_v8 }
 0x6da   : > { %v13179_v2 = vpop.f32.mrf.mxu0 }
 0x6db   : > { %v13181_v10 = vpop.f32.mrf.mxu1 }
 0x6dc   : > { %v6061_v3 = vpop.f32.mrf.mxu2  ;;  %v6119_v26 = vpop.f32.mrf.mxu3 }
 0x6dd   : > { %v6062_v46 = vadd.f32 %v6061_v3, %v13040_v52  ;;  %v9757_v52 = vld [vmem:[%s13600_s7 + $0x48] sm:$0xff] }
 0x6de   : > { %6783 = vmatpush.bf16.msra.mxu1 %v9757_v52 }
 0x6df   : > { %v13184_v11 = vadd.f32 %v6119_v26, %v6062_v46 }
 0x6e1   : > { %6285 = vmatmul.bf16.gmra.mxu2 %v12940_v17  ;;  %6343 = vmatmul.bf16.gmra.mxu3 %v12942_v49 }
 0x6e2   : > { %v6165_v1 = vpop.f32.mrf.mxu0 }
 0x6e3   : > { %v6223_v23 = vpop.f32.mrf.mxu1 }
 0x6e4   : > { %v13188_v16 = vadd.f32 %v6223_v23, %v6165_v1  ;;  %v6064_v25 = vpop.f32.mrf.mxu2  ;;  %v6122_v36 = vpop.f32.mrf.mxu3 }
 0x6e5   : > { %v6065_v28 = vadd.f32 %v6064_v25, %v13050_v54 }
 0x6e7   : > { %v13197_v17 = vadd.f32 %v6122_v36, %v6065_v28  ;;  %v9771_v28 = vld [vmem:[%s13602_s9 + $0x38] sm:$0xff] }
 0x6e8   : > { %7029 = vmatpush.bf16.msrb.mxu2 %v9771_v28 }
 0x6ea   : > { %v13199_v49 = vpop.f32.mrf.mxu0 }
 0x6eb   : > { %v13201_v21 = vpop.f32.mrf.mxu1 }
 0x6ec   : > { %v6066_v42 = vpop.f32.mrf.mxu2  ;;  %v6124_v51 = vpop.f32.mrf.mxu3 }
 0x6ed   : > { %v6067_v29 = vadd.f32 %v6066_v42, %v13059_v30 }
 0x6ef   : > { %v13204_v0 = vadd.f32 %v6124_v51, %v6067_v29 }
 0x6f1   : > { %6290 = vmatmul.bf16.gmra.mxu2 %v12972_v27  ;;  %6348 = vmatmul.bf16.gmra.mxu3 %v12974_v38  ;;  %v9748_v27 = vld [vmem:[%s13600_s7] sm:$0xff] }
 0x6f2   : > { %v6170_v41 = vpop.f32.mrf.mxu0  ;;  %v9756_v38 = vld [vmem:[%s13600_s7 + $0x40] sm:$0xff]  ;;  %6726 = vmatpush.bf16.msra.mxu0 %v9748_v27  ;;  %v6390_v27 = vld [vmem:[#allocation1 + $0x9] sm:$0xff] }
 0x6f3   : > { %v6228_v54 = vpop.f32.mrf.mxu1  ;;  %6784 = vmatpush.bf16.msra.mxu1 %v9756_v38 }
 0x6f4   : > { %v13208_v59 = vadd.f32 %v6228_v54, %v6170_v41  ;;  %v6069_v57 = vpop.f32.mrf.mxu2  ;;  %v6127_v48 = vpop.f32.mrf.mxu3  ;;  %v9770_v54 = vld [vmem:[%s13602_s9 + $0x30] sm:$0xff] }
 0x6f5   : > { %v6070_v14 = vadd.f32 %v6069_v57, %v13076_v63  ;;  %7030 = vmatpush.bf16.msrb.mxu2 %v9770_v54 }
 0x6f7   : > { %v13211_v8 = vadd.f32 %v6127_v48, %v6070_v14 }
 0x6fa   : > { %v13213_v3 = vpop.f32.mrf.mxu0 }
 0x6fb   : > { %v13215_v26 = vpop.f32.mrf.mxu1 }
 0x6fc   : > { %v13217_v30 = vpop.f32.mrf.mxu2  ;;  %v13219_v46 = vpop.f32.mrf.mxu3 }
 0x701   : > { %6295 = vmatmul.bf16.gmra.mxu2 %v13004_v61  ;;  %6353 = vmatmul.bf16.gmra.mxu3 %v13006_v13 }
 0x702   : > { %v6175_v63 = vpop.f32.mrf.mxu0 }
 0x703   : > { %v6233_v1 = vpop.f32.mrf.mxu1 }
 0x704   : > { %v13229_v23 = vadd.f32 %v6233_v1, %v6175_v63  ;;  %v6074_v25 = vpop.f32.mrf.mxu2  ;;  %v6132_v36 = vpop.f32.mrf.mxu3 }
 0x705   : > { %v6075_v24 = vadd.f32 %v6074_v25, %v13092_v15  ;;  %v6389_v15 = vld [vmem:[#allocation1] sm:$0xff] }
 0x706   : > { %v6391_v63 = vpack.i.b16 %v6389_v15, %v6389_v15 }
 0x707   : > { %v13232_v52 = vadd.f32 %v6132_v36, %v6075_v24  ;;  %v6206_v24 = vadd.f32 %v13125_v18, %v13123_v37 }
 0x708   : > { %v6393_v25 = vperm.slane %v6391_v63, 0 }
 0x709   : > { %14335 = vst [vmem:[#allocation59_spill] sm:$0xff] %v13232_v52 }
 0x70a   : > { %v13237_v42 = vpop.f32.mrf.mxu0 }
 0x70b   : > { %v13239_v61 = vpop.f32.mrf.mxu1 }
 0x70c   : > { %v6076_v13 = vpop.f32.mrf.mxu2  ;;  %v6134_v51 = vpop.f32.mrf.mxu3 }
 0x711   : > { %6300 = vmatmul.bf16.gmra.mxu2 %v13036_v62  ;;  %6358 = vmatmul.bf16.gmra.mxu3 %v13038_v35  ;;  %v6394_v62 = vpack.i.b16 %v6390_v27, %v6390_v27 }
 0x712   : > { %v6180_v29 = vpop.f32.mrf.mxu0 }
 0x713   : > { %v6238_v41 = vpop.f32.mrf.mxu1  ;;  %v6396_v28 = vperm.slane %v6394_v62, 0 }
 0x714   : > { %v13246_v57 = vadd.f32 %v6238_v41, %v6180_v29  ;;  %v6261_v48 = vpop.f32.mrf.mxu2  ;;  %v6319_v14 = vpop.f32.mrf.mxu3 }
 0x715   : > { %v6262_v38 = vadd.f32 %v6261_v48, %v13110_v45  ;;  %v13256_v45 = vunpack.c.l.bf16 %v6393_v25  ;;  %v13258_v54 = vunpack.c.l.bf16 %v6396_v28 }
 0x717   : > { %v6320_v1 = vadd.f32 %v6319_v14, %v6262_v38 }
 0x719   : > { %v6368_v35 = vpack.c.bf16 %v6320_v1, %v13055_v12 }
 0x71a   : > { %v13250_v36 = vpop.f32.mrf.mxu0 }
 0x71b   : > { %v13254_v13 = vpop.f32.mrf.mxu1  ;;  %v6397_v52 = vunpack.c.l.bf16 %v6368_v35  ;;  %v6398_v15 = vunpack.c.h.bf16 %v6368_v35 }
 0x71c   : > { %v6263_v51 = vpop.f32.mrf.mxu2  ;;  %v6321_v29 = vpop.f32.mrf.mxu3 }
 0x71d   : > { %v6264_v41 = vadd.f32 %v6263_v51, %v6206_v24  ;;  %v6437_v37 = vadd.f32 %v13256_v45, %v6397_v52  ;;  %v6438_v14 = vadd.f32 %v13258_v54, %v6398_v15 }
 0x71f   : > { %v6322_v48 = vadd.f32 %v6321_v29, %v6264_v41  ;;  %v6532_v24 = vmax.f32 %v6437_v37, 0.0 }
 0x721   : > { %v6369_v12 = vpack.c.bf16 %v6322_v48, %v13062_v20  ;;  %6305 = vmatmul.bf16.gmra.mxu2 %v13064_v9  ;;  %6363 = vmatmul.bf16.gmra.mxu3 %v13066_v43  ;;  %v6533_v43 = vmax.f32 %v6438_v14, 0.0 }
 0x722   : > { %v6185_v18 = vpop.f32.mrf.mxu0 }
 0x723   : > { %v6399_v27 = vunpack.c.l.bf16 %v6369_v12  ;;  %v6400_v38 = vunpack.c.h.bf16 %v6369_v12  ;;  %v6243_v63 = vpop.f32.mrf.mxu1  ;;  %v6211_v12 = vadd.f32 %v13141_v33, %v13139_v44 }
 0x724   : > { %v13265_v1 = vadd.f32 %v6243_v63, %v6185_v18  ;;  %v6266_v62 = vpop.f32.mrf.mxu2  ;;  %v6324_v35 = vpop.f32.mrf.mxu3 }
 0x725   : > { %v6439_v25 = vadd.f32 %v13256_v45, %v6399_v27  ;;  %v6440_v20 = vadd.f32 %v13258_v54, %v6400_v38  ;;  %v6267_v9 = vadd.f32 %v6266_v62, %v13132_v50  ;;  %v9769_v50 = vld [vmem:[%s13602_s9 + $0x28] sm:$0xff] }
 0x726   : > { %7031 = vmatpush.bf16.msrb.mxu2 %v9769_v50 }
 0x727   : > { %v6534_v28 = vmax.f32 %v6439_v25, 0.0  ;;  %v6535_v52 = vmax.f32 %v6440_v20, 0.0  ;;  %v6325_v51 = vadd.f32 %v6324_v35, %v6267_v9 }
 0x729   : > { %v6570_v29 = vpack.c.bf16 %v6534_v28, %v6532_v24  ;;  %v6571_v41 = vpack.c.bf16 %v6535_v52, %v6533_v43  ;;  %v6370_v15 = vpack.c.bf16 %v6325_v51, %v13081_v60 }
 0x72a   : > { %v13271_v48 = vpop.f32.mrf.mxu0 }
 0x72b   : > { %v13275_v18 = vpop.f32.mrf.mxu1  ;;  %6727 = vmatmul.bf16.vlgmr.msra.gmra.mxu0 %v6570_v29  ;;  %6785 = vmatmul.bf16.vlgmr.msra.gmra.mxu1 %v6571_v41  ;;  %v6401_v38 = vunpack.c.l.bf16 %v6370_v15  ;;  %v6402_v63 = vunpack.c.h.bf16 %v6370_v15 }
 0x72c   : > { %v6268_v37 = vpop.f32.mrf.mxu2  ;;  %v6326_v14 = vpop.f32.mrf.mxu3 }
 0x72d   : > { %v6269_v27 = vadd.f32 %v6268_v37, %v6211_v12  ;;  %v6441_v44 = vadd.f32 %v13256_v45, %v6401_v38  ;;  %v6442_v9 = vadd.f32 %v13258_v54, %v6402_v63  ;;  %v6216_v63 = vadd.f32 %v13161_v56, %v13159_v58 }
 0x72f   : > { %v6327_v60 = vadd.f32 %v6326_v14, %v6269_v27  ;;  %v6536_v41 = vmax.f32 %v6441_v44, 0.0  ;;  %v6537_v12 = vmax.f32 %v6442_v9, 0.0 }
 0x731   : > { %v6371_v62 = vpack.c.bf16 %v6327_v60, %v13088_v22 }
 0x732   : > { %v6190_v35 = vpop.f32.mrf.mxu0 }
 0x733   : > { %v6403_v33 = vunpack.c.l.bf16 %v6371_v62  ;;  %v6404_v25 = vunpack.c.h.bf16 %v6371_v62  ;;  %v6248_v20 = vpop.f32.mrf.mxu1 }
 0x734   : > { %v13283_v24 = vadd.f32 %v6248_v20, %v6190_v35  ;;  %v6271_v43 = vpop.f32.mrf.mxu2  ;;  %v6329_v28 = vpop.f32.mrf.mxu3 }
 0x735   : > { %v6272_v52 = vadd.f32 %v6271_v43, %v13154_v40  ;;  %v6443_v51 = vadd.f32 %v13256_v45, %v6403_v33  ;;  %v6444_v29 = vadd.f32 %v13258_v54, %v6404_v25  ;;  %v9768_v40 = vld [vmem:[%s13602_s9 + $0x20] sm:$0xff] }
 0x736   : > { %7032 = vmatpush.bf16.msrb.mxu2 %v9768_v40 }
 0x737   : > { %v6330_v22 = vadd.f32 %v6329_v28, %v6272_v52  ;;  %v6538_v15 = vmax.f32 %v6443_v51, 0.0  ;;  %v6539_v50 = vmax.f32 %v6444_v29, 0.0 }
 0x739   : > { %v6372_v37 = vpack.c.bf16 %v6330_v22, %v13103_v31  ;;  %v6572_v14 = vpack.c.bf16 %v6538_v15, %v6536_v41  ;;  %v6573_v27 = vpack.c.bf16 %v6539_v50, %v6537_v12 }
 0x73a   : > { %v6192_v38 = vpop.f32.mrf.mxu0 }
 0x73b   : > { %v6250_v60 = vpop.f32.mrf.mxu1  ;;  %6732 = vmatmul.bf16.gmra.mxu0 %v6572_v14  ;;  %6790 = vmatmul.bf16.gmra.mxu1 %v6573_v27  ;;  %v6405_v33 = vunpack.c.l.bf16 %v6372_v37  ;;  %v6406_v25 = vunpack.c.h.bf16 %v6372_v37  ;;  %v6221_v38 = vadd.f32 %v13181_v10, %v13179_v2  ;;  %v9767_v2 = vld [vmem:[%s13602_s9 + $0x18] sm:$0xff] }
 0x73c   : > { %v6273_v62 = vpop.f32.mrf.mxu2  ;;  %v6331_v35 = vpop.f32.mrf.mxu3  ;;  %7033 = vmatpush.bf16.msrb.mxu2 %v9767_v2 }
 0x73d   : > { %v6274_v44 = vadd.f32 %v6273_v62, %v6216_v63  ;;  %v6445_v9 = vadd.f32 %v13256_v45, %v6405_v33  ;;  %v6446_v56 = vadd.f32 %v13258_v54, %v6406_v25 }
 0x73f   : > { %v6332_v31 = vadd.f32 %v6331_v35, %v6274_v44  ;;  %v6540_v22 = vmax.f32 %v6445_v9, 0.0  ;;  %v6541_v50 = vmax.f32 %v6446_v56, 0.0 }
 0x741   : > { %v6373_v20 = vpack.c.bf16 %v6332_v31, %v13106_v4 }
 0x743   : > { %v6407_v43 = vunpack.c.l.bf16 %v6373_v20  ;;  %v6408_v58 = vunpack.c.h.bf16 %v6373_v20 }
 0x744   : > { %v6276_v28 = vpop.f32.mrf.mxu2  ;;  %v6334_v52 = vpop.f32.mrf.mxu3 }
 0x745   : > { %v6277_v51 = vadd.f32 %v6276_v28, %v13174_v32  ;;  %v6447_v29 = vadd.f32 %v13256_v45, %v6407_v43  ;;  %v6448_v41 = vadd.f32 %v13258_v54, %v6408_v58 }
 0x747   : > { %v6335_v15 = vadd.f32 %v6334_v52, %v6277_v51  ;;  %v6542_v12 = vmax.f32 %v6447_v29, 0.0  ;;  %v6543_v37 = vmax.f32 %v6448_v41, 0.0 }
 0x749   : > { %v6374_v4 = vpack.c.bf16 %v6335_v15, %v13115_v39  ;;  %v6574_v14 = vpack.c.bf16 %v6542_v12, %v6540_v22  ;;  %v6575_v27 = vpack.c.bf16 %v6543_v37, %v6541_v50  ;;  %v6226_v15 = vadd.f32 %v13201_v21, %v13199_v49  ;;  %v9766_v49 = vld [vmem:[%s13602_s9 + $0x10] sm:$0xff] }
 0x74a   : > { %7034 = vmatpush.bf16.msrb.mxu2 %v9766_v49 }
 0x74b   : > { %6737 = vmatmul.bf16.gmra.mxu0 %v6574_v14  ;;  %6795 = vmatmul.bf16.gmra.mxu1 %v6575_v27  ;;  %v6409_v40 = vunpack.c.l.bf16 %v6374_v4  ;;  %v6410_v62 = vunpack.c.h.bf16 %v6374_v4 }
 0x74c   : > { %v6278_v63 = vpop.f32.mrf.mxu2  ;;  %v6336_v32 = vpop.f32.mrf.mxu3 }
 0x74d   : > { %v6279_v60 = vadd.f32 %v6278_v63, %v6221_v38  ;;  %v6449_v33 = vadd.f32 %v13256_v45, %v6409_v40  ;;  %v6450_v39 = vadd.f32 %v13258_v54, %v6410_v62 }
 0x74f   : > { %v6337_v35 = vadd.f32 %v6336_v32, %v6279_v60  ;;  %v6545_v52 = vmax.f32 %v6450_v39, 0.0 }
 0x751   : > { %v6375_v44 = vpack.c.bf16 %v6337_v35, %v13128_v19  ;;  %v6544_v19 = vmax.f32 %v6449_v33, 0.0 }
 0x753   : > { %v6411_v25 = vunpack.c.l.bf16 %v6375_v44  ;;  %v6412_v31 = vunpack.c.h.bf16 %v6375_v44 }
 0x754   : > { %v6281_v10 = vpop.f32.mrf.mxu2  ;;  %v6339_v20 = vpop.f32.mrf.mxu3 }
 0x755   : > { %v6282_v9 = vadd.f32 %v6281_v10, %v13188_v16  ;;  %v6451_v43 = vadd.f32 %v13256_v45, %v6411_v25  ;;  %v6452_v58 = vadd.f32 %v13258_v54, %v6412_v31 }
 0x757   : > { %v6340_v56 = vadd.f32 %v6339_v20, %v6282_v9  ;;  %v6546_v28 = vmax.f32 %v6451_v43, 0.0  ;;  %v6547_v51 = vmax.f32 %v6452_v58, 0.0  ;;  %v6231_v20 = vadd.f32 %v13215_v26, %v13213_v3 }
 0x759   : > { %v6376_v29 = vpack.c.bf16 %v6340_v56, %v13137_v55  ;;  %v6576_v41 = vpack.c.bf16 %v6546_v28, %v6544_v19  ;;  %v6577_v22 = vpack.c.bf16 %v6547_v51, %v6545_v52 }
 0x75b   : > { %6742 = vmatmul.bf16.gmra.mxu0 %v6576_v41  ;;  %6800 = vmatmul.bf16.gmra.mxu1 %v6577_v22  ;;  %v6413_v37 = vunpack.c.l.bf16 %v6376_v29  ;;  %v6414_v4 = vunpack.c.h.bf16 %v6376_v29 }
 0x75c   : > { %v6283_v16 = vpop.f32.mrf.mxu2  ;;  %v6341_v12 = vpop.f32.mrf.mxu3 }
 0x75d   : > { %v6284_v50 = vadd.f32 %v6283_v16, %v6226_v15  ;;  %v6453_v38 = vadd.f32 %v13256_v45, %v6413_v37  ;;  %v6454_v55 = vadd.f32 %v13258_v54, %v6414_v4 }
 0x75f   : > { %v6342_v14 = vadd.f32 %v6341_v12, %v6284_v50  ;;  %v6549_v25 = vmax.f32 %v6454_v55, 0.0 }
 0x761   : > { %v6377_v27 = vpack.c.bf16 %v6342_v14, %v13150_v5  ;;  %v6548_v5 = vmax.f32 %v6453_v38, 0.0  ;;  %v6236_v38 = vadd.f32 %v13239_v61, %v13237_v42 }
 0x763   : > { %v6415_v63 = vunpack.c.l.bf16 %v6377_v27  ;;  %v6416_v32 = vunpack.c.h.bf16 %v6377_v27 }
 0x764   : > { %v6286_v21 = vpop.f32.mrf.mxu2  ;;  %v6344_v60 = vpop.f32.mrf.mxu3 }
 0x765   : > { %v6287_v40 = vadd.f32 %v6286_v21, %v13208_v59  ;;  %v6455_v62 = vadd.f32 %v13256_v45, %v6415_v63  ;;  %v6456_v35 = vadd.f32 %v13258_v54, %v6416_v32 }
 0x767   : > { %v6345_v44 = vadd.f32 %v6344_v60, %v6287_v40  ;;  %v6550_v33 = vmax.f32 %v6455_v62, 0.0  ;;  %v6551_v31 = vmax.f32 %v6456_v35, 0.0 }
 0x769   : > { %v6378_v39 = vpack.c.bf16 %v6345_v44, %v13157_v47  ;;  %v6578_v2 = vpack.c.bf16 %v6550_v33, %v6548_v5  ;;  %v6579_v10 = vpack.c.bf16 %v6551_v31, %v6549_v25 }
 0x76b   : > { %6747 = vmatmul.bf16.gmra.mxu0 %v6578_v2  ;;  %6805 = vmatmul.bf16.gmra.mxu1 %v6579_v10  ;;  %v6417_v58 = vunpack.c.l.bf16 %v6378_v39  ;;  %v6418_v19 = vunpack.c.h.bf16 %v6378_v39 }
 0x76c   : > { %v6288_v59 = vpop.f32.mrf.mxu2  ;;  %v6346_v9 = vpop.f32.mrf.mxu3 }
 0x76d   : > { %v6289_v43 = vadd.f32 %v6288_v59, %v6231_v20  ;;  %v6457_v52 = vadd.f32 %v13256_v45, %v6417_v58  ;;  %v6458_v47 = vadd.f32 %v13258_v54, %v6418_v19 }
 0x76f   : > { %v6347_v56 = vadd.f32 %v6346_v9, %v6289_v43  ;;  %v6552_v16 = vmax.f32 %v6457_v52, 0.0  ;;  %v6553_v37 = vmax.f32 %v6458_v47, 0.0  ;;  %v6241_v43 = vadd.f32 %v13254_v13, %v13250_v36 }
 0x771   : > { %v6379_v28 = vpack.c.bf16 %v6347_v56, %v13164_v34 }
 0x773   : > { %v6419_v51 = vunpack.c.l.bf16 %v6379_v28  ;;  %v6420_v29 = vunpack.c.h.bf16 %v6379_v28 }
 0x774   : > { %v6291_v41 = vpop.f32.mrf.mxu2  ;;  %v6349_v22 = vpop.f32.mrf.mxu3 }
 0x775   : > { %v6292_v3 = vadd.f32 %v6291_v41, %v13229_v23  ;;  %v6459_v26 = vadd.f32 %v13256_v45, %v6419_v51  ;;  %v6460_v15 = vadd.f32 %v13258_v54, %v6420_v29  ;;  %v9765_v23 = vld [vmem:[%s13602_s9 + $0x8] sm:$0xff]  ;;  %v9764_v29 = vld [vmem:[%s13602_s9] sm:$0xff] }
 0x776   : > { %7035 = vmatpush.bf16.msrb.mxu2 %v9765_v23  ;;  %v9779_v23 = vld [vmem:[%s13604_s11 + $0x38] sm:$0xff] }
 0x777   : > { %v6350_v12 = vadd.f32 %v6349_v22, %v6292_v3  ;;  %v6554_v50 = vmax.f32 %v6459_v26, 0.0  ;;  %v6555_v4 = vmax.f32 %v6460_v15, 0.0  ;;  %7281 = vmatpush.bf16.msrb.mxu3 %v9779_v23 }
 0x779   : > { %v6380_v34 = vpack.c.bf16 %v6350_v12, %v13177_v53  ;;  %v6580_v14 = vpack.c.bf16 %v6554_v50, %v6552_v16  ;;  %v6581_v27 = vpack.c.bf16 %v6555_v4, %v6553_v37  ;;  %v6014_v4 = vadd.f32 %v13085_v7, %v13083_v6 }
 0x77a   : > { %7036 = vmatpush.bf16.msrb.mxu2 %v9764_v29 }
 0x77b   : > { %6752 = vmatmul.bf16.gmra.mxu0 %v6580_v14  ;;  %6810 = vmatmul.bf16.gmra.mxu1 %v6581_v27  ;;  %v6421_v49 = vunpack.c.l.bf16 %v6380_v34  ;;  %v6422_v21 = vunpack.c.h.bf16 %v6380_v34 }
 0x77c   : > { %v6293_v63 = vpop.f32.mrf.mxu2  ;;  %v6351_v32 = vpop.f32.mrf.mxu3 }
 0x77d   : > { %v6294_v55 = vadd.f32 %v6293_v63, %v6236_v38  ;;  %v6461_v40 = vadd.f32 %v13256_v45, %v6421_v49  ;;  %v6462_v42 = vadd.f32 %v13258_v54, %v6422_v21  ;;  %v6072_v38 = vadd.f32 %v13217_v30, %v6014_v4 }
 0x77f   : > { %v6352_v60 = vadd.f32 %v6351_v32, %v6294_v55  ;;  %v6556_v31 = vmax.f32 %v6461_v40, 0.0  ;;  %v6557_v10 = vmax.f32 %v6462_v42, 0.0  ;;  %v6130_v7 = vadd.f32 %v13219_v46, %v6072_v38 }
 0x781   : > { %v6381_v53 = vpack.c.bf16 %v6352_v60, %v13184_v11 }
 0x783   : > { %v6423_v62 = vunpack.c.l.bf16 %v6381_v53  ;;  %v6424_v35 = vunpack.c.h.bf16 %v6381_v53 }
 0x784   : > { %v6296_v61 = vpop.f32.mrf.mxu2  ;;  %v6354_v5 = vpop.f32.mrf.mxu3 }
 0x785   : > { %v6297_v44 = vadd.f32 %v6296_v61, %v13246_v57  ;;  %v6463_v33 = vadd.f32 %v13256_v45, %v6423_v62  ;;  %v6464_v25 = vadd.f32 %v13258_v54, %v6424_v35  ;;  %v6622_v35 = vld [vmem:[%s13601_s8] sm:$0x1] }
 0x787   : > { %v6355_v39 = vadd.f32 %v6354_v5, %v6297_v44  ;;  %v6558_v2 = vmax.f32 %v6463_v33, 0.0  ;;  %v6559_v20 = vmax.f32 %v6464_v25, 0.0 }
 0x789   : > { %v6382_v11 = vpack.c.bf16 %v6355_v39, %v13197_v17  ;;  %v6582_v59 = vpack.c.bf16 %v6558_v2, %v6556_v31  ;;  %v6583_v9 = vpack.c.bf16 %v6559_v20, %v6557_v10  ;;  %v6855_v2 = vpack.i.b16 %v6622_v35, %v6622_v35  ;;  %v14336_v10 = vld [vmem:[#allocation59_spill] sm:$0xff] }
 0x78b   : > { %6757 = vmatmul.bf16.gmra.mxu0 %v6582_v59  ;;  %6815 = vmatmul.bf16.gmra.mxu1 %v6583_v9  ;;  %v6425_v56 = vunpack.c.l.bf16 %v6382_v11  ;;  %v6426_v28 = vunpack.c.h.bf16 %v6382_v11  ;;  %v9778_v9 = vld [vmem:[%s13604_s11 + $0x30] sm:$0xff] }
 0x78c   : > { %v6298_v58 = vpop.f32.mrf.mxu2  ;;  %v6356_v57 = vpop.f32.mrf.mxu3  ;;  %7282 = vmatpush.bf16.msrb.mxu3 %v9778_v9 }
 0x78d   : > { %v6299_v19 = vadd.f32 %v6298_v58, %v6241_v43  ;;  %v6465_v17 = vadd.f32 %v13256_v45, %v6425_v56  ;;  %v6466_v36 = vadd.f32 %v13258_v54, %v6426_v28  ;;  %v6857_v58 = vperm.slane %v6855_v2, 0 }
 0x78f   : > { %v6357_v52 = vadd.f32 %v6356_v57, %v6299_v19  ;;  %v6561_v50 = vmax.f32 %v6466_v36, 0.0 }
 0x791   : > { %v6383_v51 = vpack.c.bf16 %v6357_v52, %v13204_v0  ;;  %v6560_v0 = vmax.f32 %v6465_v17, 0.0 }
 0x793   : > { %v6427_v47 = vunpack.c.l.bf16 %v6383_v51  ;;  %v6428_v41 = vunpack.c.h.bf16 %v6383_v51  ;;  %v13379_v51 = vunpack.c.l.bf16 %v6857_v58 }
 0x794   : > { %v6301_v13 = vpop.f32.mrf.mxu2  ;;  %v6359_v22 = vpop.f32.mrf.mxu3 }
 0x795   : > { %v6302_v3 = vadd.f32 %v6301_v13, %v13265_v1  ;;  %v6467_v26 = vadd.f32 %v13256_v45, %v6427_v47  ;;  %v6468_v15 = vadd.f32 %v13258_v54, %v6428_v41  ;;  %v6246_v1 = vadd.f32 %v13275_v18, %v13271_v48 }
 0x797   : > { %v6360_v16 = vadd.f32 %v6359_v22, %v6302_v3  ;;  %v6562_v12 = vmax.f32 %v6467_v26, 0.0  ;;  %v6563_v37 = vmax.f32 %v6468_v15, 0.0 }
 0x799   : > { %v6384_v34 = vpack.c.bf16 %v6360_v16, %v13211_v8  ;;  %v6584_v14 = vpack.c.bf16 %v6562_v12, %v6560_v0  ;;  %v6585_v27 = vpack.c.bf16 %v6563_v37, %v6561_v50 }
 0x79b   : > { %6762 = vmatmul.bf16.gmra.mxu0 %v6584_v14  ;;  %6820 = vmatmul.bf16.gmra.mxu1 %v6585_v27  ;;  %v6429_v6 = vunpack.c.l.bf16 %v6384_v34  ;;  %v6430_v8 = vunpack.c.h.bf16 %v6384_v34 }
 0x79c   : > { %v6303_v63 = vpop.f32.mrf.mxu2  ;;  %v6361_v32 = vpop.f32.mrf.mxu3 }
 0x79d   : > { %v6304_v55 = vadd.f32 %v6303_v63, %v6246_v1  ;;  %v6469_v30 = vadd.f32 %v13256_v45, %v6429_v6  ;;  %v6470_v18 = vadd.f32 %v13258_v54, %v6430_v8  ;;  %v9777_v63 = vld [vmem:[%s13604_s11 + $0x28] sm:$0xff] }
 0x79e   : > { %7283 = vmatpush.bf16.msrb.mxu3 %v9777_v63 }
 0x79f   : > { %v6362_v49 = vadd.f32 %v6361_v32, %v6304_v55  ;;  %v6564_v61 = vmax.f32 %v6469_v30, 0.0  ;;  %v6565_v33 = vmax.f32 %v6470_v18, 0.0 }
 0x7a1   : > { %v6385_v21 = vpack.c.bf16 %v6362_v49, %v6130_v7 }
 0x7a3   : > { %v6431_v60 = vunpack.c.l.bf16 %v6385_v21  ;;  %v6432_v48 = vunpack.c.h.bf16 %v6385_v21 }
 0x7a4   : > { %v6306_v53 = vpop.f32.mrf.mxu2  ;;  %v6364_v40 = vpop.f32.mrf.mxu3 }
 0x7a5   : > { %v6307_v62 = vadd.f32 %v6306_v53, %v13283_v24  ;;  %v6471_v42 = vadd.f32 %v13256_v45, %v6431_v60  ;;  %v6472_v46 = vadd.f32 %v13258_v54, %v6432_v48 }
 0x7a7   : > { %v6365_v5 = vadd.f32 %v6364_v40, %v6307_v62  ;;  %v6566_v44 = vmax.f32 %v6471_v42, 0.0  ;;  %v6567_v25 = vmax.f32 %v6472_v46, 0.0  ;;  %v9776_v42 = vld [vmem:[%s13604_s11 + $0x20] sm:$0xff] }
 0x7a8   : > { %v6728_v31 = vpop.f32.mrf.mxu0  ;;  %v6786_v39 = vpop.f32.mrf.mxu1  ;;  %7284 = vmatpush.bf16.msrb.mxu3 %v9776_v42  ;;  %v9773_v42 = vld [vmem:[%s13604_s11 + $0x8] sm:$0xff] }
 0x7a9   : > { %v6386_v20 = vpack.c.bf16 %v6365_v5, %v14336_v10  ;;  %v6787_v11 = vadd.f32 %v6786_v39, %v6728_v31  ;;  %v6586_v24 = vpack.c.bf16 %v6566_v44, %v6564_v61  ;;  %v6587_v59 = vpack.c.bf16 %v6567_v25, %v6565_v33 }
 0x7ab   : > { %6767 = vmatmul.bf16.gmra.mxu0 %v6586_v24  ;;  %6825 = vmatmul.bf16.gmra.mxu1 %v6587_v59  ;;  %v6835_v43 = vpack.c.bf16 %v6787_v11, %v6787_v11  ;;  %v6433_v56 = vunpack.c.l.bf16 %v6386_v20  ;;  %v6434_v28 = vunpack.c.h.bf16 %v6386_v20 }
 0x7ac   : > { %v6308_v57 = vpop.f32.mrf.mxu2  ;;  %v6366_v19 = vpop.f32.mrf.mxu3 }
 0x7ad   : > { %v6858_v52 = vunpack.c.l.bf16 %v6835_v43  ;;  %v6473_v41 = vadd.f32 %v13256_v45, %v6433_v56  ;;  %v6474_v36 = vadd.f32 %v13258_v54, %v6434_v28 }
 0x7af   : > { %v6878_v22 = vadd.f32 %v13379_v51, %v6858_v52  ;;  %v6568_v26 = vmax.f32 %v6473_v41, 0.0  ;;  %v6569_v15 = vmax.f32 %v6474_v36, 0.0 }
 0x7b0   : > { %v6730_v29 = vpop.f32.mrf.mxu0  ;;  %v6788_v17 = vpop.f32.mrf.mxu1 }
 0x7b1   : > { %v6789_v47 = vadd.f32 %v6788_v17, %v6730_v29  ;;  %v6935_v16 = vmax.f32 %v6878_v22, 0.0  ;;  %v6588_v34 = vpack.c.bf16 %v6568_v26, %v6568_v26  ;;  %v6589_v14 = vpack.c.bf16 %v6569_v15, %v6569_v15 }
 0x7b3   : > { %v6836_v13 = vpack.c.bf16 %v6789_v47, %v6789_v47  ;;  %v9775_v47 = vld [vmem:[%s13604_s11 + $0x18] sm:$0xff] }
 0x7b4   : > { %7285 = vmatpush.bf16.msrb.mxu3 %v9775_v47 }
 0x7b5   : > { %v6859_v3 = vunpack.c.l.bf16 %v6836_v13 }
 0x7b7   : > { %v6879_v0 = vadd.f32 %v13379_v51, %v6859_v3 }
 0x7b8   : > { %v6733_v12 = vpop.f32.mrf.mxu0  ;;  %v6791_v50 = vpop.f32.mrf.mxu1 }
 0x7b9   : > { %v6936_v37 = vmax.f32 %v6879_v0, 0.0  ;;  %v6792_v4 = vadd.f32 %v6791_v50, %v6733_v12 }
 0x7bb   : > { %v6954_v27 = vpack.c.bf16 %v6936_v37, %v6935_v16  ;;  %6772 = vmatmul.bf16.gmra.mxu0 %v6588_v34  ;;  %6830 = vmatmul.bf16.gmra.mxu1 %v6589_v14  ;;  %v6837_v45 = vpack.c.bf16 %v6792_v4, %v6792_v4 }
 0x7bd   : > { %7037 = vmatmul.bf16.vlgmr.msrb.gmra.mxu2 %v6954_v27  ;;  %v6860_v1 = vunpack.c.l.bf16 %v6837_v45  ;;  %v9774_v27 = vld [vmem:[%s13604_s11 + $0x10] sm:$0xff] }
 0x7be   : > { %7286 = vmatpush.bf16.msrb.mxu3 %v9774_v27 }
 0x7bf   : > { %v6880_v55 = vadd.f32 %v13379_v51, %v6860_v1 }
 0x7c0   : > { %v6735_v54 = vpop.f32.mrf.mxu0  ;;  %v6793_v38 = vpop.f32.mrf.mxu1 }
 0x7c1   : > { %v6794_v23 = vadd.f32 %v6793_v38, %v6735_v54  ;;  %v6937_v21 = vmax.f32 %v6880_v55, 0.0 }
 0x7c2   : > { %7287 = vmatpush.bf16.msrb.mxu3 %v9773_v42 }
 0x7c3   : > { %v6838_v32 = vpack.c.bf16 %v6794_v23, %v6794_v23 }
 0x7c5   : > { %v6861_v6 = vunpack.c.l.bf16 %v6838_v32 }
 0x7c7   : > { %v6881_v7 = vadd.f32 %v13379_v51, %v6861_v6 }
 0x7c8   : > { %v6738_v8 = vpop.f32.mrf.mxu0  ;;  %v6796_v49 = vpop.f32.mrf.mxu1 }
 0x7c9   : > { %v6938_v30 = vmax.f32 %v6881_v7, 0.0  ;;  %v6797_v60 = vadd.f32 %v6796_v49, %v6738_v8 }
 0x7cb   : > { %v6955_v48 = vpack.c.bf16 %v6938_v30, %v6937_v21  ;;  %v6839_v18 = vpack.c.bf16 %v6797_v60, %v6797_v60 }
 0x7cd   : > { %7042 = vmatmul.bf16.gmra.mxu2 %v6955_v48  ;;  %v6862_v62 = vunpack.c.l.bf16 %v6839_v18 }
 0x7cf   : > { %v6882_v61 = vadd.f32 %v13379_v51, %v6862_v62 }
 0x7d0   : > { %v6740_v53 = vpop.f32.mrf.mxu0  ;;  %v6798_v40 = vpop.f32.mrf.mxu1 }
 0x7d1   : > { %v6799_v35 = vadd.f32 %v6798_v40, %v6740_v53  ;;  %v6939_v31 = vmax.f32 %v6882_v61, 0.0 }
 0x7d3   : > { %v6840_v46 = vpack.c.bf16 %v6799_v35, %v6799_v35 }
 0x7d5   : > { %v6863_v5 = vunpack.c.l.bf16 %v6840_v46 }
 0x7d7   : > { %v6883_v44 = vadd.f32 %v13379_v51, %v6863_v5 }
 0x7d8   : > { %v6743_v33 = vpop.f32.mrf.mxu0  ;;  %v6801_v25 = vpop.f32.mrf.mxu1 }
 0x7d9   : > { %v6940_v39 = vmax.f32 %v6883_v44, 0.0  ;;  %v6802_v2 = vadd.f32 %v6801_v25, %v6743_v33 }
 0x7db   : > { %v6956_v10 = vpack.c.bf16 %v6940_v39, %v6939_v31  ;;  %v6841_v20 = vpack.c.bf16 %v6802_v2, %v6802_v2 }
 0x7dd   : > { %7047 = vmatmul.bf16.gmra.mxu2 %v6956_v10  ;;  %v6864_v59 = vunpack.c.l.bf16 %v6841_v20 }
 0x7df   : > { %v6884_v58 = vadd.f32 %v13379_v51, %v6864_v59 }
 0x7e0   : > { %v6745_v11 = vpop.f32.mrf.mxu0  ;;  %v6803_v24 = vpop.f32.mrf.mxu1 }
 0x7e1   : > { %v6804_v9 = vadd.f32 %v6803_v24, %v6745_v11  ;;  %v6941_v52 = vmax.f32 %v6884_v58, 0.0 }
 0x7e3   : > { %v6842_v43 = vpack.c.bf16 %v6804_v9, %v6804_v9 }
 0x7e5   : > { %v6865_v57 = vunpack.c.l.bf16 %v6842_v43  ;;  %v9772_v43 = vld [vmem:[%s13604_s11] sm:$0xff] }
 0x7e6   : > { %7288 = vmatpush.bf16.msrb.mxu3 %v9772_v43 }
 0x7e7   : > { %v6885_v19 = vadd.f32 %v13379_v51, %v6865_v57 }
 0x7e8   : > { %v6748_v56 = vpop.f32.mrf.mxu0  ;;  %v6806_v28 = vpop.f32.mrf.mxu1 }
 0x7e9   : > { %v6942_v29 = vmax.f32 %v6885_v19, 0.0  ;;  %v6807_v17 = vadd.f32 %v6806_v28, %v6748_v56 }
 0x7eb   : > { %v6957_v41 = vpack.c.bf16 %v6942_v29, %v6941_v52  ;;  %v6843_v36 = vpack.c.bf16 %v6807_v17, %v6807_v17 }
 0x7ed   : > { %7052 = vmatmul.bf16.gmra.mxu2 %v6957_v41  ;;  %v6866_v3 = vunpack.c.l.bf16 %v6843_v36 }
 0x7ef   : > { %v6886_v0 = vadd.f32 %v13379_v51, %v6866_v3 }
 0x7f0   : > { %v6750_v13 = vpop.f32.mrf.mxu0  ;;  %v6808_v22 = vpop.f32.mrf.mxu1 }
 0x7f1   : > { %v6809_v26 = vadd.f32 %v6808_v22, %v6750_v13  ;;  %v6943_v4 = vmax.f32 %v6886_v0, 0.0 }
 0x7f3   : > { %v6844_v15 = vpack.c.bf16 %v6809_v26, %v6809_v26 }
 0x7f5   : > { %v6867_v16 = vunpack.c.l.bf16 %v6844_v15  ;;  %v9787_v15 = vld [vmem:[%s13606_s13 + $0x38] sm:$0xff] }
 0x7f6   : > { %7533 = vmatpush.bf16.msrb.mxu0 %v9787_v15 }
 0x7f7   : > { %v6887_v12 = vadd.f32 %v13379_v51, %v6867_v16 }
 0x7f8   : > { %v6753_v50 = vpop.f32.mrf.mxu0  ;;  %v6811_v37 = vpop.f32.mrf.mxu1 }
 0x7f9   : > { %v6944_v34 = vmax.f32 %v6887_v12, 0.0  ;;  %v6812_v14 = vadd.f32 %v6811_v37, %v6753_v50 }
 0x7fb   : > { %v6958_v45 = vpack.c.bf16 %v6944_v34, %v6943_v4  ;;  %v6845_v54 = vpack.c.bf16 %v6812_v14, %v6812_v14 }
 0x7fd   : > { %7057 = vmatmul.bf16.gmra.mxu2 %v6958_v45  ;;  %v6868_v23 = vunpack.c.l.bf16 %v6845_v54 }
 0x7ff   : > { %v6888_v55 = vadd.f32 %v13379_v51, %v6868_v23 }
 0x800   : > { %v6755_v38 = vpop.f32.mrf.mxu0  ;;  %v6813_v1 = vpop.f32.mrf.mxu1 }
 0x801   : > { %v6814_v63 = vadd.f32 %v6813_v1, %v6755_v38  ;;  %v6945_v21 = vmax.f32 %v6888_v55, 0.0  ;;  %v6980_v38 = vld [vmem:[%s13603_s10] sm:$0x1]  ;;  %v9786_v55 = vld [vmem:[%s13606_s13 + $0x30] sm:$0xff] }
 0x802   : > { %7534 = vmatpush.bf16.msrb.mxu0 %v9786_v55 }
 0x803   : > { %v6846_v32 = vpack.c.bf16 %v6814_v63, %v6814_v63 }
 0x805   : > { %v6869_v6 = vunpack.c.l.bf16 %v6846_v32  ;;  %v7107_v32 = vpack.i.b16 %v6980_v38, %v6980_v38 }
 0x807   : > { %v6889_v7 = vadd.f32 %v13379_v51, %v6869_v6 }
 0x808   : > { %v6758_v8 = vpop.f32.mrf.mxu0  ;;  %v6816_v49 = vpop.f32.mrf.mxu1 }
 0x809   : > { %v6946_v30 = vmax.f32 %v6889_v7, 0.0  ;;  %v6817_v60 = vadd.f32 %v6816_v49, %v6758_v8  ;;  %v7109_v49 = vperm.slane %v7107_v32, 0  ;;  %v9782_v32 = vld [vmem:[%s13606_s13 + $0x10] sm:$0xff] }
 0x80b   : > { %v6959_v48 = vpack.c.bf16 %v6946_v30, %v6945_v21  ;;  %v6847_v18 = vpack.c.bf16 %v6817_v60, %v6817_v60  ;;  %v13429_v60 = vunpack.c.l.bf16 %v7109_v49 }
 0x80d   : > { %7062 = vmatmul.bf16.gmra.mxu2 %v6959_v48  ;;  %v6870_v62 = vunpack.c.l.bf16 %v6847_v18 }
 0x80f   : > { %v6890_v61 = vadd.f32 %v13379_v51, %v6870_v62 }
 0x810   : > { %v6760_v53 = vpop.f32.mrf.mxu0  ;;  %v6818_v40 = vpop.f32.mrf.mxu1 }
 0x811   : > { %v6819_v35 = vadd.f32 %v6818_v40, %v6760_v53  ;;  %v6947_v31 = vmax.f32 %v6890_v61, 0.0 }
 0x813   : > { %v6848_v46 = vpack.c.bf16 %v6819_v35, %v6819_v35 }
 0x815   : > { %v6871_v5 = vunpack.c.l.bf16 %v6848_v46 }
 0x817   : > { %v6891_v44 = vadd.f32 %v13379_v51, %v6871_v5 }
 0x818   : > { %v6763_v33 = vpop.f32.mrf.mxu0  ;;  %v6821_v25 = vpop.f32.mrf.mxu1 }
 0x819   : > { %v6948_v39 = vmax.f32 %v6891_v44, 0.0  ;;  %v6822_v2 = vadd.f32 %v6821_v25, %v6763_v33  ;;  %v9785_v33 = vld [vmem:[%s13606_s13 + $0x28] sm:$0xff] }
 0x81a   : > { %7535 = vmatpush.bf16.msrb.mxu0 %v9785_v33 }
 0x81b   : > { %v6960_v10 = vpack.c.bf16 %v6948_v39, %v6947_v31  ;;  %v6849_v20 = vpack.c.bf16 %v6822_v2, %v6822_v2 }
 0x81d   : > { %7067 = vmatmul.bf16.gmra.mxu2 %v6960_v10  ;;  %v6872_v59 = vunpack.c.l.bf16 %v6849_v20 }
 0x81f   : > { %v6892_v57 = vadd.f32 %v13379_v51, %v6872_v59 }
 0x820   : > { %v6765_v11 = vpop.f32.mrf.mxu0  ;;  %v6823_v24 = vpop.f32.mrf.mxu1 }
 0x821   : > { %v6824_v9 = vadd.f32 %v6823_v24, %v6765_v11  ;;  %v6949_v29 = vmax.f32 %v6892_v57, 0.0 }
 0x823   : > { %v6850_v58 = vpack.c.bf16 %v6824_v9, %v6824_v9 }
 0x825   : > { %v6873_v19 = vunpack.c.l.bf16 %v6850_v58  ;;  %v9784_v58 = vld [vmem:[%s13606_s13 + $0x20] sm:$0xff] }
 0x826   : > { %7536 = vmatpush.bf16.msrb.mxu0 %v9784_v58 }
 0x827   : > { %v6893_v56 = vadd.f32 %v13379_v51, %v6873_v19 }
 0x828   : > { %v6768_v28 = vpop.f32.mrf.mxu0  ;;  %v6826_v52 = vpop.f32.mrf.mxu1 }
 0x829   : > { %v6950_v17 = vmax.f32 %v6893_v56, 0.0  ;;  %v6827_v47 = vadd.f32 %v6826_v52, %v6768_v28 }
 0x82b   : > { %v6961_v41 = vpack.c.bf16 %v6950_v17, %v6949_v29  ;;  %v6851_v36 = vpack.c.bf16 %v6827_v47, %v6827_v47 }
 0x82d   : > { %7072 = vmatmul.bf16.gmra.mxu2 %v6961_v41  ;;  %v6874_v3 = vunpack.c.l.bf16 %v6851_v36 }
 0x82f   : > { %v6894_v16 = vadd.f32 %v13379_v51, %v6874_v3 }
 0x830   : > { %v6770_v13 = vpop.f32.mrf.mxu0  ;;  %v6828_v22 = vpop.f32.mrf.mxu1 }
 0x831   : > { %v6829_v26 = vadd.f32 %v6828_v22, %v6770_v13  ;;  %v6951_v34 = vmax.f32 %v6894_v16, 0.0 }
 0x833   : > { %v6852_v0 = vpack.c.bf16 %v6829_v26, %v6829_v26 }
 0x835   : > { %v6875_v12 = vunpack.c.l.bf16 %v6852_v0 }
 0x837   : > { %v6895_v50 = vadd.f32 %v13379_v51, %v6875_v12 }
 0x838   : > { %v6773_v37 = vpop.f32.mrf.mxu0  ;;  %v6831_v4 = vpop.f32.mrf.mxu1 }
 0x839   : > { %v6952_v14 = vmax.f32 %v6895_v50, 0.0  ;;  %v6832_v27 = vadd.f32 %v6831_v4, %v6773_v37  ;;  %v9783_v50 = vld [vmem:[%s13606_s13 + $0x18] sm:$0xff] }
 0x83a   : > { %7537 = vmatpush.bf16.msrb.mxu0 %v9783_v50 }
 0x83b   : > { %v6853_v45 = vpack.c.bf16 %v6832_v27, %v6832_v27  ;;  %v6962_v54 = vpack.c.bf16 %v6952_v14, %v6951_v34 }
 0x83d   : > { %7077 = vmatmul.bf16.gmra.mxu2 %v6962_v54  ;;  %v6876_v1 = vunpack.c.l.bf16 %v6853_v45 }
 0x83e   : > { %7538 = vmatpush.bf16.msrb.mxu0 %v9782_v32 }
 0x83f   : > { %v6896_v7 = vadd.f32 %v13379_v51, %v6876_v1 }
 0x840   : > { %v6775_v23 = vpop.f32.mrf.mxu0  ;;  %v6833_v63 = vpop.f32.mrf.mxu1 }
 0x841   : > { %v7038_v6 = vpop.f32.mrf.mxu2  ;;  %v6953_v21 = vmax.f32 %v6896_v7, 0.0 }
 0x842   : > { %v7087_v8 = vpack.c.bf16 %v7038_v6, %v7038_v6 }
 0x843   : > { %v6963_v53 = vpack.c.bf16 %v6953_v21, %v6953_v21 }
 0x844   : > { %v7110_v30 = vunpack.c.l.bf16 %v7087_v8 }
 0x846   : > { %v7130_v40 = vadd.f32 %v13429_v60, %v7110_v30 }
 0x848   : > { %v7187_v42 = vmax.f32 %v7130_v40, 0.0 }
 0x849   : > { %v7040_v48 = vpop.f32.mrf.mxu2 }
 0x84a   : > { %v7088_v18 = vpack.c.bf16 %v7040_v48, %v7040_v48 }
 0x84c   : > { %v7111_v62 = vunpack.c.l.bf16 %v7088_v18 }
 0x84d   : > { %7082 = vmatmul.bf16.gmra.mxu2 %v6963_v53 }
 0x84e   : > { %v7131_v35 = vadd.f32 %v13429_v60, %v7111_v62 }
 0x850   : > { %v7188_v46 = vmax.f32 %v7131_v35, 0.0 }
 0x851   : > { %v7043_v61 = vpop.f32.mrf.mxu2 }
 0x852   : > { %v7206_v5 = vpack.c.bf16 %v7188_v46, %v7187_v42  ;;  %v7089_v51 = vpack.c.bf16 %v7043_v61, %v7043_v61  ;;  %v9781_v61 = vld [vmem:[%s13606_s13 + $0x8] sm:$0xff] }
 0x853   : > { %7539 = vmatpush.bf16.msrb.mxu0 %v9781_v61 }
 0x854   : > { %7289 = vmatmul.bf16.vlgmr.msrb.gmra.mxu3 %v7206_v5  ;;  %v7112_v44 = vunpack.c.l.bf16 %v7089_v51 }
 0x856   : > { %v7132_v39 = vadd.f32 %v13429_v60, %v7112_v44 }
 0x858   : > { %v7189_v20 = vmax.f32 %v7132_v39, 0.0 }
 0x859   : > { %v7045_v25 = vpop.f32.mrf.mxu2 }
 0x85a   : > { %v7090_v31 = vpack.c.bf16 %v7045_v25, %v7045_v25 }
 0x85c   : > { %v7113_v2 = vunpack.c.l.bf16 %v7090_v31 }
 0x85e   : > { %v7133_v10 = vadd.f32 %v13429_v60, %v7113_v2 }
 0x860   : > { %v7190_v11 = vmax.f32 %v7133_v10, 0.0 }
 0x861   : > { %v7048_v24 = vpop.f32.mrf.mxu2 }
 0x862   : > { %v7207_v59 = vpack.c.bf16 %v7190_v11, %v7189_v20  ;;  %v7091_v9 = vpack.c.bf16 %v7048_v24, %v7048_v24  ;;  %v9780_v24 = vld [vmem:[%s13606_s13] sm:$0xff] }
 0x863   : > { %7540 = vmatpush.bf16.msrb.mxu0 %v9780_v24 }
 0x864   : > { %7294 = vmatmul.bf16.gmra.mxu3 %v7207_v59  ;;  %v7114_v43 = vunpack.c.l.bf16 %v7091_v9 }
 0x866   : > { %v7134_v56 = vadd.f32 %v13429_v60, %v7114_v43 }
 0x868   : > { %v7191_v29 = vmax.f32 %v7134_v56, 0.0 }
 0x869   : > { %v7050_v57 = vpop.f32.mrf.mxu2 }
 0x86a   : > { %v7092_v19 = vpack.c.bf16 %v7050_v57, %v7050_v57 }
 0x86c   : > { %v7115_v28 = vunpack.c.l.bf16 %v7092_v19  ;;  %v9795_v19 = vld [vmem:[%s13608_s15 + $0x38] sm:$0xff] }
 0x86d   : > { %7788 = vmatpush.bf16.msrb.mxu1 %v9795_v19 }
 0x86e   : > { %v7135_v52 = vadd.f32 %v13429_v60, %v7115_v28 }
 0x870   : > { %v7192_v17 = vmax.f32 %v7135_v52, 0.0 }
 0x871   : > { %v7053_v47 = vpop.f32.mrf.mxu2 }
 0x872   : > { %v7208_v41 = vpack.c.bf16 %v7192_v17, %v7191_v29  ;;  %v7093_v36 = vpack.c.bf16 %v7053_v47, %v7053_v47 }
 0x874   : > { %7299 = vmatmul.bf16.gmra.mxu3 %v7208_v41  ;;  %v7116_v13 = vunpack.c.l.bf16 %v7093_v36 }
 0x876   : > { %v7136_v26 = vadd.f32 %v13429_v60, %v7116_v13 }
 0x878   : > { %v7193_v16 = vmax.f32 %v7136_v26, 0.0  ;;  %v9794_v26 = vld [vmem:[%s13608_s15 + $0x30] sm:$0xff] }
 0x879   : > { %v7055_v22 = vpop.f32.mrf.mxu2  ;;  %7789 = vmatpush.bf16.msrb.mxu1 %v9794_v26 }
 0x87a   : > { %v7094_v3 = vpack.c.bf16 %v7055_v22, %v7055_v22 }
 0x87c   : > { %v7117_v15 = vunpack.c.l.bf16 %v7094_v3 }
 0x87e   : > { %v7137_v0 = vadd.f32 %v13429_v60, %v7117_v15 }
 0x880   : > { %v7194_v12 = vmax.f32 %v7137_v0, 0.0 }
 0x881   : > { %v7058_v37 = vpop.f32.mrf.mxu2 }
 0x882   : > { %v7209_v4 = vpack.c.bf16 %v7194_v12, %v7193_v16  ;;  %v7095_v34 = vpack.c.bf16 %v7058_v37, %v7058_v37  ;;  %v7232_v37 = vld [vmem:[%s13605_s12] sm:$0x1] }
 0x884   : > { %7304 = vmatmul.bf16.gmra.mxu3 %v7209_v4  ;;  %v7118_v14 = vunpack.c.l.bf16 %v7095_v34  ;;  %v7359_v34 = vpack.i.b16 %v7232_v37, %v7232_v37 }
 0x886   : > { %v7138_v54 = vadd.f32 %v13429_v60, %v7118_v14 }
 0x888   : > { %v7195_v23 = vmax.f32 %v7138_v54, 0.0 }
 0x889   : > { %v7060_v27 = vpop.f32.mrf.mxu2 }
 0x88a   : > { %v7096_v45 = vpack.c.bf16 %v7060_v27, %v7060_v27 }
 0x88c   : > { %v7119_v38 = vunpack.c.l.bf16 %v7096_v45 }
 0x88e   : > { %v7139_v1 = vadd.f32 %v13429_v60, %v7119_v38  ;;  %v7361_v38 = vperm.slane %v7359_v34, 0 }
 0x890   : > { %v7196_v63 = vmax.f32 %v7139_v1, 0.0 }
 0x891   : > { %v7063_v55 = vpop.f32.mrf.mxu2 }
 0x892   : > { %v7210_v6 = vpack.c.bf16 %v7196_v63, %v7195_v23  ;;  %v7097_v7 = vpack.c.bf16 %v7063_v55, %v7063_v55  ;;  %v13477_v63 = vunpack.c.l.bf16 %v7361_v38 }
 0x894   : > { %7309 = vmatmul.bf16.gmra.mxu3 %v7210_v6  ;;  %v7120_v8 = vunpack.c.l.bf16 %v7097_v7 }
 0x896   : > { %v7140_v30 = vadd.f32 %v13429_v60, %v7120_v8 }
 0x898   : > { %v7197_v53 = vmax.f32 %v7140_v30, 0.0 }
 0x899   : > { %v7065_v49 = vpop.f32.mrf.mxu2 }
 0x89a   : > { %v7098_v21 = vpack.c.bf16 %v7065_v49, %v7065_v49 }
 0x89c   : > { %v7121_v48 = vunpack.c.l.bf16 %v7098_v21 }
 0x89e   : > { %v7141_v18 = vadd.f32 %v13429_v60, %v7121_v48 }
 0x8a0   : > { %v7198_v40 = vmax.f32 %v7141_v18, 0.0 }
 0x8a1   : > { %v7068_v62 = vpop.f32.mrf.mxu2 }
 0x8a2   : > { %v7211_v35 = vpack.c.bf16 %v7198_v40, %v7197_v53  ;;  %v7099_v42 = vpack.c.bf16 %v7068_v62, %v7068_v62 }
 0x8a4   : > { %7314 = vmatmul.bf16.gmra.mxu3 %v7211_v35  ;;  %v7122_v46 = vunpack.c.l.bf16 %v7099_v42 }
 0x8a6   : > { %v7142_v44 = vadd.f32 %v13429_v60, %v7122_v46 }
 0x8a8   : > { %v7199_v31 = vmax.f32 %v7142_v44, 0.0  ;;  %v9792_v44 = vld [vmem:[%s13608_s15 + $0x20] sm:$0xff] }
 0x8a9   : > { %v7070_v5 = vpop.f32.mrf.mxu2 }
 0x8aa   : > { %v7100_v51 = vpack.c.bf16 %v7070_v5, %v7070_v5 }
 0x8ac   : > { %v7123_v33 = vunpack.c.l.bf16 %v7100_v51 }
 0x8ae   : > { %v7143_v25 = vadd.f32 %v13429_v60, %v7123_v33 }
 0x8b0   : > { %v7200_v39 = vmax.f32 %v7143_v25, 0.0 }
 0x8b1   : > { %v7073_v2 = vpop.f32.mrf.mxu2 }
 0x8b2   : > { %v7212_v10 = vpack.c.bf16 %v7200_v39, %v7199_v31  ;;  %v7101_v20 = vpack.c.bf16 %v7073_v2, %v7073_v2 }
 0x8b4   : > { %7319 = vmatmul.bf16.gmra.mxu3 %v7212_v10  ;;  %v7124_v11 = vunpack.c.l.bf16 %v7101_v20 }
 0x8b6   : > { %v7144_v43 = vadd.f32 %v13429_v60, %v7124_v11 }
 0x8b8   : > { %v7201_v56 = vmax.f32 %v7144_v43, 0.0 }
 0x8b9   : > { %v7075_v59 = vpop.f32.mrf.mxu2 }
 0x8ba   : > { %v7102_v9 = vpack.c.bf16 %v7075_v59, %v7075_v59 }
 0x8bc   : > { %v7125_v58 = vunpack.c.l.bf16 %v7102_v9 }
 0x8be   : > { %v7145_v57 = vadd.f32 %v13429_v60, %v7125_v58 }
 0x8c0   : > { %v7202_v28 = vmax.f32 %v7145_v57, 0.0 }
 0x8c1   : > { %v7078_v52 = vpop.f32.mrf.mxu2 }
 0x8c2   : > { %v7213_v29 = vpack.c.bf16 %v7202_v28, %v7201_v56  ;;  %v7103_v17 = vpack.c.bf16 %v7078_v52, %v7078_v52  ;;  %v9791_v56 = vld [vmem:[%s13608_s15 + $0x18] sm:$0xff] }
 0x8c4   : > { %7324 = vmatmul.bf16.gmra.mxu3 %v7213_v29  ;;  %v7126_v47 = vunpack.c.l.bf16 %v7103_v17 }
 0x8c6   : > { %v7146_v13 = vadd.f32 %v13429_v60, %v7126_v47 }
 0x8c8   : > { %v7203_v15 = vmax.f32 %v7146_v13, 0.0 }
 0x8c9   : > { %v7080_v41 = vpop.f32.mrf.mxu2 }
 0x8ca   : > { %v7104_v36 = vpack.c.bf16 %v7080_v41, %v7080_v41 }
 0x8cc   : > { %v7127_v22 = vunpack.c.l.bf16 %v7104_v36 }
 0x8ce   : > { %v7147_v3 = vadd.f32 %v13429_v60, %v7127_v22 }
 0x8d0   : > { %v7204_v0 = vmax.f32 %v7147_v3, 0.0 }
 0x8d1   : > { %v7083_v16 = vpop.f32.mrf.mxu2 }
 0x8d2   : > { %v7105_v12 = vpack.c.bf16 %v7083_v16, %v7083_v16  ;;  %v7214_v50 = vpack.c.bf16 %v7204_v0, %v7203_v15  ;;  %v9790_v15 = vld [vmem:[%s13608_s15 + $0x10] sm:$0xff] }
 0x8d4   : > { %7329 = vmatmul.bf16.gmra.mxu3 %v7214_v50  ;;  %v7128_v4 = vunpack.c.l.bf16 %v7105_v12 }
 0x8d6   : > { %v7148_v45 = vadd.f32 %v13429_v60, %v7128_v4  ;;  %v9793_v60 = vld [vmem:[%s13608_s15 + $0x28] sm:$0xff] }
 0x8d7   : > { %v7290_v14 = vpop.f32.mrf.mxu3  ;;  %7790 = vmatpush.bf16.msrb.mxu1 %v9793_v60 }
 0x8d8   : > { %v7339_v54 = vpack.c.bf16 %v7290_v14, %v7290_v14  ;;  %v7205_v1 = vmax.f32 %v7148_v45, 0.0 }
 0x8d9   : > { %v7085_v27 = vpop.f32.mrf.mxu2 }
 0x8da   : > { %v7362_v23 = vunpack.c.l.bf16 %v7339_v54  ;;  %v7215_v8 = vpack.c.bf16 %v7205_v1, %v7205_v1 }
 0x8db   : > { %7791 = vmatpush.bf16.msrb.mxu1 %v9792_v44 }
 0x8dc   : > { %v7382_v6 = vadd.f32 %v13477_v63, %v7362_v23 }
 0x8de   : > { %v7439_v21 = vmax.f32 %v7382_v6, 0.0 }
 0x8df   : > { %v7292_v32 = vpop.f32.mrf.mxu3  ;;  %7792 = vmatpush.bf16.msrb.mxu1 %v9791_v56  ;;  %v7484_v56 = vld [vmem:[%s13607_s14] sm:$0x1] }
 0x8e0   : > { %v7340_v55 = vpack.c.bf16 %v7292_v32, %v7292_v32 }
 0x8e2   : > { %v7363_v7 = vunpack.c.l.bf16 %v7340_v55 }
 0x8e3   : > { %7793 = vmatpush.bf16.msrb.mxu1 %v9790_v15 }
 0x8e4   : > { %v7383_v49 = vadd.f32 %v13477_v63, %v7363_v7  ;;  %7334 = vmatmul.bf16.gmra.mxu3 %v7215_v8  ;;  %v9789_v8 = vld [vmem:[%s13608_s15 + $0x8] sm:$0xff] }
 0x8e6   : > { %v7440_v30 = vmax.f32 %v7383_v49, 0.0 }
 0x8e7   : > { %v7295_v48 = vpop.f32.mrf.mxu3  ;;  %7794 = vmatpush.bf16.msrb.mxu1 %v9789_v8 }
 0x8e8   : > { %v7458_v18 = vpack.c.bf16 %v7440_v30, %v7439_v21  ;;  %v7341_v53 = vpack.c.bf16 %v7295_v48, %v7295_v48 }
 0x8ea   : > { %7541 = vmatmul.bf16.vlgmr.msrb.gmra.mxu0 %v7458_v18  ;;  %v7364_v40 = vunpack.c.l.bf16 %v7341_v53 }
 0x8ec   : > { %v7384_v42 = vadd.f32 %v13477_v63, %v7364_v40 }
 0x8ee   : > { %v7441_v5 = vmax.f32 %v7384_v42, 0.0 }
 0x8ef   : > { %v7297_v62 = vpop.f32.mrf.mxu3 }
 0x8f0   : > { %v7342_v35 = vpack.c.bf16 %v7297_v62, %v7297_v62 }
 0x8f2   : > { %v7365_v46 = vunpack.c.l.bf16 %v7342_v35 }
 0x8f4   : > { %v7385_v61 = vadd.f32 %v13477_v63, %v7365_v46  ;;  %v9788_v46 = vld [vmem:[%s13608_s15] sm:$0xff] }
 0x8f5   : > { %7795 = vmatpush.bf16.msrb.mxu1 %v9788_v46 }
 0x8f6   : > { %v7442_v51 = vmax.f32 %v7385_v61, 0.0 }
 0x8f7   : > { %v7300_v33 = vpop.f32.mrf.mxu3 }
 0x8f8   : > { %v7459_v25 = vpack.c.bf16 %v7442_v51, %v7441_v5  ;;  %v7343_v31 = vpack.c.bf16 %v7300_v33, %v7300_v33 }
 0x8fa   : > { %7546 = vmatmul.bf16.gmra.mxu0 %v7459_v25  ;;  %v7366_v39 = vunpack.c.l.bf16 %v7343_v31 }
 0x8fc   : > { %v7386_v20 = vadd.f32 %v13477_v63, %v7366_v39 }
 0x8fe   : > { %v7443_v59 = vmax.f32 %v7386_v20, 0.0 }
 0x8ff   : > { %v7302_v2 = vpop.f32.mrf.mxu3 }
 0x900   : > { %v7344_v10 = vpack.c.bf16 %v7302_v2, %v7302_v2 }
 0x902   : > { %v7367_v11 = vunpack.c.l.bf16 %v7344_v10 }
 0x904   : > { %v7387_v24 = vadd.f32 %v13477_v63, %v7367_v11 }
 0x906   : > { %v7444_v9 = vmax.f32 %v7387_v24, 0.0 }
 0x907   : > { %v7305_v43 = vpop.f32.mrf.mxu3 }
 0x908   : > { %v7460_v58 = vpack.c.bf16 %v7444_v9, %v7443_v59  ;;  %v7345_v57 = vpack.c.bf16 %v7305_v43, %v7305_v43 }
 0x90a   : > { %7551 = vmatmul.bf16.gmra.mxu0 %v7460_v58  ;;  %v7368_v19 = vunpack.c.l.bf16 %v7345_v57 }
 0x90c   : > { %v7388_v29 = vadd.f32 %v13477_v63, %v7368_v19 }
 0x90e   : > { %v7445_v41 = vmax.f32 %v7388_v29, 0.0 }
 0x90f   : > { %v7307_v28 = vpop.f32.mrf.mxu3 }
 0x910   : > { %v7346_v52 = vpack.c.bf16 %v7307_v28, %v7307_v28 }
 0x912   : > { %v7369_v17 = vunpack.c.l.bf16 %v7346_v52 }
 0x914   : > { %v7389_v47 = vadd.f32 %v13477_v63, %v7369_v17  ;;  %v7611_v17 = vpack.i.b16 %v7484_v56, %v7484_v56 }
 0x916   : > { %v7446_v36 = vmax.f32 %v7389_v47, 0.0 }
 0x917   : > { %v7310_v13 = vpop.f32.mrf.mxu3 }
 0x918   : > { %v7461_v22 = vpack.c.bf16 %v7446_v36, %v7445_v41  ;;  %v7347_v3 = vpack.c.bf16 %v7310_v13, %v7310_v13 }
 0x91a   : > { %7556 = vmatmul.bf16.gmra.mxu0 %v7461_v22  ;;  %v7370_v26 = vunpack.c.l.bf16 %v7347_v3  ;;  %v7613_v3 = vperm.slane %v7611_v17, 0 }
 0x91c   : > { %v7390_v12 = vadd.f32 %v13477_v63, %v7370_v26 }
 0x91e   : > { %v7447_v4 = vmax.f32 %v7390_v12, 0.0 }
 0x91f   : > { %v7312_v0 = vpop.f32.mrf.mxu3 }
 0x920   : > { %v7348_v16 = vpack.c.bf16 %v7312_v0, %v7312_v0  ;;  %v13518_v0 = vunpack.c.l.bf16 %v7613_v3 }
 0x922   : > { %v7371_v50 = vunpack.c.l.bf16 %v7348_v16 }
 0x924   : > { %v7391_v37 = vadd.f32 %v13477_v63, %v7371_v50 }
 0x926   : > { %v7448_v34 = vmax.f32 %v7391_v37, 0.0 }
 0x927   : > { %v7315_v14 = vpop.f32.mrf.mxu3 }
 0x928   : > { %v7462_v27 = vpack.c.bf16 %v7448_v34, %v7447_v4  ;;  %v7349_v45 = vpack.c.bf16 %v7315_v14, %v7315_v14 }
 0x92a   : > { %7561 = vmatmul.bf16.gmra.mxu0 %v7462_v27  ;;  %v7372_v54 = vunpack.c.l.bf16 %v7349_v45 }
 0x92c   : > { %v7392_v23 = vadd.f32 %v13477_v63, %v7372_v54 }
 0x92e   : > { %v7449_v6 = vmax.f32 %v7392_v23, 0.0 }
 0x92f   : > { %v7317_v38 = vpop.f32.mrf.mxu3 }
 0x930   : > { %v7350_v1 = vpack.c.bf16 %v7317_v38, %v7317_v38 }
 0x932   : > { %v7373_v32 = vunpack.c.l.bf16 %v7350_v1 }
 0x934   : > { %v7393_v55 = vadd.f32 %v13477_v63, %v7373_v32 }
 0x936   : > { %v7450_v7 = vmax.f32 %v7393_v55, 0.0 }
 0x937   : > { %v7320_v49 = vpop.f32.mrf.mxu3 }
 0x938   : > { %v7463_v21 = vpack.c.bf16 %v7450_v7, %v7449_v6  ;;  %v7351_v30 = vpack.c.bf16 %v7320_v49, %v7320_v49 }
 0x93a   : > { %7566 = vmatmul.bf16.gmra.mxu0 %v7463_v21  ;;  %v7374_v60 = vunpack.c.l.bf16 %v7351_v30 }
 0x93c   : > { %v7394_v53 = vadd.f32 %v13477_v63, %v7374_v60 }
 0x93e   : > { %v7451_v35 = vmax.f32 %v7394_v53, 0.0 }
 0x93f   : > { %v7322_v48 = vpop.f32.mrf.mxu3 }
 0x940   : > { %v7352_v18 = vpack.c.bf16 %v7322_v48, %v7322_v48 }
 0x942   : > { %v7375_v40 = vunpack.c.l.bf16 %v7352_v18 }
 0x944   : > { %v7395_v62 = vadd.f32 %v13477_v63, %v7375_v40 }
 0x946   : > { %v7452_v42 = vmax.f32 %v7395_v62, 0.0 }
 0x947   : > { %v7325_v61 = vpop.f32.mrf.mxu3 }
 0x948   : > { %v7464_v5 = vpack.c.bf16 %v7452_v42, %v7451_v35  ;;  %v7353_v51 = vpack.c.bf16 %v7325_v61, %v7325_v61 }
 0x94a   : > { %7571 = vmatmul.bf16.gmra.mxu0 %v7464_v5  ;;  %v7376_v44 = vunpack.c.l.bf16 %v7353_v51 }
 0x94c   : > { %v7396_v31 = vadd.f32 %v13477_v63, %v7376_v44 }
 0x94e   : > { %v7453_v10 = vmax.f32 %v7396_v31, 0.0 }
 0x94f   : > { %v7327_v33 = vpop.f32.mrf.mxu3 }
 0x950   : > { %v7354_v25 = vpack.c.bf16 %v7327_v33, %v7327_v33 }
 0x952   : > { %v7377_v39 = vunpack.c.l.bf16 %v7354_v25 }
 0x954   : > { %v7397_v2 = vadd.f32 %v13477_v63, %v7377_v39 }
 0x956   : > { %v7454_v20 = vmax.f32 %v7397_v2, 0.0 }
 0x957   : > { %v7330_v11 = vpop.f32.mrf.mxu3 }
 0x958   : > { %v7465_v24 = vpack.c.bf16 %v7454_v20, %v7453_v10  ;;  %v7355_v59 = vpack.c.bf16 %v7330_v11, %v7330_v11 }
 0x95a   : > { %7576 = vmatmul.bf16.gmra.mxu0 %v7465_v24  ;;  %v7378_v9 = vunpack.c.l.bf16 %v7355_v59 }
 0x95c   : > { %v7398_v57 = vadd.f32 %v13477_v63, %v7378_v9 }
 0x95e   : > { %v7455_v52 = vmax.f32 %v7398_v57, 0.0 }
 0x95f   : > { %v7332_v43 = vpop.f32.mrf.mxu3 }
 0x960   : > { %v7356_v58 = vpack.c.bf16 %v7332_v43, %v7332_v43 }
 0x962   : > { %v7379_v19 = vunpack.c.l.bf16 %v7356_v58 }
 0x964   : > { %v7399_v28 = vadd.f32 %v13477_v63, %v7379_v19 }
 0x966   : > { %v7456_v29 = vmax.f32 %v7399_v28, 0.0 }
 0x967   : > { %v7335_v47 = vpop.f32.mrf.mxu3  ;;  %v7542_v41 = vpop.f32.mrf.mxu0 }
 0x968   : > { %v7357_v36 = vpack.c.bf16 %v7335_v47, %v7335_v47  ;;  %v7466_v13 = vpack.c.bf16 %v7456_v29, %v7455_v52  ;;  %v7591_v22 = vpack.c.bf16 %v7542_v41, %v7542_v41 }
 0x96a   : > { %7581 = vmatmul.bf16.gmra.mxu0 %v7466_v13  ;;  %v7380_v26 = vunpack.c.l.bf16 %v7357_v36  ;;  %v7614_v15 = vunpack.c.l.bf16 %v7591_v22 }
 0x96c   : > { %v7400_v50 = vadd.f32 %v13477_v63, %v7380_v26  ;;  %v7634_v4 = vadd.f32 %v13518_v0, %v7614_v15 }
 0x96e   : > { %v7457_v14 = vmax.f32 %v7400_v50, 0.0  ;;  %v7691_v45 = vmax.f32 %v7634_v4, 0.0 }
 0x96f   : > { %v7337_v16 = vpop.f32.mrf.mxu3  ;;  %v7544_v12 = vpop.f32.mrf.mxu0 }
 0x970   : > { %v7592_v37 = vpack.c.bf16 %v7544_v12, %v7544_v12  ;;  %v7467_v23 = vpack.c.bf16 %v7457_v14, %v7457_v14 }
 0x972   : > { %v7615_v34 = vunpack.c.l.bf16 %v7592_v37 }
 0x974   : > { %v7635_v27 = vadd.f32 %v13518_v0, %v7615_v34 }
 0x976   : > { %v7692_v54 = vmax.f32 %v7635_v27, 0.0 }
 0x977   : > { %v7547_v38 = vpop.f32.mrf.mxu0 }
 0x978   : > { %v7710_v1 = vpack.c.bf16 %v7692_v54, %v7691_v45  ;;  %v7593_v32 = vpack.c.bf16 %v7547_v38, %v7547_v38 }
 0x97a   : > { %7586 = vmatmul.bf16.gmra.mxu0 %v7467_v23  ;;  %7796 = vmatmul.bf16.vlgmr.msrb.gmra.mxu1 %v7710_v1  ;;  %v7616_v55 = vunpack.c.l.bf16 %v7593_v32 }
 0x97c   : > { %v7636_v63 = vadd.f32 %v13518_v0, %v7616_v55 }
 0x97e   : > { %v7693_v21 = vmax.f32 %v7636_v63, 0.0 }
 0x97f   : > { %v7549_v6 = vpop.f32.mrf.mxu0 }
 0x980   : > { %v7594_v7 = vpack.c.bf16 %v7549_v6, %v7549_v6 }
 0x982   : > { %v7617_v8 = vunpack.c.l.bf16 %v7594_v7 }
 0x984   : > { %v7637_v49 = vadd.f32 %v13518_v0, %v7617_v8 }
 0x986   : > { %v7694_v30 = vmax.f32 %v7637_v49, 0.0 }
 0x987   : > { %v7552_v60 = vpop.f32.mrf.mxu0 }
 0x988   : > { %v7711_v48 = vpack.c.bf16 %v7694_v30, %v7693_v21  ;;  %v7595_v18 = vpack.c.bf16 %v7552_v60, %v7552_v60 }
 0x98a   : > { %7801 = vmatmul.bf16.gmra.mxu1 %v7711_v48  ;;  %v7618_v53 = vunpack.c.l.bf16 %v7595_v18 }
 0x98c   : > { %v7638_v35 = vadd.f32 %v13518_v0, %v7618_v53 }
 0x98e   : > { %v7695_v61 = vmax.f32 %v7638_v35, 0.0 }
 0x98f   : > { %v7554_v40 = vpop.f32.mrf.mxu0 }
 0x990   : > { %v7596_v62 = vpack.c.bf16 %v7554_v40, %v7554_v40 }
 0x992   : > { %v7619_v42 = vunpack.c.l.bf16 %v7596_v62 }
 0x994   : > { %v7639_v46 = vadd.f32 %v13518_v0, %v7619_v42 }
 0x996   : > { %v7696_v5 = vmax.f32 %v7639_v46, 0.0 }
 0x997   : > { %v7557_v51 = vpop.f32.mrf.mxu0 }
 0x998   : > { %v7712_v44 = vpack.c.bf16 %v7696_v5, %v7695_v61  ;;  %v7597_v33 = vpack.c.bf16 %v7557_v51, %v7557_v51 }
 0x99a   : > { %7806 = vmatmul.bf16.gmra.mxu1 %v7712_v44  ;;  %v7620_v25 = vunpack.c.l.bf16 %v7597_v33  ;;  %v13542_v44 = vld [vmem:[%s13609_s16] ss:$0 sm:$0xff] }
 0x99c   : > { %v7640_v2 = vadd.f32 %v13518_v0, %v7620_v25 }
 0x99e   : > { %v7697_v11 = vmax.f32 %v7640_v2, 0.0 }
 0x99f   : > { %v7559_v31 = vpop.f32.mrf.mxu0 }
 0x9a0   : > { %v7598_v39 = vpack.c.bf16 %v7559_v31, %v7559_v31 }
 0x9a2   : > { %v7621_v10 = vunpack.c.l.bf16 %v7598_v39 }
 0x9a4   : > { %v7641_v20 = vadd.f32 %v13518_v0, %v7621_v10 }
 0x9a6   : > { %v7698_v24 = vmax.f32 %v7641_v20, 0.0 }
 0x9a7   : > { %v7562_v59 = vpop.f32.mrf.mxu0 }
 0x9a8   : > { %v7713_v9 = vpack.c.bf16 %v7698_v24, %v7697_v11  ;;  %v7599_v43 = vpack.c.bf16 %v7562_v59, %v7562_v59 }
 0x9aa   : > { %7811 = vmatmul.bf16.gmra.mxu1 %v7713_v9  ;;  %v7622_v58 = vunpack.c.l.bf16 %v7599_v43 }
 0x9ac   : > { %v7642_v56 = vadd.f32 %v13518_v0, %v7622_v58 }
 0x9ae   : > { %v7699_v29 = vmax.f32 %v7642_v56, 0.0 }
 0x9af   : > { %v7564_v57 = vpop.f32.mrf.mxu0 }
 0x9b0   : > { %v7600_v19 = vpack.c.bf16 %v7564_v57, %v7564_v57 }
 0x9b2   : > { %v7623_v28 = vunpack.c.l.bf16 %v7600_v19 }
 0x9b4   : > { %v7643_v52 = vadd.f32 %v13518_v0, %v7623_v28 }
 0x9b6   : > { %v7700_v17 = vmax.f32 %v7643_v52, 0.0 }
 0x9b7   : > { %v7567_v47 = vpop.f32.mrf.mxu0 }
 0x9b8   : > { %v7714_v41 = vpack.c.bf16 %v7700_v17, %v7699_v29  ;;  %v7601_v36 = vpack.c.bf16 %v7567_v47, %v7567_v47 }
 0x9ba   : > { %7816 = vmatmul.bf16.gmra.mxu1 %v7714_v41  ;;  %v7624_v13 = vunpack.c.l.bf16 %v7601_v36 }
 0x9bc   : > { %v7644_v26 = vadd.f32 %v13518_v0, %v7624_v13 }
 0x9be   : > { %v7701_v12 = vmax.f32 %v7644_v26, 0.0 }
 0x9bf   : > { %v7569_v22 = vpop.f32.mrf.mxu0 }
 0x9c0   : > { %v7602_v3 = vpack.c.bf16 %v7569_v22, %v7569_v22 }
 0x9c2   : > { %v7625_v15 = vunpack.c.l.bf16 %v7602_v3 }
 0x9c4   : > { %v7645_v16 = vadd.f32 %v13518_v0, %v7625_v15 }
 0x9c6   : > { %v7702_v50 = vmax.f32 %v7645_v16, 0.0 }
 0x9c7   : > { %v7572_v37 = vpop.f32.mrf.mxu0 }
 0x9c8   : > { %v7715_v4 = vpack.c.bf16 %v7702_v50, %v7701_v12  ;;  %v7603_v34 = vpack.c.bf16 %v7572_v37, %v7572_v37 }
 0x9ca   : > { %7821 = vmatmul.bf16.gmra.mxu1 %v7715_v4  ;;  %v7626_v14 = vunpack.c.l.bf16 %v7603_v34 }
 0x9cc   : > { %v7646_v54 = vadd.f32 %v13518_v0, %v7626_v14 }
 0x9ce   : > { %v7703_v23 = vmax.f32 %v7646_v54, 0.0 }
 0x9cf   : > { %v7574_v27 = vpop.f32.mrf.mxu0 }
 0x9d0   : > { %v7604_v45 = vpack.c.bf16 %v7574_v27, %v7574_v27 }
 0x9d2   : > { %v7627_v38 = vunpack.c.l.bf16 %v7604_v45 }
 0x9d4   : > { %v7647_v1 = vadd.f32 %v13518_v0, %v7627_v38 }
 0x9d6   : > { %v7704_v32 = vmax.f32 %v7647_v1, 0.0 }
 0x9d7   : > { %v7577_v55 = vpop.f32.mrf.mxu0 }
 0x9d8   : > { %v7716_v6 = vpack.c.bf16 %v7704_v32, %v7703_v23  ;;  %v7605_v7 = vpack.c.bf16 %v7577_v55, %v7577_v55 }
 0x9da   : > { %7826 = vmatmul.bf16.gmra.mxu1 %v7716_v6  ;;  %v7628_v63 = vunpack.c.l.bf16 %v7605_v7 }
 0x9dc   : > { %v7648_v21 = vadd.f32 %v13518_v0, %v7628_v63 }
 0x9de   : > { %v7705_v48 = vmax.f32 %v7648_v21, 0.0 }
 0x9df   : > { %v7579_v8 = vpop.f32.mrf.mxu0 }
 0x9e0   : > { %v7606_v49 = vpack.c.bf16 %v7579_v8, %v7579_v8 }
 0x9e2   : > { %v7629_v30 = vunpack.c.l.bf16 %v7606_v49 }
 0x9e4   : > { %v7649_v60 = vadd.f32 %v13518_v0, %v7629_v30 }
 0x9e6   : > { %v7706_v18 = vmax.f32 %v7649_v60, 0.0 }
 0x9e7   : > { %v7582_v53 = vpop.f32.mrf.mxu0 }
 0x9e8   : > { %v7717_v40 = vpack.c.bf16 %v7706_v18, %v7705_v48  ;;  %v7607_v62 = vpack.c.bf16 %v7582_v53, %v7582_v53 }
 0x9ea   : > { %7831 = vmatmul.bf16.gmra.mxu1 %v7717_v40  ;;  %v7630_v35 = vunpack.c.l.bf16 %v7607_v62 }
 0x9ec   : > { %v7650_v61 = vadd.f32 %v13518_v0, %v7630_v35 }
 0x9ee   : > { %v7707_v33 = vmax.f32 %v7650_v61, 0.0 }
 0x9ef   : > { %v7584_v42 = vpop.f32.mrf.mxu0 }
 0x9f0   : > { %v7608_v46 = vpack.c.bf16 %v7584_v42, %v7584_v42 }
 0x9f2   : > { %v7631_v5 = vunpack.c.l.bf16 %v7608_v46 }
 0x9f4   : > { %v7651_v51 = vadd.f32 %v13518_v0, %v7631_v5 }
 0x9f6   : > { %v7708_v25 = vmax.f32 %v7651_v51, 0.0 }
 0x9f7   : > { %v7587_v31 = vpop.f32.mrf.mxu0  ;;  %v7797_v39 = vpop.f32.mrf.mxu1 }
 0x9f8   : > { %v7609_v2 = vpack.c.bf16 %v7587_v31, %v7587_v31  ;;  %v7798_v10 = vadd.f32 %v13542_v44, %v7797_v39  ;;  %v7718_v20 = vpack.c.bf16 %v7708_v25, %v7707_v33 }
 0x9fa   : > { %7846 = vst [vmem:[%s13549_s28] sm:$0xff] %v7798_v10  ;;  %7836 = vmatmul.bf16.gmra.mxu1 %v7718_v20  ;;  %v7632_v11 = vunpack.c.l.bf16 %v7609_v2 }
 0x9fc   : > { %v7652_v9 = vadd.f32 %v13518_v0, %v7632_v11 }
 0x9fe   : > { %v7709_v58 = vmax.f32 %v7652_v9, 0.0 }
 0x9ff   : > { %v7589_v24 = vpop.f32.mrf.mxu0  ;;  %v7799_v59 = vpop.f32.mrf.mxu1 }
 0xa00   : > { %v7800_v43 = vadd.f32 %v13542_v44, %v7799_v59  ;;  %v7719_v56 = vpack.c.bf16 %v7709_v58, %v7709_v58 }
 0xa02   : > { %7847 = vst [vmem:[%s13549_s28 + $0x8] sm:$0xff] %v7800_v43 }
 0xa07   : > { %v7802_v57 = vpop.f32.mrf.mxu1 }
 0xa08   : > { %v7803_v19 = vadd.f32 %v13542_v44, %v7802_v57 }
 0xa0a   : > { %7848 = vst [vmem:[%s13549_s28 + $0x10] sm:$0xff] %v7803_v19  ;;  %7841 = vmatmul.bf16.gmra.mxu1 %v7719_v56 }
 0xa0f   : > { %v7804_v28 = vpop.f32.mrf.mxu1 }
 0xa10   : > { %v7805_v52 = vadd.f32 %v13542_v44, %v7804_v28 }
 0xa12   : > { %7849 = vst [vmem:[%s13549_s28 + $0x18] sm:$0xff] %v7805_v52 }
 0xa17   : > { %v7807_v29 = vpop.f32.mrf.mxu1 }
 0xa18   : > { %v7808_v0 = vadd.f32 %v13542_v44, %v7807_v29 }
 0xa1a   : > { %7850 = vst [vmem:[%s13549_s28 + $0x20] sm:$0xff] %v7808_v0 }
 0xa1f   : > { %v7809_v17 = vpop.f32.mrf.mxu1 }
 0xa20   : > { %v7810_v47 = vadd.f32 %v13542_v44, %v7809_v17 }
 0xa22   : > { %7851 = vst [vmem:[%s13549_s28 + $0x28] sm:$0xff] %v7810_v47 }
 0xa27   : > { %v7812_v41 = vpop.f32.mrf.mxu1 }
 0xa28   : > { %v7813_v36 = vadd.f32 %v13542_v44, %v7812_v41 }
 0xa2a   : > { %7852 = vst [vmem:[%s13549_s28 + $0x30] sm:$0xff] %v7813_v36 }
 0xa2f   : > { %v7814_v13 = vpop.f32.mrf.mxu1 }
 0xa30   : > { %v7815_v22 = vadd.f32 %v13542_v44, %v7814_v13 }
 0xa32   : > { %7853 = vst [vmem:[%s13549_s28 + $0x38] sm:$0xff] %v7815_v22 }
 0xa37   : > { %v7817_v3 = vpop.f32.mrf.mxu1 }
 0xa38   : > { %v7818_v26 = vadd.f32 %v13542_v44, %v7817_v3 }
 0xa3a   : > { %7854 = vst [vmem:[%s13549_s28 + $0x40] sm:$0xff] %v7818_v26 }
 0xa3f   : > { %v7819_v15 = vpop.f32.mrf.mxu1 }
 0xa40   : > { %v7820_v16 = vadd.f32 %v13542_v44, %v7819_v15 }
 0xa42   : > { %7855 = vst [vmem:[%s13549_s28 + $0x48] sm:$0xff] %v7820_v16 }
 0xa47   : > { %v7822_v12 = vpop.f32.mrf.mxu1 }
 0xa48   : > { %v7823_v50 = vadd.f32 %v13542_v44, %v7822_v12 }
 0xa4a   : > { %7856 = vst [vmem:[%s13549_s28 + $0x50] sm:$0xff] %v7823_v50 }
 0xa4f   : > { %v7824_v37 = vpop.f32.mrf.mxu1 }
 0xa50   : > { %v7825_v4 = vadd.f32 %v13542_v44, %v7824_v37 }
 0xa52   : > { %7857 = vst [vmem:[%s13549_s28 + $0x58] sm:$0xff] %v7825_v4 }
 0xa57   : > { %v7827_v34 = vpop.f32.mrf.mxu1 }
 0xa58   : > { %v7828_v14 = vadd.f32 %v13542_v44, %v7827_v34 }
 0xa5a   : > { %7858 = vst [vmem:[%s13549_s28 + $0x60] sm:$0xff] %v7828_v14 }
 0xa5f   : > { %v7829_v27 = vpop.f32.mrf.mxu1 }
 0xa60   : > { %v7830_v45 = vadd.f32 %v13542_v44, %v7829_v27 }
 0xa62   : > { %7859 = vst [vmem:[%s13549_s28 + $0x68] sm:$0xff] %v7830_v45 }
 0xa67   : > { %v7832_v54 = vpop.f32.mrf.mxu1 }
 0xa68   : > { %v7833_v38 = vadd.f32 %v13542_v44, %v7832_v54 }
 0xa6a   : > { %7860 = vst [vmem:[%s13549_s28 + $0x70] sm:$0xff] %v7833_v38 }
 0xa6f   : > { %v7834_v1 = vpop.f32.mrf.mxu1 }
 0xa70   : > { %v7835_v23 = vadd.f32 %v13542_v44, %v7834_v1 }
 0xa72   : > { %7861 = vst [vmem:[%s13549_s28 + $0x78] sm:$0xff] %v7835_v23 }
 0xa77   : > { %v7837_v32 = vpop.f32.mrf.mxu1 }
 0xa78   : > { %v7838_v55 = vadd.f32 %v13542_v44, %v7837_v32 }
 0xa7a   : > { %7862 = vst [vmem:[%s13549_s28 + $0x80] sm:$0xff] %v7838_v55 }
 0xa7f   : > { %v7839_v6 = vpop.f32.mrf.mxu1 }
 0xa80   : > { %v7840_v7 = vadd.f32 %v13542_v44, %v7839_v6 }
 0xa82   : > { %7863 = vst [vmem:[%s13549_s28 + $0x88] sm:$0xff] %v7840_v7 }
 0xa87   : > { %v7842_v63 = vpop.f32.mrf.mxu1 }
 0xa88   : > { %v7843_v8 = vadd.f32 %v13542_v44, %v7842_v63 }
 0xa8a   : > { %7864 = vst [vmem:[%s13549_s28 + $0x90] sm:$0xff] %v7843_v8 }
 0xa8f   : > { %v7844_v49 = vpop.f32.mrf.mxu1 }
 0xa90 PF: > { %s29_s24 = sadd.s32 1, %s9941_s24  }
 0xa91   : > { %p26_p7 = scmp.ge.s32.totalorder %s29_s24, 4  }
 0xa93   :  { %28 = sbr.rel (!%p26_p7) target bundleno = 5 (0x5), region = 127 }
 0xa98   :  { %7887 = vsyncpa [#allocation3], 1 }
 0xa99   :  { %7889 = vsyncpa [#allocation3 + $0x1], 1 }
 0xa9a   :  { %7890 = vsyncpa [#allocation5], 1 }

</bundles_post_ra>
